<compile_context>
chip_gen: v5e
topology: v5e:2x2
jax: 0.10.0
libtpu: 0.0.40
codegen_flags: <defaults>
</compile_context>

<pallas_src>
import jax
import jax.numpy as jnp
from jax import lax
from jax.experimental import pallas as pl
from jax.experimental.pallas import tpu as pltpu


def basic_block_kernel(x_ref, w1_ref, w2_ref, b1_ref, b2_ref, out_ref, pbuf):
    """Fused conv3x3 -> bn1 -> relu -> conv3x3 -> bn2 -> (+residual) -> relu.

    x_ref  : (N, H, W, C)       bf16, unpadded NHWC activations (whole batch)
    w1_ref : (9*C,    Cmid)     bf16, im2col conv1 weight, bn1 scale folded in
    w2_ref : (9*Cmid, Cmid)     bf16, im2col conv2 weight, bn2 scale folded in
    b1_ref, b2_ref: (1, Cmid)   f32, folded bn shifts
    out_ref: (N, Cmid, H*W)     f32, NCHW-ordered, lane-dense last dim
    pbuf   : (N, H+2, W+2, C)   f32 VMEM scratch: zero-bordered halo buffer
    """
    N, H, W, C = x_ref.shape
    Cmid = w1_ref.shape[1]
    M = N * H * W
    HW = H * W

    # Zero the halo scratch exactly ONCE (single fused grid step). Only the 1-px
    # border has to stay zero; the interior is fully overwritten before each conv,
    # so there is no per-step re-zeroing and the same buffer serves both convs.
    pbuf[...] = jnp.zeros_like(pbuf)

    def conv3x3(w_ref, cin):
        # im2col: the 9 shifted taps are concatenated along lanes and fed to a
        # single MXU matmul with K = 9*cin and M = N*H*W.
        xp = pbuf[...]                                          # (N, H+2, W+2, cin)
        cols = [xp[:, kh:kh + H, kw:kw + W, :].reshape(M, cin)
                for kh in range(3) for kw in range(3)]
        col = jnp.concatenate(cols, axis=-1).astype(jnp.bfloat16)   # (M, 9*cin)
        return jnp.dot(col, w_ref[...], preferred_element_type=jnp.float32)

    # ---- conv1 (bn1 scale pre-folded into w1) + shift + relu ----
    pbuf[:, 1:H + 1, 1:W + 1, :] = x_ref[...].astype(jnp.float32)
    y1 = jnp.maximum(conv3x3(w1_ref, C) + b1_ref[...], 0.0)    # (M, Cmid) f32

    # ---- conv2 (bn2 scale pre-folded into w2): reuse the zero-bordered scratch ----
    pbuf[:, 1:H + 1, 1:W + 1, :] = y1.reshape(N, H, W, Cmid)
    y2 = conv3x3(w2_ref, Cmid) + b2_ref[...]

    # ---- residual add (identity path: stride=1, downsample=None) + relu ----
    res = x_ref[...].reshape(M, C).astype(jnp.float32)
    out = jnp.maximum(y2 + res, 0.0)                           # (M, Cmid) f32

    # ---- lane-dense, NCHW-ordered writeback ----
    # Pad channels up to a 128 multiple, do a tile-aligned (M,128)->(128,M)
    # transpose on the XLU, then store (Cmid, H*W) slabs: the stored last dim is
    # H*W (a multiple of 128 -> unmasked vst) and the layout is already NCHW, so
    # the wrapper needs no output transpose.
    Cpad = pl.cdiv(Cmid, 128) * 128
    if Cpad > Cmid:
        out = jnp.concatenate(
            [out, jnp.zeros((M, Cpad - Cmid), jnp.float32)], axis=-1)
    out_t = out.T                                              # (Cpad, M)
    for n in range(N):
        out_ref[n] = out_t[:Cmid, n * HW:(n + 1) * HW]


def _fold_bn(gamma, beta, mean, var, eps):
    scale = (gamma / jnp.sqrt(var + eps)).astype(jnp.float32)  # (C,)
    shift = (beta - mean * scale).astype(jnp.float32)          # (C,)
    return scale, shift


def basic_block_pallas(x_nchw, w1_oihw, w2_oihw, bn1_params, bn2_params, eps=1e-5):
    N, C, H, W = x_nchw.shape
    Cmid = w1_oihw.shape[0]
    # Identity residual path only (BasicBlock defaults: stride=1, downsample=None).
    assert Cmid == C, "BasicBlock with downsample=None requires planes == inplanes"

    # NCHW -> NHWC once at the block boundary; cast activations to bf16 (halves the
    # input DMA, bf16-native MXU). In a full network you would keep NHWC + bf16
    # end-to-end so this transpose/cast leaves the hot path; the output side is
    # already emitted in NCHW order by the kernel.
    x_nhwc = jnp.transpose(x_nchw, (0, 2, 3, 1)).astype(jnp.bfloat16)

    # Fold the (eval-mode) BatchNorm scale into the conv weights once at trace
    # time; only the per-channel shift is applied inside the kernel.
    s1, b1 = _fold_bn(*bn1_params, eps)
    s2, b2 = _fold_bn(*bn2_params, eps)
    w1_mat = (jnp.transpose(w1_oihw, (2, 3, 1, 0)).astype(jnp.float32) * s1
              ).reshape(9 * C, Cmid).astype(jnp.bfloat16)      # (9*C, Cmid)
    w2_mat = (jnp.transpose(w2_oihw, (2, 3, 1, 0)).astype(jnp.float32) * s2
              ).reshape(9 * Cmid, Cmid).astype(jnp.bfloat16)   # (9*Cmid, Cmid)
    b1 = b1.reshape(1, Cmid)
    b2 = b2.reshape(1, Cmid)

    out_flat = pl.pallas_call(
        basic_block_kernel,
        out_shape=jax.ShapeDtypeStruct((N, Cmid, H * W), jnp.float32),
        grid_spec=pltpu.PrefetchScalarGridSpec(
            num_scalar_prefetch=0,
            grid=(1,),  # whole batch fused into one step (M = N*H*W)
            in_specs=[
                pl.BlockSpec((N, H, W, C), lambda i: (0, 0, 0, 0)),
                pl.BlockSpec((9 * C, Cmid), lambda i: (0, 0)),
                pl.BlockSpec((9 * Cmid, Cmid), lambda i: (0, 0)),
                pl.BlockSpec((1, Cmid), lambda i: (0, 0)),
                pl.BlockSpec((1, Cmid), lambda i: (0, 0)),
            ],
            out_specs=pl.BlockSpec((N, Cmid, H * W), lambda i: (0, 0, 0)),
            scratch_shapes=[pltpu.VMEM((N, H + 2, W + 2, C), jnp.float32)],
        ),
        compiler_params=pltpu.CompilerParams(
            dimension_semantics=("parallel",)),
    )(x_nhwc, w1_mat, w2_mat, b1, b2)

    # Kernel output is already NCHW-ordered: (N, C, H*W) -> (N, C, H, W).
    return out_flat.reshape(N, Cmid, H, W)


def basic_block_reference(x_nchw, w1, w2, bn1_params, bn2_params, eps=1e-5):
    """Pure-JAX f32 reference matching the PyTorch forward (eval-mode BN)."""
    dn = lax.conv_dimension_numbers(x_nchw.shape, w1.shape,
                                    ('NCHW', 'OIHW', 'NCHW'))

    def conv(x, w):
        return lax.conv_general_dilated(x, w, (1, 1), ((1, 1), (1, 1)),
                                        dimension_numbers=dn)

    def bn(x, params):
        gamma, beta, mean, var = params
        g = gamma.reshape(1, -1, 1, 1)
        b = beta.reshape(1, -1, 1, 1)
        m = mean.reshape(1, -1, 1, 1)
        v = var.reshape(1, -1, 1, 1)
        return (x - m) / jnp.sqrt(v + eps) * g + b

    out = jax.nn.relu(bn(conv(x_nchw, w1), bn1_params))
    out = bn(conv(out, w2), bn2_params)
    return jax.nn.relu(out + x_nchw)


if __name__ == "__main__":
    key = jax.random.PRNGKey(0)
    kx, kw1, kw2, kg1, kb1, km1, kv1, kg2, kb2, km2, kv2 = jax.random.split(key, 11)

    N, C, H, W = 2, 4, 16, 16   # inplanes = planes = 4, stride = 1
    planes = C

    x = jax.random.normal(kx, (N, C, H, W), dtype=jnp.float32)

    # conv weights (torch OIHW layout), deterministic synthetic init
    w1 = jax.random.normal(kw1, (planes, C, 3, 3), dtype=jnp.float32) * 0.1
    w2 = jax.random.normal(kw2, (planes, planes, 3, 3), dtype=jnp.float32) * 0.1

    # BatchNorm params (gamma, beta, running_mean, running_var), eval mode
    bn1_params = (
        1.0 + 0.1 * jax.random.normal(kg1, (planes,), dtype=jnp.float32),
        0.1 * jax.random.normal(kb1, (planes,), dtype=jnp.float32),
        0.1 * jax.random.normal(km1, (planes,), dtype=jnp.float32),
        jax.random.uniform(kv1, (planes,), minval=0.5, maxval=1.5, dtype=jnp.float32),
    )
    bn2_params = (
        1.0 + 0.1 * jax.random.normal(kg2, (planes,), dtype=jnp.float32),
        0.1 * jax.random.normal(kb2, (planes,), dtype=jnp.float32),
        0.1 * jax.random.normal(km2, (planes,), dtype=jnp.float32),
        jax.random.uniform(kv2, (planes,), minval=0.5, maxval=1.5, dtype=jnp.float32),
    )

    out = basic_block_pallas(x, w1, w2, bn1_params, bn2_params)
    out = jax.block_until_ready(out)

    ref = basic_block_reference(x, w1, w2, bn1_params, bn2_params)
    ref = jax.block_until_ready(ref)

    assert out.shape == (N, C, H, W)
    # Tolerance loosened vs. the f32 reference because the kernel feeds the MXU
    # with bf16 activations/weights (f32 accumulation), per the perf review.
    assert jnp.allclose(out, ref, rtol=5e-2, atol=5e-2), (
        f"max abs err = {jnp.max(jnp.abs(out - ref))}")

    print("KERNEL_OK")
</pallas_src>

<mosaic_0001>
module attributes {stable_mosaic.version = 11 : i64} {
  func.func @basic_block_kernel(%arg0: i32, %arg1: memref<2x16x16x4xbf16, #tpu.memory_space<vmem>>, %arg2: memref<36x4xbf16, #tpu.memory_space<vmem>>, %arg3: memref<36x4xbf16, #tpu.memory_space<vmem>>, %arg4: memref<1x4xf32, #tpu.memory_space<vmem>>, %arg5: memref<1x4xf32, #tpu.memory_space<vmem>>, %arg6: memref<2x4x256xf32, #tpu.memory_space<vmem>>, %arg7: memref<2x18x18x4xf32, #tpu.memory_space<vmem>>) attributes {dimension_semantics = [#tpu.dimension_semantics<parallel>], iteration_bounds = array<i64: 1>, scalar_prefetch = 0 : i64, scratch_operands = 1 : i64, tpu.core_type = #tpu.core_type<tc>, window_params = [{pipeline_mode = #tpu.pipeline_mode<synchronous>, transform_indices = @transform_0, window_bounds = array<i64: 2, 16, 16, 4>}, {pipeline_mode = #tpu.pipeline_mode<synchronous>, transform_indices = @transform_1, window_bounds = array<i64: 36, 4>}, {pipeline_mode = #tpu.pipeline_mode<synchronous>, transform_indices = @transform_2, window_bounds = array<i64: 36, 4>}, {pipeline_mode = #tpu.pipeline_mode<synchronous>, transform_indices = @transform_3, window_bounds = array<i64: 1, 4>}, {pipeline_mode = #tpu.pipeline_mode<synchronous>, transform_indices = @transform_4, window_bounds = array<i64: 1, 4>}, {pipeline_mode = #tpu.pipeline_mode<synchronous>, transform_indices = @transform_5, window_bounds = array<i64: 2, 4, 256>}]} {
    %cst = arith.constant 0.000000e+00 : f32
    %0 = vector.broadcast %cst : f32 to vector<2x18x18x4xf32>
    %c0 = arith.constant 0 : index
    %c0_0 = arith.constant 0 : index
    %c0_1 = arith.constant 0 : index
    %c0_2 = arith.constant 0 : index
    %1 = vector.load %arg7[%c0, %c0_0, %c0_1, %c0_2] : memref<2x18x18x4xf32, #tpu.memory_space<vmem>>, vector<2x18x18x4xf32>
    tpu.vector_store %arg7[%c0, %c0_0, %c0_1, %c0_2], %0 {strides = array<i32>} : memref<2x18x18x4xf32, #tpu.memory_space<vmem>>, vector<2x18x18x4xf32>,
    %c0_3 = arith.constant 0 : index
    %c0_4 = arith.constant 0 : index
    %c0_5 = arith.constant 0 : index
    %c0_6 = arith.constant 0 : index
    %2 = vector.load %arg1[%c0_3, %c0_4, %c0_5, %c0_6] : memref<2x16x16x4xbf16, #tpu.memory_space<vmem>>, vector<2x16x16x4xbf16>
    %3 = arith.extf %2 : vector<2x16x16x4xbf16> to vector<2x16x16x4xf32>
    %c0_7 = arith.constant 0 : index
    %c1 = arith.constant 1 : index
    %c1_8 = arith.constant 1 : index
    %c0_9 = arith.constant 0 : index
    %4 = vector.load %arg7[%c0_7, %c1, %c1_8, %c0_9] : memref<2x18x18x4xf32, #tpu.memory_space<vmem>>, vector<2x16x16x4xf32>
    tpu.vector_store %arg7[%c0_7, %c1, %c1_8, %c0_9], %3 {strides = array<i32>} : memref<2x18x18x4xf32, #tpu.memory_space<vmem>>, vector<2x16x16x4xf32>,
    %c0_10 = arith.constant 0 : index
    %c0_11 = arith.constant 0 : index
    %c0_12 = arith.constant 0 : index
    %c0_13 = arith.constant 0 : index
    %5 = vector.load %arg7[%c0_10, %c0_11, %c0_12, %c0_13] : memref<2x18x18x4xf32, #tpu.memory_space<vmem>>, vector<2x18x18x4xf32>
    %6 = vector.extract_strided_slice %5 {offsets = [0, 0, 0, 0], sizes = [2, 16, 16, 4], strides = [1, 1, 1, 1]} : vector<2x18x18x4xf32> to vector<2x16x16x4xf32>
    %7 = vector.shape_cast %6 : vector<2x16x16x4xf32> to vector<512x4xf32>
    %8 = vector.extract_strided_slice %5 {offsets = [0, 0, 1, 0], sizes = [2, 16, 16, 4], strides = [1, 1, 1, 1]} : vector<2x18x18x4xf32> to vector<2x16x16x4xf32>
    %9 = vector.shape_cast %8 : vector<2x16x16x4xf32> to vector<512x4xf32>
    %10 = vector.extract_strided_slice %5 {offsets = [0, 0, 2, 0], sizes = [2, 16, 16, 4], strides = [1, 1, 1, 1]} : vector<2x18x18x4xf32> to vector<2x16x16x4xf32>
    %11 = vector.shape_cast %10 : vector<2x16x16x4xf32> to vector<512x4xf32>
    %12 = vector.extract_strided_slice %5 {offsets = [0, 1, 0, 0], sizes = [2, 16, 16, 4], strides = [1, 1, 1, 1]} : vector<2x18x18x4xf32> to vector<2x16x16x4xf32>
    %13 = vector.shape_cast %12 : vector<2x16x16x4xf32> to vector<512x4xf32>
    %14 = vector.extract_strided_slice %5 {offsets = [0, 1, 1, 0], sizes = [2, 16, 16, 4], strides = [1, 1, 1, 1]} : vector<2x18x18x4xf32> to vector<2x16x16x4xf32>
    %15 = vector.shape_cast %14 : vector<2x16x16x4xf32> to vector<512x4xf32>
    %16 = vector.extract_strided_slice %5 {offsets = [0, 1, 2, 0], sizes = [2, 16, 16, 4], strides = [1, 1, 1, 1]} : vector<2x18x18x4xf32> to vector<2x16x16x4xf32>
    %17 = vector.shape_cast %16 : vector<2x16x16x4xf32> to vector<512x4xf32>
    %18 = vector.extract_strided_slice %5 {offsets = [0, 2, 0, 0], sizes = [2, 16, 16, 4], strides = [1, 1, 1, 1]} : vector<2x18x18x4xf32> to vector<2x16x16x4xf32>
    %19 = vector.shape_cast %18 : vector<2x16x16x4xf32> to vector<512x4xf32>
    %20 = vector.extract_strided_slice %5 {offsets = [0, 2, 1, 0], sizes = [2, 16, 16, 4], strides = [1, 1, 1, 1]} : vector<2x18x18x4xf32> to vector<2x16x16x4xf32>
    %21 = vector.shape_cast %20 : vector<2x16x16x4xf32> to vector<512x4xf32>
    %22 = vector.extract_strided_slice %5 {offsets = [0, 2, 2, 0], sizes = [2, 16, 16, 4], strides = [1, 1, 1, 1]} : vector<2x18x18x4xf32> to vector<2x16x16x4xf32>
    %23 = vector.shape_cast %22 : vector<2x16x16x4xf32> to vector<512x4xf32>
    %24 = tpu.concatenate %7, %9, %11, %13, %15, %17, %19, %21, %23 in 1 : vector<512x4xf32>, vector<512x4xf32>, vector<512x4xf32>, vector<512x4xf32>, vector<512x4xf32>, vector<512x4xf32>, vector<512x4xf32>, vector<512x4xf32>, vector<512x4xf32> -> vector<512x36xf32>
    %25 = arith.truncf %24 : vector<512x36xf32> to vector<512x36xbf16>
    %c0_14 = arith.constant 0 : index
    %c0_15 = arith.constant 0 : index
    %26 = vector.load %arg2[%c0_14, %c0_15] : memref<36x4xbf16, #tpu.memory_space<vmem>>, vector<36x4xbf16>
    %cst_16 = arith.constant dense<0.000000e+00> : vector<512x4xf32>
    %27 = tpu.matmul %25, %26, %cst_16 {dimension_numbers = #tpu.dot_dimension_numbers<[1], [0], [0], [1], [0, 0, 1, 1], [], []>} : vector<512x36xbf16>, vector<36x4xbf16>, vector<512x4xf32> -> vector<512x4xf32>
    %c0_17 = arith.constant 0 : index
    %c0_18 = arith.constant 0 : index
    %28 = vector.load %arg4[%c0_17, %c0_18] : memref<1x4xf32, #tpu.memory_space<vmem>>, vector<1x4xf32>
    %29 = vector.broadcast %28 : vector<1x4xf32> to vector<512x4xf32>
    %30 = arith.addf %27, %29 : vector<512x4xf32>
    %cst_19 = arith.constant 0.000000e+00 : f32
    %31 = vector.broadcast %cst_19 : f32 to vector<512x4xf32>
    %32 = arith.maximumf %30, %31 : vector<512x4xf32>
    %33 = vector.shape_cast %32 : vector<512x4xf32> to vector<2x16x16x4xf32>
    %c0_20 = arith.constant 0 : index
    %c1_21 = arith.constant 1 : index
    %c1_22 = arith.constant 1 : index
    %c0_23 = arith.constant 0 : index
    %34 = vector.load %arg7[%c0_20, %c1_21, %c1_22, %c0_23] : memref<2x18x18x4xf32, #tpu.memory_space<vmem>>, vector<2x16x16x4xf32>
    tpu.vector_store %arg7[%c0_20, %c1_21, %c1_22, %c0_23], %33 {strides = array<i32>} : memref<2x18x18x4xf32, #tpu.memory_space<vmem>>, vector<2x16x16x4xf32>,
    %c0_24 = arith.constant 0 : index
    %c0_25 = arith.constant 0 : index
    %c0_26 = arith.constant 0 : index
    %c0_27 = arith.constant 0 : index
    %35 = vector.load %arg7[%c0_24, %c0_25, %c0_26, %c0_27] : memref<2x18x18x4xf32, #tpu.memory_space<vmem>>, vector<2x18x18x4xf32>
    %36 = vector.extract_strided_slice %35 {offsets = [0, 0, 0, 0], sizes = [2, 16, 16, 4], strides = [1, 1, 1, 1]} : vector<2x18x18x4xf32> to vector<2x16x16x4xf32>
    %37 = vector.shape_cast %36 : vector<2x16x16x4xf32> to vector<512x4xf32>
    %38 = vector.extract_strided_slice %35 {offsets = [0, 0, 1, 0], sizes = [2, 16, 16, 4], strides = [1, 1, 1, 1]} : vector<2x18x18x4xf32> to vector<2x16x16x4xf32>
    %39 = vector.shape_cast %38 : vector<2x16x16x4xf32> to vector<512x4xf32>
    %40 = vector.extract_strided_slice %35 {offsets = [0, 0, 2, 0], sizes = [2, 16, 16, 4], strides = [1, 1, 1, 1]} : vector<2x18x18x4xf32> to vector<2x16x16x4xf32>
    %41 = vector.shape_cast %40 : vector<2x16x16x4xf32> to vector<512x4xf32>
    %42 = vector.extract_strided_slice %35 {offsets = [0, 1, 0, 0], sizes = [2, 16, 16, 4], strides = [1, 1, 1, 1]} : vector<2x18x18x4xf32> to vector<2x16x16x4xf32>
    %43 = vector.shape_cast %42 : vector<2x16x16x4xf32> to vector<512x4xf32>
    %44 = vector.extract_strided_slice %35 {offsets = [0, 1, 1, 0], sizes = [2, 16, 16, 4], strides = [1, 1, 1, 1]} : vector<2x18x18x4xf32> to vector<2x16x16x4xf32>
    %45 = vector.shape_cast %44 : vector<2x16x16x4xf32> to vector<512x4xf32>
    %46 = vector.extract_strided_slice %35 {offsets = [0, 1, 2, 0], sizes = [2, 16, 16, 4], strides = [1, 1, 1, 1]} : vector<2x18x18x4xf32> to vector<2x16x16x4xf32>
    %47 = vector.shape_cast %46 : vector<2x16x16x4xf32> to vector<512x4xf32>
    %48 = vector.extract_strided_slice %35 {offsets = [0, 2, 0, 0], sizes = [2, 16, 16, 4], strides = [1, 1, 1, 1]} : vector<2x18x18x4xf32> to vector<2x16x16x4xf32>
    %49 = vector.shape_cast %48 : vector<2x16x16x4xf32> to vector<512x4xf32>
    %50 = vector.extract_strided_slice %35 {offsets = [0, 2, 1, 0], sizes = [2, 16, 16, 4], strides = [1, 1, 1, 1]} : vector<2x18x18x4xf32> to vector<2x16x16x4xf32>
    %51 = vector.shape_cast %50 : vector<2x16x16x4xf32> to vector<512x4xf32>
    %52 = vector.extract_strided_slice %35 {offsets = [0, 2, 2, 0], sizes = [2, 16, 16, 4], strides = [1, 1, 1, 1]} : vector<2x18x18x4xf32> to vector<2x16x16x4xf32>
    %53 = vector.shape_cast %52 : vector<2x16x16x4xf32> to vector<512x4xf32>
    %54 = tpu.concatenate %37, %39, %41, %43, %45, %47, %49, %51, %53 in 1 : vector<512x4xf32>, vector<512x4xf32>, vector<512x4xf32>, vector<512x4xf32>, vector<512x4xf32>, vector<512x4xf32>, vector<512x4xf32>, vector<512x4xf32>, vector<512x4xf32> -> vector<512x36xf32>
    %55 = arith.truncf %54 : vector<512x36xf32> to vector<512x36xbf16>
    %c0_28 = arith.constant 0 : index
    %c0_29 = arith.constant 0 : index
    %56 = vector.load %arg3[%c0_28, %c0_29] : memref<36x4xbf16, #tpu.memory_space<vmem>>, vector<36x4xbf16>
    %cst_30 = arith.constant dense<0.000000e+00> : vector<512x4xf32>
    %57 = tpu.matmul %55, %56, %cst_30 {dimension_numbers = #tpu.dot_dimension_numbers<[1], [0], [0], [1], [0, 0, 1, 1], [], []>} : vector<512x36xbf16>, vector<36x4xbf16>, vector<512x4xf32> -> vector<512x4xf32>
    %c0_31 = arith.constant 0 : index
    %c0_32 = arith.constant 0 : index
    %58 = vector.load %arg5[%c0_31, %c0_32] : memref<1x4xf32, #tpu.memory_space<vmem>>, vector<1x4xf32>
    %59 = vector.broadcast %58 : vector<1x4xf32> to vector<512x4xf32>
    %60 = arith.addf %57, %59 : vector<512x4xf32>
    %c0_33 = arith.constant 0 : index
    %c0_34 = arith.constant 0 : index
    %c0_35 = arith.constant 0 : index
    %c0_36 = arith.constant 0 : index
    %61 = vector.load %arg1[%c0_33, %c0_34, %c0_35, %c0_36] : memref<2x16x16x4xbf16, #tpu.memory_space<vmem>>, vector<2x16x16x4xbf16>
    %62 = vector.shape_cast %61 : vector<2x16x16x4xbf16> to vector<512x4xbf16>
    %63 = arith.extf %62 : vector<512x4xbf16> to vector<512x4xf32>
    %64 = arith.addf %60, %63 : vector<512x4xf32>
    %cst_37 = arith.constant 0.000000e+00 : f32
    %65 = vector.broadcast %cst_37 : f32 to vector<512x4xf32>
    %66 = arith.maximumf %64, %65 : vector<512x4xf32>
    %cst_38 = arith.constant 0.000000e+00 : f32
    %67 = vector.broadcast %cst_38 : f32 to vector<512x124xf32>
    %68 = tpu.concatenate %66, %67 in 1 : vector<512x4xf32>, vector<512x124xf32> -> vector<512x128xf32>
    %69 = tpu.transpose %68, [1, 0] : vector<512x128xf32> -> vector<128x512xf32>
    %70 = vector.extract_strided_slice %69 {offsets = [0, 0], sizes = [4, 256], strides = [1, 1]} : vector<128x512xf32> to vector<4x256xf32>
    %c0_39 = arith.constant 0 : index
    %c0_40 = arith.constant 0 : index
    %c0_41 = arith.constant 0 : index
    %71 = vector.load %arg6[%c0_39, %c0_40, %c0_41] : memref<2x4x256xf32, #tpu.memory_space<vmem>>, vector<1x4x256xf32>
    %72 = vector.shape_cast %71 : vector<1x4x256xf32> to vector<4x256xf32>
    %73 = vector.shape_cast %70 : vector<4x256xf32> to vector<1x4x256xf32>
    tpu.vector_store %arg6[%c0_39, %c0_40, %c0_41], %73 {strides = array<i32>} : memref<2x4x256xf32, #tpu.memory_space<vmem>>, vector<1x4x256xf32>,
    %74 = vector.extract_strided_slice %69 {offsets = [0, 256], sizes = [4, 256], strides = [1, 1]} : vector<128x512xf32> to vector<4x256xf32>
    %c1_42 = arith.constant 1 : index
    %c0_43 = arith.constant 0 : index
    %c0_44 = arith.constant 0 : index
    %75 = vector.load %arg6[%c1_42, %c0_43, %c0_44] : memref<2x4x256xf32, #tpu.memory_space<vmem>>, vector<1x4x256xf32>
    %76 = vector.shape_cast %75 : vector<1x4x256xf32> to vector<4x256xf32>
    %77 = vector.shape_cast %74 : vector<4x256xf32> to vector<1x4x256xf32>
    tpu.vector_store %arg6[%c1_42, %c0_43, %c0_44], %77 {strides = array<i32>} : memref<2x4x256xf32, #tpu.memory_space<vmem>>, vector<1x4x256xf32>,
    return
  }
  func.func @transform_0(%arg0: i32) -> (i32, i32, i32, i32) {
    %c0_i32 = arith.constant 0 : i32
    %c0_i32_0 = arith.constant 0 : i32
    %c0_i32_1 = arith.constant 0 : i32
    %c0_i32_2 = arith.constant 0 : i32
    %c0_i32_3 = arith.constant 0 : i32
    return %c0_i32, %c0_i32_0, %c0_i32_1, %c0_i32_2 : i32, i32, i32, i32
  }
  func.func @transform_1(%arg0: i32) -> (i32, i32) {
    %c0_i32 = arith.constant 0 : i32
    %c0_i32_0 = arith.constant 0 : i32
    %c0_i32_1 = arith.constant 0 : i32
    return %c0_i32, %c0_i32_0 : i32, i32
  }
  func.func @transform_2(%arg0: i32) -> (i32, i32) {
    %c0_i32 = arith.constant 0 : i32
    %c0_i32_0 = arith.constant 0 : i32
    %c0_i32_1 = arith.constant 0 : i32
    return %c0_i32, %c0_i32_0 : i32, i32
  }
  func.func @transform_3(%arg0: i32) -> (i32, i32) {
    %c0_i32 = arith.constant 0 : i32
    %c0_i32_0 = arith.constant 0 : i32
    %c0_i32_1 = arith.constant 0 : i32
    return %c0_i32, %c0_i32_0 : i32, i32
  }
  func.func @transform_4(%arg0: i32) -> (i32, i32) {
    %c0_i32 = arith.constant 0 : i32
    %c0_i32_0 = arith.constant 0 : i32
    %c0_i32_1 = arith.constant 0 : i32
    return %c0_i32, %c0_i32_0 : i32, i32
  }
  func.func @transform_5(%arg0: i32) -> (i32, i32, i32) {
    %c0_i32 = arith.constant 0 : i32
    %c0_i32_0 = arith.constant 0 : i32
    %c0_i32_1 = arith.constant 0 : i32
    %c0_i32_2 = arith.constant 0 : i32
    return %c0_i32, %c0_i32_0, %c0_i32_1 : i32, i32, i32
  }
}

</mosaic_0001>

<bundles_post_ra>
// kernel: tpu_custom_call.1
= control target key start
LH: loop header
LB: loop body
LE: loop exit
PB: predicated region body
PF: predicated region fallthrough
CT: control target
= control target key end

     0   :  { %vm22_vm0 = vcmask 31744   ;;  %vm25_vm1 = vcmask 25600   ;;  %v10020_v0 = vmov 0.0   ;;  %s17839_s0 = inlined_call_operand.vmem [shape: bf16[2,16,16,4], index: 0, kind: input, shape index: {}]   ;;  %s17840_s1 = inlined_call_operand.vmem [shape: bf16[36,4], index: 1, kind: input, shape index: {}]   ;;  %s17841_s2 = inlined_call_operand.vmem [shape: bf16[36,4], index: 2, kind: input, shape index: {}]   ;;  %s17842_s3 = inlined_call_operand.vmem [shape: f32[1,4], index: 3, kind: input, shape index: {}]   ;;  %s17843_s4 = inlined_call_operand.vmem [shape: f32[1,4], index: 4, kind: input, shape index: {}]   ;;  %s17844_s5 = inlined_call_operand.hbm [shape: f32[2,4,256], index: 5, kind: output, shape index: {}]  }
   0x1   :  { %23 = vst.msk [vmem:[#allocation2] sm:$0xff] %vm22_vm0, %v10020_v0 }
   0x2   :  { %24 = vst.msk [vmem:[#allocation2 + $0x8] sm:$0xff] %vm22_vm0, %v10020_v0 }
   0x3   :  { %10 = vsyncpa [#allocation4], 0  ;;  %26 = vst.msk [vmem:[#allocation2 + $0x10] sm:$0x3] %vm25_vm1, %v10020_v0  ;;  %vm529_vm2 = vcmask 1046528   ;;  %s10021_s18 = smov 4  }
   0x4   :  { %27 = vst.msk [vmem:[#allocation2 + $0x18] sm:$0xff] %vm22_vm0, %v10020_v0  ;;  %v7182_v10 = vld [vmem:[%s17839_s0 + $0x18] sm:$0xff]   ;;  %v7180_v11 = vld [vmem:[%s17839_s0 + $0x8] sm:$0xff]   ;;  %v6925_v14 = vld [vmem:[%s17839_s0] sm:$0xff]   ;;  %vm690_vm3 = vcmask 1045504   ;;  %s10022_s6 = smov 8  }
   0x5   :  { %28 = vst.msk [vmem:[#allocation2 + $0x20] sm:$0xff] %vm22_vm0, %v10020_v0  ;;  %v6938_v12 = vunpack.c.l.bf16 %v7182_v10  ;;  %v6939_v13 = vunpack.c.h.bf16 %v7182_v10  ;;  %v6930_v15 = vunpack.c.l.bf16 %v7180_v11  ;;  %v6931_v16 = vunpack.c.h.bf16 %v7180_v11  ;;  %v7183_v17 = vld [vmem:[%s17839_s0 + $0x20] sm:$0xff]   ;;  %v7181_v20 = vld [vmem:[%s17839_s0 + $0x10] sm:$0xff]   ;;  %v7184_v23 = vld [vmem:[%s17839_s0 + $0x28] sm:$0xff]   ;;  %s10023_s9 = smov 12   ;;  %s10024_s12 = smov 16  }
   0x6   :  { %29 = vst.msk [vmem:[#allocation2 + $0x28] sm:$0x3] %vm25_vm1, %v10020_v0  ;;  %v6926_v18 = vunpack.c.l.bf16 %v6925_v14  ;;  %v6927_v19 = vunpack.c.h.bf16 %v6925_v14  ;;  %v6942_v21 = vunpack.c.l.bf16 %v7183_v17  ;;  %v6943_v22 = vunpack.c.h.bf16 %v7183_v17  ;;  %v7186_v26 = vld [vmem:[%s17839_s0 + $0x38] sm:$0xff]   ;;  %v7185_v30 = vld [vmem:[%s17839_s0 + $0x30] sm:$0xff]   ;;  %v7187_v39 = vld [vmem:[%s17839_s0 + $0x40] sm:$0xff]   ;;  %s10025_s13 = smov 20  }
   0x7   :  { %30 = vst.msk [vmem:[#allocation2 + $0x30] sm:$0xff] %vm22_vm0, %v10020_v0  ;;  %v6934_v24 = vunpack.c.l.bf16 %v7181_v20  ;;  %v6935_v25 = vunpack.c.h.bf16 %v7181_v20  ;;  %v6946_v27 = vunpack.c.l.bf16 %v7184_v23  ;;  %v6947_v29 = vunpack.c.h.bf16 %v7184_v23  ;;  %v7189_v50 = vld [vmem:[%s17839_s0 + $0x50] sm:$0xff]   ;;  %v7188_v62 = vld [vmem:[%s17839_s0 + $0x48] sm:$0xff]   ;;  %v7190_v10 = vld [vmem:[%s17839_s0 + $0x58] sm:$0xff]   ;;  %s10026_s14 = smov 24   ;;  %s10027_s15 = smov 28  }
   0x8   :  { %v325_v1 = vld [vmem:[#allocation2] sm:$0xff]  ;;  %31 = vst.msk [vmem:[#allocation2 + $0x38] sm:$0xff] %vm22_vm0, %v10020_v0  ;;  %v6954_v34 = vunpack.c.l.bf16 %v7186_v26  ;;  %v6955_v38 = vunpack.c.h.bf16 %v7186_v26  ;;  %v6950_v43 = vunpack.c.l.bf16 %v7185_v30  ;;  %v6951_v44 = vunpack.c.h.bf16 %v7185_v30  ;;  %s10028_s16 = smov 32   ;;  %s6828_s19 = sshll.u32 %s17844_s5, 4  ;;  %s6829_s19 = int_to_ptr.hbm [resolvable:$true] %s6828_s19 }
   0x9   :  { %v326_v2 = vld [vmem:[#allocation2 + $0x8] sm:$0xff]  ;;  %v530_v3 = vrot.slane %v325_v1, 1  ;;  %32 = vst.msk [vmem:[#allocation2 + $0x40] sm:$0x3] %vm25_vm1, %v10020_v0  ;;  %v6958_v55 = vunpack.c.l.bf16 %v7187_v39  ;;  %v6959_v56 = vunpack.c.h.bf16 %v7187_v39  ;;  %vm3111_vm4 = vcmask 1041408   ;;  %s10029_s20 = smov [#allocation3]  }
   0xa   :  { %v327_v4 = vld [vmem:[#allocation2 + $0x10] sm:$0x3]  ;;  %v531_v5 = vrot.slane %v326_v2, 1  ;;  %33 = vst.msk [vmem:[#allocation2 + $0x48] sm:$0xff] %vm22_vm0, %v10020_v0  ;;  %vm2503_vm5 = vcmask 64512   ;;  %vm2568_vm6 = vcmask 97280  }
   0xb   :  { %v533_v6 = vrot.slane %v327_v4, 1  ;;  %34 = vst.msk [vmem:[#allocation2 + $0x50] sm:$0xff] %vm22_vm0, %v10020_v0  ;;  %v6967_v4 = vunpack.c.h.bf16 %v7189_v50  ;;  %vm2698_vm7 = vcmask 162816   ;;  %vm2633_vm8 = vcmask 130048   ;;  %s6826_s21 = sshll.u32 %s10029_s20, 4  ;;  %s10030_s22 = smov 128   ;;  %s6827_s21 = int_to_ptr.vmem [resolvable:$true] %s6826_s21 }
   0xc   :  { %v532_v7 = vsel %vm529_vm2, %v530_v3, %v531_v5  ;;  %35 = vst.msk [vmem:[#allocation2 + $0x58] sm:$0x3] %vm25_vm1, %v10020_v0  ;;  %v6966_v3 = vunpack.c.l.bf16 %v7189_v50  ;;  %vm2763_vm9 = vcmask 195584   ;;  %vm2893_vm10 = vcmask 261120  }
   0xd   :  { %v534_v8 = vsel %vm529_vm2, %v531_v5, %v533_v6  ;;  %36 = vst.msk [vmem:[#allocation2 + $0x60] sm:$0xff] %vm22_vm0, %v10020_v0  ;;  %vm2828_vm11 = vcmask 228352   ;;  %vm3014_vm12 = vcmask 293888   ;;  %vm6811_vm13 = vcmask 1043456  }
   0xe   :  { %v7259_v9 = vpack.i.bf16 %v534_v8, %v532_v7  ;;  %37 = vst.msk [vmem:[#allocation2 + $0x68] sm:$0xff] %vm22_vm0, %v10020_v0 }
   0xf   :  { %38 = vst.msk [vmem:[#allocation2 + $0x70] sm:$0x3] %vm25_vm1, %v10020_v0 }
  0x10   :  { %7260 = vrot.lane.b32.xlu0 %v7259_v9, %s10021_s18  ;;  %39 = vst.msk [vmem:[#allocation2 + $0x78] sm:$0xff] %vm22_vm0, %v10020_v0 }
  0x11   :  { %40 = vst.msk [vmem:[#allocation2 + $0x80] sm:$0xff] %vm22_vm0, %v10020_v0 }
  0x12   :  { %41 = vst.msk [vmem:[#allocation2 + $0x88] sm:$0x3] %vm25_vm1, %v10020_v0 }
  0x13   :  { %42 = vst.msk [vmem:[#allocation2 + $0x90] sm:$0xff] %vm22_vm0, %v10020_v0 }
  0x14   :  { %43 = vst.msk [vmem:[#allocation2 + $0x98] sm:$0xff] %vm22_vm0, %v10020_v0 }
  0x15   :  { %44 = vst.msk [vmem:[#allocation2 + $0xa0] sm:$0x3] %vm25_vm1, %v10020_v0 }
  0x16   :  { %45 = vst.msk [vmem:[#allocation2 + $0xa8] sm:$0xff] %vm22_vm0, %v10020_v0 }
  0x17   :  { %46 = vst.msk [vmem:[#allocation2 + $0xb0] sm:$0xff] %vm22_vm0, %v10020_v0 }
  0x18   :  { %47 = vst.msk [vmem:[#allocation2 + $0xb8] sm:$0x3] %vm25_vm1, %v10020_v0 }
  0x19   :  { %48 = vst.msk [vmem:[#allocation2 + $0xc0] sm:$0xff] %vm22_vm0, %v10020_v0 }
  0x1a   :  { %49 = vst.msk [vmem:[#allocation2 + $0xc8] sm:$0xff] %vm22_vm0, %v10020_v0 }
  0x1b   :  { %50 = vst.msk [vmem:[#allocation2 + $0xd0] sm:$0x3] %vm25_vm1, %v10020_v0 }
  0x1c   :  { %51 = vst.msk [vmem:[#allocation2 + $0xd8] sm:$0xff] %vm22_vm0, %v10020_v0 }
  0x1d   :  { %52 = vst.msk [vmem:[#allocation2 + $0xe0] sm:$0xff] %vm22_vm0, %v10020_v0 }
  0x1e   :  { %53 = vst.msk [vmem:[#allocation2 + $0xe8] sm:$0x3] %vm25_vm1, %v10020_v0 }
  0x1f   :  { %54 = vst.msk [vmem:[#allocation2 + $0xf0] sm:$0xff] %vm22_vm0, %v10020_v0 }
  0x20   :  { %55 = vst.msk [vmem:[#allocation2 + $0xf8] sm:$0xff] %vm22_vm0, %v10020_v0 }
  0x21   :  { %56 = vst.msk [vmem:[#allocation2 + $0x100] sm:$0x3] %vm25_vm1, %v10020_v0 }
  0x22   :  { %57 = vst.msk [vmem:[#allocation2 + $0x108] sm:$0xff] %vm22_vm0, %v10020_v0 }
  0x23   :  { %58 = vst.msk [vmem:[#allocation2 + $0x110] sm:$0xff] %vm22_vm0, %v10020_v0 }
  0x24   :  { %59 = vst.msk [vmem:[#allocation2 + $0x118] sm:$0x3] %vm25_vm1, %v10020_v0 }
  0x25   :  { %60 = vst.msk [vmem:[#allocation2 + $0x120] sm:$0xff] %vm22_vm0, %v10020_v0 }
  0x26   :  { %61 = vst.msk [vmem:[#allocation2 + $0x128] sm:$0xff] %vm22_vm0, %v10020_v0 }
  0x27   :  { %62 = vst.msk [vmem:[#allocation2 + $0x130] sm:$0x3] %vm25_vm1, %v10020_v0 }
  0x28   :  { %63 = vst.msk [vmem:[#allocation2 + $0x138] sm:$0xff] %vm22_vm0, %v10020_v0 }
  0x29   :  { %64 = vst.msk [vmem:[#allocation2 + $0x140] sm:$0xff] %vm22_vm0, %v10020_v0 }
  0x2a   :  { %65 = vst.msk [vmem:[#allocation2 + $0x148] sm:$0x3] %vm25_vm1, %v10020_v0 }
  0x2b   :  { %66 = vst.msk [vmem:[#allocation2 + $0x150] sm:$0xff] %vm22_vm0, %v10020_v0 }
  0x2c   :  { %67 = vst.msk [vmem:[#allocation2 + $0x158] sm:$0xff] %vm22_vm0, %v10020_v0 }
  0x2d   :  { %68 = vst.msk [vmem:[#allocation2 + $0x160] sm:$0x3] %vm25_vm1, %v10020_v0 }
  0x2e   :  { %69 = vst.msk [vmem:[#allocation2 + $0x168] sm:$0xff] %vm22_vm0, %v10020_v0 }
  0x2f   :  { %70 = vst.msk [vmem:[#allocation2 + $0x170] sm:$0xff] %vm22_vm0, %v10020_v0 }
  0x30   :  { %71 = vst.msk [vmem:[#allocation2 + $0x178] sm:$0x3] %vm25_vm1, %v10020_v0 }
  0x31   :  { %72 = vst.msk [vmem:[#allocation2 + $0x180] sm:$0xff] %vm22_vm0, %v10020_v0 }
  0x32   :  { %73 = vst.msk [vmem:[#allocation2 + $0x188] sm:$0xff] %vm22_vm0, %v10020_v0 }
  0x33   :  { %74 = vst.msk [vmem:[#allocation2 + $0x190] sm:$0x3] %vm25_vm1, %v10020_v0 }
  0x34   :  { %75 = vst.msk [vmem:[#allocation2 + $0x198] sm:$0xff] %vm22_vm0, %v10020_v0 }
  0x35   :  { %76 = vst.msk [vmem:[#allocation2 + $0x1a0] sm:$0xff] %vm22_vm0, %v10020_v0 }
  0x36   :  { %77 = vst.msk [vmem:[#allocation2 + $0x1a8] sm:$0x3] %vm25_vm1, %v10020_v0 }
  0x37   :  { %78 = vst.msk [vmem:[#allocation2 + $0x1b0] sm:$0xff] %vm22_vm0, %v10020_v0 }
  0x38   :  { %79 = vst.msk [vmem:[#allocation2 + $0x1b8] sm:$0xff] %vm22_vm0, %v10020_v0 }
  0x39   :  { %80 = vst.msk [vmem:[#allocation2 + $0x1c0] sm:$0x3] %vm25_vm1, %v10020_v0 }
  0x3a   :  { %81 = vst.msk [vmem:[#allocation2 + $0x1c8] sm:$0xff] %vm22_vm0, %v10020_v0 }
  0x3b   :  { %82 = vst.msk [vmem:[#allocation2 + $0x1d0] sm:$0xff] %vm22_vm0, %v10020_v0 }
  0x3c   :  { %83 = vst.msk [vmem:[#allocation2 + $0x1d8] sm:$0x3] %vm25_vm1, %v10020_v0 }
  0x3d   :  { %84 = vst.msk [vmem:[#allocation2 + $0x1e0] sm:$0xff] %vm22_vm0, %v10020_v0 }
  0x3e   :  { %85 = vst.msk [vmem:[#allocation2 + $0x1e8] sm:$0xff] %vm22_vm0, %v10020_v0 }
  0x3f   :  { %86 = vst.msk [vmem:[#allocation2 + $0x1f0] sm:$0x3] %vm25_vm1, %v10020_v0 }
  0x40   :  { %87 = vst.msk [vmem:[#allocation2 + $0x1f8] sm:$0xff] %vm22_vm0, %v10020_v0 }
  0x41   :  { %88 = vst.msk [vmem:[#allocation2 + $0x200] sm:$0xff] %vm22_vm0, %v10020_v0 }
  0x42   :  { %89 = vst.msk [vmem:[#allocation2 + $0x208] sm:$0x3] %vm25_vm1, %v10020_v0 }
  0x43   :  { %90 = vst.msk [vmem:[#allocation2 + $0x210] sm:$0xff] %vm22_vm0, %v10020_v0 }
  0x44   :  { %91 = vst.msk [vmem:[#allocation2 + $0x218] sm:$0xff] %vm22_vm0, %v10020_v0 }
  0x45   :  { %92 = vst.msk [vmem:[#allocation2 + $0x220] sm:$0x3] %vm25_vm1, %v10020_v0 }
  0x46   :  { %93 = vst.msk [vmem:[#allocation2 + $0x228] sm:$0xff] %vm22_vm0, %v10020_v0 }
  0x47   :  { %94 = vst.msk [vmem:[#allocation2 + $0x230] sm:$0xff] %vm22_vm0, %v10020_v0 }
  0x48   :  { %95 = vst.msk [vmem:[#allocation2 + $0x238] sm:$0x3] %vm25_vm1, %v10020_v0 }
  0x49   :  { %96 = vst.msk [vmem:[#allocation2 + $0x240] sm:$0xff] %vm22_vm0, %v10020_v0 }
  0x4a   :  { %97 = vst.msk [vmem:[#allocation2 + $0x248] sm:$0xff] %vm22_vm0, %v10020_v0 }
  0x4b   :  { %98 = vst.msk [vmem:[#allocation2 + $0x250] sm:$0x3] %vm25_vm1, %v10020_v0 }
  0x4c   :  { %99 = vst.msk [vmem:[#allocation2 + $0x258] sm:$0xff] %vm22_vm0, %v10020_v0 }
  0x4d   :  { %100 = vst.msk [vmem:[#allocation2 + $0x260] sm:$0xff] %vm22_vm0, %v10020_v0 }
  0x4e   :  { %101 = vst.msk [vmem:[#allocation2 + $0x268] sm:$0x3] %vm25_vm1, %v10020_v0 }
  0x4f   :  { %102 = vst.msk [vmem:[#allocation2 + $0x270] sm:$0xff] %vm22_vm0, %v10020_v0 }
  0x50   :  { %103 = vst.msk [vmem:[#allocation2 + $0x278] sm:$0xff] %vm22_vm0, %v10020_v0 }
  0x51   :  { %104 = vst.msk [vmem:[#allocation2 + $0x280] sm:$0x3] %vm25_vm1, %v10020_v0 }
  0x52   :  { %105 = vst.msk [vmem:[#allocation2 + $0x288] sm:$0xff] %vm22_vm0, %v10020_v0 }
  0x53   :  { %106 = vst.msk [vmem:[#allocation2 + $0x290] sm:$0xff] %vm22_vm0, %v10020_v0 }
  0x54   :  { %107 = vst.msk [vmem:[#allocation2 + $0x298] sm:$0x3] %vm25_vm1, %v10020_v0 }
  0x55   :  { %108 = vst.msk [vmem:[#allocation2 + $0x2a0] sm:$0xff] %vm22_vm0, %v10020_v0 }
  0x56   :  { %109 = vst.msk [vmem:[#allocation2 + $0x2a8] sm:$0xff] %vm22_vm0, %v10020_v0 }
  0x57   :  { %110 = vst.msk [vmem:[#allocation2 + $0x2b0] sm:$0x3] %vm25_vm1, %v10020_v0 }
  0x58   :  { %111 = vst.msk [vmem:[#allocation2 + $0x2b8] sm:$0xff] %vm22_vm0, %v10020_v0 }
  0x59   :  { %112 = vst.msk [vmem:[#allocation2 + $0x2c0] sm:$0xff] %vm22_vm0, %v10020_v0 }
  0x5a   :  { %113 = vst.msk [vmem:[#allocation2 + $0x2c8] sm:$0x3] %vm25_vm1, %v10020_v0 }
  0x5b   :  { %114 = vst.msk [vmem:[#allocation2 + $0x2d0] sm:$0xff] %vm22_vm0, %v10020_v0 }
  0x5c   :  { %115 = vst.msk [vmem:[#allocation2 + $0x2d8] sm:$0xff] %vm22_vm0, %v10020_v0 }
  0x5d   :  { %116 = vst.msk [vmem:[#allocation2 + $0x2e0] sm:$0x3] %vm25_vm1, %v10020_v0 }
  0x5e   :  { %117 = vst.msk [vmem:[#allocation2 + $0x2e8] sm:$0xff] %vm22_vm0, %v10020_v0 }
  0x5f   :  { %118 = vst.msk [vmem:[#allocation2 + $0x2f0] sm:$0xff] %vm22_vm0, %v10020_v0 }
  0x60   :  { %119 = vst.msk [vmem:[#allocation2 + $0x2f8] sm:$0x3] %vm25_vm1, %v10020_v0 }
  0x61   :  { %120 = vst.msk [vmem:[#allocation2 + $0x300] sm:$0xff] %vm22_vm0, %v10020_v0 }
  0x62   :  { %121 = vst.msk [vmem:[#allocation2 + $0x308] sm:$0xff] %vm22_vm0, %v10020_v0 }
  0x63   :  { %122 = vst.msk [vmem:[#allocation2 + $0x310] sm:$0x3] %vm25_vm1, %v10020_v0 }
  0x64   :  { %123 = vst.msk [vmem:[#allocation2 + $0x318] sm:$0xff] %vm22_vm0, %v10020_v0 }
  0x65   :  { %124 = vst.msk [vmem:[#allocation2 + $0x320] sm:$0xff] %vm22_vm0, %v10020_v0 }
  0x66   :  { %125 = vst.msk [vmem:[#allocation2 + $0x328] sm:$0x3] %vm25_vm1, %v10020_v0 }
  0x67   :  { %126 = vst.msk [vmem:[#allocation2 + $0x330] sm:$0xff] %vm22_vm0, %v10020_v0 }
  0x68   :  { %127 = vst.msk [vmem:[#allocation2 + $0x338] sm:$0xff] %vm22_vm0, %v10020_v0 }
  0x69   :  { %128 = vst.msk [vmem:[#allocation2 + $0x340] sm:$0x3] %vm25_vm1, %v10020_v0 }
  0x6a   :  { %129 = vst.msk [vmem:[#allocation2 + $0x348] sm:$0xff] %vm22_vm0, %v10020_v0 }
  0x6b   :  { %130 = vst.msk [vmem:[#allocation2 + $0x350] sm:$0xff] %vm22_vm0, %v10020_v0 }
  0x6c   :  { %131 = vst.msk [vmem:[#allocation2 + $0x358] sm:$0x3] %vm25_vm1, %v10020_v0 }
  0x6d   :  { %267 = vst.msk [vmem:[#allocation2 + $0x61] sm:$0xff] %vm22_vm0, %v6938_v12 }
  0x6e   :  { %268 = vst.msk [vmem:[#allocation2 + $0x69] sm:$0xff] %vm22_vm0, %v6939_v13 }
  0x6f   :  { %263 = vst.msk [vmem:[#allocation2 + $0x31] sm:$0xff] %vm22_vm0, %v6930_v15  ;;  %v6962_v15 = vunpack.c.l.bf16 %v7188_v62 }
  0x70   :  { %264 = vst.msk [vmem:[#allocation2 + $0x39] sm:$0xff] %vm22_vm0, %v6931_v16  ;;  %v6963_v16 = vunpack.c.h.bf16 %v7188_v62 }
  0x71   :  { %261 = vst.msk [vmem:[#allocation2 + $0x19] sm:$0xff] %vm22_vm0, %v6926_v18 }
  0x72   :  { %262 = vst.msk [vmem:[#allocation2 + $0x21] sm:$0xff] %vm22_vm0, %v6927_v19 }
  0x73   :  { %269 = vst.msk [vmem:[#allocation2 + $0x79] sm:$0xff] %vm22_vm0, %v6942_v21 }
  0x74   :  { %v10308_v28 = vld [vmem:[#allocation2 + $0x60] sm:$0xff]  ;;  %270 = vst.msk [vmem:[#allocation2 + $0x81] sm:$0xff] %vm22_vm0, %v6943_v22  ;;  %v7192_v22 = vld [vmem:[%s17839_s0 + $0x68] sm:$0xff]  }
  0x75   :  { %v10314_v31 = vld [vmem:[#allocation2 + $0x68] sm:$0xff]  ;;  %v10316_v32 = vld [vmem:[#allocation2 + $0x70] sm:$0x3]  ;;  %v550_v33 = vrot.slane %v10308_v28, 1  ;;  %265 = vst.msk [vmem:[#allocation2 + $0x49] sm:$0xff] %vm22_vm0, %v6934_v24 }
  0x76   :  { %v551_v35 = vrot.slane %v10314_v31, 1  ;;  %v553_v36 = vrot.slane %v10316_v32, 1  ;;  %v10322_v37 = vld [vmem:[#allocation2 + $0x30] sm:$0xff]  ;;  %266 = vst.msk [vmem:[#allocation2 + $0x51] sm:$0xff] %vm22_vm0, %v6935_v25 }
  0x77   :  { %v10328_v40 = vld [vmem:[#allocation2 + $0x38] sm:$0xff]  ;;  %v10330_v41 = vld [vmem:[#allocation2 + $0x40] sm:$0x3]  ;;  %v540_v42 = vrot.slane %v10322_v37, 1  ;;  %271 = vst.msk [vmem:[#allocation2 + $0x91] sm:$0xff] %vm22_vm0, %v6946_v27  ;;  %v6970_v27 = vunpack.c.l.bf16 %v7190_v10 }
  0x78   :  { %v552_v45 = vsel %vm529_vm2, %v550_v33, %v551_v35  ;;  %v554_v46 = vsel %vm529_vm2, %v551_v35, %v553_v36  ;;  %v541_v47 = vrot.slane %v10328_v40, 1  ;;  %v543_v48 = vrot.slane %v10330_v41, 1  ;;  %v10338_v49 = vld [vmem:[#allocation2 + $0x18] sm:$0xff]  ;;  %272 = vst.msk [vmem:[#allocation2 + $0x99] sm:$0xff] %vm22_vm0, %v6947_v29 }
  0x79   :  { %v10344_v51 = vpack.i.bf16 %v554_v46, %v552_v45  ;;  %v10346_v52 = vld [vmem:[#allocation2 + $0x20] sm:$0xff]  ;;  %v10348_v53 = vld [vmem:[#allocation2 + $0x28] sm:$0x3]  ;;  %v535_v54 = vrot.slane %v10338_v49, 1  ;;  %275 = vst.msk [vmem:[#allocation2 + $0xc1] sm:$0xff] %vm22_vm0, %v6954_v34  ;;  %v6971_v29 = vunpack.c.h.bf16 %v7190_v10  ;;  %v6978_v45 = vunpack.c.l.bf16 %v7192_v22 }
  0x7a   :  { %v542_v57 = vsel %vm529_vm2, %v540_v42, %v541_v47  ;;  %v544_v58 = vsel %vm529_vm2, %v541_v47, %v543_v48  ;;  %v536_v59 = vrot.slane %v10346_v52, 1  ;;  %v538_v60 = vrot.slane %v10348_v53, 1  ;;  %v10356_v61 = vld [vmem:[#allocation2 + $0x78] sm:$0xff]  ;;  %276 = vst.msk [vmem:[#allocation2 + $0xc9] sm:$0xff] %vm22_vm0, %v6955_v38  ;;  %v7191_v38 = vld [vmem:[%s17839_s0 + $0x60] sm:$0xff]  }
  0x7b   :  { %18553 = vst [vmem:[#allocation6_spill] sm:$0xff] %v10344_v51  ;;  %7280 = vrot.lane.b32.xlu2 %v10344_v51, %s10021_s18  ;;  %v10364_v63 = vpack.i.bf16 %v544_v58, %v542_v57  ;;  %v10366_v0 = vld [vmem:[#allocation2 + $0x80] sm:$0xff]  ;;  %v10368_v1 = vld [vmem:[#allocation2 + $0x88] sm:$0x3]  ;;  %v555_v2 = vrot.slane %v10356_v61, 1  ;;  %v6979_v46 = vunpack.c.h.bf16 %v7192_v22  ;;  %v6974_v62 = vunpack.c.l.bf16 %v7191_v38 }
  0x7c   :  { %273 = vst.msk [vmem:[#allocation2 + $0xa9] sm:$0xff] %vm22_vm0, %v6950_v43  ;;  %v537_v5 = vsel %vm529_vm2, %v535_v54, %v536_v59  ;;  %v539_v6 = vsel %vm529_vm2, %v536_v59, %v538_v60  ;;  %v556_v7 = vrot.slane %v10366_v0, 1  ;;  %v558_v8 = vrot.slane %v10368_v1, 1  ;;  %v10376_v9 = vld [vmem:[#allocation2 + $0x48] sm:$0xff] }
  0x7d   :  { %18554 = vst [vmem:[#allocation7_spill] sm:$0xff] %v10364_v63  ;;  %7270 = vrot.lane.b32.xlu1 %v10364_v63, %s10021_s18  ;;  %v10384_v11 = vpack.i.bf16 %v539_v6, %v537_v5  ;;  %v10386_v12 = vld [vmem:[#allocation2 + $0x50] sm:$0xff]  ;;  %v10388_v13 = vld [vmem:[#allocation2 + $0x58] sm:$0x3]  ;;  %v545_v14 = vrot.slane %v10376_v9, 1 }
  0x7e   :  { %274 = vst.msk [vmem:[#allocation2 + $0xb1] sm:$0xff] %vm22_vm0, %v6951_v44  ;;  %v557_v17 = vsel %vm529_vm2, %v555_v2, %v556_v7  ;;  %v559_v18 = vsel %vm529_vm2, %v556_v7, %v558_v8  ;;  %v546_v19 = vrot.slane %v10386_v12, 1  ;;  %v548_v20 = vrot.slane %v10388_v13, 1  ;;  %v10396_v21 = vld [vmem:[#allocation2 + $0x90] sm:$0xff]  ;;  %v7195_v8 = vld [vmem:[%s17839_s0 + $0x80] sm:$0xff]  }
  0x7f   :  { %18555 = vst [vmem:[#allocation8_spill] sm:$0xff] %v10384_v11  ;;  %7265 = vrot.lane.b32.xlu0 %v10384_v11, %s10021_s18  ;;  %v10404_v23 = vpack.i.bf16 %v559_v18, %v557_v17  ;;  %v10406_v24 = vld [vmem:[#allocation2 + $0x98] sm:$0xff]  ;;  %v10408_v25 = vld [vmem:[#allocation2 + $0xa0] sm:$0x3]  ;;  %v560_v26 = vrot.slane %v10396_v21, 1  ;;  %v6975_v2 = vunpack.c.h.bf16 %v7191_v38  ;;  %v6991_v38 = vunpack.c.h.bf16 %v7195_v8 }
  0x80   :  { %277 = vst.msk [vmem:[#allocation2 + $0xd9] sm:$0xff] %vm22_vm0, %v6958_v55  ;;  %v547_v30 = vsel %vm529_vm2, %v545_v14, %v546_v19  ;;  %v549_v33 = vsel %vm529_vm2, %v546_v19, %v548_v20  ;;  %v561_v34 = vrot.slane %v10406_v24, 1  ;;  %v563_v35 = vrot.slane %v10408_v25, 1  ;;  %v10416_v36 = vld [vmem:[#allocation2 + $0xc0] sm:$0xff] }
  0x81   :  { %278 = vst.msk [vmem:[#allocation2 + $0xe1] sm:$0xff] %vm22_vm0, %v6959_v56  ;;  %v10422_v39 = vpack.i.bf16 %v549_v33, %v547_v30  ;;  %v10424_v42 = vld [vmem:[#allocation2 + $0xc8] sm:$0xff]  ;;  %v10426_v43 = vld [vmem:[#allocation2 + $0xd0] sm:$0x3]  ;;  %v570_v44 = vrot.slane %v10416_v36, 1 }
  0x82   :  { %18556 = vst [vmem:[#allocation9_spill] sm:$0xff] %v10404_v23  ;;  %v562_v47 = vsel %vm529_vm2, %v560_v26, %v561_v34  ;;  %v564_v48 = vsel %vm529_vm2, %v561_v34, %v563_v35  ;;  %v571_v50 = vrot.slane %v10424_v42, 1  ;;  %v573_v54 = vrot.slane %v10426_v43, 1  ;;  %v7193_v56 = vld [vmem:[%s17839_s0 + $0x70] sm:$0xff]  }
  0x83   :  { %281 = vst.msk [vmem:[#allocation2 + $0x109] sm:$0xff] %vm22_vm0, %v6966_v3  ;;  %v10434_v55 = vld [vmem:[#allocation2 + $0xa8] sm:$0xff]  ;;  %7285 = vrot.lane.b32.xlu2 %v10404_v23, %s10021_s18  ;;  %v10442_v57 = vpack.i.bf16 %v564_v48, %v562_v47  ;;  %v6983_v17 = vunpack.c.h.bf16 %v7193_v56  ;;  %v6990_v35 = vunpack.c.l.bf16 %v7195_v8  ;;  %v7197_v8 = vld [vmem:[%s17839_s0 + $0x90] sm:$0xff]  }
  0x84   :  { %282 = vst.msk [vmem:[#allocation2 + $0x111] sm:$0xff] %vm22_vm0, %v6967_v4  ;;  %v565_v60 = vrot.slane %v10434_v55, 1  ;;  %v572_v3 = vsel %vm529_vm2, %v570_v44, %v571_v50  ;;  %v574_v4 = vsel %vm529_vm2, %v571_v50, %v573_v54  ;;  %v7198_v50 = vld [vmem:[%s17839_s0 + $0x98] sm:$0xff]  }
  0x85   :  { %18557 = vst [vmem:[#allocation10_spill] sm:$0xff] %v10422_v39  ;;  %v10444_v58 = vld [vmem:[#allocation2 + $0xb0] sm:$0xff]  ;;  %v10446_v59 = vld [vmem:[#allocation2 + $0xb8] sm:$0x3]  ;;  %7275 = vrot.lane.b32.xlu1 %v10422_v39, %s10021_s18 }
  0x86   :  { %279 = vst.msk [vmem:[#allocation2 + $0xf1] sm:$0xff] %vm22_vm0, %v6962_v15  ;;  %v566_v5 = vrot.slane %v10444_v58, 1  ;;  %v568_v6 = vrot.slane %v10446_v59, 1 }
  0x87   :  { %280 = vst.msk [vmem:[#allocation2 + $0xf9] sm:$0xff] %vm22_vm0, %v6963_v16  ;;  %v10454_v7 = vld [vmem:[#allocation2 + $0xd8] sm:$0xff]  ;;  %v6982_v16 = vunpack.c.l.bf16 %v7193_v56  ;;  %7290 = vrot.lane.b32.xlu0 %v10442_v57, %s10021_s18 }
  0x88   :  { %18558 = vst [vmem:[#allocation11_spill] sm:$0xff] %v10442_v57  ;;  %v10462_v10 = vld [vmem:[#allocation2 + $0xe0] sm:$0xff]  ;;  %v10464_v14 = vld [vmem:[#allocation2 + $0xe8] sm:$0x3]  ;;  %v575_v15 = vrot.slane %v10454_v7, 1  ;;  %v567_v18 = vsel %vm529_vm2, %v565_v60, %v566_v5  ;;  %v569_v19 = vsel %vm529_vm2, %v566_v5, %v568_v6  ;;  %v6999_v57 = vunpack.c.h.bf16 %v7197_v8 }
  0x89   :  { %283 = vst.msk [vmem:[#allocation2 + $0x121] sm:$0xff] %vm22_vm0, %v6970_v27  ;;  %v576_v20 = vrot.slane %v10462_v10, 1  ;;  %v578_v22 = vrot.slane %v10464_v14, 1  ;;  %v7196_v27 = vld [vmem:[%s17839_s0 + $0x88] sm:$0xff]   ;;  %v10498_v54 = vpack.i.bf16 %v569_v19, %v567_v18 }
  0x8a   :  { %284 = vst.msk [vmem:[#allocation2 + $0x129] sm:$0xff] %vm22_vm0, %v6971_v29  ;;  %v10472_v26 = vld [vmem:[#allocation2 + $0x108] sm:$0xff]  ;;  %v10480_v29 = vpack.i.bf16 %v574_v4, %v572_v3  ;;  %v6995_v6 = vunpack.c.h.bf16 %v7196_v27 }
  0x8b   :  { %287 = vst.msk [vmem:[#allocation2 + $0x151] sm:$0xff] %vm22_vm0, %v6978_v45  ;;  %v10482_v30 = vld [vmem:[#allocation2 + $0x110] sm:$0xff]  ;;  %v10484_v33 = vld [vmem:[#allocation2 + $0x118] sm:$0x3]  ;;  %v585_v34 = vrot.slane %v10472_v26, 1  ;;  %v577_v44 = vsel %vm529_vm2, %v575_v15, %v576_v20  ;;  %v579_v45 = vsel %vm529_vm2, %v576_v20, %v578_v22  ;;  %v7002_v20 = vunpack.c.l.bf16 %v7198_v50 }
  0x8c   :  { %288 = vst.msk [vmem:[#allocation2 + $0x159] sm:$0xff] %vm22_vm0, %v6979_v46  ;;  %v586_v46 = vrot.slane %v10482_v30, 1  ;;  %v588_v47 = vrot.slane %v10484_v33, 1  ;;  %7300 = vrot.lane.b32.xlu2 %v10480_v29, %s10021_s18  ;;  %v10516_v15 = vpack.i.bf16 %v579_v45, %v577_v44 }
  0x8d   :  { %18559 = vst [vmem:[#allocation12_spill] sm:$0xff] %v10480_v29  ;;  %v10492_v48 = vld [vmem:[#allocation2 + $0xf0] sm:$0xff]  ;;  %7295 = vrot.lane.b32.xlu1 %v10498_v54, %s10021_s18 }
  0x8e   :  { %18560 = vst [vmem:[#allocation13_spill] sm:$0xff] %v10484_v33  ;;  %v10500_v56 = vld [vmem:[#allocation2 + $0xf8] sm:$0xff]  ;;  %v10502_v60 = vld [vmem:[#allocation2 + $0x100] sm:$0x3]  ;;  %v580_v3 = vrot.slane %v10492_v48, 1  ;;  %v589_v22 = vsel %vm529_vm2, %v586_v46, %v588_v47 }
  0x8f   :  { %285 = vst.msk [vmem:[#allocation2 + $0x139] sm:$0xff] %vm22_vm0, %v6974_v62  ;;  %v6994_v62 = vunpack.c.l.bf16 %v7196_v27  ;;  %v581_v4 = vrot.slane %v10500_v56, 1  ;;  %v583_v5 = vrot.slane %v10502_v60, 1  ;;  %7305 = vrot.lane.b32.xlu0 %v10516_v15, %s10021_s18 }
  0x90   :  { %286 = vst.msk [vmem:[#allocation2 + $0x141] sm:$0xff] %vm22_vm0, %v6975_v2  ;;  %v10508_v2 = vld [vmem:[#allocation2 + $0x120] sm:$0xff] }
  0x91   :  { %18561 = vst [vmem:[#allocation14_spill] sm:$0xff] %v10498_v54  ;;  %v10519_v18 = vld [vmem:[#allocation2 + $0x128] sm:$0xff]  ;;  %v10521_v19 = vld [vmem:[#allocation2 + $0x130] sm:$0x3]  ;;  %v590_v27 = vrot.slane %v10508_v2, 1  ;;  %v582_v47 = vsel %vm529_vm2, %v580_v3, %v581_v4 }
  0x92   :  { %289 = vst.msk [vmem:[#allocation2 + $0x169] sm:$0xff] %vm22_vm0, %v6982_v16  ;;  %v587_v16 = vsel %vm529_vm2, %v585_v34, %v586_v46  ;;  %v591_v23 = vrot.slane %v10519_v18, 1  ;;  %v593_v29 = vrot.slane %v10521_v19, 1  ;;  %v10528_v44 = vld [vmem:[#allocation2 + $0x150] sm:$0xff]  ;;  %v7199_v34 = vld [vmem:[%s17839_s0 + $0xa0] sm:$0xff]   ;;  %v6998_v46 = vunpack.c.l.bf16 %v7197_v8 }
  0x93   :  { %290 = vst.msk [vmem:[#allocation2 + $0x171] sm:$0xff] %vm22_vm0, %v6983_v17  ;;  %v7003_v17 = vunpack.c.h.bf16 %v7198_v50  ;;  %v10538_v45 = vld [vmem:[#allocation2 + $0x160] sm:$0x3]  ;;  %v584_v50 = vsel %vm529_vm2, %v581_v4, %v583_v5  ;;  %v7201_v54 = vld [vmem:[%s17839_s0 + $0xb0] sm:$0xff]   ;;  %v10550_v51 = vpack.i.bf16 %v589_v22, %v587_v16  ;;  %v7006_v5 = vunpack.c.l.bf16 %v7199_v34  ;;  %v7200_v22 = vld [vmem:[%s17839_s0 + $0xa8] sm:$0xff]  }
  0x94   :  { %18562 = vst [vmem:[#allocation15_spill] sm:$0xff] %v10516_v15  ;;  %v594_v8 = vsel %vm529_vm2, %v591_v23, %v593_v29  ;;  %v603_v39 = vrot.slane %v10538_v45, 1  ;;  %v7007_v16 = vunpack.c.h.bf16 %v7199_v34  ;;  %v10567_v15 = vpack.i.bf16 %v584_v50, %v582_v47  ;;  %v7202_v47 = vld [vmem:[%s17839_s0 + $0xb8] sm:$0xff]  }
  0x95   :  { %293 = vst.msk [vmem:[#allocation2 + $0x1c9] sm:$0xff] %vm22_vm0, %v6990_v35  ;;  %v10536_v35 = vld [vmem:[#allocation2 + $0x158] sm:$0xff]  ;;  %v7015_v34 = vunpack.c.h.bf16 %v7201_v54  ;;  %7315 = vrot.lane.b32.xlu2 %v10550_v51, %s10021_s18 }
  0x96   :  { %18563 = vst [vmem:[#allocation16_spill] sm:$0xff] %v10528_v44  ;;  %v10553_v63 = vld [vmem:[#allocation2 + $0x138] sm:$0xff]  ;;  %7310 = vrot.lane.b32.xlu1 %v10567_v15, %s10021_s18 }
  0x97   :  { %294 = vst.msk [vmem:[#allocation2 + $0x1d1] sm:$0xff] %vm22_vm0, %v6991_v38  ;;  %v600_v38 = vrot.slane %v10528_v44, 1  ;;  %v10555_v3 = vld [vmem:[#allocation2 + $0x140] sm:$0xff]  ;;  %v10557_v4 = vld [vmem:[#allocation2 + $0x148] sm:$0x3]  ;;  %v595_v29 = vrot.slane %v10553_v63, 1  ;;  %v7011_v44 = vunpack.c.h.bf16 %v7200_v22 }
  0x98   :  { %18564 = vst [vmem:[#allocation17_spill] sm:$0xff] %v10536_v35 }
  0x99   :  { %18565 = vst [vmem:[#allocation18_spill] sm:$0xff] %v10538_v45  ;;  %v10569_v11 = vld [vmem:[#allocation2 + $0x168] sm:$0xff]  ;;  %v7010_v45 = vunpack.c.l.bf16 %v7200_v22  ;;  %v10608_v22 = vld [vmem:[#allocation2 + $0x1b0] sm:$0xff] }
  0x9a   :  { %295 = vst.msk [vmem:[#allocation2 + $0x1e1] sm:$0xff] %vm22_vm0, %v6994_v62  ;;  %v601_v62 = vrot.slane %v10536_v35, 1  ;;  %v10571_v35 = vld [vmem:[#allocation2 + $0x170] sm:$0xff] }
  0x9b   :  { %296 = vst.msk [vmem:[#allocation2 + $0x1e9] sm:$0xff] %vm22_vm0, %v6995_v6  ;;  %v592_v6 = vsel %vm529_vm2, %v590_v27, %v591_v23  ;;  %v7014_v23 = vunpack.c.l.bf16 %v7201_v54  ;;  %v598_v27 = vrot.slane %v10557_v4, 1  ;;  %v606_v54 = vrot.slane %v10571_v35, 1 }
  0x9c   :  { %18566 = vst [vmem:[#allocation19_spill] sm:$0xff] %v10550_v51  ;;  %v10585_v50 = vpack.i.bf16 %v594_v8, %v592_v6  ;;  %v7019_v51 = vunpack.c.h.bf16 %v7202_v47 }
  0x9d   :  { %18567 = vst [vmem:[#allocation20_spill] sm:$0xff] %v10553_v63  ;;  %v10593_v63 = vld [vmem:[#allocation2 + $0x1c8] sm:$0xff] }
  0x9e   :  { %18568 = vst [vmem:[#allocation21_spill] sm:$0xff] %v10555_v3  ;;  %7320 = vrot.lane.b32.xlu0 %v10585_v50, %s10021_s18 }
  0x9f   :  { %18569 = vst [vmem:[#allocation22_spill] sm:$0xff] %v10557_v4  ;;  %v604_v4 = vsel %vm529_vm2, %v601_v62, %v603_v39  ;;  %v10603_v39 = vld [vmem:[#allocation2 + $0x1d8] sm:$0x3] }
  0xa0   :  { %299 = vst.msk [vmem:[#allocation2 + $0x211] sm:$0xff] %vm22_vm0, %v7002_v20  ;;  %v10573_v20 = vld [vmem:[#allocation2 + $0x178] sm:$0x3] }
  0xa1   :  { %300 = vst.msk [vmem:[#allocation2 + $0x219] sm:$0xff] %vm22_vm0, %v7003_v17  ;;  %v596_v17 = vrot.slane %v10555_v3, 1  ;;  %v608_v3 = vrot.slane %v10573_v20, 1  ;;  %v10628_v33 = vld [vmem:[#allocation2 + $0x1e0] sm:$0xff] }
  0xa2   :  { %18570 = vst [vmem:[#allocation23_spill] sm:$0xff] %v10567_v15  ;;  %v7203_v15 = vld [vmem:[%s17839_s0 + $0xc0] sm:$0xff]  }
  0xa3   :  { %18571 = vst [vmem:[#allocation24_spill] sm:$0xff] %v10569_v11  ;;  %v597_v6 = vsel %vm529_vm2, %v595_v29, %v596_v17  ;;  %v599_v8 = vsel %vm529_vm2, %v596_v17, %v598_v27  ;;  %v615_v29 = vrot.slane %v10593_v63, 1 }
  0xa4   :  { %18572 = vst [vmem:[#allocation25_spill] sm:$0xff] %v10571_v35 }
  0xa5   :  { %18573 = vst [vmem:[#allocation26_spill] sm:$0xff] %v10573_v20  ;;  %v10621_v20 = vld [vmem:[#allocation2 + $0x1c0] sm:$0x3] }
  0xa6   :  { %297 = vst.msk [vmem:[#allocation2 + $0x1f9] sm:$0xff] %vm22_vm0, %v6998_v46  ;;  %v602_v46 = vsel %vm529_vm2, %v600_v38, %v601_v62  ;;  %v7204_v38 = vld [vmem:[%s17839_s0 + $0xc8] sm:$0xff]   ;;  %v7018_v62 = vunpack.c.l.bf16 %v7202_v47  ;;  %v609_v47 = vsel %vm529_vm2, %v606_v54, %v608_v3  ;;  %v10640_v3 = vld [vmem:[#allocation2 + $0x1f0] sm:$0x3] }
  0xa7   :  { %298 = vst.msk [vmem:[#allocation2 + $0x201] sm:$0xff] %vm22_vm0, %v6999_v57  ;;  %v605_v57 = vrot.slane %v10569_v11, 1  ;;  %v7026_v17 = vunpack.c.l.bf16 %v7204_v38  ;;  %v7027_v27 = vunpack.c.h.bf16 %v7204_v38  ;;  %v618_v11 = vrot.slane %v10603_v39, 1  ;;  %v10638_v38 = vld [vmem:[#allocation2 + $0x1e8] sm:$0xff] }
  0xa8   :  { %18574 = vst [vmem:[#allocation27_spill] sm:$0xff] %v10585_v50  ;;  %v613_v50 = vrot.slane %v10621_v20, 1 }
  0xa9   :  { %301 = vst.msk [vmem:[#allocation2 + $0x229] sm:$0xff] %vm22_vm0, %v7006_v5  ;;  %v10601_v5 = vld [vmem:[#allocation2 + $0x1d0] sm:$0xff] }
  0xaa   :  { %18575 = vst [vmem:[#allocation28_spill] sm:$0xff] %v10593_v63  ;;  %v616_v35 = vrot.slane %v10601_v5, 1 }
  0xab   :  { %302 = vst.msk [vmem:[#allocation2 + $0x231] sm:$0xff] %vm22_vm0, %v7007_v16  ;;  %v10610_v16 = vld [vmem:[#allocation2 + $0x1b8] sm:$0xff] }
  0xac   :  { %18576 = vst [vmem:[#allocation29_spill] sm:$0xff] %v10601_v5  ;;  %v10653_v5 = vld [vmem:[#allocation2 + $0x210] sm:$0xff] }
  0xad   :  { %18577 = vst [vmem:[#allocation30_spill] sm:$0xff] %v10603_v39  ;;  %v620_v39 = vrot.slane %v10628_v33, 1 }
  0xae   :  { %305 = vst.msk [vmem:[#allocation2 + $0x259] sm:$0xff] %vm22_vm0, %v7014_v23  ;;  %v10618_v23 = vpack.i.bf16 %v604_v4, %v602_v46  ;;  %v7205_v4 = vld [vmem:[%s17839_s0 + $0xd0] sm:$0xff]   ;;  %v10634_v46 = vpack.i.bf16 %v599_v8, %v597_v6  ;;  %v7207_v6 = vld [vmem:[%s17839_s0 + $0xe0] sm:$0xff]  }
  0xaf   :  { %18578 = vst [vmem:[#allocation31_spill] sm:$0xff] %v10610_v16  ;;  %v7030_v63 = vunpack.c.l.bf16 %v7205_v4 }
  0xb0   :  { %306 = vst.msk [vmem:[#allocation2 + $0x261] sm:$0xff] %vm22_vm0, %v7015_v34  ;;  %v607_v34 = vsel %vm529_vm2, %v605_v57, %v606_v54  ;;  %v611_v57 = vrot.slane %v10610_v16, 1  ;;  %v7022_v54 = vunpack.c.l.bf16 %v7203_v15  ;;  %7330 = vrot.lane.b32.xlu2 %v10618_v23, %s10021_s18  ;;  %v621_v16 = vrot.slane %v10638_v38, 1  ;;  %7325 = vrot.lane.b32.xlu1 %v10634_v46, %s10021_s18 }
  0xb1   :  { %18579 = vst [vmem:[#allocation32_spill] sm:$0xff] %v10618_v23  ;;  %v10650_v8 = vpack.i.bf16 %v609_v47, %v607_v34  ;;  %v623_v23 = vrot.slane %v10640_v3, 1  ;;  %v10662_v34 = vld [vmem:[#allocation2 + $0x220] sm:$0x3]  ;;  %v7206_v47 = vld [vmem:[%s17839_s0 + $0xd8] sm:$0xff]  }
  0xb2   :  { %18580 = vst [vmem:[#allocation33_spill] sm:$0xff] %v10621_v20  ;;  %v619_v20 = vsel %vm529_vm2, %v616_v35, %v618_v11  ;;  %v7038_v11 = vunpack.c.l.bf16 %v7207_v6 }
  0xb3   :  { %303 = vst.msk [vmem:[#allocation2 + $0x241] sm:$0xff] %vm22_vm0, %v7010_v45  ;;  %v610_v45 = vrot.slane %v10608_v22, 1  ;;  %7335 = vrot.lane.b32.xlu0 %v10650_v8, %s10021_s18 }
  0xb4   :  { %304 = vst.msk [vmem:[#allocation2 + $0x249] sm:$0xff] %vm22_vm0, %v7011_v44  ;;  %v7023_v44 = vunpack.c.h.bf16 %v7203_v15  ;;  %v617_v15 = vsel %vm529_vm2, %v615_v29, %v616_v35  ;;  %v614_v35 = vsel %vm529_vm2, %v611_v57, %v613_v50  ;;  %v630_v29 = vrot.slane %v10653_v5, 1  ;;  %v10686_v50 = vld [vmem:[#allocation2 + $0x200] sm:$0xff] }
  0xb5   :  { %18581 = vst [vmem:[#allocation34_spill] sm:$0xff] %v10634_v46  ;;  %v10684_v46 = vld [vmem:[#allocation2 + $0x1f8] sm:$0xff] }
  0xb6   :  { %18582 = vst [vmem:[#allocation35_spill] sm:$0xff] %v10638_v38  ;;  %v10701_v38 = vld [vmem:[#allocation2 + $0x238] sm:$0x3] }
  0xb7   :  { %18583 = vst [vmem:[#allocation36_spill] sm:$0xff] %v10640_v3  ;;  %v7208_v3 = vld [vmem:[%s17839_s0 + $0xe8] sm:$0xff]  }
  0xb8   :  { %307 = vst.msk [vmem:[#allocation2 + $0x271] sm:$0xff] %vm22_vm0, %v7018_v62  ;;  %v10655_v62 = vld [vmem:[#allocation2 + $0x218] sm:$0xff] }
  0xb9   :  { %308 = vst.msk [vmem:[#allocation2 + $0x279] sm:$0xff] %vm22_vm0, %v7019_v51  ;;  %v7031_v51 = vunpack.c.h.bf16 %v7205_v4  ;;  %v631_v4 = vrot.slane %v10655_v62, 1 }
  0xba   :  { %18584 = vst [vmem:[#allocation37_spill] sm:$0xff] %v10650_v8  ;;  %v7035_v8 = vunpack.c.h.bf16 %v7206_v47 }
  0xbb   :  { %18585 = vst [vmem:[#allocation38_spill] sm:$0xff] %v10653_v5  ;;  %v10699_v5 = vld [vmem:[#allocation2 + $0x230] sm:$0xff] }
  0xbc   :  { %18586 = vst [vmem:[#allocation39_spill] sm:$0xff] %v10655_v62  ;;  %v624_v62 = vsel %vm529_vm2, %v621_v16, %v623_v23 }
  0xbd   :  { %311 = vst.msk [vmem:[#allocation2 + $0x2a1] sm:$0xff] %vm22_vm0, %v7026_v17  ;;  %v612_v17 = vsel %vm529_vm2, %v610_v45, %v611_v57  ;;  %v10681_v45 = vpack.i.bf16 %v619_v20, %v617_v15  ;;  %v10688_v57 = vld [vmem:[#allocation2 + $0x208] sm:$0x3]  ;;  %v7209_v20 = vld [vmem:[%s17839_s0 + $0xf0] sm:$0xff]  }
  0xbe   :  { %18587 = vst [vmem:[#allocation40_spill] sm:$0xff] %v10662_v34  ;;  %v7339_v15 = vpack.i.bf16 %v614_v35, %v612_v17  ;;  %v628_v23 = vrot.slane %v10688_v57, 1  ;;  %v632_v17 = vsel %vm529_vm2, %v630_v29, %v631_v4  ;;  %v10724_v29 = vld [vmem:[#allocation2 + $0x268] sm:$0x3] }
  0xbf   :  { %312 = vst.msk [vmem:[#allocation2 + $0x2a9] sm:$0xff] %vm22_vm0, %v7027_v27  ;;  %v7039_v27 = vunpack.c.h.bf16 %v7207_v6  ;;  %v622_v6 = vsel %vm529_vm2, %v620_v39, %v621_v16  ;;  %v625_v39 = vrot.slane %v10684_v46, 1  ;;  %v626_v16 = vrot.slane %v10686_v50, 1  ;;  %7345 = vrot.lane.b32.xlu2 %v10681_v45, %s10021_s18 }
  0xc0   :  { %309 = vst.msk [vmem:[#allocation2 + $0x289] sm:$0xff] %vm22_vm0, %v7022_v54  ;;  %v633_v54 = vrot.slane %v10662_v34, 1  ;;  %v10697_v34 = vld [vmem:[#allocation2 + $0x228] sm:$0xff]  ;;  %7340 = vrot.lane.b32.xlu1 %v7339_v15, %s10021_s18 }
  0xc1   :  { %310 = vst.msk [vmem:[#allocation2 + $0x291] sm:$0xff] %vm22_vm0, %v7023_v44  ;;  %v7034_v44 = vunpack.c.l.bf16 %v7206_v47  ;;  %v10710_v47 = vpack.i.bf16 %v624_v62, %v622_v6  ;;  %v7047_v62 = vunpack.c.h.bf16 %v7209_v20  ;;  %v10738_v15 = vld [vmem:[#allocation2 + $0x248] sm:$0xff] }
  0xc2   :  { %18588 = vst [vmem:[#allocation41_spill] sm:$0xff] %v10681_v45  ;;  %v634_v35 = vsel %vm529_vm2, %v631_v4, %v633_v54  ;;  %v627_v4 = vsel %vm529_vm2, %v625_v39, %v626_v16  ;;  %v629_v54 = vsel %vm529_vm2, %v626_v16, %v628_v23  ;;  %v648_v23 = vrot.slane %v10724_v29, 1  ;;  %v10753_v45 = vld [vmem:[#allocation2 + $0x280] sm:$0x3] }
  0xc3   :  { %18589 = vst [vmem:[#allocation42_spill] sm:$0xff] %v10684_v46  ;;  %v7046_v46 = vunpack.c.l.bf16 %v7209_v20  ;;  %7350 = vrot.lane.b32.xlu0 %v10710_v47, %s10021_s18  ;;  %v10733_v6 = vpack.i.bf16 %v634_v35, %v632_v17  ;;  %v10736_v20 = vld [vmem:[#allocation2 + $0x240] sm:$0xff]  ;;  %v10749_v17 = vld [vmem:[#allocation2 + $0x270] sm:$0xff]  ;;  %v10751_v35 = vld [vmem:[#allocation2 + $0x278] sm:$0xff] }
  0xc4   :  { %18590 = vst [vmem:[#allocation43_spill] sm:$0xff] %v10686_v50  ;;  %v635_v50 = vrot.slane %v10697_v34, 1 }
  0xc5   :  { %18591 = vst [vmem:[#allocation44_spill] sm:$0xff] %v10688_v57  ;;  %v636_v57 = vrot.slane %v10699_v5, 1 }
  0xc6   :  { %313 = vst.msk [vmem:[#allocation2 + $0x2b9] sm:$0xff] %vm22_vm0, %v7030_v63  ;;  %v7042_v63 = vunpack.c.l.bf16 %v7208_v3 }
  0xc7   :  { %314 = vst.msk [vmem:[#allocation2 + $0x2c1] sm:$0xff] %vm22_vm0, %v7031_v51  ;;  %v7043_v51 = vunpack.c.h.bf16 %v7208_v3  ;;  %v638_v3 = vrot.slane %v10701_v38, 1  ;;  %v637_v39 = vsel %vm529_vm2, %v635_v50, %v636_v57  ;;  %7360 = vrot.lane.b32.xlu2 %v10733_v6, %s10021_s18 }
  0xc8   :  { %317 = vst.msk [vmem:[#allocation2 + $0x2e9] sm:$0xff] %vm22_vm0, %v7038_v11  ;;  %v10714_v11 = vld [vmem:[#allocation2 + $0x258] sm:$0xff] }
  0xc9   :  { %318 = vst.msk [vmem:[#allocation2 + $0x2f1] sm:$0xff] %vm22_vm0, %v7039_v27  ;;  %v10720_v27 = vld [vmem:[#allocation2 + $0x260] sm:$0xff]  ;;  %v639_v16 = vsel %vm529_vm2, %v636_v57, %v638_v3 }
  0xca   :  { %18592 = vst [vmem:[#allocation45_spill] sm:$0xff] %v10710_v47  ;;  %v640_v47 = vrot.slane %v10736_v20, 1  ;;  %v10760_v57 = vpack.i.bf16 %v639_v16, %v637_v39 }
  0xcb   :  { %18593 = vst [vmem:[#allocation46_spill] sm:$0xff] %v10714_v11 }
  0xcc   :  { %315 = vst.msk [vmem:[#allocation2 + $0x2d1] sm:$0xff] %vm22_vm0, %v7034_v44  ;;  %v645_v44 = vrot.slane %v10714_v11, 1  ;;  %v10769_v11 = vld [vmem:[#allocation2 + $0x2a8] sm:$0xff]  ;;  %7365 = vrot.lane.b32.xlu0 %v10760_v57, %s10021_s18 }
  0xcd   :  { %18594 = vst [vmem:[#allocation47_spill] sm:$0xff] %v10720_v27 }
  0xce   :  { %316 = vst.msk [vmem:[#allocation2 + $0x2d9] sm:$0xff] %vm22_vm0, %v7035_v8  ;;  %v646_v8 = vrot.slane %v10720_v27, 1  ;;  %v10767_v27 = vld [vmem:[#allocation2 + $0x2a0] sm:$0xff] }
  0xcf   :  { %18595 = vst [vmem:[#allocation48_spill] sm:$0xff] %v10724_v29  ;;  %v653_v29 = vrot.slane %v10753_v45, 1  ;;  %v660_v16 = vrot.slane %v10767_v27, 1 }
  0xd0   :  { %319 = vst.msk [vmem:[#allocation2 + $0x301] sm:$0xff] %vm22_vm0, %v7042_v63  ;;  %v10740_v63 = vld [vmem:[#allocation2 + $0x250] sm:$0x3]  ;;  %v647_v3 = vsel %vm529_vm2, %v645_v44, %v646_v8 }
  0xd1   :  { %320 = vst.msk [vmem:[#allocation2 + $0x309] sm:$0xff] %vm22_vm0, %v7043_v51  ;;  %v10747_v51 = vpack.i.bf16 %v629_v54, %v627_v4  ;;  %v643_v50 = vrot.slane %v10740_v63, 1  ;;  %v650_v4 = vrot.slane %v10749_v17, 1  ;;  %v651_v54 = vrot.slane %v10751_v35, 1 }
  0xd2   :  { %18596 = vst [vmem:[#allocation49_spill] sm:$0xff] %v10733_v6  ;;  %v10773_v6 = vld [vmem:[#allocation2 + $0x2b0] sm:$0x3] }
  0xd3   :  { %18597 = vst [vmem:[#allocation50_spill] sm:$0xff] %v10740_v63  ;;  %7355 = vrot.lane.b32.xlu1 %v10747_v51, %s10021_s18 }
  0xd4   :  { %321 = vst.msk [vmem:[#allocation2 + $0x319] sm:$0xff] %vm22_vm0, %v7046_v46  ;;  %v641_v46 = vrot.slane %v10738_v15, 1 }
  0xd5   :  { %322 = vst.msk [vmem:[#allocation2 + $0x321] sm:$0xff] %vm22_vm0, %v7047_v62  ;;  %v649_v62 = vsel %vm529_vm2, %v646_v8, %v648_v23  ;;  %v661_v23 = vrot.slane %v10769_v11, 1 }
  0xd6   :  { %18598 = vst [vmem:[#allocation51_spill] sm:$0xff] %v10747_v51  ;;  %v642_v39 = vsel %vm529_vm2, %v640_v47, %v641_v46  ;;  %v644_v44 = vsel %vm529_vm2, %v641_v46, %v643_v50  ;;  %v10779_v8 = vpack.i.bf16 %v649_v62, %v647_v3  ;;  %v10787_v51 = vld [vmem:[#allocation2 + $0x298] sm:$0x3]  ;;  %v654_v47 = vsel %vm529_vm2, %v651_v54, %v653_v29  ;;  %v10796_v62 = vld [vmem:[#allocation2 + $0x2c0] sm:$0xff] }
  0xd7   :  { %18599 = vst [vmem:[#allocation52_spill] sm:$0xff] %v10749_v17  ;;  %v652_v17 = vsel %vm529_vm2, %v650_v4, %v651_v54  ;;  %v663_v46 = vrot.slane %v10773_v6, 1  ;;  %v10792_v50 = vpack.i.bf16 %v644_v44, %v642_v39  ;;  %v10794_v3 = vld [vmem:[#allocation2 + $0x2b8] sm:$0xff]  ;;  %v658_v63 = vrot.slane %v10787_v51, 1 }
  0xd8   :  { %18600 = vst [vmem:[#allocation53_spill] sm:$0xff] %v10751_v35  ;;  %v10785_v35 = vld [vmem:[#allocation2 + $0x290] sm:$0xff]  ;;  %7375 = vrot.lane.b32.xlu2 %v10779_v8, %s10021_s18  ;;  %v10805_v29 = vpack.i.bf16 %v654_v47, %v652_v17  ;;  %v662_v4 = vsel %vm529_vm2, %v660_v16, %v661_v23  ;;  %v665_v39 = vrot.slane %v10794_v3, 1  ;;  %v666_v44 = vrot.slane %v10796_v62, 1 }
  0xd9   :  { %18601 = vst [vmem:[#allocation54_spill] sm:$0xff] %v10753_v45  ;;  %v10783_v45 = vld [vmem:[#allocation2 + $0x288] sm:$0xff]  ;;  %v664_v54 = vsel %vm529_vm2, %v661_v23, %v663_v46 }
  0xda   :  { %18602 = vst [vmem:[#allocation55_spill] sm:$0xff] %v10760_v57  ;;  %v10798_v57 = vld [vmem:[#allocation2 + $0x2c8] sm:$0x3]  ;;  %7380 = vrot.lane.b32.xlu0 %v10805_v29, %s10021_s18  ;;  %v10824_v23 = vpack.i.bf16 %v664_v54, %v662_v4  ;;  %v10839_v4 = vld [vmem:[#allocation2 + $0x300] sm:$0xff] }
  0xdb   :  { %18603 = vst [vmem:[#allocation56_spill] sm:$0xff] %v10767_v27  ;;  %v656_v27 = vrot.slane %v10785_v35, 1  ;;  %7370 = vrot.lane.b32.xlu1 %v10792_v50, %s10021_s18  ;;  %v10841_v54 = vld [vmem:[#allocation2 + $0x308] sm:$0xff] }
  0xdc   :  { %18604 = vst [vmem:[#allocation57_spill] sm:$0xff] %v10769_v11  ;;  %v655_v11 = vrot.slane %v10783_v45, 1 }
  0xdd   :  { %18605 = vst [vmem:[#allocation58_spill] sm:$0xff] %v10773_v6  ;;  %v668_v6 = vrot.slane %v10798_v57, 1  ;;  %v659_v16 = vsel %vm529_vm2, %v656_v27, %v658_v63 }
  0xde   :  { %18606 = vst [vmem:[#allocation59_spill] sm:$0xff] %v10779_v8  ;;  %v10818_v8 = vld [vmem:[#allocation2 + $0x2f8] sm:$0x3]  ;;  %v657_v17 = vsel %vm529_vm2, %v655_v11, %v656_v27 }
  0xdf   :  { %18607 = vst [vmem:[#allocation60_spill] sm:$0xff] %v10783_v45  ;;  %v10812_v45 = vld [vmem:[#allocation2 + $0x2e8] sm:$0xff]  ;;  %v669_v11 = vsel %vm529_vm2, %v666_v44, %v668_v6  ;;  %v678_v27 = vrot.slane %v10818_v8, 1  ;;  %v10837_v63 = vpack.i.bf16 %v659_v16, %v657_v17  ;;  %v680_v17 = vrot.slane %v10839_v4, 1 }
  0xe0   :  { %18608 = vst [vmem:[#allocation61_spill] sm:$0xff] %v10785_v35  ;;  %v10814_v35 = vld [vmem:[#allocation2 + $0x2f0] sm:$0xff]  ;;  %v675_v47 = vrot.slane %v10812_v45, 1  ;;  %7390 = vrot.lane.b32.xlu2 %v10824_v23, %s10021_s18  ;;  %v681_v16 = vrot.slane %v10841_v54, 1 }
  0xe1   :  { %18609 = vst [vmem:[#allocation62_spill] sm:$0xff] %v10787_v51  ;;  %v676_v46 = vrot.slane %v10814_v35, 1 }
  0xe2   :  { %18610 = vst [vmem:[#allocation63_spill] sm:$0xff] %v10792_v50  ;;  %v10832_v50 = vld [vmem:[#allocation2 + $0x2e0] sm:$0x3] }
  0xe3   :  { %18611 = vst [vmem:[#allocation64_spill] sm:$0xff] %v10794_v3  ;;  %v667_v3 = vsel %vm529_vm2, %v665_v39, %v666_v44  ;;  %v673_v51 = vrot.slane %v10832_v50, 1  ;;  %v677_v39 = vsel %vm529_vm2, %v675_v47, %v676_v46  ;;  %v679_v44 = vsel %vm529_vm2, %v676_v46, %v678_v27  ;;  %7385 = vrot.lane.b32.xlu1 %v10837_v63, %s10021_s18  ;;  %v10865_v47 = vld [vmem:[#allocation2 + $0x318] sm:$0xff]  ;;  %v10867_v46 = vld [vmem:[#allocation2 + $0x320] sm:$0xff] }
  0xe4   :  { %18612 = vst [vmem:[#allocation65_spill] sm:$0xff] %v10796_v62  ;;  %v10830_v62 = vld [vmem:[#allocation2 + $0x2d8] sm:$0xff]  ;;  %v10850_v6 = vpack.i.bf16 %v669_v11, %v667_v3  ;;  %v10863_v3 = vpack.i.bf16 %v679_v44, %v677_v39  ;;  %v10869_v11 = vld [vmem:[#allocation2 + $0x328] sm:$0x3]  ;;  %v9821_v27 = vld [vmem:[#allocation2] sm:$0xff]  ;;  %v685_v39 = vrot.slane %v10865_v47, 1 }
  0xe5   :  { %18613 = vst [vmem:[#allocation66_spill] sm:$0xff] %v10798_v57  ;;  %v10828_v57 = vld [vmem:[#allocation2 + $0x2d0] sm:$0xff]  ;;  %v686_v44 = vrot.slane %v10867_v46, 1 }
  0xe6   :  { %18614 = vst [vmem:[#allocation67_spill] sm:$0xff] %v10805_v29  ;;  %v10843_v29 = vld [vmem:[#allocation2 + $0x310] sm:$0x3]  ;;  %7395 = vrot.lane.b32.xlu0 %v10850_v6, %s10021_s18 }
  0xe7   :  { %18615 = vst [vmem:[#allocation68_spill] sm:$0xff] %v10812_v45  ;;  %v671_v45 = vrot.slane %v10830_v62, 1 }
  0xe8   :  { %18616 = vst [vmem:[#allocation69_spill] sm:$0xff] %v10814_v35  ;;  %v670_v35 = vrot.slane %v10828_v57, 1  ;;  %7405 = vrot.lane.b32.xlu2 %v10863_v3, %s10021_s18 }
  0xe9   :  { %18617 = vst [vmem:[#allocation70_spill] sm:$0xff] %v10818_v8  ;;  %v683_v8 = vrot.slane %v10843_v29, 1 }
  0xea   :  { %18618 = vst [vmem:[#allocation71_spill] sm:$0xff] %v10824_v23  ;;  %v691_v23 = vrot.slane %v9821_v27, 2 }
  0xeb   :  { %18619 = vst [vmem:[#allocation72_spill] sm:$0xff] %v10830_v62  ;;  %v674_v62 = vsel %vm529_vm2, %v671_v45, %v673_v51 }
  0xec   :  { %18620 = vst [vmem:[#allocation73_spill] sm:$0xff] %v10832_v50  ;;  %v672_v50 = vsel %vm529_vm2, %v670_v35, %v671_v45  ;;  %v682_v35 = vsel %vm529_vm2, %v680_v17, %v681_v16  ;;  %v684_v45 = vsel %vm529_vm2, %v681_v16, %v683_v8  ;;  %v696_v8 = vrot.slane %v10338_v49, 2 }
  0xed   :  { %18621 = vst [vmem:[#allocation74_spill] sm:$0xff] %v10837_v63  ;;  %v9823_v63 = vld [vmem:[#allocation2 + $0x10] sm:$0x3]  ;;  %v10873_v51 = vpack.i.bf16 %v674_v62, %v672_v50  ;;  %v10880_v27 = vpack.i.bf16 %v684_v45, %v682_v35  ;;  %v697_v50 = vrot.slane %v10346_v52, 2  ;;  %v699_v62 = vrot.slane %v10348_v53, 2 }
  0xee   :  { %18622 = vst [vmem:[#allocation75_spill] sm:$0xff] %v10839_v4  ;;  %v694_v4 = vrot.slane %v9823_v63, 2  ;;  %v687_v17 = vsel %vm529_vm2, %v685_v39, %v686_v44  ;;  %v709_v53 = vrot.slane %v10388_v13, 2  ;;  %v701_v45 = vrot.slane %v10322_v37, 2 }
  0xef   :  { %18623 = vst [vmem:[#allocation76_spill] sm:$0xff] %v10841_v54  ;;  %7400 = vrot.lane.b32.xlu1 %v10873_v51, %s10021_s18  ;;  %7410 = vrot.lane.b32.xlu0 %v10880_v27, %s10021_s18  ;;  %v698_v49 = vsel %vm690_vm3, %v696_v8, %v697_v50  ;;  %v700_v52 = vsel %vm690_vm3, %v697_v50, %v699_v62  ;;  %v704_v39 = vrot.slane %v10330_v41, 2  ;;  %v712_v13 = vrot.slane %v10314_v31, 2 }
  0xf0   :  { %18624 = vst [vmem:[#allocation77_spill] sm:$0xff] %v10843_v29  ;;  %v9822_v29 = vld [vmem:[#allocation2 + $0x8] sm:$0xff]  ;;  %v721_v8 = vrot.slane %v10396_v21, 2  ;;  %v724_v50 = vrot.slane %v10408_v25, 2  ;;  %v727_v25 = vrot.slane %v10444_v58, 2  ;;  %v737_v58 = vrot.slane %v10462_v10, 2 }
  0xf1   :  { %18625 = vst [vmem:[#allocation78_spill] sm:$0xff] %v10850_v6  ;;  %v692_v54 = vrot.slane %v9822_v29, 2  ;;  %v688_v6 = vrot.slane %v10869_v11, 1 }
  0xf2   :  { %18626 = vst [vmem:[#allocation79_spill] sm:$0xff] %v10880_v27 }
  0xf3   :  { %v693_v29 = vsel %vm690_vm3, %v691_v23, %v692_v54  ;;  %v695_v63 = vsel %vm690_vm3, %v692_v54, %v694_v4  ;;  %v689_v16 = vsel %vm529_vm2, %v686_v44, %v688_v6  ;;  %v706_v23 = vrot.slane %v10376_v9, 2 }
  0xf4   :  { %v7419_v35 = vpack.i.bf16 %v695_v63, %v693_v29  ;;  %v707_v4 = vrot.slane %v10386_v12, 2  ;;  %v10898_v54 = vpack.i.bf16 %v689_v16, %v687_v17  ;;  %v702_v6 = vrot.slane %v10328_v40, 2 }
  0xf5   :  { %v10904_v9 = vpack.i.bf16 %v700_v52, %v698_v49  ;;  %v711_v29 = vrot.slane %v10308_v28, 2  ;;  %v714_v63 = vrot.slane %v10316_v32, 2  ;;  %v722_v28 = vrot.slane %v10406_v24, 2 }
  0xf6   :  { %7420 = vrot.lane.b32.xlu2 %v7419_v35, %s10022_s6  ;;  %v708_v12 = vsel %vm690_vm3, %v706_v23, %v707_v4  ;;  %v710_v44 = vsel %vm690_vm3, %v707_v4, %v709_v53  ;;  %v703_v37 = vsel %vm690_vm3, %v701_v45, %v702_v6  ;;  %v705_v40 = vsel %vm690_vm3, %v702_v6, %v704_v39 }
  0xf7   :  { %7415 = vrot.lane.b32.xlu1 %v10898_v54, %s10021_s18  ;;  %7425 = vrot.lane.b32.xlu0 %v10904_v9, %s10022_s6  ;;  %v10917_v41 = vpack.i.bf16 %v710_v44, %v708_v12  ;;  %v713_v31 = vsel %vm690_vm3, %v711_v29, %v712_v13  ;;  %v715_v32 = vsel %vm690_vm3, %v712_v13, %v714_v63  ;;  %v716_v17 = vrot.slane %v10356_v61, 2  ;;  %v10940_v61 = vpop.permute.xlu2 %7280 }
  0xf8   :  { %v10924_v62 = vpack.i.bf16 %v705_v40, %v703_v37  ;;  %v717_v16 = vrot.slane %v10366_v0, 2  ;;  %v719_v35 = vrot.slane %v10368_v1, 2  ;;  %v10931_v21 = vpack.i.bf16 %v715_v32, %v713_v31  ;;  %18628 = vst [vmem:[#allocation81_spill] sm:$0xff] %v10940_v61 }
  0xf9   :  { %v723_v24 = vsel %vm690_vm3, %v721_v8, %v722_v28  ;;  %v725_v23 = vsel %vm690_vm3, %v722_v28, %v724_v50  ;;  %v726_v4 = vrot.slane %v10434_v55, 2  ;;  %v729_v49 = vrot.slane %v10446_v59, 2  ;;  %v18630_v50 = vld [vmem:[#allocation13_spill] sm:$0xff] }
  0xfa   :  { %18627 = vst [vmem:[#allocation80_spill] sm:$0xff] %v10924_v62  ;;  %v718_v0 = vsel %vm690_vm3, %v716_v17, %v717_v16  ;;  %v720_v1 = vsel %vm690_vm3, %v717_v16, %v719_v35  ;;  %v10946_v52 = vpack.i.bf16 %v725_v23, %v723_v24  ;;  %v736_v55 = vrot.slane %v10454_v7, 2  ;;  %v18631_v35 = vld [vmem:[#allocation20_spill] sm:$0xff] }
  0xfb   :  { %v728_v59 = vsel %vm690_vm3, %v726_v4, %v727_v25  ;;  %v730_v53 = vsel %vm690_vm3, %v727_v25, %v729_v49  ;;  %v739_v45 = vrot.slane %v10464_v14, 2  ;;  %v10953_v6 = vpack.i.bf16 %v720_v1, %v718_v0  ;;  %v18633_v4 = vld [vmem:[#allocation22_spill] sm:$0xff]  ;;  %v11006_v1 = vpop.permute.xlu0 %7260 }
  0xfc   :  { %v731_v39 = vrot.slane %v10416_v36, 2  ;;  %v732_v12 = vrot.slane %v10424_v42, 2  ;;  %v734_v44 = vrot.slane %v10426_v43, 2  ;;  %v10960_v7 = vpack.i.bf16 %v730_v53, %v728_v59  ;;  %v18638_v59 = vld [vmem:[#allocation25_spill] sm:$0xff] }
  0xfd   :  { %v738_v10 = vsel %vm690_vm3, %v736_v55, %v737_v58  ;;  %v740_v29 = vsel %vm690_vm3, %v737_v58, %v739_v45  ;;  %v741_v13 = vrot.slane %v10492_v48, 2  ;;  %v742_v14 = vrot.slane %v10500_v56, 2  ;;  %v18637_v55 = vld [vmem:[#allocation24_spill] sm:$0xff] }
  0xfe   :  { %7435 = vrot.lane.b32.xlu2 %v10917_v41, %s10022_s6  ;;  %v744_v63 = vrot.slane %v10502_v60, 2  ;;  %v733_v42 = vsel %vm690_vm3, %v731_v39, %v732_v12  ;;  %v735_v43 = vsel %vm690_vm3, %v732_v12, %v734_v44  ;;  %v10975_v37 = vpack.i.bf16 %v740_v29, %v738_v10  ;;  %v18639_v12 = vld [vmem:[#allocation26_spill] sm:$0xff]  ;;  %v18640_v29 = vld [vmem:[#allocation16_spill] sm:$0xff] }
  0xff   :  { %7430 = vrot.lane.b32.xlu1 %v10924_v62, %s10022_s6  ;;  %7440 = vrot.lane.b32.xlu0 %v10931_v21, %s10022_s6  ;;  %v10969_v36 = vpop.permute.xlu2 %7285  ;;  %v751_v48 = vrot.slane %v10508_v2, 2  ;;  %v752_v56 = vrot.slane %v10519_v18, 2  ;;  %v743_v60 = vsel %vm690_vm3, %v741_v13, %v742_v14  ;;  %v754_v8 = vrot.slane %v10521_v19, 2  ;;  %v18632_v19 = vld [vmem:[#allocation21_spill] sm:$0xff] }
 0x100   :  { %18629 = vst [vmem:[#allocation82_spill] sm:$0xff] %v10969_v36  ;;  %v745_v40 = vsel %vm690_vm3, %v742_v14, %v744_v63  ;;  %v10982_v28 = vpack.i.bf16 %v735_v43, %v733_v42  ;;  %v746_v31 = vrot.slane %v10472_v26, 2  ;;  %v747_v32 = vrot.slane %v10482_v30, 2  ;;  %v18641_v14 = vld [vmem:[#allocation17_spill] sm:$0xff]  ;;  %v18642_v42 = vld [vmem:[#allocation18_spill] sm:$0xff] }
 0x101   :  { %v749_v17 = vrot.slane %v18630_v50, 2  ;;  %v10989_v2 = vpack.i.bf16 %v745_v40, %v743_v60  ;;  %v753_v18 = vsel %vm690_vm3, %v751_v48, %v752_v56  ;;  %v755_v16 = vsel %vm690_vm3, %v752_v56, %v754_v8  ;;  %18636 = vst [vmem:[#allocation21_spill] sm:$0xff] %v11006_v1  ;;  %v18643_v8 = vld [vmem:[#allocation31_spill] sm:$0xff]  ;;  %v18687_v36 = vld [vmem:[#allocation65_spill] sm:$0xff] }
 0x102   :  { %v756_v24 = vrot.slane %v18631_v35, 2  ;;  %v757_v23 = vrot.slane %v18632_v19, 2  ;;  %v759_v25 = vrot.slane %v18633_v4, 2  ;;  %v748_v30 = vsel %vm690_vm3, %v746_v31, %v747_v32  ;;  %v11033_v35 = vpop.permute.xlu1 %7270  ;;  %v18648_v19 = vld [vmem:[#allocation35_spill] sm:$0xff] }
 0x103   :  { %v750_v49 = vsel %vm690_vm3, %v747_v32, %v749_v17  ;;  %v11004_v0 = vpack.i.bf16 %v755_v16, %v753_v18  ;;  %v766_v58 = vrot.slane %v18637_v55, 2  ;;  %v767_v53 = vrot.slane %v18638_v59, 2  ;;  %v18644_v32 = vld [vmem:[#allocation33_spill] sm:$0xff]  ;;  %18646 = vst [vmem:[#allocation24_spill] sm:$0xff] %v11033_v35  ;;  %v18652_v59 = vld [vmem:[#allocation28_spill] sm:$0xff] }
 0x104   :  { %v758_v45 = vsel %vm690_vm3, %v756_v24, %v757_v23  ;;  %v760_v39 = vsel %vm690_vm3, %v757_v23, %v759_v25  ;;  %v769_v44 = vrot.slane %v18639_v12, 2  ;;  %v11013_v10 = vpack.i.bf16 %v750_v49, %v748_v30  ;;  %v18649_v30 = vld [vmem:[#allocation36_spill] sm:$0xff]  ;;  %v18654_v12 = vld [vmem:[#allocation30_spill] sm:$0xff] }
 0x105   :  { %18635 = vst [vmem:[#allocation20_spill] sm:$0xff] %v11004_v0  ;;  %v761_v13 = vrot.slane %v18640_v29, 2  ;;  %v762_v63 = vrot.slane %v18641_v14, 2  ;;  %v764_v43 = vrot.slane %v18642_v42, 2  ;;  %v11020_v48 = vpack.i.bf16 %v760_v39, %v758_v45  ;;  %v18653_v45 = vld [vmem:[#allocation29_spill] sm:$0xff] }
 0x106   :  { %7450 = vrot.lane.b32.xlu2 %v10946_v52, %s10022_s6  ;;  %v768_v56 = vsel %vm690_vm3, %v766_v58, %v767_v53  ;;  %v770_v60 = vsel %vm690_vm3, %v767_v53, %v769_v44  ;;  %v771_v40 = vrot.slane %v10608_v22, 2  ;;  %v772_v31 = vrot.slane %v18643_v8, 2  ;;  %v11046_v58 = vpop.permute.xlu0 %7265 }
 0x107   :  { %7445 = vrot.lane.b32.xlu1 %v10953_v6, %s10022_s6  ;;  %7455 = vrot.lane.b32.xlu0 %v10960_v7, %s10022_s6  ;;  %v10998_v26 = vpop.permute.xlu2 %7300  ;;  %v774_v50 = vrot.slane %v18644_v32, 2  ;;  %v763_v18 = vsel %vm690_vm3, %v761_v13, %v762_v63  ;;  %v765_v16 = vsel %vm690_vm3, %v762_v63, %v764_v43  ;;  %v11037_v24 = vpack.i.bf16 %v770_v60, %v768_v56  ;;  %v18655_v63 = vld [vmem:[#allocation42_spill] sm:$0xff]  ;;  %v18656_v43 = vld [vmem:[#allocation43_spill] sm:$0xff]  ;;  %v18657_v60 = vld [vmem:[#allocation44_spill] sm:$0xff] }
 0x108   :  { %18634 = vst [vmem:[#allocation13_spill] sm:$0xff] %v10998_v26  ;;  %v781_v22 = vrot.slane %v10628_v33, 2  ;;  %v782_v23 = vrot.slane %v18648_v19, 2  ;;  %v773_v4 = vsel %vm690_vm3, %v771_v40, %v772_v31  ;;  %v784_v49 = vrot.slane %v18649_v30, 2 }
 0x109   :  { %18647 = vst [vmem:[#allocation25_spill] sm:$0xff] %v11037_v24  ;;  %v775_v25 = vsel %vm690_vm3, %v772_v31, %v774_v50  ;;  %v11044_v55 = vpack.i.bf16 %v765_v16, %v763_v18  ;;  %v776_v53 = vrot.slane %v18652_v59, 2  ;;  %v777_v39 = vrot.slane %v18653_v45, 2  ;;  %v18663_v59 = vld [vmem:[#allocation38_spill] sm:$0xff]  ;;  %v18664_v45 = vld [vmem:[#allocation39_spill] sm:$0xff] }
 0x10a   :  { %18651 = vst [vmem:[#allocation16_spill] sm:$0xff] %v11046_v58  ;;  %v779_v44 = vrot.slane %v18654_v12, 2  ;;  %v7499_v29 = vpack.i.bf16 %v775_v25, %v773_v4  ;;  %v783_v13 = vsel %vm690_vm3, %v781_v22, %v782_v23  ;;  %v785_v14 = vsel %vm690_vm3, %v782_v23, %v784_v49  ;;  %v11064_v50 = vpop.permute.xlu1 %7275  ;;  %v18665_v12 = vld [vmem:[#allocation40_spill] sm:$0xff] }
 0x10b   :  { %18650 = vst [vmem:[#allocation26_spill] sm:$0xff] %v11044_v55  ;;  %v786_v42 = vrot.slane %v18655_v63, 2  ;;  %v787_v56 = vrot.slane %v18656_v43, 2  ;;  %v789_v40 = vrot.slane %v18657_v60, 2  ;;  %v778_v31 = vsel %vm690_vm3, %v776_v53, %v777_v39 }
 0x10c   :  { %v780_v32 = vsel %vm690_vm3, %v777_v39, %v779_v44  ;;  %18659 = vst [vmem:[#allocation18_spill] sm:$0xff] %v11064_v50  ;;  %v11067_v18 = vpack.i.bf16 %v785_v14, %v783_v13  ;;  %v796_v16 = vrot.slane %v10697_v34, 2  ;;  %v797_v22 = vrot.slane %v10699_v5, 2 }
 0x10d   :  { %v788_v23 = vsel %vm690_vm3, %v786_v42, %v787_v56  ;;  %v790_v4 = vsel %vm690_vm3, %v787_v56, %v789_v40  ;;  %v799_v25 = vrot.slane %v10701_v38, 2  ;;  %v11074_v30 = vpack.i.bf16 %v780_v32, %v778_v31  ;;  %v18667_v56 = vld [vmem:[#allocation50_spill] sm:$0xff] }
 0x10e   :  { %7465 = vrot.lane.b32.xlu2 %v10975_v37, %s10022_s6  ;;  %18660 = vst [vmem:[#allocation31_spill] sm:$0xff] %v11067_v18  ;;  %v11076_v49 = vpop.permute.xlu0 %7290  ;;  %v791_v53 = vrot.slane %v18663_v59, 2  ;;  %v792_v39 = vrot.slane %v18664_v45, 2  ;;  %v794_v44 = vrot.slane %v18665_v12, 2  ;;  %v798_v13 = vsel %vm690_vm3, %v796_v16, %v797_v22 }
 0x10f   :  { %7460 = vrot.lane.b32.xlu1 %v10982_v28, %s10022_s6  ;;  %7470 = vrot.lane.b32.xlu0 %v10989_v2, %s10022_s6  ;;  %v11029_v17 = vpop.permute.xlu2 %7315  ;;  %18661 = vst [vmem:[#allocation33_spill] sm:$0xff] %v11074_v30  ;;  %v800_v14 = vsel %vm690_vm3, %v797_v22, %v799_v25  ;;  %v801_v38 = vrot.slane %v10736_v20, 2  ;;  %v802_v42 = vrot.slane %v10738_v15, 2  ;;  %v804_v60 = vrot.slane %v18667_v56, 2  ;;  %v18671_v22 = vld [vmem:[#allocation52_spill] sm:$0xff]  ;;  %v18672_v25 = vld [vmem:[#allocation53_spill] sm:$0xff] }
 0x110   :  { %18645 = vst [vmem:[#allocation22_spill] sm:$0xff] %v11029_v17  ;;  %v793_v31 = vsel %vm690_vm3, %v791_v53, %v792_v39  ;;  %v795_v32 = vsel %vm690_vm3, %v792_v39, %v794_v44  ;;  %v11100_v16 = vpack.i.bf16 %v800_v14, %v798_v13  ;;  %v812_v12 = vrot.slane %v18672_v25, 2  ;;  %v18676_v44 = vld [vmem:[#allocation46_spill] sm:$0xff]  ;;  %v18678_v13 = vld [vmem:[#allocation48_spill] sm:$0xff] }
 0x111   :  { %18662 = vst [vmem:[#allocation35_spill] sm:$0xff] %v11076_v49  ;;  %v803_v56 = vsel %vm690_vm3, %v801_v38, %v802_v42  ;;  %v805_v49 = vsel %vm690_vm3, %v802_v42, %v804_v60  ;;  %v11107_v53 = vpack.i.bf16 %v795_v32, %v793_v31  ;;  %v809_v14 = vrot.slane %v18678_v13, 2  ;;  %v18680_v60 = vld [vmem:[#allocation60_spill] sm:$0xff]  ;;  %v18681_v31 = vld [vmem:[#allocation61_spill] sm:$0xff] }
 0x112   :  { %18670 = vst [vmem:[#allocation30_spill] sm:$0xff] %v11100_v16  ;;  %v11116_v35 = vpack.i.bf16 %v805_v49, %v803_v56  ;;  %v817_v32 = vrot.slane %v18681_v31, 2 }
 0x113   :  { %18674 = vst [vmem:[#allocation42_spill] sm:$0xff] %v11107_v53 }
 0x114   :  { %18679 = vst [vmem:[#allocation44_spill] sm:$0xff] %v11116_v35 }
 0x116   :  { %7480 = vrot.lane.b32.xlu2 %v11004_v0, %s10022_s6  ;;  %v11109_v39 = vpop.permute.xlu0 %7305 }
 0x117   :  { %7475 = vrot.lane.b32.xlu1 %v11013_v10, %s10022_s6  ;;  %7485 = vrot.lane.b32.xlu0 %v11020_v48, %s10022_s6  ;;  %v11060_v8 = vpop.permute.xlu2 %7330  ;;  %18675 = vst [vmem:[#allocation43_spill] sm:$0xff] %v11109_v39  ;;  %v18682_v39 = vld [vmem:[#allocation62_spill] sm:$0xff] }
 0x118   :  { %18658 = vst [vmem:[#allocation17_spill] sm:$0xff] %v11060_v8  ;;  %v18677_v8 = vld [vmem:[#allocation47_spill] sm:$0xff]  ;;  %v819_v17 = vrot.slane %v18682_v39, 2  ;;  %v827_v39 = vrot.slane %v18687_v36, 2 }
 0x119   :  { %v807_v58 = vrot.slane %v18677_v8, 2 }
 0x11a   :  { %v820_v1 = vsel %vm690_vm3, %v817_v32, %v819_v17 }
 0x11b   :  { %v810_v49 = vsel %vm690_vm3, %v807_v58, %v809_v14  ;;  %v18691_v14 = vld [vmem:[#allocation56_spill] sm:$0xff] }
 0x11e   :  { %7495 = vrot.lane.b32.xlu2 %v11037_v24, %s10022_s6 }
 0x11f   :  { %7490 = vrot.lane.b32.xlu1 %v11044_v55, %s10022_s6  ;;  %7500 = vrot.lane.b32.xlu0 %v7499_v29, %s10022_s6  ;;  %v11083_v29 = vpack.i.bf16 %v790_v4, %v788_v23  ;;  %v11092_v40 = vpop.permute.xlu2 %7345  ;;  %v11096_v23 = vpop.permute.xlu1 %7295  ;;  %v811_v4 = vrot.slane %v18671_v22, 2  ;;  %v18705_v55 = vld [vmem:[#allocation69_spill] sm:$0xff] }
 0x120   :  { %18668 = vst [vmem:[#allocation28_spill] sm:$0xff] %v11092_v40  ;;  %v18673_v40 = vld [vmem:[#allocation54_spill] sm:$0xff] }
 0x121   :  { %18666 = vst [vmem:[#allocation36_spill] sm:$0xff] %v11083_v29  ;;  %v814_v50 = vrot.slane %v18673_v40, 2  ;;  %v813_v38 = vsel %vm690_vm3, %v811_v4, %v812_v12  ;;  %v816_v40 = vrot.slane %v18680_v60, 2  ;;  %v18686_v4 = vld [vmem:[#allocation64_spill] sm:$0xff] }
 0x122   :  { %18669 = vst [vmem:[#allocation29_spill] sm:$0xff] %v11096_v23  ;;  %v806_v23 = vrot.slane %v18676_v44, 2 }
 0x123   :  { %v815_v42 = vsel %vm690_vm3, %v812_v12, %v814_v50  ;;  %v826_v12 = vrot.slane %v18686_v4, 2  ;;  %v818_v61 = vsel %vm690_vm3, %v816_v40, %v817_v32  ;;  %v18695_v32 = vld [vmem:[#allocation72_spill] sm:$0xff] }
 0x124   :  { %v808_v13 = vsel %vm690_vm3, %v806_v23, %v807_v58  ;;  %v11133_v50 = vpack.i.bf16 %v815_v42, %v813_v38  ;;  %v11142_v58 = vpop.permute.xlu0 %7320  ;;  %v18693_v38 = vld [vmem:[#allocation58_spill] sm:$0xff] }
 0x125   :  { %v11140_v23 = vpack.i.bf16 %v810_v49, %v808_v13  ;;  %18690 = vst [vmem:[#allocation52_spill] sm:$0xff] %v11142_v58  ;;  %v824_v42 = vrot.slane %v18693_v38, 2  ;;  %v828_v40 = vsel %vm690_vm3, %v826_v12, %v827_v39  ;;  %v832_v13 = vrot.slane %v18695_v32, 2  ;;  %v18696_v49 = vld [vmem:[#allocation73_spill] sm:$0xff]  ;;  %v18699_v12 = vld [vmem:[#allocation75_spill] sm:$0xff] }
 0x126   :  { %7510 = vrot.lane.b32.xlu2 %v11067_v18, %s10022_s6  ;;  %18685 = vst [vmem:[#allocation40_spill] sm:$0xff] %v11133_v50  ;;  %v11149_v18 = vpack.i.bf16 %v820_v1, %v818_v61  ;;  %v834_v58 = vrot.slane %v18696_v49, 2 }
 0x127   :  { %7505 = vrot.lane.b32.xlu1 %v11074_v30, %s10022_s6  ;;  %7515 = vrot.lane.b32.xlu0 %v11083_v29, %s10022_s6  ;;  %v11125_v26 = vpop.permute.xlu2 %7360  ;;  %v11129_v56 = vpop.permute.xlu1 %7310  ;;  %18689 = vst [vmem:[#allocation50_spill] sm:$0xff] %v11140_v23 }
 0x128   :  { %18683 = vst [vmem:[#allocation38_spill] sm:$0xff] %v11125_v26  ;;  %v18688_v26 = vld [vmem:[#allocation66_spill] sm:$0xff] }
 0x129   :  { %18684 = vst [vmem:[#allocation39_spill] sm:$0xff] %v11129_v56  ;;  %v821_v56 = vrot.slane %v18691_v14, 2 }
 0x12a   :  { %18694 = vst [vmem:[#allocation53_spill] sm:$0xff] %v11149_v18 }
 0x12e   :  { %7525 = vrot.lane.b32.xlu2 %v11100_v16, %s10022_s6  ;;  %v829_v16 = vrot.slane %v18688_v26, 2  ;;  %v831_v26 = vrot.slane %v10828_v57, 2 }
 0x12f   :  { %7520 = vrot.lane.b32.xlu1 %v11107_v53, %s10022_s6  ;;  %7530 = vrot.lane.b32.xlu0 %v11116_v35, %s10022_s6  ;;  %v18692_v53 = vld [vmem:[#allocation57_spill] sm:$0xff]  ;;  %v11162_v1 = vpop.permute.xlu1 %7325 }
 0x130   :  { %v822_v35 = vrot.slane %v18692_v53, 2  ;;  %v830_v17 = vsel %vm690_vm3, %v827_v39, %v829_v16  ;;  %18698 = vst [vmem:[#allocation46_spill] sm:$0xff] %v11162_v1  ;;  %v841_v39 = vrot.slane %v18699_v12, 2  ;;  %v833_v30 = vsel %vm690_vm3, %v831_v26, %v832_v13 }
 0x131   :  { %v11166_v16 = vpack.i.bf16 %v830_v17, %v828_v40  ;;  %v18706_v40 = vld [vmem:[#allocation70_spill] sm:$0xff] }
 0x132   :  { %v11158_v29 = vpop.permute.xlu2 %7375  ;;  %v823_v38 = vsel %vm690_vm3, %v821_v56, %v822_v35  ;;  %v825_v61 = vsel %vm690_vm3, %v822_v35, %v824_v42  ;;  %v11175_v35 = vpop.permute.xlu0 %7335  ;;  %v18704_v42 = vld [vmem:[#allocation68_spill] sm:$0xff]  ;;  %v839_v17 = vrot.slane %v18706_v40, 2 }
 0x133   :  { %18697 = vst [vmem:[#allocation54_spill] sm:$0xff] %v11158_v29  ;;  %v18701_v29 = vld [vmem:[#allocation77_spill] sm:$0xff]  ;;  %v11173_v56 = vpack.i.bf16 %v825_v61, %v823_v38  ;;  %v836_v1 = vrot.slane %v18704_v42, 2  ;;  %v849_v38 = vrot.slane %v10869_v11, 2 }
 0x134   :  { %v844_v24 = vrot.slane %v18701_v29, 2  ;;  %18703 = vst [vmem:[#allocation48_spill] sm:$0xff] %v11175_v35  ;;  %v846_v29 = vrot.slane %v10865_v47, 2 }
 0x135   :  { %18702 = vst [vmem:[#allocation47_spill] sm:$0xff] %v11173_v56 }
 0x136   :  { %7540 = vrot.lane.b32.xlu2 %v11133_v50, %s10022_s6  ;;  %v18700_v50 = vld [vmem:[#allocation76_spill] sm:$0xff] }
 0x137   :  { %7535 = vrot.lane.b32.xlu1 %v11140_v23, %s10022_s6  ;;  %7545 = vrot.lane.b32.xlu0 %v11149_v18, %s10022_s6  ;;  %v842_v49 = vrot.slane %v18700_v50, 2  ;;  %v835_v23 = vsel %vm690_vm3, %v832_v13, %v834_v58  ;;  %v837_v18 = vrot.slane %v18705_v55, 2  ;;  %v847_v13 = vrot.slane %v10867_v46, 2 }
 0x138   :  { %v11182_v0 = vpack.i.bf16 %v835_v23, %v833_v30  ;;  %v11195_v23 = vpop.permute.xlu1 %7340 }
 0x139   :  { %v843_v26 = vsel %vm690_vm3, %v841_v39, %v842_v49  ;;  %v845_v58 = vsel %vm690_vm3, %v842_v49, %v844_v24  ;;  %v838_v40 = vsel %vm690_vm3, %v836_v1, %v837_v18  ;;  %v840_v30 = vsel %vm690_vm3, %v837_v18, %v839_v17  ;;  %18709 = vst [vmem:[#allocation62_spill] sm:$0xff] %v11195_v23 }
 0x13a   :  { %18707 = vst [vmem:[#allocation60_spill] sm:$0xff] %v11182_v0  ;;  %v11191_v61 = vpop.permute.xlu2 %7390  ;;  %v11199_v24 = vpack.i.bf16 %v845_v58, %v843_v26  ;;  %v848_v39 = vsel %vm690_vm3, %v846_v29, %v847_v13  ;;  %v850_v11 = vsel %vm690_vm3, %v847_v13, %v849_v38  ;;  %v11203_v49 = vpack.i.bf16 %v840_v30, %v838_v40  ;;  %v11205_v35 = vpop.permute.xlu0 %7350  ;;  %v9824_v26 = vld [vmem:[#allocation2 + $0x30] sm:$0xff]  ;;  %v9825_v58 = vld [vmem:[#allocation2 + $0x38] sm:$0xff]  ;;  %v9827_v40 = vld [vmem:[#allocation2 + $0x20] sm:$0xff] }
 0x13b   :  { %18708 = vst [vmem:[#allocation61_spill] sm:$0xff] %v11191_v61  ;;  %v11209_v1 = vpack.i.bf16 %v850_v11, %v848_v39  ;;  %v11219_v29 = vpack.i.bf16 %v9825_v58, %v9824_v26  ;;  %v7194_v13 = vld [vmem:[%s17839_s0 + $0x78] sm:$0xff]   ;;  %v9839_v61 = vld [vmem:[#allocation2 + $0xb0] sm:$0xff] }
 0x13c   :  { %18710 = vst [vmem:[#allocation64_spill] sm:$0xff] %v11205_v35  ;;  %v9826_v38 = vld [vmem:[#allocation2 + $0x18] sm:$0xff]  ;;  %v6986_v11 = vunpack.c.l.bf16 %v7194_v13  ;;  %v9829_v35 = vld [vmem:[#allocation2 + $0x50] sm:$0xff] }
 0x13d   :  { %18711 = vst [vmem:[#allocation65_spill] sm:$0xff] %v11209_v1  ;;  %v7579_v30 = vpack.i.bf16 %v9827_v40, %v9826_v38  ;;  %v9831_v38 = vld [vmem:[#allocation2 + $0x80] sm:$0xff] }
 0x13e   :  { %7555 = vrot.lane.b32.xlu2 %v11166_v16, %s10022_s6  ;;  %291 = vst.msk [vmem:[#allocation2 + $0x181] sm:$0xff] %vm22_vm0, %v6986_v11 }
 0x13f   :  { %7550 = vrot.lane.b32.xlu1 %v11173_v56, %s10022_s6  ;;  %7560 = vrot.lane.b32.xlu0 %v11182_v0, %s10022_s6 }
 0x142   :  { %v11213_v18 = vpop.permute.xlu2 %7405  ;;  %v11224_v39 = vpop.permute.xlu0 %7365 }
 0x143   :  { %18712 = vst [vmem:[#allocation66_spill] sm:$0xff] %v11213_v18  ;;  %v6987_v18 = vunpack.c.h.bf16 %v7194_v13  ;;  %v9830_v13 = vld [vmem:[#allocation2 + $0x78] sm:$0xff] }
 0x144   :  { %18714 = vst [vmem:[#allocation57_spill] sm:$0xff] %v11224_v39  ;;  %v11239_v40 = vpack.i.bf16 %v9831_v38, %v9830_v13  ;;  %v9832_v39 = vld [vmem:[#allocation2 + $0x60] sm:$0xff]  ;;  %v9837_v38 = vld [vmem:[#allocation2 + $0xc8] sm:$0xff] }
 0x145   :  { %v11215_v17 = vpop.permute.xlu1 %7355  ;;  %292 = vst.msk [vmem:[#allocation2 + $0x189] sm:$0xff] %vm22_vm0, %v6987_v18  ;;  %v9834_v18 = vld [vmem:[#allocation2 + $0x90] sm:$0xff] }
 0x146   :  { %7570 = vrot.lane.b32.xlu2 %v11199_v24, %s10022_s6  ;;  %18713 = vst [vmem:[#allocation56_spill] sm:$0xff] %v11215_v17  ;;  %v9828_v17 = vld [vmem:[#allocation2 + $0x48] sm:$0xff] }
 0x147   :  { %7565 = vrot.lane.b32.xlu1 %v11203_v49, %s10022_s6  ;;  %7575 = vrot.lane.b32.xlu0 %v11209_v1, %s10022_s6  ;;  %v11228_v23 = vpack.i.bf16 %v9829_v35, %v9828_v17  ;;  %18717 = vst [vmem:[#allocation73_spill] sm:$0xff] %v11239_v40  ;;  %v9833_v35 = vld [vmem:[#allocation2 + $0x68] sm:$0xff] }
 0x148   :  { %v11241_v17 = vpack.i.bf16 %v9833_v35, %v9832_v39  ;;  %v9836_v39 = vld [vmem:[#allocation2 + $0xc0] sm:$0xff] }
 0x149   :  { %v11257_v35 = vpack.i.bf16 %v9837_v38, %v9836_v39 }
 0x14a   :  { %18718 = vst [vmem:[#allocation75_spill] sm:$0xff] %v11241_v17 }
 0x14b   :  { %18723 = vst [vmem:[#allocation70_spill] sm:$0xff] %v11257_v35 }
 0x14c   :  { %v11243_v11 = vpop.permute.xlu0 %7380 }
 0x14d   :  { %v11235_v58 = vpop.permute.xlu1 %7370  ;;  %18719 = vst [vmem:[#allocation76_spill] sm:$0xff] %v11243_v11  ;;  %v9838_v11 = vld [vmem:[#allocation2 + $0xa8] sm:$0xff] }
 0x14e   :  { %7585 = vrot.lane.b32.xlu2 %v11219_v29, %s10023_s9  ;;  %18716 = vst [vmem:[#allocation72_spill] sm:$0xff] %v11235_v58 }
 0x14f   :  { %7580 = vrot.lane.b32.xlu1 %v7579_v30, %s10023_s9  ;;  %7590 = vrot.lane.b32.xlu0 %v11228_v23, %s10023_s9  ;;  %v9835_v30 = vld [vmem:[#allocation2 + $0x98] sm:$0xff] }
 0x150   :  { %v11233_v26 = vpop.permute.xlu2 %7420 }
 0x151   :  { %18715 = vst [vmem:[#allocation58_spill] sm:$0xff] %v11233_v26  ;;  %v11247_v26 = vpack.i.bf16 %v9835_v30, %v9834_v18  ;;  %v9840_v30 = vld [vmem:[#allocation2 + $0xd8] sm:$0xff] }
 0x153   :  { %18720 = vst [vmem:[#allocation77_spill] sm:$0xff] %v11247_v26 }
 0x155   :  { %v11253_v13 = vpop.permute.xlu1 %7385 }
 0x156   :  { %7600 = vrot.lane.b32.xlu2 %v11239_v40, %s10023_s9  ;;  %18722 = vst [vmem:[#allocation69_spill] sm:$0xff] %v11253_v13  ;;  %v11259_v40 = vpack.i.bf16 %v9839_v61, %v9838_v11  ;;  %v9842_v61 = vld [vmem:[#allocation2 + $0x108] sm:$0xff]  ;;  %v9843_v11 = vld [vmem:[#allocation2 + $0x110] sm:$0xff] }
 0x157   :  { %7595 = vrot.lane.b32.xlu1 %v11241_v17, %s10023_s9  ;;  %7605 = vrot.lane.b32.xlu0 %v11247_v26, %s10023_s9  ;;  %v11275_v38 = vpack.i.bf16 %v9843_v11, %v9842_v61 }
 0x158   :  { %v11251_v58 = vpop.permute.xlu2 %7435  ;;  %18724 = vst [vmem:[#allocation83_spill] sm:$0xff] %v11259_v40  ;;  %v11261_v18 = vpop.permute.xlu0 %7395 }
 0x159   :  { %18721 = vst [vmem:[#allocation68_spill] sm:$0xff] %v11251_v58  ;;  %v9841_v58 = vld [vmem:[#allocation2 + $0xe0] sm:$0xff] }
 0x15a   :  { %18725 = vst [vmem:[#allocation84_spill] sm:$0xff] %v11261_v18  ;;  %v11265_v17 = vpack.i.bf16 %v9841_v58, %v9840_v30  ;;  %v9844_v18 = vld [vmem:[#allocation2 + $0xf0] sm:$0xff]  ;;  %v9846_v30 = vld [vmem:[#allocation2 + $0x120] sm:$0xff] }
 0x15b   :  { %18729 = vst [vmem:[#allocation88_spill] sm:$0xff] %v11275_v38 }
 0x15c   :  { %18726 = vst [vmem:[#allocation85_spill] sm:$0xff] %v11265_v17 }
 0x15e   :  { %7615 = vrot.lane.b32.xlu2 %v11257_v35, %s10023_s9  ;;  %v9845_v35 = vld [vmem:[#allocation2 + $0xf8] sm:$0xff] }
 0x15f   :  { %7610 = vrot.lane.b32.xlu1 %v11259_v40, %s10023_s9  ;;  %7620 = vrot.lane.b32.xlu0 %v11265_v17, %s10023_s9  ;;  %v11277_v26 = vpack.i.bf16 %v9845_v35, %v9844_v18  ;;  %v9848_v35 = vld [vmem:[#allocation2 + $0x150] sm:$0xff]  ;;  %v9849_v18 = vld [vmem:[#allocation2 + $0x158] sm:$0xff] }
 0x160   :  { %v11269_v13 = vpop.permute.xlu2 %7450  ;;  %v11293_v11 = vpack.i.bf16 %v9849_v18, %v9848_v35  ;;  %v11307_v35 = vld [vmem:[#allocation2 + $0x180] sm:$0xff]  ;;  %v11309_v18 = vld [vmem:[#allocation2 + $0x188] sm:$0xff] }
 0x161   :  { %18727 = vst [vmem:[#allocation86_spill] sm:$0xff] %v11269_v13  ;;  %v11271_v39 = vpop.permute.xlu1 %7400  ;;  %v11279_v58 = vpop.permute.xlu0 %7410  ;;  %v9847_v13 = vld [vmem:[#allocation2 + $0x128] sm:$0xff] }
 0x162   :  { %18728 = vst [vmem:[#allocation87_spill] sm:$0xff] %v11271_v39  ;;  %v11283_v40 = vpack.i.bf16 %v9847_v13, %v9846_v30  ;;  %v9852_v30 = vld [vmem:[#allocation2 + $0x168] sm:$0xff] }
 0x163   :  { %18730 = vst [vmem:[#allocation89_spill] sm:$0xff] %v11277_v26 }
 0x164   :  { %18731 = vst [vmem:[#allocation90_spill] sm:$0xff] %v11279_v58  ;;  %v9850_v58 = vld [vmem:[#allocation2 + $0x138] sm:$0xff] }
 0x165   :  { %18732 = vst [vmem:[#allocation91_spill] sm:$0xff] %v11283_v40 }
 0x166   :  { %7630 = vrot.lane.b32.xlu2 %v11275_v38, %s10023_s9  ;;  %18735 = vst [vmem:[#allocation94_spill] sm:$0xff] %v11293_v11  ;;  %v9851_v38 = vld [vmem:[#allocation2 + $0x140] sm:$0xff] }
 0x167   :  { %7625 = vrot.lane.b32.xlu1 %v11277_v26, %s10023_s9  ;;  %7635 = vrot.lane.b32.xlu0 %v11283_v40, %s10023_s9  ;;  %v11295_v17 = vpack.i.bf16 %v9851_v38, %v9850_v58  ;;  %v9854_v58 = vld [vmem:[#allocation2 + $0x1c8] sm:$0xff] }
 0x168   :  { %v11287_v39 = vpop.permute.xlu2 %7465 }
 0x169   :  { %18733 = vst [vmem:[#allocation92_spill] sm:$0xff] %v11287_v39  ;;  %v11289_v61 = vpop.permute.xlu1 %7415  ;;  %v11297_v13 = vpop.permute.xlu0 %7425  ;;  %v9853_v39 = vld [vmem:[#allocation2 + $0x170] sm:$0xff] }
 0x16a   :  { %18734 = vst [vmem:[#allocation93_spill] sm:$0xff] %v11289_v61  ;;  %v11301_v26 = vpack.i.bf16 %v9853_v39, %v9852_v30  ;;  %v7210_v39 = vld [vmem:[%s17839_s0 + $0xf8] sm:$0xff]   ;;  %v11320_v30 = vpack.i.bf16 %v11309_v18, %v11307_v35 }
 0x16b   :  { %18736 = vst [vmem:[#allocation95_spill] sm:$0xff] %v11295_v17  ;;  %v7051_v40 = vunpack.c.h.bf16 %v7210_v39 }
 0x16c   :  { %18737 = vst [vmem:[#allocation96_spill] sm:$0xff] %v11297_v13  ;;  %v9855_v13 = vld [vmem:[#allocation2 + $0x1d0] sm:$0xff] }
 0x16d   :  { %324 = vst.msk [vmem:[#allocation2 + $0x339] sm:$0xff] %vm22_vm0, %v7051_v40 }
 0x16e   :  { %7645 = vrot.lane.b32.xlu2 %v11293_v11, %s10023_s9  ;;  %v7659_v11 = vpack.i.bf16 %v9855_v13, %v9854_v58 }
 0x16f   :  { %7640 = vrot.lane.b32.xlu1 %v11295_v17, %s10023_s9  ;;  %7650 = vrot.lane.b32.xlu0 %v11301_v26, %s10023_s9  ;;  %v7050_v17 = vunpack.c.l.bf16 %v7210_v39  ;;  %v7674_v39 = vpack.i.bf16 %v18664_v45, %v18663_v59  ;;  %v7689_v59 = vpack.i.bf16 %v18677_v8, %v18676_v44  ;;  %v7704_v8 = vpack.i.bf16 %v18692_v53, %v18691_v14 }
 0x170   :  { %v11305_v61 = vpop.permute.xlu2 %7480  ;;  %v7719_v53 = vpack.i.bf16 %v18705_v55, %v18704_v42  ;;  %v7729_v55 = vpack.i.bf16 %v10867_v46, %v10865_v47  ;;  %v18758_v42 = vld [vmem:[#allocation8_spill] sm:$0xff]  ;;  %v18761_v47 = vld [vmem:[#allocation7_spill] sm:$0xff] }
 0x171   :  { %18738 = vst [vmem:[#allocation97_spill] sm:$0xff] %v11305_v61  ;;  %v11311_v38 = vpop.permute.xlu1 %7430  ;;  %v11322_v61 = vpop.permute.xlu0 %7440 }
 0x172   :  { %18739 = vst [vmem:[#allocation98_spill] sm:$0xff] %v11311_v38  ;;  %v7664_v38 = vpack.i.bf16 %v18648_v19, %v10628_v33  ;;  %v7679_v19 = vpack.i.bf16 %v10699_v5, %v10697_v34  ;;  %v7694_v5 = vpack.i.bf16 %v18672_v25, %v18671_v22  ;;  %v7709_v22 = vpack.i.bf16 %v18687_v36, %v18686_v4 }
 0x173   :  { %18740 = vst [vmem:[#allocation99_spill] sm:$0xff] %v11322_v61  ;;  %v7724_v36 = vpack.i.bf16 %v18700_v50, %v18699_v12  ;;  %v18801_v61 = vld [vmem:[#allocation67_spill] sm:$0xff] }
 0x174   :  { %323 = vst.msk [vmem:[#allocation2 + $0x331] sm:$0xff] %vm22_vm0, %v7050_v17 }
 0x176   :  { %7660 = vrot.lane.b32.xlu2 %v7659_v11, %s10023_s9  ;;  %v7669_v11 = vpack.i.bf16 %v18656_v43, %v18655_v63  ;;  %v7684_v63 = vpack.i.bf16 %v10738_v15, %v10736_v20  ;;  %v7699_v20 = vpack.i.bf16 %v18681_v31, %v18680_v60  ;;  %v7714_v60 = vpack.i.bf16 %v18695_v32, %v10828_v57 }
 0x177   :  { %7655 = vrot.lane.b32.xlu1 %v11320_v30, %s10023_s9  ;;  %7665 = vrot.lane.b32.xlu0 %v7664_v38, %s10023_s9 }
 0x178   :  { %v11331_v13 = vpop.permute.xlu2 %7495 }
 0x179   :  { %18741 = vst [vmem:[#allocation100_spill] sm:$0xff] %v11331_v13  ;;  %v11333_v58 = vpop.permute.xlu1 %7445  ;;  %v11340_v33 = vpop.permute.xlu0 %7455 }
 0x17a   :  { %18742 = vst [vmem:[#allocation101_spill] sm:$0xff] %v11333_v58  ;;  %v18799_v58 = vld [vmem:[#allocation63_spill] sm:$0xff] }
 0x17b   :  { %18743 = vst [vmem:[#allocation102_spill] sm:$0xff] %v11340_v33  ;;  %v11390_v4 = vld [vmem:[#allocation2 + $0x330] sm:$0xff]  ;;  %v11392_v14 = vld [vmem:[#allocation2 + $0x338] sm:$0xff] }
 0x17c   :  { %v11402_v57 = vpack.i.bf16 %v11392_v14, %v11390_v4 }
 0x17e   :  { %7675 = vrot.lane.b32.xlu2 %v7674_v39, %s10023_s9 }
 0x17f   :  { %7670 = vrot.lane.b32.xlu1 %v7669_v11, %s10023_s9  ;;  %7680 = vrot.lane.b32.xlu0 %v7679_v19, %s10023_s9  ;;  %v18760_v19 = vld [vmem:[#allocation10_spill] sm:$0xff] }
 0x180   :  { %v11346_v40 = vpop.permute.xlu2 %7510 }
 0x181   :  { %18744 = vst [vmem:[#allocation103_spill] sm:$0xff] %v11346_v40  ;;  %v11348_v17 = vpop.permute.xlu1 %7460  ;;  %v11355_v43 = vpop.permute.xlu0 %7470  ;;  %v18796_v40 = vld [vmem:[#allocation49_spill] sm:$0xff] }
 0x182   :  { %18745 = vst [vmem:[#allocation104_spill] sm:$0xff] %v11348_v17 }
 0x183   :  { %18746 = vst [vmem:[#allocation105_spill] sm:$0xff] %v11355_v43  ;;  %v862_v43 = vrot.slane %v11390_v4, 1 }
 0x186   :  { %7690 = vrot.lane.b32.xlu2 %v7689_v59, %s10023_s9  ;;  %v11425_v59 = vld [vmem:[#allocation2 + $0x190] sm:$0x3] }
 0x187   :  { %7685 = vrot.lane.b32.xlu1 %v7684_v63, %s10023_s9  ;;  %7695 = vrot.lane.b32.xlu0 %v7694_v5, %s10023_s9  ;;  %v857_v63 = vrot.slane %v11307_v35, 1  ;;  %v858_v5 = vrot.slane %v11309_v18, 1 }
 0x188   :  { %v11361_v34 = vpop.permute.xlu2 %7525 }
 0x189   :  { %18747 = vst [vmem:[#allocation106_spill] sm:$0xff] %v11361_v34  ;;  %v11363_v45 = vpop.permute.xlu1 %7475  ;;  %v11370_v15 = vpop.permute.xlu0 %7485  ;;  %v18793_v34 = vld [vmem:[#allocation51_spill] sm:$0xff] }
 0x18a   :  { %18748 = vst [vmem:[#allocation107_spill] sm:$0xff] %v11363_v45 }
 0x18b   :  { %18749 = vst [vmem:[#allocation108_spill] sm:$0xff] %v11370_v15 }
 0x18e   :  { %7705 = vrot.lane.b32.xlu2 %v7704_v8, %s10023_s9 }
 0x18f   :  { %7700 = vrot.lane.b32.xlu1 %v7699_v20, %s10023_s9  ;;  %7710 = vrot.lane.b32.xlu0 %v7709_v22, %s10023_s9  ;;  %v18764_v20 = vld [vmem:[#allocation6_spill] sm:$0xff]  ;;  %v860_v22 = vrot.slane %v11425_v59, 1 }
 0x190   :  { %v11376_v25 = vpop.permute.xlu2 %7540 }
 0x191   :  { %18750 = vst [vmem:[#allocation109_spill] sm:$0xff] %v11376_v25  ;;  %v11378_v44 = vpop.permute.xlu1 %7490  ;;  %v11385_v31 = vpop.permute.xlu0 %7500  ;;  %v18789_v25 = vld [vmem:[#allocation45_spill] sm:$0xff] }
 0x192   :  { %18751 = vst [vmem:[#allocation110_spill] sm:$0xff] %v11378_v44 }
 0x193   :  { %18752 = vst [vmem:[#allocation111_spill] sm:$0xff] %v11385_v31 }
 0x196   :  { %7720 = vrot.lane.b32.xlu2 %v7719_v53, %s10023_s9 }
 0x197   :  { %7715 = vrot.lane.b32.xlu1 %v7714_v60, %s10023_s9  ;;  %7725 = vrot.lane.b32.xlu0 %v7724_v36, %s10023_s9  ;;  %v859_v60 = vsel %vm529_vm2, %v857_v63, %v858_v5  ;;  %v861_v36 = vsel %vm529_vm2, %v858_v5, %v860_v22  ;;  %v18772_v63 = vld [vmem:[#allocation15_spill] sm:$0xff]  ;;  %v18773_v5 = vld [vmem:[#allocation12_spill] sm:$0xff] }
 0x198   :  { %v11395_v38 = vpop.permute.xlu2 %7555 }
 0x199   :  { %18753 = vst [vmem:[#allocation112_spill] sm:$0xff] %v11395_v38  ;;  %v11397_v39 = vpop.permute.xlu1 %7505  ;;  %v11406_v50 = vpop.permute.xlu0 %7515  ;;  %v18782_v38 = vld [vmem:[#allocation34_spill] sm:$0xff] }
 0x19a   :  { %18754 = vst [vmem:[#allocation113_spill] sm:$0xff] %v11397_v39 }
 0x19b   :  { %18755 = vst [vmem:[#allocation114_spill] sm:$0xff] %v11406_v50 }
 0x19e   :  { %7735 = vrot.lane.b32.xlu2 %v11402_v57, %s10023_s9 }
 0x19f   :  { %7730 = vrot.lane.b32.xlu1 %v7729_v55, %s10023_s9  ;;  %7740 = vrot.lane.b32.xlu0 %v18758_v42, %s10024_s12  ;;  %v18766_v55 = vld [vmem:[#allocation11_spill] sm:$0xff]  ;;  %v11440_v42 = vpack.i.bf16 %v861_v36, %v859_v60 }
 0x1a0   :  { %v11411_v32 = vpop.permute.xlu2 %7570  ;;  %v18776_v36 = vld [vmem:[#allocation23_spill] sm:$0xff] }
 0x1a1   :  { %18756 = vst [vmem:[#allocation115_spill] sm:$0xff] %v11411_v32  ;;  %v11413_v12 = vpop.permute.xlu1 %7520  ;;  %v11417_v11 = vpop.permute.xlu0 %7530  ;;  %v18770_v32 = vld [vmem:[#allocation14_spill] sm:$0xff] }
 0x1a2   :  { %18757 = vst [vmem:[#allocation116_spill] sm:$0xff] %v11413_v12 }
 0x1a3   :  { %18759 = vst [vmem:[#allocation8_spill] sm:$0xff] %v11417_v11  ;;  %v18767_v11 = vld [vmem:[#allocation9_spill] sm:$0xff] }
 0x1a6   :  { %7750 = vrot.lane.b32.xlu2 %v18760_v19, %s10024_s12 }
 0x1a7   :  { %7745 = vrot.lane.b32.xlu1 %v18761_v47, %s10024_s12  ;;  %7755 = vrot.lane.b32.xlu0 %v18764_v20, %s10024_s12 }
 0x1a8   :  { %v11423_v46 = vpop.permute.xlu2 %7585 }
 0x1a9   :  { %18762 = vst [vmem:[#allocation10_spill] sm:$0xff] %v11423_v46  ;;  %v11429_v8 = vpop.permute.xlu1 %7535  ;;  %v11434_v53 = vpop.permute.xlu0 %7545  ;;  %v18795_v46 = vld [vmem:[#allocation55_spill] sm:$0xff] }
 0x1aa   :  { %18763 = vst [vmem:[#allocation7_spill] sm:$0xff] %v11429_v8 }
 0x1ab   :  { %18765 = vst [vmem:[#allocation6_spill] sm:$0xff] %v11434_v53 }
 0x1ae   :  { %7765 = vrot.lane.b32.xlu2 %v18766_v55, %s10024_s12 }
 0x1af   :  { %7760 = vrot.lane.b32.xlu1 %v18767_v11, %s10024_s12  ;;  %7770 = vrot.lane.b32.xlu0 %v18770_v32, %s10024_s12 }
 0x1b0   :  { %v11444_v8 = vpop.permute.xlu2 %7600 }
 0x1b1   :  { %18768 = vst [vmem:[#allocation11_spill] sm:$0xff] %v11444_v8  ;;  %v11446_v12 = vpop.permute.xlu1 %7550  ;;  %v11450_v53 = vpop.permute.xlu0 %7560 }
 0x1b2   :  { %18769 = vst [vmem:[#allocation9_spill] sm:$0xff] %v11446_v12  ;;  %v18778_v12 = vld [vmem:[#allocation27_spill] sm:$0xff] }
 0x1b3   :  { %18771 = vst [vmem:[#allocation14_spill] sm:$0xff] %v11450_v53  ;;  %v18779_v53 = vld [vmem:[#allocation19_spill] sm:$0xff] }
 0x1b6   :  { %7780 = vrot.lane.b32.xlu2 %v18772_v63, %s10024_s12 }
 0x1b7   :  { %7775 = vrot.lane.b32.xlu1 %v18773_v5, %s10024_s12  ;;  %7785 = vrot.lane.b32.xlu0 %v18776_v36, %s10024_s12 }
 0x1b8   :  { %v11456_v22 = vpop.permute.xlu2 %7615 }
 0x1b9   :  { %18774 = vst [vmem:[#allocation15_spill] sm:$0xff] %v11456_v22  ;;  %v11458_v60 = vpop.permute.xlu1 %7565  ;;  %v11462_v8 = vpop.permute.xlu0 %7575 }
 0x1ba   :  { %18775 = vst [vmem:[#allocation12_spill] sm:$0xff] %v11458_v60  ;;  %v18784_v60 = vld [vmem:[#allocation37_spill] sm:$0xff] }
 0x1bb   :  { %18777 = vst [vmem:[#allocation23_spill] sm:$0xff] %v11462_v8  ;;  %v18785_v8 = vld [vmem:[#allocation32_spill] sm:$0xff] }
 0x1be   :  { %7795 = vrot.lane.b32.xlu2 %v18778_v12, %s10024_s12 }
 0x1bf   :  { %7790 = vrot.lane.b32.xlu1 %v18779_v53, %s10024_s12  ;;  %7800 = vrot.lane.b32.xlu0 %v18782_v38, %s10024_s12 }
 0x1c0   :  { %v11468_v50 = vpop.permute.xlu2 %7630 }
 0x1c1   :  { %18780 = vst [vmem:[#allocation27_spill] sm:$0xff] %v11468_v50  ;;  %v11470_v39 = vpop.permute.xlu1 %7580  ;;  %v11474_v22 = vpop.permute.xlu0 %7590 }
 0x1c2   :  { %18781 = vst [vmem:[#allocation19_spill] sm:$0xff] %v11470_v39 }
 0x1c3   :  { %18783 = vst [vmem:[#allocation34_spill] sm:$0xff] %v11474_v22  ;;  %v18790_v22 = vld [vmem:[#allocation41_spill] sm:$0xff] }
 0x1c6   :  { %7810 = vrot.lane.b32.xlu2 %v18784_v60, %s10024_s12 }
 0x1c7   :  { %7805 = vrot.lane.b32.xlu1 %v18785_v8, %s10024_s12  ;;  %7815 = vrot.lane.b32.xlu0 %v11440_v42, %s10024_s12 }
 0x1c8   :  { %v11480_v31 = vpop.permute.xlu2 %7645 }
 0x1c9   :  { %18786 = vst [vmem:[#allocation37_spill] sm:$0xff] %v11480_v31  ;;  %v11482_v44 = vpop.permute.xlu1 %7595  ;;  %v11486_v50 = vpop.permute.xlu0 %7605  ;;  %v11498_v31 = vld [vmem:[#allocation2 + $0x340] sm:$0x3] }
 0x1ca   :  { %18787 = vst [vmem:[#allocation32_spill] sm:$0xff] %v11482_v44  ;;  %v865_v17 = vrot.slane %v11498_v31, 1 }
 0x1cb   :  { %18788 = vst [vmem:[#allocation117_spill] sm:$0xff] %v11486_v50  ;;  %v863_v50 = vrot.slane %v11392_v14, 1 }
 0x1ce   :  { %7825 = vrot.lane.b32.xlu2 %v18789_v25, %s10024_s12 }
 0x1cf   :  { %7820 = vrot.lane.b32.xlu1 %v18790_v22, %s10024_s12  ;;  %7830 = vrot.lane.b32.xlu0 %v18793_v34, %s10024_s12  ;;  %v864_v22 = vsel %vm529_vm2, %v862_v43, %v863_v50  ;;  %v18802_v43 = vld [vmem:[#allocation59_spill] sm:$0xff] }
 0x1d0   :  { %v11492_v15 = vpop.permute.xlu2 %7660 }
 0x1d1   :  { %18791 = vst [vmem:[#allocation45_spill] sm:$0xff] %v11492_v15  ;;  %v11494_v45 = vpop.permute.xlu1 %7610  ;;  %v11500_v44 = vpop.permute.xlu0 %7620 }
 0x1d2   :  { %18792 = vst [vmem:[#allocation41_spill] sm:$0xff] %v11494_v45  ;;  %v866_v45 = vsel %vm529_vm2, %v863_v50, %v865_v17  ;;  %v18805_v50 = vld [vmem:[#allocation74_spill] sm:$0xff] }
 0x1d3   :  { %18794 = vst [vmem:[#allocation51_spill] sm:$0xff] %v11500_v44  ;;  %v11509_v15 = vpack.i.bf16 %v866_v45, %v864_v22 }
 0x1d6   :  { %7840 = vrot.lane.b32.xlu2 %v18795_v46, %s10024_s12 }
 0x1d7   :  { %7835 = vrot.lane.b32.xlu1 %v18796_v40, %s10024_s12  ;;  %7845 = vrot.lane.b32.xlu0 %v18799_v58, %s10024_s12 }
 0x1d8   :  { %v11513_v33 = vpop.permute.xlu2 %7675 }
 0x1d9   :  { %18797 = vst [vmem:[#allocation55_spill] sm:$0xff] %v11513_v33  ;;  %v11515_v44 = vpop.permute.xlu1 %7625  ;;  %v11519_v13 = vpop.permute.xlu0 %7635 }
 0x1da   :  { %18798 = vst [vmem:[#allocation49_spill] sm:$0xff] %v11515_v44  ;;  %v18807_v44 = vld [vmem:[#allocation78_spill] sm:$0xff] }
 0x1db   :  { %18800 = vst [vmem:[#allocation63_spill] sm:$0xff] %v11519_v13  ;;  %v18808_v13 = vld [vmem:[#allocation71_spill] sm:$0xff] }
 0x1de   :  { %7855 = vrot.lane.b32.xlu2 %v18801_v61, %s10024_s12 }
 0x1df   :  { %7850 = vrot.lane.b32.xlu1 %v18802_v43, %s10024_s12  ;;  %7860 = vrot.lane.b32.xlu0 %v18805_v50, %s10024_s12 }
 0x1e0   :  { %v11525_v17 = vpop.permute.xlu2 %7690 }
 0x1e1   :  { %18803 = vst [vmem:[#allocation67_spill] sm:$0xff] %v11525_v17  ;;  %v11527_v45 = vpop.permute.xlu1 %7640  ;;  %v11531_v22 = vpop.permute.xlu0 %7650 }
 0x1e2   :  { %18804 = vst [vmem:[#allocation59_spill] sm:$0xff] %v11527_v45 }
 0x1e3   :  { %18806 = vst [vmem:[#allocation74_spill] sm:$0xff] %v11531_v22 }
 0x1e6   :  { %7870 = vrot.lane.b32.xlu2 %v18807_v44, %s10024_s12 }
 0x1e7   :  { %7865 = vrot.lane.b32.xlu1 %v18808_v13, %s10024_s12  ;;  %7875 = vrot.lane.b32.xlu0 %v10873_v51, %s10024_s12 }
 0x1e8   :  { %v11537_v33 = vpop.permute.xlu2 %7705 }
 0x1e9   :  { %18809 = vst [vmem:[#allocation78_spill] sm:$0xff] %v11537_v33  ;;  %v11539_v39 = vpop.permute.xlu1 %7655  ;;  %v11543_v17 = vpop.permute.xlu0 %7665 }
 0x1ea   :  { %18810 = vst [vmem:[#allocation71_spill] sm:$0xff] %v11539_v39 }
 0x1eb   :  { %18811 = vst [vmem:[#allocation118_spill] sm:$0xff] %v11543_v17 }
 0x1ee   :  { %7885 = vrot.lane.b32.xlu2 %v10880_v27, %s10024_s12  ;;  %v870_v27 = vrot.slane %v11425_v59, 2 }
 0x1ef   :  { %7880 = vrot.lane.b32.xlu1 %v10863_v3, %s10024_s12  ;;  %7890 = vrot.lane.b32.xlu0 %v10898_v54, %s10024_s12 }
 0x1f0   :  { %v11549_v22 = vpop.permute.xlu2 %7720 }
 0x1f1   :  { %18812 = vst [vmem:[#allocation119_spill] sm:$0xff] %v11549_v22  ;;  %v11551_v45 = vpop.permute.xlu1 %7670  ;;  %v11555_v33 = vpop.permute.xlu0 %7680 }
 0x1f2   :  { %18813 = vst [vmem:[#allocation120_spill] sm:$0xff] %v11551_v45  ;;  %v867_v45 = vrot.slane %v11307_v35, 2 }
 0x1f3   :  { %18814 = vst [vmem:[#allocation121_spill] sm:$0xff] %v11555_v33  ;;  %v868_v33 = vrot.slane %v11309_v18, 2 }
 0x1f6   :  { %7900 = vrot.lane.b32.xlu2 %v10904_v9, %s10025_s13  ;;  %v869_v9 = vsel %vm690_vm3, %v867_v45, %v868_v33 }
 0x1f7   :  { %7895 = vrot.lane.b32.xlu1 %v11509_v15, %s10024_s12  ;;  %7905 = vrot.lane.b32.xlu0 %v10924_v62, %s10025_s13 }
 0x1f8   :  { %v11561_v39 = vpop.permute.xlu2 %7735 }
 0x1f9   :  { %18815 = vst [vmem:[#allocation122_spill] sm:$0xff] %v11561_v39  ;;  %v11563_v17 = vpop.permute.xlu1 %7685  ;;  %v11567_v22 = vpop.permute.xlu0 %7695  ;;  %v871_v39 = vsel %vm690_vm3, %v868_v33, %v870_v27 }
 0x1fa   :  { %18816 = vst [vmem:[#allocation123_spill] sm:$0xff] %v11563_v17  ;;  %v11580_v62 = vpack.i.bf16 %v871_v39, %v869_v9  ;;  %v18828_v9 = vld [vmem:[#allocation20_spill] sm:$0xff] }
 0x1fb   :  { %18817 = vst [vmem:[#allocation124_spill] sm:$0xff] %v11567_v22 }
 0x1fc   :  { %18819 = vst [vmem:[#allocation126_spill] sm:$0xff] %v11580_v62 }
 0x1fe   :  { %7915 = vrot.lane.b32.xlu2 %v10931_v21, %s10025_s13 }
 0x1ff   :  { %7910 = vrot.lane.b32.xlu1 %v10917_v41, %s10025_s13  ;;  %7920 = vrot.lane.b32.xlu0 %v10953_v6, %s10025_s13 }
 0x200   :  { %v11578_v17 = vpop.permute.xlu2 %7750 }
 0x201   :  { %18818 = vst [vmem:[#allocation125_spill] sm:$0xff] %v11578_v17  ;;  %v11582_v22 = vpop.permute.xlu1 %7700  ;;  %v11586_v35 = vpop.permute.xlu0 %7710  ;;  %v18836_v17 = vld [vmem:[#allocation33_spill] sm:$0xff] }
 0x202   :  { %18820 = vst [vmem:[#allocation127_spill] sm:$0xff] %v11582_v22 }
 0x203   :  { %18821 = vst [vmem:[#allocation128_spill] sm:$0xff] %v11586_v35  ;;  %v18831_v35 = vld [vmem:[#allocation26_spill] sm:$0xff] }
 0x206   :  { %7930 = vrot.lane.b32.xlu2 %v10960_v7, %s10025_s13 }
 0x207   :  { %7925 = vrot.lane.b32.xlu1 %v10946_v52, %s10025_s13  ;;  %7935 = vrot.lane.b32.xlu0 %v10982_v28, %s10025_s13 }
 0x208   :  { %v11592_v27 = vpop.permute.xlu2 %7765 }
 0x209   :  { %18822 = vst [vmem:[#allocation129_spill] sm:$0xff] %v11592_v27  ;;  %v11594_v18 = vpop.permute.xlu1 %7715  ;;  %v11598_v33 = vpop.permute.xlu0 %7725 }
 0x20a   :  { %18823 = vst [vmem:[#allocation130_spill] sm:$0xff] %v11594_v18 }
 0x20b   :  { %18824 = vst [vmem:[#allocation131_spill] sm:$0xff] %v11598_v33 }
 0x20e   :  { %7945 = vrot.lane.b32.xlu2 %v10989_v2, %s10025_s13 }
 0x20f   :  { %7940 = vrot.lane.b32.xlu1 %v10975_v37, %s10025_s13  ;;  %7950 = vrot.lane.b32.xlu0 %v11013_v10, %s10025_s13 }
 0x210   :  { %v11604_v39 = vpop.permute.xlu2 %7780 }
 0x211   :  { %18825 = vst [vmem:[#allocation132_spill] sm:$0xff] %v11604_v39  ;;  %v11606_v59 = vpop.permute.xlu1 %7730  ;;  %v11610_v45 = vpop.permute.xlu0 %7740 }
 0x212   :  { %18826 = vst [vmem:[#allocation133_spill] sm:$0xff] %v11606_v59  ;;  %v18833_v59 = vld [vmem:[#allocation25_spill] sm:$0xff] }
 0x213   :  { %18827 = vst [vmem:[#allocation134_spill] sm:$0xff] %v11610_v45 }
 0x216   :  { %7960 = vrot.lane.b32.xlu2 %v11020_v48, %s10025_s13 }
 0x217   :  { %7955 = vrot.lane.b32.xlu1 %v18828_v9, %s10025_s13  ;;  %7965 = vrot.lane.b32.xlu0 %v18831_v35, %s10025_s13 }
 0x218   :  { %v11616_v33 = vpop.permute.xlu2 %7795 }
 0x219   :  { %18829 = vst [vmem:[#allocation20_spill] sm:$0xff] %v11616_v33  ;;  %v11618_v18 = vpop.permute.xlu1 %7745  ;;  %v11622_v39 = vpop.permute.xlu0 %7755 }
 0x21a   :  { %18830 = vst [vmem:[#allocation135_spill] sm:$0xff] %v11618_v18  ;;  %v18838_v18 = vld [vmem:[#allocation36_spill] sm:$0xff] }
 0x21b   :  { %18832 = vst [vmem:[#allocation26_spill] sm:$0xff] %v11622_v39  ;;  %v18839_v39 = vld [vmem:[#allocation31_spill] sm:$0xff] }
 0x21e   :  { %7975 = vrot.lane.b32.xlu2 %v11580_v62, %s10025_s13 }
 0x21f   :  { %7970 = vrot.lane.b32.xlu1 %v18833_v59, %s10025_s13  ;;  %7980 = vrot.lane.b32.xlu0 %v18836_v17, %s10025_s13  ;;  %v18842_v59 = vld [vmem:[#allocation42_spill] sm:$0xff] }
 0x220   :  { %v11628_v22 = vpop.permute.xlu2 %7810  ;;  %v18845_v17 = vld [vmem:[#allocation30_spill] sm:$0xff] }
 0x221   :  { %18834 = vst [vmem:[#allocation136_spill] sm:$0xff] %v11628_v22  ;;  %v11630_v27 = vpop.permute.xlu1 %7760  ;;  %v11634_v33 = vpop.permute.xlu0 %7770 }
 0x222   :  { %18835 = vst [vmem:[#allocation137_spill] sm:$0xff] %v11630_v27  ;;  %v18844_v27 = vld [vmem:[#allocation44_spill] sm:$0xff] }
 0x223   :  { %18837 = vst [vmem:[#allocation33_spill] sm:$0xff] %v11634_v33 }
 0x226   :  { %7990 = vrot.lane.b32.xlu2 %v18838_v18, %s10025_s13 }
 0x227   :  { %7985 = vrot.lane.b32.xlu1 %v18839_v39, %s10025_s13  ;;  %7995 = vrot.lane.b32.xlu0 %v18842_v59, %s10025_s13  ;;  %v18848_v39 = vld [vmem:[#allocation50_spill] sm:$0xff] }
 0x228   :  { %v11640_v45 = vpop.permute.xlu2 %7825 }
 0x229   :  { %18840 = vst [vmem:[#allocation138_spill] sm:$0xff] %v11640_v45  ;;  %v11642_v62 = vpop.permute.xlu1 %7775  ;;  %v11646_v22 = vpop.permute.xlu0 %7785 }
 0x22a   :  { %18841 = vst [vmem:[#allocation139_spill] sm:$0xff] %v11642_v62  ;;  %v18850_v62 = vld [vmem:[#allocation53_spill] sm:$0xff] }
 0x22b   :  { %18843 = vst [vmem:[#allocation140_spill] sm:$0xff] %v11646_v22  ;;  %v18851_v22 = vld [vmem:[#allocation40_spill] sm:$0xff] }
 0x22e   :  { %8005 = vrot.lane.b32.xlu2 %v18844_v27, %s10025_s13 }
 0x22f   :  { %8000 = vrot.lane.b32.xlu1 %v18845_v17, %s10025_s13  ;;  %8010 = vrot.lane.b32.xlu0 %v18848_v39, %s10025_s13 }
 0x230   :  { %v11652_v33 = vpop.permute.xlu2 %7840 }
 0x231   :  { %18846 = vst [vmem:[#allocation30_spill] sm:$0xff] %v11652_v33  ;;  %v11654_v18 = vpop.permute.xlu1 %7790  ;;  %v11658_v45 = vpop.permute.xlu0 %7800 }
 0x232   :  { %18847 = vst [vmem:[#allocation141_spill] sm:$0xff] %v11654_v18  ;;  %v873_v18 = vrot.slane %v11392_v14, 2 }
 0x233   :  { %18849 = vst [vmem:[#allocation50_spill] sm:$0xff] %v11658_v45  ;;  %v872_v45 = vrot.slane %v11390_v4, 2 }
 0x236   :  { %8020 = vrot.lane.b32.xlu2 %v18850_v62, %s10025_s13  ;;  %v875_v62 = vrot.slane %v11498_v31, 2 }
 0x237   :  { %8015 = vrot.lane.b32.xlu1 %v18851_v22, %s10025_s13  ;;  %8025 = vrot.lane.b32.xlu0 %v11173_v56, %s10025_s13 }
 0x238   :  { %v11664_v59 = vpop.permute.xlu2 %7855 }
 0x239   :  { %18852 = vst [vmem:[#allocation40_spill] sm:$0xff] %v11664_v59  ;;  %v11666_v27 = vpop.permute.xlu1 %7805  ;;  %v11670_v33 = vpop.permute.xlu0 %7815 }
 0x23a   :  { %18853 = vst [vmem:[#allocation142_spill] sm:$0xff] %v11666_v27 }
 0x23b   :  { %18854 = vst [vmem:[#allocation143_spill] sm:$0xff] %v11670_v33  ;;  %v874_v33 = vsel %vm690_vm3, %v872_v45, %v873_v18 }
 0x23e   :  { %8035 = vrot.lane.b32.xlu2 %v11182_v0, %s10025_s13  ;;  %v876_v0 = vsel %vm690_vm3, %v873_v18, %v875_v62  ;;  %v18864_v18 = vld [vmem:[#allocation75_spill] sm:$0xff] }
 0x23f   :  { %8030 = vrot.lane.b32.xlu1 %v11166_v16, %s10025_s13  ;;  %8040 = vrot.lane.b32.xlu0 %v11203_v49, %s10025_s13  ;;  %v11691_v31 = vpack.i.bf16 %v876_v0, %v874_v33 }
 0x240   :  { %v11679_v59 = vpop.permute.xlu2 %7870 }
 0x241   :  { %18855 = vst [vmem:[#allocation144_spill] sm:$0xff] %v11679_v59  ;;  %v11681_v27 = vpop.permute.xlu1 %7820  ;;  %v11687_v56 = vpop.permute.xlu0 %7830  ;;  %v18867_v59 = vld [vmem:[#allocation73_spill] sm:$0xff] }
 0x242   :  { %18856 = vst [vmem:[#allocation145_spill] sm:$0xff] %v11681_v27  ;;  %v11778_v27 = vld [vmem:[#allocation2 + $0x200] sm:$0xff] }
 0x243   :  { %18857 = vst [vmem:[#allocation146_spill] sm:$0xff] %v11687_v56 }
 0x244   :  { %18858 = vst [vmem:[#allocation147_spill] sm:$0xff] %v11691_v31 }
 0x245   :  { %18891 = vst [vmem:[#allocation158_spill] sm:$0xff] %v11778_v27 }
 0x246   :  { %8050 = vrot.lane.b32.xlu2 %v11209_v1, %s10025_s13  ;;  %v11823_v1 = vld [vmem:[#allocation2 + $0x260] sm:$0xff] }
 0x247   :  { %8045 = vrot.lane.b32.xlu1 %v11199_v24, %s10025_s13  ;;  %8055 = vrot.lane.b32.xlu0 %v11691_v31, %s10025_s13  ;;  %18904 = vst [vmem:[#allocation171_spill] sm:$0xff] %v11823_v1  ;;  %v11848_v31 = vld [vmem:[#allocation2 + $0x2a0] sm:$0xff] }
 0x248   :  { %v11695_v4 = vpop.permute.xlu2 %7885  ;;  %18912 = vst [vmem:[#allocation179_spill] sm:$0xff] %v11848_v31 }
 0x249   :  { %18859 = vst [vmem:[#allocation148_spill] sm:$0xff] %v11695_v4  ;;  %v11697_v14 = vpop.permute.xlu1 %7835  ;;  %v11701_v45 = vpop.permute.xlu0 %7845  ;;  %v18866_v4 = vld [vmem:[#allocation77_spill] sm:$0xff] }
 0x24a   :  { %18860 = vst [vmem:[#allocation149_spill] sm:$0xff] %v11697_v14 }
 0x24b   :  { %18861 = vst [vmem:[#allocation150_spill] sm:$0xff] %v11701_v45 }
 0x24e   :  { %8065 = vrot.lane.b32.xlu2 %v11228_v23, %s10026_s14 }
 0x24f   :  { %8060 = vrot.lane.b32.xlu1 %v11219_v29, %s10026_s14  ;;  %8070 = vrot.lane.b32.xlu0 %v18864_v18, %s10026_s14  ;;  %v18870_v29 = vld [vmem:[#allocation83_spill] sm:$0xff]  ;;  %v18873_v18 = vld [vmem:[#allocation70_spill] sm:$0xff] }
 0x250   :  { %v11707_v62 = vpop.permute.xlu2 %7900 }
 0x251   :  { %18862 = vst [vmem:[#allocation151_spill] sm:$0xff] %v11707_v62  ;;  %v11709_v0 = vpop.permute.xlu1 %7850  ;;  %v11713_v33 = vpop.permute.xlu0 %7860  ;;  %v11821_v62 = vld [vmem:[#allocation2 + $0x258] sm:$0xff] }
 0x252   :  { %18863 = vst [vmem:[#allocation152_spill] sm:$0xff] %v11709_v0  ;;  %v18872_v0 = vld [vmem:[#allocation85_spill] sm:$0xff] }
 0x253   :  { %18865 = vst [vmem:[#allocation75_spill] sm:$0xff] %v11713_v33 }
 0x254   :  { %18903 = vst [vmem:[#allocation170_spill] sm:$0xff] %v11821_v62 }
 0x256   :  { %8080 = vrot.lane.b32.xlu2 %v18866_v4, %s10026_s14 }
 0x257   :  { %8075 = vrot.lane.b32.xlu1 %v18867_v59, %s10026_s14  ;;  %8085 = vrot.lane.b32.xlu0 %v18870_v29, %s10026_s14  ;;  %v18876_v59 = vld [vmem:[#allocation89_spill] sm:$0xff]  ;;  %v18879_v29 = vld [vmem:[#allocation88_spill] sm:$0xff] }
 0x258   :  { %v11719_v45 = vpop.permute.xlu2 %7915 }
 0x259   :  { %18868 = vst [vmem:[#allocation77_spill] sm:$0xff] %v11719_v45  ;;  %v11721_v23 = vpop.permute.xlu1 %7865  ;;  %v11725_v14 = vpop.permute.xlu0 %7875 }
 0x25a   :  { %18869 = vst [vmem:[#allocation73_spill] sm:$0xff] %v11721_v23  ;;  %v18878_v23 = vld [vmem:[#allocation91_spill] sm:$0xff] }
 0x25b   :  { %18871 = vst [vmem:[#allocation83_spill] sm:$0xff] %v11725_v14 }
 0x25e   :  { %8095 = vrot.lane.b32.xlu2 %v18872_v0, %s10026_s14 }
 0x25f   :  { %8090 = vrot.lane.b32.xlu1 %v18873_v18, %s10026_s14  ;;  %8100 = vrot.lane.b32.xlu0 %v18876_v59, %s10026_s14  ;;  %v18882_v18 = vld [vmem:[#allocation95_spill] sm:$0xff]  ;;  %v18884_v59 = vld [vmem:[#allocation94_spill] sm:$0xff] }
 0x260   :  { %v11731_v33 = vpop.permute.xlu2 %7930 }
 0x261   :  { %18874 = vst [vmem:[#allocation85_spill] sm:$0xff] %v11731_v33  ;;  %v11733_v4 = vpop.permute.xlu1 %7880  ;;  %v11737_v56 = vpop.permute.xlu0 %7890 }
 0x262   :  { %18875 = vst [vmem:[#allocation70_spill] sm:$0xff] %v11733_v4 }
 0x263   :  { %18877 = vst [vmem:[#allocation89_spill] sm:$0xff] %v11737_v56 }
 0x266   :  { %8110 = vrot.lane.b32.xlu2 %v18878_v23, %s10026_s14  ;;  %v11757_v23 = vld [vmem:[#allocation2 + $0x198] sm:$0xff] }
 0x267   :  { %8105 = vrot.lane.b32.xlu1 %v18879_v29, %s10026_s14  ;;  %8115 = vrot.lane.b32.xlu0 %v18882_v18, %s10026_s14  ;;  %v11759_v29 = vld [vmem:[#allocation2 + $0x1a0] sm:$0xff] }
 0x268   :  { %v11743_v14 = vpop.permute.xlu2 %7945  ;;  %v11765_v18 = vld [vmem:[#allocation2 + $0x1e0] sm:$0xff] }
 0x269   :  { %18880 = vst [vmem:[#allocation91_spill] sm:$0xff] %v11743_v14  ;;  %v11745_v0 = vpop.permute.xlu1 %7895  ;;  %v11749_v33 = vpop.permute.xlu0 %7905  ;;  %v11776_v14 = vld [vmem:[#allocation2 + $0x1f8] sm:$0xff] }
 0x26a   :  { %18881 = vst [vmem:[#allocation88_spill] sm:$0xff] %v11745_v0  ;;  %v11767_v0 = vld [vmem:[#allocation2 + $0x1e8] sm:$0xff] }
 0x26b   :  { %18883 = vst [vmem:[#allocation95_spill] sm:$0xff] %v11749_v33  ;;  %v11788_v33 = vld [vmem:[#allocation2 + $0x228] sm:$0xff] }
 0x26c   :  { %18887 = vst [vmem:[#allocation154_spill] sm:$0xff] %v11765_v18 }
 0x26d   :  { %18888 = vst [vmem:[#allocation155_spill] sm:$0xff] %v11767_v0 }
 0x26e   :  { %8125 = vrot.lane.b32.xlu2 %v11301_v26, %s10026_s14  ;;  %v8139_v26 = vpack.i.bf16 %v11767_v0, %v11765_v18  ;;  %18890 = vst [vmem:[#allocation157_spill] sm:$0xff] %v11776_v14  ;;  %v11794_v18 = vld [vmem:[#allocation2 + $0x210] sm:$0xff]  ;;  %v11796_v0 = vld [vmem:[#allocation2 + $0x218] sm:$0xff] }
 0x26f   :  { %8120 = vrot.lane.b32.xlu1 %v18884_v59, %s10026_s14  ;;  %8130 = vrot.lane.b32.xlu0 %v11320_v30, %s10026_s14  ;;  %v8134_v59 = vpack.i.bf16 %v11759_v29, %v11757_v23  ;;  %v8144_v30 = vpack.i.bf16 %v11778_v27, %v11776_v14  ;;  %18894 = vst [vmem:[#allocation161_spill] sm:$0xff] %v11788_v33  ;;  %v11815_v27 = vld [vmem:[#allocation2 + $0x270] sm:$0xff] }
 0x270   :  { %v11755_v56 = vpop.permute.xlu2 %7960  ;;  %18901 = vst [vmem:[#allocation168_spill] sm:$0xff] %v11815_v27 }
 0x271   :  { %18885 = vst [vmem:[#allocation94_spill] sm:$0xff] %v11755_v56  ;;  %v11761_v4 = vpop.permute.xlu1 %7910  ;;  %v11773_v56 = vpop.permute.xlu0 %7920 }
 0x272   :  { %18886 = vst [vmem:[#allocation153_spill] sm:$0xff] %v11761_v4 }
 0x273   :  { %18889 = vst [vmem:[#allocation156_spill] sm:$0xff] %v11773_v56  ;;  %v11790_v56 = vld [vmem:[#allocation2 + $0x230] sm:$0xff] }
 0x274   :  { %18895 = vst [vmem:[#allocation162_spill] sm:$0xff] %v11790_v56 }
 0x276   :  { %8140 = vrot.lane.b32.xlu2 %v8139_v26, %s10026_s14  ;;  %v8154_v26 = vpack.i.bf16 %v11790_v56, %v11788_v33 }
 0x277   :  { %8135 = vrot.lane.b32.xlu1 %v8134_v59, %s10026_s14  ;;  %8145 = vrot.lane.b32.xlu0 %v8144_v30, %s10026_s14  ;;  %v8149_v59 = vpack.i.bf16 %v11796_v0, %v11794_v18  ;;  %v11805_v30 = vld [vmem:[#allocation2 + $0x248] sm:$0xff] }
 0x278   :  { %v11783_v45 = vpop.permute.xlu2 %7975  ;;  %18898 = vst [vmem:[#allocation165_spill] sm:$0xff] %v11805_v30 }
 0x279   :  { %18892 = vst [vmem:[#allocation159_spill] sm:$0xff] %v11783_v45  ;;  %v11785_v4 = vpop.permute.xlu1 %7925  ;;  %v11800_v14 = vpop.permute.xlu0 %7935  ;;  %v11803_v45 = vld [vmem:[#allocation2 + $0x240] sm:$0xff] }
 0x27a   :  { %18893 = vst [vmem:[#allocation160_spill] sm:$0xff] %v11785_v4  ;;  %v8159_v4 = vpack.i.bf16 %v11805_v30, %v11803_v45  ;;  %v11842_v30 = vld [vmem:[#allocation2 + $0x2b8] sm:$0xff] }
 0x27b   :  { %18896 = vst [vmem:[#allocation163_spill] sm:$0xff] %v11800_v14  ;;  %v11817_v14 = vld [vmem:[#allocation2 + $0x278] sm:$0xff] }
 0x27c   :  { %18897 = vst [vmem:[#allocation164_spill] sm:$0xff] %v11803_v45 }
 0x27d   :  { %18902 = vst [vmem:[#allocation169_spill] sm:$0xff] %v11817_v14 }
 0x27e   :  { %8155 = vrot.lane.b32.xlu2 %v8154_v26, %s10026_s14  ;;  %v8169_v26 = vpack.i.bf16 %v11817_v14, %v11815_v27  ;;  %18910 = vst [vmem:[#allocation177_spill] sm:$0xff] %v11842_v30 }
 0x27f   :  { %8150 = vrot.lane.b32.xlu1 %v8149_v59, %s10026_s14  ;;  %8160 = vrot.lane.b32.xlu0 %v8159_v4, %s10026_s14  ;;  %v8164_v59 = vpack.i.bf16 %v11823_v1, %v11821_v62  ;;  %v11832_v4 = vld [vmem:[#allocation2 + $0x290] sm:$0xff]  ;;  %v11850_v62 = vld [vmem:[#allocation2 + $0x2a8] sm:$0xff] }
 0x280   :  { %v11810_v33 = vpop.permute.xlu2 %7990  ;;  %18907 = vst [vmem:[#allocation174_spill] sm:$0xff] %v11832_v4  ;;  %v11889_v1 = vld [vmem:[#allocation2 + $0x350] sm:$0xff] }
 0x281   :  { %18899 = vst [vmem:[#allocation166_spill] sm:$0xff] %v11810_v33  ;;  %v11812_v56 = vpop.permute.xlu1 %7940  ;;  %v11827_v45 = vpop.permute.xlu0 %7950 }
 0x282   :  { %18900 = vst [vmem:[#allocation167_spill] sm:$0xff] %v11812_v56  ;;  %v11830_v56 = vld [vmem:[#allocation2 + $0x288] sm:$0xff] }
 0x283   :  { %18905 = vst [vmem:[#allocation172_spill] sm:$0xff] %v11827_v45  ;;  %v8174_v33 = vpack.i.bf16 %v11832_v4, %v11830_v56  ;;  %v11844_v45 = vld [vmem:[#allocation2 + $0x2c0] sm:$0xff] }
 0x284   :  { %18906 = vst [vmem:[#allocation173_spill] sm:$0xff] %v11830_v56  ;;  %v11869_v4 = vld [vmem:[#allocation2 + $0x300] sm:$0xff] }
 0x285   :  { %18911 = vst [vmem:[#allocation178_spill] sm:$0xff] %v11844_v45 }
 0x286   :  { %8170 = vrot.lane.b32.xlu2 %v8169_v26, %s10026_s14  ;;  %v8184_v26 = vpack.i.bf16 %v11844_v45, %v11842_v30  ;;  %18913 = vst [vmem:[#allocation180_spill] sm:$0xff] %v11850_v62 }
 0x287   :  { %8165 = vrot.lane.b32.xlu1 %v8164_v59, %s10026_s14  ;;  %8175 = vrot.lane.b32.xlu0 %v8174_v33, %s10026_s14  ;;  %v8179_v59 = vpack.i.bf16 %v11850_v62, %v11848_v31  ;;  %v11859_v33 = vld [vmem:[#allocation2 + $0x2d8] sm:$0xff]  ;;  %18919 = vst [vmem:[#allocation186_spill] sm:$0xff] %v11869_v4  ;;  %v11875_v31 = vld [vmem:[#allocation2 + $0x2e8] sm:$0xff]  ;;  %v11877_v62 = vld [vmem:[#allocation2 + $0x2f0] sm:$0xff] }
 0x288   :  { %v11837_v27 = vpop.permute.xlu2 %8005  ;;  %18916 = vst [vmem:[#allocation183_spill] sm:$0xff] %v11859_v33 }
 0x289   :  { %18908 = vst [vmem:[#allocation175_spill] sm:$0xff] %v11837_v27  ;;  %v11839_v14 = vpop.permute.xlu1 %7955  ;;  %v11854_v56 = vpop.permute.xlu0 %7965 }
 0x28a   :  { %18909 = vst [vmem:[#allocation176_spill] sm:$0xff] %v11839_v14  ;;  %v11857_v14 = vld [vmem:[#allocation2 + $0x2d0] sm:$0xff] }
 0x28b   :  { %18914 = vst [vmem:[#allocation181_spill] sm:$0xff] %v11854_v56  ;;  %v8189_v27 = vpack.i.bf16 %v11859_v33, %v11857_v14  ;;  %v11871_v56 = vld [vmem:[#allocation2 + $0x308] sm:$0xff] }
 0x28c   :  { %18915 = vst [vmem:[#allocation182_spill] sm:$0xff] %v11857_v14  ;;  %v11887_v33 = vld [vmem:[#allocation2 + $0x348] sm:$0xff] }
 0x28d   :  { %18920 = vst [vmem:[#allocation187_spill] sm:$0xff] %v11871_v56 }
 0x28e   :  { %8185 = vrot.lane.b32.xlu2 %v8184_v26, %s10026_s14  ;;  %v8199_v26 = vpack.i.bf16 %v11871_v56, %v11869_v4 }
 0x28f   :  { %8180 = vrot.lane.b32.xlu1 %v8179_v59, %s10026_s14  ;;  %8190 = vrot.lane.b32.xlu0 %v8189_v27, %s10026_s14  ;;  %v8194_v59 = vpack.i.bf16 %v11877_v62, %v11875_v31  ;;  %v11884_v27 = vld [vmem:[#allocation2 + $0x320] sm:$0xff] }
 0x290   :  { %v11864_v30 = vpop.permute.xlu2 %8020  ;;  %18922 = vst [vmem:[#allocation189_spill] sm:$0xff] %v11884_v27 }
 0x291   :  { %18917 = vst [vmem:[#allocation184_spill] sm:$0xff] %v11864_v30  ;;  %v11866_v45 = vpop.permute.xlu1 %7970  ;;  %v11881_v14 = vpop.permute.xlu0 %7980 }
 0x292   :  { %18918 = vst [vmem:[#allocation185_spill] sm:$0xff] %v11866_v45  ;;  %v9882_v45 = vld [vmem:[#allocation2 + $0x318] sm:$0xff] }
 0x293   :  { %18921 = vst [vmem:[#allocation188_spill] sm:$0xff] %v11881_v14  ;;  %v8204_v30 = vpack.i.bf16 %v11884_v27, %v9882_v45 }
 0x296   :  { %8200 = vrot.lane.b32.xlu2 %v8199_v26, %s10026_s14  ;;  %v8214_v26 = vpack.i.bf16 %v11889_v1, %v11887_v33 }
 0x297   :  { %8195 = vrot.lane.b32.xlu1 %v8194_v59, %s10026_s14  ;;  %8205 = vrot.lane.b32.xlu0 %v8204_v30, %s10026_s14  ;;  %v884_v30 = vrot.slane %v11759_v29, 1 }
 0x298   :  { %v11892_v4 = vpop.permute.xlu2 %8035 }
 0x299   :  { %18923 = vst [vmem:[#allocation190_spill] sm:$0xff] %v11892_v4  ;;  %v11894_v56 = vpop.permute.xlu1 %7985  ;;  %v11899_v14 = vpop.permute.xlu0 %7995 }
 0x29a   :  { %18924 = vst [vmem:[#allocation191_spill] sm:$0xff] %v11894_v56 }
 0x29b   :  { %18925 = vst [vmem:[#allocation192_spill] sm:$0xff] %v11899_v14 }
 0x29e   :  { %8215 = vrot.lane.b32.xlu2 %v8214_v26, %s10026_s14  ;;  %v883_v26 = vrot.slane %v11757_v23, 1 }
 0x29f   :  { %8210 = vrot.lane.b32.xlu1 %v11402_v57, %s10026_s14  ;;  %8220 = vrot.lane.b32.xlu0 %v18761_v47, %s10027_s15 }
 0x2a0   :  { %v11904_v45 = vpop.permute.xlu2 %8050 }
 0x2a1   :  { %18926 = vst [vmem:[#allocation193_spill] sm:$0xff] %v11904_v45  ;;  %v11906_v27 = vpop.permute.xlu1 %8000  ;;  %v11910_v59 = vpop.permute.xlu0 %8010  ;;  %v11920_v45 = vld [vmem:[#allocation2 + $0x1a8] sm:$0x3] }
 0x2a2   :  { %18927 = vst [vmem:[#allocation194_spill] sm:$0xff] %v11906_v27  ;;  %v886_v4 = vrot.slane %v11920_v45, 1 }
 0x2a3   :  { %18928 = vst [vmem:[#allocation195_spill] sm:$0xff] %v11910_v59 }
 0x2a4   :  { %v887_v59 = vsel %vm529_vm2, %v884_v30, %v886_v4 }
 0x2a6   :  { %8230 = vrot.lane.b32.xlu2 %v18764_v20, %s10027_s15  ;;  %v885_v20 = vsel %vm529_vm2, %v883_v26, %v884_v30  ;;  %v11990_v30 = vld [vmem:[#allocation2 + $0x358] sm:$0x3] }
 0x2a7   :  { %8225 = vrot.lane.b32.xlu1 %v18760_v19, %s10027_s15  ;;  %8235 = vrot.lane.b32.xlu0 %v18767_v11, %s10027_s15  ;;  %v8294_v19 = vpack.i.bf16 %v887_v59, %v885_v20 }
 0x2a8   :  { %v11918_v57 = vpop.permute.xlu2 %8065 }
 0x2a9   :  { %v11923_v27 = vpop.permute.xlu1 %8015  ;;  %v11927_v47 = vpop.permute.xlu0 %8025 }
 0x2aa   :  { %18929 = vst [vmem:[#allocation196_spill] sm:$0xff] %v11923_v27  ;;  %v9887_v27 = vld [vmem:[#allocation2 + $0x60] sm:$0xff] }
 0x2ab   :  { %18930 = vst [vmem:[#allocation197_spill] sm:$0xff] %v11927_v47 }
 0x2ae   :  { %8245 = vrot.lane.b32.xlu2 %v18770_v32, %s10027_s15 }
 0x2af   :  { %8240 = vrot.lane.b32.xlu1 %v18766_v55, %s10027_s15  ;;  %8250 = vrot.lane.b32.xlu0 %v18773_v5, %s10027_s15 }
 0x2b0   :  { %v11935_v14 = vpop.permute.xlu2 %8080 }
 0x2b1   :  { %18931 = vst [vmem:[#allocation198_spill] sm:$0xff] %v11935_v14  ;;  %v11937_v56 = vpop.permute.xlu1 %8030  ;;  %v11941_v11 = vpop.permute.xlu0 %8040 }
 0x2b2   :  { %18932 = vst [vmem:[#allocation199_spill] sm:$0xff] %v11937_v56  ;;  %v18989_v56 = vld [vmem:[#allocation24_spill] sm:$0xff] }
 0x2b3   :  { %18933 = vst [vmem:[#allocation200_spill] sm:$0xff] %v11941_v11  ;;  %v7272_v47 = vunpack.i.l.bf16 %v18989_v56 }
 0x2b6   :  { %8260 = vrot.lane.b32.xlu2 %v18776_v36, %s10027_s15 }
 0x2b7   :  { %8255 = vrot.lane.b32.xlu1 %v18772_v63, %s10027_s15  ;;  %8265 = vrot.lane.b32.xlu0 %v18779_v53, %s10027_s15 }
 0x2b8   :  { %v11947_v32 = vpop.permute.xlu2 %8095 }
 0x2b9   :  { %18934 = vst [vmem:[#allocation201_spill] sm:$0xff] %v11947_v32  ;;  %v11949_v4 = vpop.permute.xlu1 %8045  ;;  %v11953_v55 = vpop.permute.xlu0 %8055 }
 0x2ba   :  { %18935 = vst [vmem:[#allocation202_spill] sm:$0xff] %v11949_v4 }
 0x2bb   :  { %18936 = vst [vmem:[#allocation203_spill] sm:$0xff] %v11953_v55 }
 0x2be   :  { %8275 = vrot.lane.b32.xlu2 %v18782_v38, %s10027_s15 }
 0x2bf   :  { %8270 = vrot.lane.b32.xlu1 %v18778_v12, %s10027_s15  ;;  %8280 = vrot.lane.b32.xlu0 %v18785_v8, %s10027_s15 }
 0x2c0   :  { %v11959_v5 = vpop.permute.xlu2 %8110 }
 0x2c1   :  { %18937 = vst [vmem:[#allocation204_spill] sm:$0xff] %v11959_v5  ;;  %v11961_v36 = vpop.permute.xlu1 %8060  ;;  %v11965_v63 = vpop.permute.xlu0 %8070 }
 0x2c6   :  { %8290 = vrot.lane.b32.xlu2 %v11440_v42, %s10027_s15  ;;  %v889_v42 = vrot.slane %v11889_v1, 1 }
 0x2c7   :  { %8285 = vrot.lane.b32.xlu1 %v18784_v60, %s10027_s15  ;;  %8295 = vrot.lane.b32.xlu0 %v8294_v19, %s10027_s15  ;;  %v888_v60 = vrot.slane %v11887_v33, 1 }
 0x2c8   :  { %v11971_v53 = vpop.permute.xlu2 %8125 }
 0x2c9   :  { %18938 = vst [vmem:[#allocation205_spill] sm:$0xff] %v11971_v53  ;;  %v11973_v38 = vpop.permute.xlu1 %8075  ;;  %v11976_v12 = vpop.permute.xlu0 %8085 }
 0x2ca   :  { %18939 = vst [vmem:[#allocation206_spill] sm:$0xff] %v11973_v38  ;;  %v9917_v38 = vld [vmem:[#allocation2 + $0x168] sm:$0xff] }
 0x2cb   :  { %18940 = vst [vmem:[#allocation207_spill] sm:$0xff] %v11976_v12  ;;  %v19017_v12 = vld [vmem:[#allocation62_spill] sm:$0xff] }
 0x2ce   :  { %8305 = vrot.lane.b32.xlu2 %v18793_v34, %s10027_s15  ;;  %v891_v34 = vrot.slane %v11990_v30, 1 }
 0x2cf   :  { %8300 = vrot.lane.b32.xlu1 %v18789_v25, %s10027_s15  ;;  %8310 = vrot.lane.b32.xlu0 %v18796_v40, %s10027_s15  ;;  %v890_v25 = vsel %vm529_vm2, %v888_v60, %v889_v42 }
 0x2d0   :  { %v11982_v8 = vpop.permute.xlu2 %8140  ;;  %v892_v20 = vsel %vm529_vm2, %v889_v42, %v891_v34 }
 0x2d1   :  { %18941 = vst [vmem:[#allocation208_spill] sm:$0xff] %v11982_v8  ;;  %v11986_v59 = vpop.permute.xlu1 %8090  ;;  %v11992_v26 = vpop.permute.xlu0 %8100  ;;  %v8374_v19 = vpack.i.bf16 %v892_v20, %v890_v25  ;;  %v893_v25 = vrot.slane %v11757_v23, 2 }
 0x2d2   :  { %18942 = vst [vmem:[#allocation209_spill] sm:$0xff] %v11986_v59 }
 0x2d3   :  { %18943 = vst [vmem:[#allocation210_spill] sm:$0xff] %v11992_v26  ;;  %v19002_v26 = vld [vmem:[#allocation38_spill] sm:$0xff] }
 0x2d6   :  { %8320 = vrot.lane.b32.xlu2 %v18799_v58, %s10027_s15 }
 0x2d7   :  { %8315 = vrot.lane.b32.xlu1 %v18795_v46, %s10027_s15  ;;  %8325 = vrot.lane.b32.xlu0 %v18802_v43, %s10027_s15 }
 0x2d8   :  { %v12001_v55 = vpop.permute.xlu2 %8155 }
 0x2d9   :  { %18944 = vst [vmem:[#allocation211_spill] sm:$0xff] %v12001_v55  ;;  %v12003_v40 = vpop.permute.xlu1 %8105  ;;  %v12007_v4 = vpop.permute.xlu0 %8115  ;;  %v9900_v55 = vld [vmem:[#allocation2 + $0x50] sm:$0xff] }
 0x2da   :  { %18945 = vst [vmem:[#allocation212_spill] sm:$0xff] %v12003_v40 }
 0x2db   :  { %18946 = vst [vmem:[#allocation213_spill] sm:$0xff] %v12007_v4 }
 0x2de   :  { %8335 = vrot.lane.b32.xlu2 %v18805_v50, %s10027_s15 }
 0x2df   :  { %8330 = vrot.lane.b32.xlu1 %v18801_v61, %s10027_s15  ;;  %8340 = vrot.lane.b32.xlu0 %v18808_v13, %s10027_s15  ;;  %v18953_v13 = vld [vmem:[#allocation79_spill] sm:$0xff] }
 0x2e0   :  { %v12013_v58 = vpop.permute.xlu2 %8170 }
 0x2e1   :  { %18947 = vst [vmem:[#allocation214_spill] sm:$0xff] %v12013_v58  ;;  %v12015_v42 = vpop.permute.xlu1 %8120  ;;  %v12019_v46 = vpop.permute.xlu0 %8130 }
 0x2e2   :  { %18948 = vst [vmem:[#allocation215_spill] sm:$0xff] %v12015_v42 }
 0x2e3   :  { %18949 = vst [vmem:[#allocation216_spill] sm:$0xff] %v12019_v46 }
 0x2e6   :  { %8350 = vrot.lane.b32.xlu2 %v10873_v51, %s10027_s15 }
 0x2e7   :  { %8345 = vrot.lane.b32.xlu1 %v18807_v44, %s10027_s15  ;;  %8355 = vrot.lane.b32.xlu0 %v10863_v3, %s10027_s15  ;;  %v18957_v3 = vld [vmem:[#allocation80_spill] sm:$0xff] }
 0x2e8   :  { %v12025_v43 = vpop.permute.xlu2 %8185 }
 0x2e9   :  { %18950 = vst [vmem:[#allocation217_spill] sm:$0xff] %v12025_v43  ;;  %v12027_v50 = vpop.permute.xlu1 %8135  ;;  %v12031_v61 = vpop.permute.xlu0 %8145  ;;  %v7273_v43 = vunpack.i.h.bf16 %v18989_v56 }
 0x2ea   :  { %18951 = vst [vmem:[#allocation218_spill] sm:$0xff] %v12027_v50  ;;  %v18985_v50 = vld [vmem:[#allocation82_spill] sm:$0xff] }
 0x2eb   :  { %18952 = vst [vmem:[#allocation219_spill] sm:$0xff] %v12031_v61  ;;  %v9910_v61 = vld [vmem:[#allocation2 + $0xf8] sm:$0xff] }
 0x2ee   :  { %8365 = vrot.lane.b32.xlu2 %v10898_v54, %s10027_s15  ;;  %v894_v54 = vrot.slane %v11759_v29, 2 }
 0x2ef   :  { %8360 = vrot.lane.b32.xlu1 %v18953_v13, %s10027_s15  ;;  %8370 = vrot.lane.b32.xlu0 %v11509_v15, %s10027_s15  ;;  %v896_v13 = vrot.slane %v11920_v45, 2 }
 0x2f0   :  { %v12037_v60 = vpop.permute.xlu2 %8200 }
 0x2f1   :  { %18954 = vst [vmem:[#allocation79_spill] sm:$0xff] %v12037_v60  ;;  %v12039_v51 = vpop.permute.xlu1 %8150  ;;  %v12043_v44 = vpop.permute.xlu0 %8160 }
 0x2f2   :  { %18955 = vst [vmem:[#allocation220_spill] sm:$0xff] %v12039_v51  ;;  %v19016_v51 = vld [vmem:[#allocation61_spill] sm:$0xff] }
 0x2f3   :  { %18956 = vst [vmem:[#allocation221_spill] sm:$0xff] %v12043_v44 }
 0x2f6   :  { %8380 = vrot.lane.b32.xlu2 %v18957_v3, %s10028_s16  ;;  %v897_v3 = vsel %vm690_vm3, %v894_v54, %v896_v13 }
 0x2f7   :  { %8375 = vrot.lane.b32.xlu1 %v8374_v19, %s10027_s15  ;;  %8385 = vrot.lane.b32.xlu0 %v10917_v41, %s10028_s16  ;;  %v895_v19 = vsel %vm690_vm3, %v893_v25, %v894_v54 }
 0x2f8   :  { %v12048_v34 = vpop.permute.xlu2 %8215 }
 0x2f9   :  { %18958 = vst [vmem:[#allocation80_spill] sm:$0xff] %v12048_v34  ;;  %v12052_v20 = vpop.permute.xlu1 %8165  ;;  %v12056_v15 = vpop.permute.xlu0 %8175  ;;  %v8454_v34 = vpack.i.bf16 %v897_v3, %v895_v19  ;;  %v18976_v19 = vld [vmem:[#allocation42_spill] sm:$0xff]  ;;  %v899_v3 = vrot.slane %v11889_v1, 2 }
 0x2fa   :  { %18959 = vst [vmem:[#allocation222_spill] sm:$0xff] %v12052_v20  ;;  %v19001_v20 = vld [vmem:[#allocation43_spill] sm:$0xff] }
 0x2fb   :  { %18960 = vst [vmem:[#allocation223_spill] sm:$0xff] %v12056_v15  ;;  %v9886_v15 = vld [vmem:[#allocation2 + $0x68] sm:$0xff] }
 0x2fe   :  { %8395 = vrot.lane.b32.xlu2 %v10953_v6, %s10028_s16 }
 0x2ff   :  { %8390 = vrot.lane.b32.xlu1 %v10931_v21, %s10028_s16  ;;  %8400 = vrot.lane.b32.xlu0 %v10946_v52, %s10028_s16 }
 0x300   :  { %v12065_v23 = vpop.permute.xlu2 %8230 }
 0x301   :  { %v12067_v29 = vpop.permute.xlu1 %8180  ;;  %v12071_v41 = vpop.permute.xlu0 %8190 }
 0x302   :  { %18961 = vst [vmem:[#allocation224_spill] sm:$0xff] %v12067_v29  ;;  %v9885_v29 = vld [vmem:[#allocation2] sm:$0xff] }
 0x303   :  { %18962 = vst [vmem:[#allocation225_spill] sm:$0xff] %v12071_v41 }
 0x306   :  { %8410 = vrot.lane.b32.xlu2 %v10982_v28, %s10028_s16 }
 0x307   :  { %8405 = vrot.lane.b32.xlu1 %v10960_v7, %s10028_s16  ;;  %8415 = vrot.lane.b32.xlu0 %v10975_v37, %s10028_s16 }
 0x308   :  { %v12077_v6 = vpop.permute.xlu2 %8245 }
 0x309   :  { %18963 = vst [vmem:[#allocation226_spill] sm:$0xff] %v12077_v6  ;;  %v12079_v45 = vpop.permute.xlu1 %8195  ;;  %v12083_v21 = vpop.permute.xlu0 %8205  ;;  %v7393_v6 = vunpack.i.h.bf16 %v19016_v51 }
 0x30a   :  { %18964 = vst [vmem:[#allocation227_spill] sm:$0xff] %v12079_v45 }
 0x30b   :  { %18965 = vst [vmem:[#allocation228_spill] sm:$0xff] %v12083_v21 }
 0x30e   :  { %8425 = vrot.lane.b32.xlu2 %v11013_v10, %s10028_s16 }
 0x30f   :  { %8420 = vrot.lane.b32.xlu1 %v10989_v2, %s10028_s16  ;;  %8430 = vrot.lane.b32.xlu0 %v18828_v9, %s10028_s16  ;;  %v18969_v2 = vld [vmem:[#allocation25_spill] sm:$0xff]  ;;  %v18971_v9 = vld [vmem:[#allocation126_spill] sm:$0xff] }
 0x310   :  { %v12089_v52 = vpop.permute.xlu2 %8260 }
 0x311   :  { %18966 = vst [vmem:[#allocation229_spill] sm:$0xff] %v12089_v52  ;;  %v12091_v28 = vpop.permute.xlu1 %8210  ;;  %v12095_v7 = vpop.permute.xlu0 %8220  ;;  %v7308_v52 = vunpack.i.h.bf16 %v19001_v20 }
 0x312   :  { %18967 = vst [vmem:[#allocation230_spill] sm:$0xff] %v12091_v28 }
 0x316   :  { %8440 = vrot.lane.b32.xlu2 %v18831_v35, %s10028_s16 }
 0x317   :  { %8435 = vrot.lane.b32.xlu1 %v11020_v48, %s10028_s16  ;;  %8445 = vrot.lane.b32.xlu0 %v18969_v2, %s10028_s16  ;;  %v18974_v48 = vld [vmem:[#allocation31_spill] sm:$0xff]  ;;  %v898_v2 = vrot.slane %v11887_v33, 2 }
 0x318   :  { %v12101_v37 = vpop.permute.xlu2 %8275 }
 0x319   :  { %18968 = vst [vmem:[#allocation231_spill] sm:$0xff] %v12101_v37  ;;  %v12103_v10 = vpop.permute.xlu1 %8225  ;;  %v12107_v54 = vpop.permute.xlu0 %8235  ;;  %v12137_v33 = vsel %vm690_vm3, %v898_v2, %v899_v3  ;;  %v18991_v37 = vld [vmem:[#allocation16_spill] sm:$0xff] }
 0x31a   :  { %18970 = vst [vmem:[#allocation25_spill] sm:$0xff] %v12107_v54  ;;  %v7268_v4 = vunpack.i.h.bf16 %v18991_v37 }
 0x31e   :  { %8455 = vrot.lane.b32.xlu2 %v8454_v34, %s10028_s16  ;;  %v2994_v34 = vld [vmem:[%s17840_s1 + $0x10] sm:$0x3] }
 0x31f   :  { %8450 = vrot.lane.b32.xlu1 %v18971_v9, %s10028_s16  ;;  %8460 = vrot.lane.b32.xlu0 %v18974_v48, %s10028_s16  ;;  %v18977_v9 = vld [vmem:[#allocation36_spill] sm:$0xff]  ;;  %v3008_v21 = vunpack.c.l.b16 %v2994_v34  ;;  %v901_v48 = vrot.slane %v11990_v30, 2  ;;  %v18983_v34 = vld [vmem:[#allocation21_spill] sm:$0xff] }
 0x320   :  { %v12112_v25 = vpop.permute.xlu2 %8290 }
 0x321   :  { %18972 = vst [vmem:[#allocation126_spill] sm:$0xff] %v12112_v25  ;;  %v12114_v35 = vpop.permute.xlu1 %8240  ;;  %v12118_v13 = vpop.permute.xlu0 %8250  ;;  %v3011_v1 = vpack.c.b16 %v3008_v21, %v3008_v21  ;;  %v18981_v21 = vld [vmem:[#allocation44_spill] sm:$0xff] }
 0x322   :  { %18973 = vst [vmem:[#allocation232_spill] sm:$0xff] %v12114_v35 }
 0x323   :  { %18975 = vst [vmem:[#allocation31_spill] sm:$0xff] %v12118_v13  ;;  %v3113_v11 = vsel %vm3111_vm4, %v3011_v1, 0  ;;  %v18984_v1 = vld [vmem:[#allocation81_spill] sm:$0xff] }
 0x324   :  { %3120 = vmatpush.bf16.msra.mxu0 %v3113_v11  ;;  %7242 = vmatpush.bf16.msra.mxu2 %v3113_v11  ;;  %v7283_v30 = vunpack.i.h.bf16 %v18984_v1  ;;  %v7282_v45 = vunpack.i.l.bf16 %v18984_v1  ;;  %v7288_v11 = vunpack.i.h.bf16 %v18985_v50  ;;  %v9901_v13 = vld [vmem:[#allocation2 + $0x48] sm:$0xff] }
 0x326   :  { %8470 = vrot.lane.b32.xlu2 %v18976_v19, %s10028_s16  ;;  %v12188_v56 = vsel %vm22_vm0, %v9887_v27, %v7282_v45  ;;  %v9892_v27 = vld [vmem:[#allocation2 + $0x110] sm:$0xff] }
 0x327   :  { %8465 = vrot.lane.b32.xlu1 %v18977_v9, %s10028_s16  ;;  %8475 = vrot.lane.b32.xlu0 %v18845_v17, %s10028_s16  ;;  %v12143_v9 = vsel %vm690_vm3, %v899_v3, %v901_v48  ;;  %v6921_v17 = vld [vmem:[%s17840_s1 + $0x8] sm:$0xff]  ;;  %v7263_v3 = vunpack.i.h.bf16 %v18983_v34  ;;  %v7262_v48 = vunpack.i.l.bf16 %v18983_v34  ;;  %v18988_v34 = vld [vmem:[#allocation22_spill] sm:$0xff] }
 0x328   :  { %v12129_v28 = vpop.permute.xlu2 %8305  ;;  %3121 = vmatpush.bf16.msra.mxu0 %v6921_v17  ;;  %7243 = vmatpush.bf16.msra.mxu2 %v6921_v17  ;;  %v7318_v53 = vunpack.i.h.bf16 %v18988_v34  ;;  %v6920_v17 = vld [vmem:[%s17840_s1] sm:$0xff]  ;;  %v7317_v1 = vunpack.i.l.bf16 %v18988_v34  ;;  %v12185_v34 = vsel %vm22_vm0, %v9886_v15, %v7283_v30 }
 0x329   :  { %18978 = vst [vmem:[#allocation42_spill] sm:$0xff] %v12129_v28  ;;  %v12132_v60 = vpop.permute.xlu1 %8255  ;;  %v12139_v19 = vpop.permute.xlu0 %8265  ;;  %v9891_v15 = vld [vmem:[#allocation2 + $0xc0] sm:$0xff]  ;;  %v7343_v28 = vunpack.i.h.bf16 %v19017_v12 }
 0x32a   :  { %18979 = vst [vmem:[#allocation36_spill] sm:$0xff] %v12132_v60  ;;  %v12205_v45 = vsel %vm22_vm0, %v9892_v27, %v7318_v53  ;;  %v9896_v53 = vld [vmem:[#allocation2 + $0x20] sm:$0xff] }
 0x32b   :  { %18980 = vst [vmem:[#allocation233_spill] sm:$0xff] %v12139_v19  ;;  %v12222_v27 = vsel %vm22_vm0, %v9896_v53, %v7268_v4 }
 0x32c   :  { %3122 = vmatpush.bf16.msra.mxu0 %v6920_v17  ;;  %7244 = vmatpush.bf16.msra.mxu2 %v6920_v17  ;;  %v9890_v17 = vld [vmem:[#allocation2 + $0xc8] sm:$0xff] }
 0x32e   :  { %8485 = vrot.lane.b32.xlu2 %v18848_v39, %s10028_s16  ;;  %v7287_v39 = vunpack.i.l.bf16 %v18985_v50 }
 0x32f   :  { %8480 = vrot.lane.b32.xlu1 %v18981_v21, %s10028_s16  ;;  %8490 = vrot.lane.b32.xlu0 %v18851_v22, %s10028_s16  ;;  %v18987_v21 = vld [vmem:[#allocation13_spill] sm:$0xff] }
 0x330   :  { %v12154_v2 = vpop.permute.xlu2 %8320  ;;  %v7303_v46 = vunpack.i.h.bf16 %v18987_v21  ;;  %v7302_v41 = vunpack.i.l.bf16 %v18987_v21  ;;  %v9884_v22 = vld [vmem:[#allocation2 + $0x8] sm:$0xff]  ;;  %v12181_v21 = vsel %vm22_vm0, %v9885_v29, %v7262_v48  ;;  %v9889_v29 = vld [vmem:[#allocation2 + $0x78] sm:$0xff] }
 0x331   :  { %18982 = vst [vmem:[#allocation44_spill] sm:$0xff] %v12154_v2  ;;  %v12161_v25 = vpop.permute.xlu1 %8270  ;;  %v12175_v42 = vpop.permute.xlu0 %8280  ;;  %v12178_v50 = vsel %vm22_vm0, %v9884_v22, %v7263_v3  ;;  %v18992_v22 = vld [vmem:[#allocation47_spill] sm:$0xff]  ;;  %v12196_v48 = vsel %vm22_vm0, %v9889_v29, %v7287_v39  ;;  %v9895_v29 = vld [vmem:[#allocation2 + $0x30] sm:$0xff]  ;;  %v7363_v2 = vunpack.i.h.bf16 %v19002_v26 }
 0x332   :  { %18986 = vst [vmem:[#allocation21_spill] sm:$0xff] %v12161_v25  ;;  %v12199_v25 = vsel %vm22_vm0, %v9890_v17, %v7303_v46  ;;  %v12202_v30 = vsel %vm22_vm0, %v9891_v15, %v7302_v41  ;;  %v12214_v46 = vsel %vm22_vm0, %v9895_v29, %v7272_v47  ;;  %v7267_v17 = vunpack.i.l.bf16 %v18991_v37  ;;  %v18993_v41 = vld [vmem:[#allocation53_spill] sm:$0xff]  ;;  %v18997_v29 = vld [vmem:[#allocation35_spill] sm:$0xff] }
 0x333   :  { %18990 = vst [vmem:[#allocation81_spill] sm:$0xff] %v12175_v42  ;;  %v9888_v42 = vld [vmem:[#allocation2 + $0x80] sm:$0xff]  ;;  %v7293_v58 = vunpack.i.h.bf16 %v18997_v29  ;;  %v7292_v37 = vunpack.i.l.bf16 %v18997_v29 }
 0x334   :  { %v12191_v3 = vsel %vm22_vm0, %v9888_v42, %v7288_v11  ;;  %v9893_v42 = vld [vmem:[#allocation2 + $0x108] sm:$0xff] }
 0x335   :  { %v12208_v11 = vsel %vm22_vm0, %v9893_v42, %v7317_v1  ;;  %v18995_v1 = vld [vmem:[#allocation17_spill] sm:$0xff] }
 0x336   :  { %8500 = vrot.lane.b32.xlu2 %v18992_v22, %s10028_s16  ;;  %v9894_v22 = vld [vmem:[#allocation2 + $0x38] sm:$0xff]  ;;  %v7333_v42 = vunpack.i.h.bf16 %v18995_v1 }
 0x337   :  { %v12211_v39 = vsel %vm22_vm0, %v9894_v22, %v7273_v43  ;;  %8495 = vrot.lane.b32.xlu1 %v18993_v41, %s10028_s16  ;;  %v7332_v43 = vunpack.i.l.bf16 %v18995_v1  ;;  %v18996_v22 = vld [vmem:[#allocation18_spill] sm:$0xff]  ;;  %8505 = vrot.lane.b32.xlu0 %v11166_v16, %s10028_s16  ;;  %v18999_v41 = vld [vmem:[#allocation28_spill] sm:$0xff]  ;;  %v9898_v16 = vld [vmem:[#allocation2 + $0x158] sm:$0xff] }
 0x338   :  { %v12219_v15 = vpop.permute.xlu2 %8335  ;;  %v7278_v5 = vunpack.i.h.bf16 %v18996_v22  ;;  %v7277_v47 = vunpack.i.l.bf16 %v18996_v22  ;;  %v7348_v4 = vunpack.i.h.bf16 %v18999_v41  ;;  %v7347_v53 = vunpack.i.l.bf16 %v18999_v41  ;;  %v9899_v41 = vld [vmem:[#allocation2 + $0x150] sm:$0xff] }
 0x339   :  { %18994 = vst [vmem:[#allocation82_spill] sm:$0xff] %v12219_v15  ;;  %v12230_v19 = vpop.permute.xlu1 %8285  ;;  %v19000_v15 = vld [vmem:[#allocation29_spill] sm:$0xff]  ;;  %v7307_v22 = vunpack.i.l.bf16 %v19001_v20  ;;  %v12241_v29 = vpop.permute.xlu0 %8295  ;;  %v12247_v60 = vsel %vm22_vm0, %v9898_v16, %v7333_v42  ;;  %v12250_v32 = vsel %vm22_vm0, %v9899_v41, %v7332_v43  ;;  %v9903_v42 = vld [vmem:[#allocation2 + $0x90] sm:$0xff] }
 0x33a   :  { %18998 = vst [vmem:[#allocation13_spill] sm:$0xff] %v12230_v19  ;;  %v7298_v40 = vunpack.i.h.bf16 %v19000_v15  ;;  %v7297_v1 = vunpack.i.l.bf16 %v19000_v15  ;;  %v9897_v19 = vld [vmem:[#allocation2 + $0x18] sm:$0xff]  ;;  %v7362_v15 = vunpack.i.l.bf16 %v19002_v26  ;;  %v12254_v20 = vsel %vm22_vm0, %v9900_v55, %v7278_v5  ;;  %v9904_v26 = vld [vmem:[#allocation2 + $0x1d0] sm:$0xff]  ;;  %v9905_v55 = vld [vmem:[#allocation2 + $0x1c8] sm:$0xff] }
 0x33b   :  { %19003 = vst [vmem:[#allocation22_spill] sm:$0xff] %v12241_v29  ;;  %v12244_v44 = vsel %vm22_vm0, %v9897_v19, %v7267_v17  ;;  %v12257_v29 = vsel %vm22_vm0, %v9901_v13, %v7277_v47  ;;  %v9902_v19 = vld [vmem:[#allocation2 + $0x98] sm:$0xff]  ;;  %v12265_v43 = vsel %vm22_vm0, %v9903_v42, %v7292_v37  ;;  %v12268_v16 = vsel %vm22_vm0, %v9904_v26, %v7348_v4  ;;  %v9906_v13 = vld [vmem:[#allocation2 + $0xb0] sm:$0xff]  ;;  %v19007_v42 = vld [vmem:[#allocation60_spill] sm:$0xff] }
 0x33c   :  { %v12260_v17 = vsel %vm22_vm0, %v9902_v19, %v7293_v58  ;;  %19004 = vst [vmem:[#allocation24_spill] sm:$0xff] %v12268_v16  ;;  %v12271_v5 = vsel %vm22_vm0, %v9905_v55, %v7347_v53  ;;  %v12274_v47 = vsel %vm22_vm0, %v9906_v13, %v7298_v40  ;;  %v9907_v58 = vld [vmem:[#allocation2 + $0xa8] sm:$0xff]  ;;  %v9909_v19 = vld [vmem:[#allocation2 + $0xd8] sm:$0xff]  ;;  %v12287_v53 = vsel %vm22_vm0, %v11796_v0, %v7363_v2  ;;  %v19011_v13 = vld [vmem:[#allocation52_spill] sm:$0xff] }
 0x33d   :  { %19005 = vst [vmem:[#allocation16_spill] sm:$0xff] %v12271_v5  ;;  %v12277_v41 = vsel %vm22_vm0, %v9907_v58, %v7297_v1  ;;  %v12283_v4 = vsel %vm22_vm0, %v9909_v19, %v7307_v22  ;;  %v12295_v1 = vsel %vm22_vm0, %v11794_v18, %v7362_v15  ;;  %v19010_v26 = vld [vmem:[#allocation39_spill] sm:$0xff]  ;;  %v7323_v22 = vunpack.i.h.bf16 %v19011_v13 }
 0x33e   :  { %8515 = vrot.lane.b32.xlu2 %v11203_v49, %s10028_s16  ;;  %v9908_v49 = vld [vmem:[#allocation2 + $0xe0] sm:$0xff]  ;;  %19006 = vst [vmem:[#allocation47_spill] sm:$0xff] %v12287_v53  ;;  %v7312_v55 = vunpack.i.l.bf16 %v19010_v26  ;;  %v7322_v58 = vunpack.i.l.bf16 %v19011_v13  ;;  %v7392_v13 = vunpack.i.l.bf16 %v19016_v51 }
 0x33f   :  { %v12280_v37 = vsel %vm22_vm0, %v9908_v49, %v7308_v52  ;;  %8510 = vrot.lane.b32.xlu1 %v19007_v42, %s10028_s16  ;;  %19009 = vst [vmem:[#allocation17_spill] sm:$0xff] %v12295_v1  ;;  %v7313_v52 = vunpack.i.h.bf16 %v19010_v26  ;;  %v19012_v49 = vld [vmem:[#allocation54_spill] sm:$0xff]  ;;  %8520 = vrot.lane.b32.xlu0 %v11199_v24, %s10028_s16  ;;  %v9913_v51 = vld [vmem:[#allocation2 + $0x120] sm:$0xff] }
 0x340   :  { %v12291_v40 = vpop.permute.xlu2 %8350  ;;  %v7378_v0 = vunpack.i.h.bf16 %v19012_v49  ;;  %v7377_v2 = vunpack.i.l.bf16 %v19012_v49  ;;  %v19014_v42 = vld [vmem:[#allocation46_spill] sm:$0xff]  ;;  %v12327_v8 = vsel %vm22_vm0, %v9913_v51, %v7322_v58 }
 0x341   :  { %19008 = vst [vmem:[#allocation53_spill] sm:$0xff] %v12291_v40  ;;  %v12303_v19 = vpop.permute.xlu1 %8300  ;;  %v7328_v18 = vunpack.i.h.bf16 %v19014_v42  ;;  %v7327_v15 = vunpack.i.l.bf16 %v19014_v42  ;;  %v19015_v40 = vld [vmem:[#allocation48_spill] sm:$0xff]  ;;  %v12314_v49 = vpop.permute.xlu0 %8310  ;;  %v12317_v35 = vsel %vm22_vm0, %v9910_v61, %v7313_v52  ;;  %v9911_v24 = vld [vmem:[#allocation2 + $0xf0] sm:$0xff]  ;;  %v7342_v42 = vunpack.i.l.bf16 %v19017_v12 }
 0x342   :  { %19013 = vst [vmem:[#allocation18_spill] sm:$0xff] %v12303_v19  ;;  %v7338_v59 = vunpack.i.h.bf16 %v19015_v40  ;;  %v7337_v26 = vunpack.i.l.bf16 %v19015_v40  ;;  %v12320_v14 = vsel %vm22_vm0, %v9911_v24, %v7312_v55  ;;  %v9912_v40 = vld [vmem:[#allocation2 + $0x128] sm:$0xff]  ;;  %v19021_v61 = vld [vmem:[#allocation170_spill] sm:$0xff]  ;;  %v19023_v55 = vld [vmem:[#allocation147_spill] sm:$0xff] }
 0x343   :  { %19018 = vst [vmem:[#allocation35_spill] sm:$0xff] %v12314_v49  ;;  %v12324_v19 = vsel %vm22_vm0, %v9912_v40, %v7323_v22  ;;  %v19019_v49 = vld [vmem:[#allocation171_spill] sm:$0xff]  ;;  %v12335_v52 = vsel %vm22_vm0, %v19021_v61, %v7377_v2  ;;  %v9914_v12 = vld [vmem:[#allocation2 + $0x140] sm:$0xff]  ;;  %v9916_v58 = vld [vmem:[#allocation2 + $0x170] sm:$0xff] }
 0x344   :  { %v12331_v54 = vsel %vm22_vm0, %v19019_v49, %v7378_v0  ;;  %19022 = vst [vmem:[#allocation29_spill] sm:$0xff] %v12335_v52  ;;  %v12340_v24 = vsel %vm22_vm0, %v9914_v12, %v7328_v18  ;;  %v9915_v22 = vld [vmem:[#allocation2 + $0x138] sm:$0xff]  ;;  %v12346_v51 = vsel %vm22_vm0, %v9916_v58, %v7338_v59  ;;  %v19024_v0 = vld [vmem:[#allocation58_spill] sm:$0xff]  ;;  %v12350_v2 = vsel %vm22_vm0, %v9917_v38, %v7337_v26  ;;  %v19025_v61 = vld [vmem:[#allocation180_spill] sm:$0xff] }
 0x345   :  { %19020 = vst [vmem:[#allocation28_spill] sm:$0xff] %v12331_v54  ;;  %v12343_v40 = vsel %vm22_vm0, %v9915_v22, %v7327_v15  ;;  %v7422_v49 = vunpack.i.l.bf16 %v19024_v0  ;;  %v19027_v18 = vld [vmem:[#allocation179_spill] sm:$0xff]  ;;  %v19029_v59 = vld [vmem:[#allocation65_spill] sm:$0xff]  ;;  %v9919_v52 = vld [vmem:[#allocation2 + $0x1b0] sm:$0xff] }
 0x346   :  { %8530 = vrot.lane.b32.xlu2 %v19023_v55, %s10028_s16  ;;  %v12354_v55 = vsel %vm22_vm0, %v19025_v61, %v7393_v6  ;;  %v12358_v12 = vsel %vm22_vm0, %v19027_v18, %v7392_v13  ;;  %v9918_v15 = vld [vmem:[#allocation2 + $0x1b8] sm:$0xff]  ;;  %v12368_v38 = vsel %vm22_vm0, %v9919_v52, %v7342_v42  ;;  %v19032_v26 = vld [vmem:[#allocation64_spill] sm:$0xff]  ;;  %v7423_v61 = vunpack.i.h.bf16 %v19024_v0  ;;  %v19035_v54 = vld [vmem:[#allocation134_spill] sm:$0xff] }
 0x347   :  { %19026 = vst [vmem:[#allocation43_spill] sm:$0xff] %v12354_v55  ;;  %v12361_v22 = vsel %vm22_vm0, %v9918_v15, %v7343_v28  ;;  %8525 = vrot.lane.b32.xlu1 %v19029_v59, %s10028_s16  ;;  %v7353_v6 = vunpack.i.h.bf16 %v19032_v26  ;;  %v19033_v55 = vld [vmem:[#allocation19_spill] sm:$0xff]  ;;  %v7352_v18 = vunpack.i.l.bf16 %v19032_v26  ;;  %v7742_v59 = vunpack.i.l.bf16 %v19035_v54 }
 0x348   :  { %19028 = vst [vmem:[#allocation38_spill] sm:$0xff] %v12358_v12  ;;  %v12365_v58 = vpop.permute.xlu2 %8365  ;;  %v7582_v13 = vunpack.i.l.bf16 %v19033_v55  ;;  %v19034_v12 = vld [vmem:[#allocation66_spill] sm:$0xff]  ;;  %v7583_v15 = vunpack.i.h.bf16 %v19033_v55  ;;  %v19037_v42 = vpack.i.bf16 %v12143_v9, %v12137_v33  ;;  %v2504_v0 = vsel %vm2503_vm5, %v12181_v21, %v7422_v49 }
 0x349   :  { %19030 = vst [vmem:[#allocation60_spill] sm:$0xff] %v12365_v58  ;;  %v7408_v28 = vunpack.i.h.bf16 %v19034_v12  ;;  %v12377_v1 = vpop.permute.xlu1 %8315  ;;  %v7407_v52 = vunpack.i.l.bf16 %v19034_v12  ;;  %v7743_v26 = vunpack.i.h.bf16 %v19035_v54  ;;  %v19038_v58 = vld [vmem:[#allocation151_spill] sm:$0xff]  ;;  %v12390_v5 = vpop.permute.xlu0 %8325  ;;  %v2505_v33 = vsel %vm2503_vm5, %v12178_v50, %v7423_v61 }
 0x34a   :  { %19031 = vst [vmem:[#allocation39_spill] sm:$0xff] %v12368_v38  ;;  %8535 = vrot.lane.b32.xlu0 %v19037_v42, %s10028_s16  ;;  %v7902_v53 = vunpack.i.l.bf16 %v19038_v58  ;;  %v7903_v55 = vunpack.i.h.bf16 %v19038_v58  ;;  %v2569_v9 = vsel %vm2568_vm6, %v2504_v0, %v7582_v13  ;;  %v8063_v21 = vunpack.i.h.bf16 %v11961_v36  ;;  %v19040_v42 = vld [vmem:[#allocation56_spill] sm:$0xff]  ;;  %v19041_v0 = vld [vmem:[#allocation57_spill] sm:$0xff] }
 0x34b   :  { %19036 = vst [vmem:[#allocation52_spill] sm:$0xff] %v12377_v1  ;;  %v8062_v1 = vunpack.i.l.bf16 %v11961_v36  ;;  %v2570_v54 = vsel %vm2568_vm6, %v2505_v33, %v7583_v15  ;;  %v2634_v49 = vsel %vm2633_vm8, %v2569_v9, %v7742_v59  ;;  %v8223_v12 = vunpack.i.h.bf16 %v12095_v7 }
 0x34c   :  { %19039 = vst [vmem:[#allocation54_spill] sm:$0xff] %v12390_v5  ;;  %v8222_v58 = vunpack.i.l.bf16 %v12095_v7  ;;  %v7358_v16 = vunpack.i.h.bf16 %v19040_v42  ;;  %v2635_v5 = vsel %vm2633_vm8, %v2570_v54, %v7743_v26  ;;  %v2699_v38 = vsel %vm2698_vm7, %v2634_v49, %v7902_v53 }
 0x34d   :  { %v7357_v50 = vunpack.i.l.bf16 %v19040_v42  ;;  %v2700_v61 = vsel %vm2698_vm7, %v2635_v5, %v7903_v55  ;;  %v2764_v36 = vsel %vm2763_vm9, %v2699_v38, %v8062_v1  ;;  %v7368_v33 = vunpack.i.h.bf16 %v19041_v0  ;;  %v19043_v5 = vld [vmem:[#allocation155_spill] sm:$0xff] }
 0x34e   :  { %v2765_v15 = vsel %vm2763_vm9, %v2700_v61, %v8063_v21  ;;  %v7367_v26 = vunpack.i.l.bf16 %v19041_v0  ;;  %v2829_v53 = vsel %vm2828_vm11, %v2764_v36, %v8222_v58  ;;  %v12415_v1 = vsel %vm22_vm0, %v19043_v5, %v7353_v6  ;;  %v19044_v21 = vld [vmem:[#allocation154_spill] sm:$0xff]  ;;  %v19046_v58 = vld [vmem:[#allocation72_spill] sm:$0xff]  ;;  %v19053_v0 = vld [vmem:[#allocation161_spill] sm:$0xff] }
 0x34f   :  { %v2830_v54 = vsel %vm2828_vm11, %v2765_v15, %v8223_v12  ;;  %v12421_v49 = vsel %vm22_vm0, %v19044_v21, %v7352_v18  ;;  %v12425_v42 = vsel %vm22_vm0, %v11877_v62, %v7408_v28  ;;  %v7373_v61 = vunpack.i.h.bf16 %v19046_v58  ;;  %v19052_v28 = vld [vmem:[#allocation162_spill] sm:$0xff] }
 0x350   :  { %v8381_v13 = vpop.permute.xlu2 %8380  ;;  %19045 = vst [vmem:[#allocation48_spill] sm:$0xff] %v12425_v42  ;;  %v12432_v6 = vsel %vm22_vm0, %v11875_v31, %v7407_v52  ;;  %v7372_v62 = vunpack.i.l.bf16 %v19046_v58  ;;  %v19054_v31 = vld [vmem:[#allocation76_spill] sm:$0xff] }
 0x351   :  { %v8383_v59 = vunpack.i.h.bf16 %v8381_v13  ;;  %v8382_v7 = vunpack.i.l.bf16 %v8381_v13  ;;  %v12409_v9 = vpop.permute.xlu1 %8330  ;;  %v12428_v12 = vpop.permute.xlu0 %8340  ;;  %19048 = vst [vmem:[#allocation62_spill] sm:$0xff] %v12432_v6  ;;  %v19049_v13 = vld [vmem:[#allocation158_spill] sm:$0xff]  ;;  %v7383_v52 = vunpack.i.h.bf16 %v19054_v31  ;;  %v19063_v6 = vld [vmem:[#allocation87_spill] sm:$0xff] }
 0x352   :  { %19042 = vst [vmem:[#allocation46_spill] sm:$0xff] %v12409_v9  ;;  %v12436_v15 = vsel %vm22_vm0, %v19049_v13, %v7358_v16  ;;  %v19055_v16 = vld [vmem:[#allocation69_spill] sm:$0xff]  ;;  %v7402_v42 = vunpack.i.l.bf16 %v19063_v6 }
 0x353   :  { %v2894_v38 = vsel %vm2893_vm10, %v2829_v53, %v8382_v7  ;;  %v2895_v55 = vsel %vm2893_vm10, %v2830_v54, %v8383_v59  ;;  %19047 = vst [vmem:[#allocation61_spill] sm:$0xff] %v12428_v12  ;;  %v19050_v59 = vld [vmem:[#allocation157_spill] sm:$0xff]  ;;  %v12445_v7 = vsel %vm22_vm0, %v19052_v28, %v7368_v33  ;;  %v12449_v53 = vsel %vm22_vm0, %v19053_v0, %v7367_v26  ;;  %v19059_v26 = vld [vmem:[#allocation84_spill] sm:$0xff]  ;;  %v19060_v28 = vld [vmem:[#allocation86_spill] sm:$0xff] }
 0x354   :  { %v2958_v36 = vpack.c.bf16 %v2895_v55, %v2894_v38  ;;  %v12440_v18 = vsel %vm22_vm0, %v19050_v59, %v7357_v50  ;;  %v7382_v54 = vunpack.i.l.bf16 %v19054_v31  ;;  %v7388_v5 = vunpack.i.h.bf16 %v19055_v16  ;;  %v19056_v38 = vld [vmem:[#allocation68_spill] sm:$0xff]  ;;  %v19057_v33 = vld [vmem:[#allocation165_spill] sm:$0xff] }
 0x355   :  { %19051 = vst [vmem:[#allocation171_spill] sm:$0xff] %v12440_v18  ;;  %v7387_v50 = vunpack.i.l.bf16 %v19055_v16  ;;  %v7438_v55 = vunpack.i.h.bf16 %v19056_v38  ;;  %v7437_v21 = vunpack.i.l.bf16 %v19056_v38  ;;  %v12460_v58 = vsel %vm22_vm0, %v19057_v33, %v7373_v61  ;;  %v19061_v31 = vld [vmem:[#allocation164_spill] sm:$0xff]  ;;  %v19064_v12 = vld [vmem:[#allocation169_spill] sm:$0xff] }
 0x356   :  { %6848 = vmatmul.msk.bf16.vlgmr.msra.gmra.mxu0 %vm3014_vm12, %v2958_v36  ;;  %19058 = vst [vmem:[#allocation170_spill] sm:$0xff] %v12460_v58  ;;  %v7398_v13 = vunpack.i.h.bf16 %v19059_v26  ;;  %v7397_v59 = vunpack.i.l.bf16 %v19059_v26  ;;  %v7452_v0 = vunpack.i.l.bf16 %v19060_v28  ;;  %v12467_v36 = vsel %vm22_vm0, %v19061_v31, %v7372_v62  ;;  %v19065_v33 = vld [vmem:[#allocation168_spill] sm:$0xff]  ;;  %v19066_v26 = vld [vmem:[#allocation90_spill] sm:$0xff] }
 0x357   :  { %19062 = vst [vmem:[#allocation147_spill] sm:$0xff] %v12467_v36  ;;  %v7403_v16 = vunpack.i.h.bf16 %v19063_v6  ;;  %v7453_v38 = vunpack.i.h.bf16 %v19060_v28  ;;  %v12474_v61 = vsel %vm22_vm0, %v19064_v12, %v7383_v52  ;;  %v12478_v9 = vsel %vm22_vm0, %v19065_v33, %v7382_v54  ;;  %v19068_v31 = vld [vmem:[#allocation174_spill] sm:$0xff]  ;;  %v19069_v6 = vld [vmem:[#allocation173_spill] sm:$0xff] }
 0x358   :  { %v7413_v58 = vunpack.i.h.bf16 %v19066_v26  ;;  %v7412_v18 = vunpack.i.l.bf16 %v19066_v26  ;;  %v12486_v36 = vsel %vm22_vm0, %v19068_v31, %v7388_v5  ;;  %v12490_v28 = vsel %vm22_vm0, %v19069_v6, %v7387_v50  ;;  %v19073_v54 = vld [vmem:[#allocation178_spill] sm:$0xff]  ;;  %v19074_v26 = vld [vmem:[#allocation177_spill] sm:$0xff]  ;;  %v19076_v31 = vld [vmem:[#allocation92_spill] sm:$0xff] }
 0x359   :  { %v12482_v62 = vpop.permute.xlu1 %8345  ;;  %19070 = vst [vmem:[#allocation180_spill] sm:$0xff] %v12490_v28  ;;  %v12494_v12 = vsel %vm2503_vm5, %v12254_v20, %v7438_v55  ;;  %v12498_v52 = vsel %vm2503_vm5, %v12257_v29, %v7437_v21  ;;  %v12502_v33 = vsel %vm22_vm0, %v19073_v54, %v7398_v13  ;;  %v12506_v5 = vsel %vm22_vm0, %v19074_v26, %v7397_v59  ;;  %v12513_v20 = vpop.permute.xlu0 %8355  ;;  %v19078_v55 = vld [vmem:[#allocation183_spill] sm:$0xff]  ;;  %v19080_v21 = vld [vmem:[#allocation182_spill] sm:$0xff] }
 0x35a   :  { %19067 = vst [vmem:[#allocation58_spill] sm:$0xff] %v12482_v62  ;;  %v12510_v50 = vsel %vm2503_vm5, %v12265_v43, %v7452_v0  ;;  %v7467_v6 = vunpack.i.l.bf16 %v19076_v31  ;;  %v12517_v29 = vsel %vm22_vm0, %v19078_v55, %v7403_v16  ;;  %v12521_v13 = vsel %vm22_vm0, %v19080_v21, %v7402_v42  ;;  %v19083_v43 = vld [vmem:[#allocation187_spill] sm:$0xff]  ;;  %v19084_v26 = vld [vmem:[#allocation186_spill] sm:$0xff]  ;;  %v19085_v16 = vld [vmem:[#allocation93_spill] sm:$0xff] }
 0x35b   :  { %19071 = vst [vmem:[#allocation179_spill] sm:$0xff] %v12494_v12  ;;  %v12525_v59 = vsel %vm2503_vm5, %v12260_v17, %v7453_v38  ;;  %v7468_v54 = vunpack.i.h.bf16 %v19076_v31  ;;  %v12530_v0 = vsel %vm22_vm0, %v19083_v43, %v7413_v58  ;;  %v7418_v55 = vunpack.i.h.bf16 %v19085_v16  ;;  %v19086_v62 = vld [vmem:[#allocation96_spill] sm:$0xff]  ;;  %v19087_v17 = vld [vmem:[#allocation97_spill] sm:$0xff]  ;;  %v19089_v43 = vld [vmem:[#allocation98_spill] sm:$0xff] }
 0x35c   :  { %19072 = vst [vmem:[#allocation65_spill] sm:$0xff] %v12498_v52  ;;  %v7428_v21 = vunpack.i.h.bf16 %v19086_v62  ;;  %v7483_v38 = vunpack.i.h.bf16 %v19087_v17  ;;  %v7482_v31 = vunpack.i.l.bf16 %v19087_v17  ;;  %v12544_v58 = vsel %vm2503_vm5, %v12283_v4, %v7467_v6  ;;  %v19091_v42 = vld [vmem:[#allocation100_spill] sm:$0xff]  ;;  %v19092_v12 = vld [vmem:[#allocation189_spill] sm:$0xff] }
 0x35d   :  { %19075 = vst [vmem:[#allocation64_spill] sm:$0xff] %v12510_v50  ;;  %v7427_v50 = vunpack.i.l.bf16 %v19086_v62  ;;  %v7498_v16 = vunpack.i.h.bf16 %v19091_v42  ;;  %v7497_v17 = vunpack.i.l.bf16 %v19091_v42  ;;  %v12558_v4 = vsel %vm22_vm0, %v19092_v12, %v7418_v55  ;;  %v19096_v55 = vld [vmem:[#allocation102_spill] sm:$0xff] }
 0x35e   :  { %19077 = vst [vmem:[#allocation19_spill] sm:$0xff] %v12513_v20  ;;  %v12534_v20 = vsel %vm22_vm0, %v19084_v26, %v7412_v18  ;;  %v7432_v18 = vunpack.i.l.bf16 %v19089_v43  ;;  %v19090_v26 = vld [vmem:[#allocation99_spill] sm:$0xff]  ;;  %v12574_v12 = vsel %vm2503_vm5, %v12324_v19, %v7483_v38  ;;  %v7458_v42 = vunpack.i.h.bf16 %v19096_v55 }
 0x35f   :  { %19079 = vst [vmem:[#allocation66_spill] sm:$0xff] %v12517_v29  ;;  %v12551_v29 = vsel %vm2503_vm5, %v12280_v37, %v7468_v54  ;;  %v7442_v62 = vunpack.i.l.bf16 %v19090_v26  ;;  %v2506_v6 = vsel %vm2503_vm5, %v12244_v44, %v7427_v50  ;;  %v2507_v37 = vsel %vm2503_vm5, %v12222_v27, %v7428_v21 }
 0x360   :  { %19081 = vst [vmem:[#allocation134_spill] sm:$0xff] %v12521_v13  ;;  %v7443_v13 = vunpack.i.h.bf16 %v19090_v26  ;;  %v12570_v54 = vsel %vm2503_vm5, %v12327_v8, %v7482_v31  ;;  %v12579_v44 = vsel %vm2503_vm5, %v12214_v46, %v7432_v18  ;;  %v7457_v8 = vunpack.i.l.bf16 %v19096_v55 }
 0x361   :  { %19082 = vst [vmem:[#allocation151_spill] sm:$0xff] %v12525_v59  ;;  %v7433_v59 = vunpack.i.h.bf16 %v19089_v43  ;;  %v19094_v43 = vld [vmem:[#allocation101_spill] sm:$0xff]  ;;  %v12564_v28 = vpop.permute.xlu1 %8360  ;;  %v12590_v21 = vpop.permute.xlu0 %8370  ;;  %v12594_v19 = vsel %vm2503_vm5, %v12188_v56, %v7442_v62  ;;  %v12598_v46 = vsel %vm2503_vm5, %v12350_v2, %v7497_v17  ;;  %v19101_v56 = vld [vmem:[#allocation10_spill] sm:$0xff]  ;;  %v12617_v2 = vsel %vm2503_vm5, %v12274_v47, %v7458_v42 }
 0x362   :  { %19088 = vst [vmem:[#allocation56_spill] sm:$0xff] %v12544_v58  ;;  %v7448_v58 = vunpack.i.h.bf16 %v19094_v43  ;;  %v7447_v52 = vunpack.i.l.bf16 %v19094_v43  ;;  %v12587_v27 = vsel %vm2503_vm5, %v12185_v34, %v7443_v13  ;;  %v7588_v31 = vunpack.i.h.bf16 %v19101_v56 }
 0x363   :  { %19093 = vst [vmem:[#allocation57_spill] sm:$0xff] %v12558_v4  ;;  %v12583_v50 = vsel %vm2503_vm5, %v12211_v39, %v7433_v59  ;;  %v12602_v39 = vsel %vm2503_vm5, %v12346_v51, %v7498_v16  ;;  %v19100_v59 = vld [vmem:[#allocation103_spill] sm:$0xff]  ;;  %v7587_v18 = vunpack.i.l.bf16 %v19101_v56  ;;  %v8068_v42 = vunpack.i.h.bf16 %v11918_v57 }
 0x364   :  { %19095 = vst [vmem:[#allocation155_spill] sm:$0xff] %v12564_v28  ;;  %v7512_v38 = vunpack.i.l.bf16 %v19100_v59  ;;  %v12607_v34 = vsel %vm2503_vm5, %v12191_v3, %v7448_v58  ;;  %v12611_v13 = vsel %vm2503_vm5, %v12196_v48, %v7447_v52  ;;  %v7513_v51 = vunpack.i.h.bf16 %v19100_v59  ;;  %v19102_v16 = vld [vmem:[#allocation135_spill] sm:$0xff]  ;;  %v19103_v48 = vld [vmem:[#allocation104_spill] sm:$0xff] }
 0x365   :  { %19097 = vst [vmem:[#allocation154_spill] sm:$0xff] %v12590_v21  ;;  %v7748_v26 = vunpack.i.h.bf16 %v19102_v16  ;;  %v7747_v62 = vunpack.i.l.bf16 %v19102_v16  ;;  %v12624_v3 = vsel %vm2503_vm5, %v12277_v41, %v7457_v8  ;;  %v7463_v52 = vunpack.i.h.bf16 %v19103_v48  ;;  %v19104_v58 = vld [vmem:[#allocation95_spill] sm:$0xff] }
 0x366   :  { %19098 = vst [vmem:[#allocation72_spill] sm:$0xff] %v12598_v46  ;;  %v7908_v17 = vunpack.i.h.bf16 %v19104_v58  ;;  %v7907_v43 = vunpack.i.l.bf16 %v19104_v58  ;;  %v7462_v55 = vunpack.i.l.bf16 %v19103_v48  ;;  %v12632_v47 = vsel %vm2503_vm5, %v12421_v49, %v7512_v38  ;;  %v19106_v49 = vld [vmem:[#allocation105_spill] sm:$0xff] }
 0x367   :  { %19099 = vst [vmem:[#allocation158_spill] sm:$0xff] %v12602_v39  ;;  %v8067_v59 = vunpack.i.l.bf16 %v11918_v57  ;;  %v2571_v56 = vsel %vm2568_vm6, %v2506_v6, %v7587_v18  ;;  %v2572_v41 = vsel %vm2568_vm6, %v2507_v37, %v7588_v31  ;;  %v8228_v8 = vunpack.i.h.bf16 %v12103_v10  ;;  %v19107_v18 = vld [vmem:[#allocation106_spill] sm:$0xff]  ;;  %v19108_v39 = vld [vmem:[#allocation107_spill] sm:$0xff] }
 0x368   :  { %v8227_v16 = vunpack.i.l.bf16 %v12103_v10  ;;  %v12644_v48 = vsel %vm2503_vm5, %v12415_v1, %v7513_v51  ;;  %v7473_v38 = vunpack.i.h.bf16 %v19106_v49  ;;  %v2636_v58 = vsel %vm2633_vm8, %v2571_v56, %v7747_v62 }
 0x369   :  { %v12640_v4 = vpop.permute.xlu1 %8375  ;;  %v2637_v57 = vsel %vm2633_vm8, %v2572_v41, %v7748_v26  ;;  %v7472_v6 = vunpack.i.l.bf16 %v19106_v49  ;;  %v7528_v37 = vunpack.i.h.bf16 %v19107_v18  ;;  %v2701_v31 = vsel %vm2698_vm7, %v2636_v58, %v7907_v43  ;;  %v8386_v21 = vpop.permute.xlu0 %8385  ;;  %v19109_v43 = vld [vmem:[#allocation108_spill] sm:$0xff]  ;;  %v19110_v58 = vld [vmem:[#allocation109_spill] sm:$0xff] }
 0x36a   :  { %19105 = vst [vmem:[#allocation157_spill] sm:$0xff] %v12640_v4  ;;  %v2702_v10 = vsel %vm2698_vm7, %v2637_v57, %v7908_v17  ;;  %v2766_v4 = vsel %vm2763_vm9, %v2701_v31, %v8067_v59  ;;  %v8388_v51 = vunpack.i.h.bf16 %v8386_v21  ;;  %v8387_v28 = vunpack.i.l.bf16 %v8386_v21 }
 0x36b   :  { %v2767_v1 = vsel %vm2763_vm9, %v2702_v10, %v8068_v42  ;;  %v7478_v46 = vunpack.i.h.bf16 %v19108_v39  ;;  %v7527_v62 = vunpack.i.l.bf16 %v19107_v18  ;;  %v2831_v26 = vsel %vm2828_vm11, %v2766_v4, %v8227_v16 }
 0x36c   :  { %v2832_v56 = vsel %vm2828_vm11, %v2767_v1, %v8228_v8  ;;  %v7477_v41 = vunpack.i.l.bf16 %v19108_v39  ;;  %v7488_v49 = vunpack.i.h.bf16 %v19109_v43  ;;  %v2896_v17 = vsel %vm2893_vm10, %v2831_v26, %v8387_v28  ;;  %v19111_v28 = vld [vmem:[#allocation110_spill] sm:$0xff] }
 0x36d   :  { %v2897_v59 = vsel %vm2893_vm10, %v2832_v56, %v8388_v51  ;;  %v12665_v42 = vsel %vm2503_vm5, %v12199_v25, %v7463_v52  ;;  %v7487_v21 = vunpack.i.l.bf16 %v19109_v43  ;;  %v7542_v57 = vunpack.i.l.bf16 %v19110_v58  ;;  %v19118_v56 = vld [vmem:[#allocation153_spill] sm:$0xff] }
 0x36e   :  { %v2959_v18 = vpack.c.bf16 %v2897_v59, %v2896_v17  ;;  %v12671_v4 = vsel %vm2503_vm5, %v12202_v30, %v7462_v55  ;;  %v12675_v39 = vsel %vm2503_vm5, %v12317_v35, %v7473_v38  ;;  %v7493_v8 = vunpack.i.h.bf16 %v19111_v28 }
 0x36f   :  { %v7543_v16 = vunpack.i.h.bf16 %v19110_v58  ;;  %v12681_v25 = vsel %vm2503_vm5, %v12320_v14, %v7472_v6  ;;  %v12685_v52 = vsel %vm2503_vm5, %v12449_v53, %v7527_v62  ;;  %v12689_v30 = vsel %vm2503_vm5, %v12445_v7, %v7528_v37  ;;  %v19113_v6 = vld [vmem:[#allocation111_spill] sm:$0xff] }
 0x370   :  { %19112 = vst [vmem:[#allocation162_spill] sm:$0xff] %v12689_v30  ;;  %v7492_v55 = vunpack.i.l.bf16 %v19111_v28  ;;  %6849 = vmatmul.msk.bf16.gmra.mxu0 %vm3014_vm12, %v2959_v18  ;;  %v12695_v38 = vsel %vm2503_vm5, %v12205_v45, %v7478_v46  ;;  %v12699_v14 = vsel %vm2503_vm5, %v12208_v11, %v7477_v41  ;;  %v12703_v53 = vsel %vm2503_vm5, %v12340_v24, %v7488_v49  ;;  %v19115_v45 = vld [vmem:[#allocation34_spill] sm:$0xff] }
 0x371   :  { %v8391_v35 = vpop.permute.xlu1 %8390  ;;  %v7503_v7 = vunpack.i.h.bf16 %v19113_v6  ;;  %v12708_v37 = vsel %vm2503_vm5, %v12343_v40, %v7487_v21  ;;  %v12712_v31 = vsel %vm2503_vm5, %v12478_v9, %v7542_v57  ;;  %v7593_v46 = vunpack.i.h.bf16 %v19115_v45  ;;  %v12716_v11 = vpop.permute.xlu0 %8400  ;;  %v19117_v40 = vld [vmem:[#allocation125_spill] sm:$0xff] }
 0x372   :  { %19114 = vst [vmem:[#allocation161_spill] sm:$0xff] %v12712_v31  ;;  %v7592_v10 = vunpack.i.l.bf16 %v19115_v45  ;;  %v12720_v24 = vsel %vm2503_vm5, %v12247_v60, %v7493_v8  ;;  %v12724_v1 = vsel %vm2503_vm5, %v12474_v61, %v7543_v16  ;;  %v7753_v51 = vunpack.i.h.bf16 %v19117_v40  ;;  %v19119_v61 = vld [vmem:[#allocation112_spill] sm:$0xff]  ;;  %v19120_v16 = vld [vmem:[#allocation39_spill] sm:$0xff] }
 0x373   :  { %19116 = vst [vmem:[#allocation76_spill] sm:$0xff] %v12724_v1  ;;  %v7752_v62 = vunpack.i.l.bf16 %v19117_v40  ;;  %v12730_v9 = vsel %vm2503_vm5, %v12250_v32, %v7492_v55  ;;  %v7502_v26 = vunpack.i.l.bf16 %v19113_v6  ;;  %v7913_v41 = vunpack.i.h.bf16 %v19118_v56  ;;  %v19123_v40 = vld [vmem:[#allocation114_spill] sm:$0xff]  ;;  %v19156_v1 = vld [vmem:[#allocation25_spill] sm:$0xff] }
 0x374   :  { %v7912_v43 = vunpack.i.l.bf16 %v19118_v56  ;;  %v12737_v60 = vsel %vm2503_vm5, %v12361_v22, %v7503_v7  ;;  %v7557_v49 = vunpack.i.l.bf16 %v19119_v61  ;;  %v8073_v17 = vunpack.i.h.bf16 %v11965_v63  ;;  %v19121_v7 = vld [vmem:[#allocation113_spill] sm:$0xff] }
 0x375   :  { %v8072_v59 = vunpack.i.l.bf16 %v11965_v63  ;;  %v2574_v32 = vsel %vm2568_vm6, %v12583_v50, %v7593_v46  ;;  %v2573_v21 = vsel %vm2568_vm6, %v12579_v44, %v7592_v10  ;;  %v8233_v58 = vunpack.i.h.bf16 %v12065_v23 }
 0x376   :  { %v8232_v57 = vunpack.i.l.bf16 %v12065_v23  ;;  %v2638_v18 = vsel %vm2633_vm8, %v2573_v21, %v7752_v62  ;;  %v2639_v22 = vsel %vm2633_vm8, %v2574_v32, %v7753_v51  ;;  %v8393_v28 = vunpack.i.h.bf16 %v8391_v35  ;;  %v12768_v62 = vpop.permute.xlu2 %8395 }
 0x377   :  { %v8392_v8 = vunpack.i.l.bf16 %v8391_v35  ;;  %v12752_v55 = vsel %vm2503_vm5, %v19120_v16, %v7502_v26  ;;  %v7558_v63 = vunpack.i.h.bf16 %v19119_v61  ;;  %v2703_v50 = vsel %vm2698_vm7, %v2638_v18, %v7912_v43  ;;  %v19125_v61 = vld [vmem:[#allocation115_spill] sm:$0xff]  ;;  %v19129_v16 = vld [vmem:[#allocation8_spill] sm:$0xff] }
 0x378   :  { %v2704_v44 = vsel %vm2698_vm7, %v2639_v22, %v7913_v41  ;;  %v7508_v23 = vunpack.i.h.bf16 %v19121_v7  ;;  %v7507_v45 = vunpack.i.l.bf16 %v19121_v7  ;;  %v2768_v46 = vsel %vm2763_vm9, %v2703_v50, %v8072_v59  ;;  %v19128_v22 = vld [vmem:[#allocation24_spill] sm:$0xff] }
 0x379   :  { %v12757_v6 = vpop.permute.xlu1 %8405  ;;  %v2769_v35 = vsel %vm2763_vm9, %v2704_v44, %v8073_v17  ;;  %v12765_v10 = vsel %vm2503_vm5, %v12506_v5, %v7557_v49  ;;  %v7518_v51 = vunpack.i.h.bf16 %v19123_v40  ;;  %v12770_v26 = vpop.permute.xlu0 %8415  ;;  %v2833_v56 = vsel %vm2828_vm11, %v2768_v46, %v8232_v57  ;;  %v19127_v49 = vld [vmem:[#allocation116_spill] sm:$0xff]  ;;  %v19130_v44 = vld [vmem:[#allocation7_spill] sm:$0xff]  ;;  %v19132_v46 = vld [vmem:[#allocation6_spill] sm:$0xff] }
 0x37a   :  { %19122 = vst [vmem:[#allocation69_spill] sm:$0xff] %v12765_v10  ;;  %v2834_v41 = vsel %vm2828_vm11, %v2769_v35, %v8233_v58  ;;  %v7517_v43 = vunpack.i.l.bf16 %v19123_v40  ;;  %v7572_v59 = vunpack.i.l.bf16 %v19125_v61  ;;  %v2898_v17 = vsel %vm2893_vm10, %v2833_v56, %v8392_v8  ;;  %v19131_v7 = vld [vmem:[#allocation16_spill] sm:$0xff] }
 0x37b   :  { %19124 = vst [vmem:[#allocation68_spill] sm:$0xff] %v12770_v26  ;;  %v2899_v32 = vsel %vm2893_vm10, %v2834_v41, %v8393_v28  ;;  %v12780_v5 = vsel %vm2503_vm5, %v12502_v33, %v7558_v63  ;;  %v7523_v21 = vunpack.i.h.bf16 %v19127_v49  ;;  %v7522_v18 = vunpack.i.l.bf16 %v19127_v49  ;;  %v19135_v49 = vld [vmem:[#allocation47_spill] sm:$0xff] }
 0x37c   :  { %19126 = vst [vmem:[#allocation165_spill] sm:$0xff] %v12780_v5  ;;  %v7573_v57 = vunpack.i.h.bf16 %v19125_v61  ;;  %v12787_v58 = vsel %vm2503_vm5, %v19128_v22, %v7508_v23  ;;  %v7533_v50 = vunpack.i.h.bf16 %v19129_v16  ;;  %v7532_v8 = vunpack.i.l.bf16 %v19129_v16  ;;  %v19133_v23 = vld [vmem:[#allocation171_spill] sm:$0xff]  ;;  %v19136_v16 = vld [vmem:[#allocation17_spill] sm:$0xff] }
 0x37d   :  { %v7538_v28 = vunpack.i.h.bf16 %v19130_v44  ;;  %v12794_v33 = vsel %vm2503_vm5, %v19131_v7, %v7507_v45  ;;  %v7537_v63 = vunpack.i.l.bf16 %v19130_v44  ;;  %v7548_v35 = vunpack.i.h.bf16 %v19132_v46  ;;  %v19154_v5 = vld [vmem:[#allocation65_spill] sm:$0xff]  ;;  %v19157_v26 = vld [vmem:[#allocation15_spill] sm:$0xff] }
 0x37e   :  { %v2960_v40 = vpack.c.bf16 %v2899_v32, %v2898_v17  ;;  %v12800_v56 = vsel %vm2503_vm5, %v12436_v15, %v7518_v51  ;;  %v12804_v41 = vsel %vm2503_vm5, %v19133_v23, %v7517_v43  ;;  %v12808_v61 = vsel %vm2503_vm5, %v12534_v20, %v7572_v59  ;;  %v19138_v51 = vld [vmem:[#allocation11_spill] sm:$0xff]  ;;  %v19140_v20 = vld [vmem:[#allocation170_spill] sm:$0xff] }
 0x37f   :  { %19134 = vst [vmem:[#allocation84_spill] sm:$0xff] %v12808_v61  ;;  %v7547_v45 = vunpack.i.l.bf16 %v19132_v46  ;;  %v12813_v22 = vsel %vm2503_vm5, %v19135_v49, %v7523_v21  ;;  %v12817_v17 = vsel %vm2503_vm5, %v19136_v16, %v7522_v18  ;;  %v12821_v15 = vsel %vm2503_vm5, %v12530_v0, %v7573_v57  ;;  %v19141_v21 = vld [vmem:[#allocation147_spill] sm:$0xff]  ;;  %v19142_v18 = vld [vmem:[#allocation28_spill] sm:$0xff]  ;;  %v19144_v57 = vld [vmem:[#allocation29_spill] sm:$0xff]  ;;  %v12866_v61 = vpop.permute.xlu2 %8410 }
 0x380   :  { %19137 = vst [vmem:[#allocation86_spill] sm:$0xff] %v12821_v15  ;;  %v7602_v43 = vunpack.i.l.bf16 %v19138_v51  ;;  %6850 = vmatmul.msk.bf16.gmra.mxu0 %vm3014_vm12, %v2960_v40  ;;  %v12829_v59 = vsel %vm2503_vm5, %v19140_v20, %v7533_v50  ;;  %v12833_v44 = vsel %vm2503_vm5, %v19141_v21, %v7532_v8  ;;  %v12837_v7 = vsel %vm2503_vm5, %v19142_v18, %v7538_v28  ;;  %v19146_v50 = vld [vmem:[#allocation32_spill] sm:$0xff]  ;;  %v19149_v20 = vld [vmem:[#allocation9_spill] sm:$0xff]  ;;  %v19150_v21 = vld [vmem:[#allocation26_spill] sm:$0xff] }
 0x381   :  { %v12824_v32 = vpop.permute.xlu1 %8420  ;;  %19143 = vst [vmem:[#allocation87_spill] sm:$0xff] %v12837_v7  ;;  %v7603_v0 = vunpack.i.h.bf16 %v19138_v51  ;;  %v12842_v46 = vsel %vm2503_vm5, %v19144_v57, %v7537_v63  ;;  %v12846_v40 = vsel %vm2503_vm5, %v12486_v36, %v7548_v35  ;;  %v7598_v23 = vunpack.i.h.bf16 %v19146_v50  ;;  %v12850_v8 = vpop.permute.xlu0 %8430  ;;  %v19148_v16 = vld [vmem:[#allocation180_spill] sm:$0xff]  ;;  %v19151_v35 = vld [vmem:[#allocation77_spill] sm:$0xff] }
 0x382   :  { %19139 = vst [vmem:[#allocation164_spill] sm:$0xff] %v12824_v32  ;;  %v7597_v49 = vunpack.i.l.bf16 %v19146_v50  ;;  %v12854_v28 = vsel %vm2503_vm5, %v19148_v16, %v7547_v45  ;;  %v7553_v51 = vunpack.i.h.bf16 %v19149_v20  ;;  %v7758_v18 = vunpack.i.h.bf16 %v19150_v21  ;;  %v19152_v16 = vld [vmem:[#allocation14_spill] sm:$0xff] }
 0x383   :  { %19145 = vst [vmem:[#allocation169_spill] sm:$0xff] %v12842_v46  ;;  %v7757_v63 = vunpack.i.l.bf16 %v19150_v21  ;;  %v7552_v57 = vunpack.i.l.bf16 %v19149_v20  ;;  %v12862_v36 = vsel %vm2568_vm6, %v12594_v19, %v7602_v43  ;;  %v7918_v50 = vunpack.i.h.bf16 %v19151_v35  ;;  %v19153_v32 = vld [vmem:[#allocation206_spill] sm:$0xff]  ;;  %v19155_v43 = vld [vmem:[#allocation179_spill] sm:$0xff] }
 0x384   :  { %19147 = vst [vmem:[#allocation168_spill] sm:$0xff] %v12850_v8  ;;  %v7917_v15 = vunpack.i.l.bf16 %v19151_v35  ;;  %v12870_v45 = vsel %vm2568_vm6, %v12587_v27, %v7603_v0  ;;  %v7563_v8 = vunpack.i.h.bf16 %v19152_v16  ;;  %v8078_v21 = vunpack.i.h.bf16 %v19153_v32 }
 0x385   :  { %v8077_v20 = vunpack.i.l.bf16 %v19153_v32  ;;  %v2575_v19 = vsel %vm2568_vm6, %v19154_v5, %v7597_v49  ;;  %v2576_v10 = vsel %vm2568_vm6, %v19155_v43, %v7598_v23  ;;  %v8238_v35 = vunpack.i.h.bf16 %v19156_v1  ;;  %v19159_v43 = vld [vmem:[#allocation43_spill] sm:$0xff] }
 0x386   :  { %v8237_v31 = vunpack.i.l.bf16 %v19156_v1  ;;  %v2641_v46 = vsel %vm2633_vm8, %v2576_v10, %v7758_v18  ;;  %v2640_v27 = vsel %vm2633_vm8, %v2575_v19, %v7757_v63  ;;  %v8398_v0 = vunpack.i.h.bf16 %v12768_v62  ;;  %v19160_v63 = vld [vmem:[#allocation38_spill] sm:$0xff]  ;;  %v19161_v19 = vld [vmem:[#allocation27_spill] sm:$0xff] }
 0x387   :  { %v8397_v7 = vunpack.i.l.bf16 %v12768_v62  ;;  %v7562_v32 = vunpack.i.l.bf16 %v19152_v16  ;;  %v7617_v30 = vunpack.i.l.bf16 %v19157_v26  ;;  %v2705_v5 = vsel %vm2698_vm7, %v2640_v27, %v7917_v15 }
 0x388   :  { %v2706_v23 = vsel %vm2698_vm7, %v2641_v46, %v7918_v50  ;;  %v12893_v1 = vsel %vm2503_vm5, %v19159_v43, %v7553_v51  ;;  %v7618_v10 = vunpack.i.h.bf16 %v19157_v26  ;;  %v2770_v18 = vsel %vm2763_vm9, %v2705_v5, %v8077_v20  ;;  %v19163_v51 = vld [vmem:[#allocation66_spill] sm:$0xff] }
 0x389   :  { %v12889_v49 = vpop.permute.xlu1 %8435  ;;  %v2771_v62 = vsel %vm2763_vm9, %v2706_v23, %v8078_v21  ;;  %v12900_v16 = vsel %vm2503_vm5, %v19160_v63, %v7552_v57  ;;  %v7632_v15 = vunpack.i.l.bf16 %v19161_v19  ;;  %v12903_v27 = vpop.permute.xlu0 %8445  ;;  %v2835_v46 = vsel %vm2828_vm11, %v2770_v18, %v8237_v31  ;;  %v19164_v57 = vld [vmem:[#allocation134_spill] sm:$0xff]  ;;  %v19165_v31 = vld [vmem:[#allocation45_spill] sm:$0xff] }
 0x38a   :  { %19158 = vst [vmem:[#allocation90_spill] sm:$0xff] %v12889_v49  ;;  %v2836_v50 = vsel %vm2828_vm11, %v2771_v62, %v8238_v35  ;;  %v12909_v43 = vsel %vm2503_vm5, %v19163_v51, %v7563_v8  ;;  %v7633_v26 = vunpack.i.h.bf16 %v19161_v19  ;;  %v2900_v21 = vsel %vm2893_vm10, %v2835_v46, %v8397_v7  ;;  %v19166_v62 = vld [vmem:[#allocation37_spill] sm:$0xff] }
 0x38b   :  { %19162 = vst [vmem:[#allocation174_spill] sm:$0xff] %v12903_v27  ;;  %v2901_v20 = vsel %vm2893_vm10, %v2836_v50, %v8398_v0  ;;  %v12916_v5 = vsel %vm2503_vm5, %v19164_v57, %v7562_v32  ;;  %v12920_v23 = vsel %vm2568_vm6, %v12624_v3, %v7617_v30  ;;  %v7663_v35 = vunpack.i.h.bf16 %v19165_v31  ;;  %v19167_v63 = vld [vmem:[#allocation145_spill] sm:$0xff]  ;;  %v19168_v3 = vld [vmem:[#allocation188_spill] sm:$0xff]  ;;  %v12937_v50 = vpop.permute.xlu2 %8425 }
 0x38c   :  { %v7662_v18 = vunpack.i.l.bf16 %v19165_v31  ;;  %v12926_v8 = vsel %vm2568_vm6, %v12617_v2, %v7618_v10  ;;  %v7647_v7 = vunpack.i.l.bf16 %v19166_v62  ;;  %v7823_v0 = vunpack.i.h.bf16 %v19167_v63  ;;  %19169 = vst [vmem:[#allocation173_spill] sm:$0xff] %v12937_v50  ;;  %v19170_v57 = vld [vmem:[#allocation208_spill] sm:$0xff] }
 0x38d   :  { %v7822_v19 = vunpack.i.l.bf16 %v19167_v63  ;;  %v12933_v32 = vsel %vm2568_vm6, %v12681_v25, %v7632_v15  ;;  %v7983_v30 = vunpack.i.h.bf16 %v19168_v3  ;;  %v7982_v46 = vunpack.i.l.bf16 %v19168_v3  ;;  %v19171_v3 = vld [vmem:[#allocation18_spill] sm:$0xff] }
 0x38e   :  { %v2961_v51 = vpack.c.bf16 %v2901_v20, %v2900_v21  ;;  %v12941_v2 = vsel %vm2568_vm6, %v12675_v39, %v7633_v26  ;;  %v7648_v10 = vunpack.i.h.bf16 %v19166_v62  ;;  %v8143_v31 = vunpack.i.h.bf16 %v19170_v57  ;;  %v19173_v26 = vld [vmem:[#allocation117_spill] sm:$0xff] }
 0x38f   :  { %v8142_v63 = vunpack.i.l.bf16 %v19170_v57  ;;  %v2601_v25 = vsel %vm2568_vm6, %v12752_v55, %v7662_v18  ;;  %v2602_v15 = vsel %vm2568_vm6, %v12737_v60, %v7663_v35  ;;  %v8303_v27 = vunpack.i.h.bf16 %v19171_v3  ;;  %v19174_v55 = vld [vmem:[#allocation137_spill] sm:$0xff] }
 0x390   :  { %v8302_v21 = vunpack.i.l.bf16 %v19171_v3  ;;  %6851 = vmatmul.msk.bf16.gmra.mxu0 %vm3014_vm12, %v2961_v51  ;;  %v12955_v39 = vsel %vm2568_vm6, %v12708_v37, %v7647_v7  ;;  %v7608_v20 = vunpack.i.h.bf16 %v19173_v26  ;;  %v2666_v62 = vsel %vm2633_vm8, %v2601_v25, %v7822_v19  ;;  %v19176_v19 = vld [vmem:[#allocation156_spill] sm:$0xff] }
 0x391   :  { %19172 = vst [vmem:[#allocation178_spill] sm:$0xff] %v12955_v39  ;;  %v2667_v57 = vsel %vm2633_vm8, %v2602_v15, %v7823_v0  ;;  %v7763_v18 = vunpack.i.h.bf16 %v19174_v55  ;;  %v7762_v60 = vunpack.i.l.bf16 %v19174_v55  ;;  %v2731_v35 = vsel %vm2698_vm7, %v2666_v62, %v7982_v46  ;;  %v12964_v49 = vpop.permute.xlu1 %8450  ;;  %v8461_v51 = vpop.permute.xlu0 %8460  ;;  %v19177_v46 = vld [vmem:[#allocation198_spill] sm:$0xff] }
 0x392   :  { %v2732_v3 = vsel %vm2698_vm7, %v2667_v57, %v7983_v30  ;;  %19175 = vst [vmem:[#allocation177_spill] sm:$0xff] %v12964_v49  ;;  %v2796_v37 = vsel %vm2763_vm9, %v2731_v35, %v8142_v63  ;;  %v8463_v39 = vunpack.i.h.bf16 %v8461_v51  ;;  %v8462_v50 = vunpack.i.l.bf16 %v8461_v51  ;;  %v19178_v35 = vld [vmem:[#allocation232_spill] sm:$0xff] }
 0x393   :  { %v2797_v7 = vsel %vm2763_vm9, %v2732_v3, %v8143_v31  ;;  %v7923_v25 = vunpack.i.h.bf16 %v19176_v19  ;;  %v7922_v0 = vunpack.i.l.bf16 %v19176_v19  ;;  %v2861_v15 = vsel %vm2828_vm11, %v2796_v37, %v8302_v21 }
 0x394   :  { %v2862_v55 = vsel %vm2828_vm11, %v2797_v7, %v8303_v27  ;;  %v8083_v62 = vunpack.i.h.bf16 %v19177_v46  ;;  %v8082_v30 = vunpack.i.l.bf16 %v19177_v46  ;;  %v2926_v57 = vsel %vm2893_vm10, %v2861_v15, %v8462_v50  ;;  %v19181_v46 = vld [vmem:[#allocation138_spill] sm:$0xff] }
 0x395   :  { %v2927_v63 = vsel %vm2893_vm10, %v2862_v55, %v8463_v39  ;;  %v7607_v31 = vunpack.i.l.bf16 %v19173_v26  ;;  %v8243_v3 = vunpack.i.h.bf16 %v19178_v35  ;;  %v8242_v51 = vunpack.i.l.bf16 %v19178_v35  ;;  %v19179_v39 = vld [vmem:[#allocation41_spill] sm:$0xff]  ;;  %v12992_v55 = vpop.permute.xlu2 %8440 }
 0x396   :  { %v2974_v49 = vpack.c.bf16 %v2927_v63, %v2926_v57  ;;  %v2642_v21 = vsel %vm2633_vm8, %v12862_v36, %v7762_v60  ;;  %v2643_v27 = vsel %vm2633_vm8, %v12870_v45, %v7763_v18  ;;  %v8403_v37 = vunpack.i.h.bf16 %v12716_v11  ;;  %v19180_v45 = vld [vmem:[#allocation118_spill] sm:$0xff] }
 0x397   :  { %v8402_v7 = vunpack.i.l.bf16 %v12716_v11  ;;  %v12987_v50 = vsel %vm2568_vm6, %v12703_v53, %v7648_v10  ;;  %v7612_v26 = vunpack.i.l.bf16 %v19179_v39  ;;  %v2707_v19 = vsel %vm2698_vm7, %v2642_v21, %v7922_v0 }
 0x398   :  { %v2708_v15 = vsel %vm2698_vm7, %v2643_v27, %v7923_v25  ;;  %6864 = vmatmul.msk.bf16.vlgmr.msra.gmra.mxu2 %vm3014_vm12, %v2974_v49  ;;  %v2580_v36 = vsel %vm2568_vm6, %v12607_v34, %v7608_v20  ;;  %v7668_v18 = vunpack.i.h.bf16 %v19180_v45  ;;  %v2772_v11 = vsel %vm2763_vm9, %v2707_v19, %v8082_v30  ;;  %v19185_v19 = vld [vmem:[#allocation219_spill] sm:$0xff] }
 0x399   :  { %v2773_v53 = vsel %vm2763_vm9, %v2708_v15, %v8083_v62  ;;  %v2579_v10 = vsel %vm2568_vm6, %v12611_v13, %v7607_v31  ;;  %v7667_v60 = vunpack.i.l.bf16 %v19180_v45  ;;  %v2837_v25 = vsel %vm2828_vm11, %v2772_v11, %v8242_v51  ;;  %v19182_v62 = vld [vmem:[#allocation64_spill] sm:$0xff]  ;;  %v19183_v13 = vld [vmem:[#allocation191_spill] sm:$0xff]  ;;  %v8466_v51 = vpop.permute.xlu1 %8465  ;;  %v19186_v15 = vld [vmem:[#allocation42_spill] sm:$0xff] }
 0x39a   :  { %v2838_v0 = vsel %vm2828_vm11, %v2773_v53, %v8243_v3  ;;  %v7828_v49 = vunpack.i.h.bf16 %v19181_v46  ;;  %v7827_v57 = vunpack.i.l.bf16 %v19181_v46  ;;  %v2902_v34 = vsel %vm2893_vm10, %v2837_v25, %v8402_v7  ;;  %v19184_v3 = vld [vmem:[#allocation51_spill] sm:$0xff] }
 0x39b   :  { %v2903_v20 = vsel %vm2893_vm10, %v2838_v0, %v8403_v37  ;;  %v7613_v30 = vunpack.i.h.bf16 %v19179_v39  ;;  %v13012_v63 = vsel %vm2568_vm6, %v19182_v62, %v7612_v26  ;;  %v7988_v31 = vunpack.i.h.bf16 %v19183_v13  ;;  %v19187_v62 = vld [vmem:[#allocation151_spill] sm:$0xff] }
 0x39c   :  { %v7987_v35 = vunpack.i.l.bf16 %v19183_v13  ;;  %v7623_v21 = vunpack.i.h.bf16 %v19184_v3  ;;  %v2604_v27 = vsel %vm2568_vm6, %v12787_v58, %v7668_v18  ;;  %v8148_v7 = vunpack.i.h.bf16 %v19185_v19 }
 0x39d   :  { %v8147_v37 = vunpack.i.l.bf16 %v19185_v19  ;;  %v2603_v39 = vsel %vm2568_vm6, %v12794_v33, %v7667_v60  ;;  %v8308_v26 = vunpack.i.h.bf16 %v19186_v15  ;;  %v8307_v45 = vunpack.i.l.bf16 %v19186_v15  ;;  %v19188_v60 = vld [vmem:[#allocation55_spill] sm:$0xff]  ;;  %v19190_v19 = vld [vmem:[#allocation129_spill] sm:$0xff] }
 0x39e   :  { %v2962_v11 = vpack.c.bf16 %v2903_v20, %v2902_v34  ;;  %v2668_v53 = vsel %vm2633_vm8, %v2603_v39, %v7827_v57  ;;  %v2669_v25 = vsel %vm2633_vm8, %v2604_v27, %v7828_v49  ;;  %v8468_v0 = vunpack.i.h.bf16 %v8466_v51  ;;  %v13044_v27 = vpop.permute.xlu2 %8455 }
 0x39f   :  { %v8467_v46 = vunpack.i.l.bf16 %v8466_v51  ;;  %v13029_v58 = vsel %vm2568_vm6, %v19187_v62, %v7613_v30  ;;  %v7622_v18 = vunpack.i.l.bf16 %v19184_v3  ;;  %v2733_v13 = vsel %vm2698_vm7, %v2668_v53, %v7987_v35  ;;  %v19189_v51 = vld [vmem:[#allocation49_spill] sm:$0xff] }
 0x3a0   :  { %v2734_v33 = vsel %vm2698_vm7, %v2669_v25, %v7988_v31  ;;  %6852 = vmatmul.msk.bf16.gmra.mxu0 %vm3014_vm12, %v2962_v11  ;;  %v7678_v34 = vunpack.i.h.bf16 %v19188_v60  ;;  %v7677_v57 = vunpack.i.l.bf16 %v19188_v60  ;;  %v2798_v49 = vsel %vm2763_vm9, %v2733_v13, %v8147_v37  ;;  %v19191_v11 = vld [vmem:[#allocation160_spill] sm:$0xff]  ;;  %v19194_v13 = vld [vmem:[#allocation226_spill] sm:$0xff] }
 0x3a1   :  { %v2799_v20 = vsel %vm2763_vm9, %v2734_v33, %v8148_v7  ;;  %v13041_v30 = vsel %vm2568_vm6, %v12665_v42, %v7623_v21  ;;  %v7627_v3 = vunpack.i.l.bf16 %v19189_v51  ;;  %v2863_v31 = vsel %vm2828_vm11, %v2798_v49, %v8307_v45 }
 0x3a2   :  { %v2864_v35 = vsel %vm2828_vm11, %v2799_v20, %v8308_v26  ;;  %v7768_v39 = vunpack.i.h.bf16 %v19190_v19  ;;  %v7767_v15 = vunpack.i.l.bf16 %v19190_v19  ;;  %v2928_v37 = vsel %vm2893_vm10, %v2863_v31, %v8467_v46  ;;  %v19192_v46 = vld [vmem:[#allocation207_spill] sm:$0xff]  ;;  %v19196_v19 = vld [vmem:[#allocation120_spill] sm:$0xff] }
 0x3a3   :  { %v2929_v7 = vsel %vm2893_vm10, %v2864_v35, %v8468_v0  ;;  %v13054_v42 = vsel %vm2568_vm6, %v12671_v4, %v7622_v18  ;;  %v7628_v21 = vunpack.i.h.bf16 %v19189_v51  ;;  %v7928_v53 = vunpack.i.h.bf16 %v19191_v11  ;;  %v19193_v4 = vld [vmem:[#allocation56_spill] sm:$0xff]  ;;  %v19195_v51 = vld [vmem:[#allocation63_spill] sm:$0xff] }
 0x3a4   :  { %v7927_v45 = vunpack.i.l.bf16 %v19191_v11  ;;  %v13061_v26 = vsel %vm2568_vm6, %v12804_v41, %v7677_v57  ;;  %v13065_v25 = vsel %vm2568_vm6, %v12800_v56, %v7678_v34  ;;  %v8088_v0 = vunpack.i.h.bf16 %v19192_v46  ;;  %v19198_v11 = vld [vmem:[#allocation146_spill] sm:$0xff] }
 0x3a5   :  { %v8087_v62 = vunpack.i.l.bf16 %v19192_v46  ;;  %v13071_v18 = vsel %vm2568_vm6, %v19193_v4, %v7627_v3  ;;  %v8248_v33 = vunpack.i.h.bf16 %v19194_v13  ;;  %v8247_v60 = vunpack.i.l.bf16 %v19194_v13  ;;  %v19199_v13 = vld [vmem:[#allocation59_spill] sm:$0xff] }
 0x3a6   :  { %v2975_v49 = vpack.c.bf16 %v2929_v7, %v2928_v37  ;;  %v2644_v41 = vsel %vm2633_vm8, %v2579_v10, %v7767_v15  ;;  %v2645_v57 = vsel %vm2633_vm8, %v2580_v36, %v7768_v39  ;;  %v8408_v56 = vunpack.i.h.bf16 %v12757_v6  ;;  %v19197_v15 = vld [vmem:[#allocation67_spill] sm:$0xff] }
 0x3a7   :  { %v8407_v34 = vunpack.i.l.bf16 %v12757_v6  ;;  %v13081_v20 = vsel %vm2568_vm6, %v12551_v29, %v7628_v21  ;;  %v7638_v3 = vunpack.i.h.bf16 %v19195_v51  ;;  %v2709_v31 = vsel %vm2698_vm7, %v2644_v41, %v7927_v45 }
 0x3a8   :  { %v2710_v35 = vsel %vm2698_vm7, %v2645_v57, %v7928_v53  ;;  %6865 = vmatmul.msk.bf16.gmra.mxu2 %vm3014_vm12, %v2975_v49  ;;  %v7637_v10 = vunpack.i.l.bf16 %v19195_v51  ;;  %v7672_v36 = vunpack.i.l.bf16 %v19196_v19  ;;  %v2774_v39 = vsel %vm2763_vm9, %v2709_v31, %v8087_v62  ;;  %v19200_v49 = vld [vmem:[#allocation166_spill] sm:$0xff]  ;;  %v8471_v51 = vpop.permute.xlu2 %8470  ;;  %v19201_v31 = vld [vmem:[#allocation220_spill] sm:$0xff] }
 0x3a9   :  { %v2775_v6 = vsel %vm2763_vm9, %v2710_v35, %v8088_v0  ;;  %v7693_v37 = vunpack.i.h.bf16 %v19197_v15  ;;  %v7673_v29 = vunpack.i.h.bf16 %v19196_v19  ;;  %v2839_v7 = vsel %vm2828_vm11, %v2774_v39, %v8247_v60  ;;  %v19202_v19 = vld [vmem:[#allocation35_spill] sm:$0xff] }
 0x3aa   :  { %v2840_v21 = vsel %vm2828_vm11, %v2775_v6, %v8248_v33  ;;  %v7833_v53 = vunpack.i.h.bf16 %v19198_v11  ;;  %v7832_v45 = vunpack.i.l.bf16 %v19198_v11  ;;  %v2904_v46 = vsel %vm2893_vm10, %v2839_v7, %v8407_v34 }
 0x3ab   :  { %v2905_v4 = vsel %vm2893_vm10, %v2840_v21, %v8408_v56  ;;  %v7643_v62 = vunpack.i.h.bf16 %v19199_v13  ;;  %v7692_v0 = vunpack.i.l.bf16 %v19197_v15  ;;  %v7993_v41 = vunpack.i.h.bf16 %v19200_v49 }
 0x3ac   :  { %v7992_v57 = vunpack.i.l.bf16 %v19200_v49  ;;  %v7642_v60 = vunpack.i.l.bf16 %v19199_v13  ;;  %v2605_v33 = vsel %vm2568_vm6, %v12632_v47, %v7672_v36  ;;  %v8153_v35 = vunpack.i.h.bf16 %v19201_v31 }
 0x3ad   :  { %v8152_v34 = vunpack.i.l.bf16 %v19201_v31  ;;  %v2606_v56 = vsel %vm2568_vm6, %v12644_v48, %v7673_v29  ;;  %v8313_v39 = vunpack.i.h.bf16 %v19202_v19  ;;  %v8312_v6 = vunpack.i.l.bf16 %v19202_v19  ;;  %v19208_v19 = vld [vmem:[#allocation71_spill] sm:$0xff] }
 0x3ae   :  { %v2963_v15 = vpack.c.bf16 %v2905_v4, %v2904_v46  ;;  %v2670_v7 = vsel %vm2633_vm8, %v2605_v33, %v7832_v45  ;;  %v2671_v21 = vsel %vm2633_vm8, %v2606_v56, %v7833_v53  ;;  %v8473_v11 = vunpack.i.h.bf16 %v8471_v51  ;;  %v19203_v4 = vld [vmem:[#allocation33_spill] sm:$0xff] }
 0x3af   :  { %v8472_v13 = vunpack.i.l.bf16 %v8471_v51  ;;  %v13116_v47 = vsel %vm2568_vm6, %v12695_v38, %v7638_v3  ;;  %v13120_v36 = vsel %vm2568_vm6, %v12699_v14, %v7637_v10  ;;  %v2735_v48 = vsel %vm2698_vm7, %v2670_v7, %v7992_v57  ;;  %v19205_v51 = vld [vmem:[#allocation85_spill] sm:$0xff] }
 0x3b0   :  { %v2736_v29 = vsel %vm2698_vm7, %v2671_v21, %v7993_v41  ;;  %6853 = vmatmul.msk.bf16.gmra.mxu0 %vm3014_vm12, %v2963_v15  ;;  %v13127_v45 = vsel %vm2568_vm6, %v12833_v44, %v7692_v0  ;;  %v13131_v53 = vsel %vm2568_vm6, %v12829_v59, %v7693_v37  ;;  %v2800_v38 = vsel %vm2763_vm9, %v2735_v48, %v8152_v34  ;;  %v19204_v41 = vld [vmem:[#allocation74_spill] sm:$0xff] }
 0x3b1   :  { %v2801_v3 = vsel %vm2763_vm9, %v2736_v29, %v8153_v35  ;;  %v13137_v14 = vsel %vm2568_vm6, %v12570_v54, %v7642_v60  ;;  %v13141_v10 = vsel %vm2568_vm6, %v12574_v12, %v7643_v62  ;;  %v2865_v46 = vsel %vm2828_vm11, %v2800_v38, %v8312_v6  ;;  %v19206_v62 = vld [vmem:[#allocation78_spill] sm:$0xff]  ;;  %v19207_v35 = vld [vmem:[#allocation209_spill] sm:$0xff]  ;;  %v19209_v6 = vld [vmem:[#allocation31_spill] sm:$0xff] }
 0x3b2   :  { %v2866_v44 = vsel %vm2828_vm11, %v2801_v3, %v8313_v39  ;;  %v7773_v0 = vunpack.i.h.bf16 %v19203_v4  ;;  %v7772_v59 = vunpack.i.l.bf16 %v19203_v4  ;;  %v2930_v37 = vsel %vm2893_vm10, %v2865_v46, %v8472_v13  ;;  %v19210_v4 = vld [vmem:[#allocation72_spill] sm:$0xff] }
 0x3b3   :  { %v2931_v49 = vsel %vm2893_vm10, %v2866_v44, %v8473_v11  ;;  %v7653_v57 = vunpack.i.h.bf16 %v19204_v41  ;;  %v7652_v54 = vunpack.i.l.bf16 %v19204_v41  ;;  %v7933_v60 = vunpack.i.h.bf16 %v19205_v51 }
 0x3b4   :  { %v7932_v12 = vunpack.i.l.bf16 %v19205_v51  ;;  %v7708_v33 = vunpack.i.h.bf16 %v19206_v62  ;;  %v7707_v31 = vunpack.i.l.bf16 %v19206_v62  ;;  %v8093_v34 = vunpack.i.h.bf16 %v19207_v35  ;;  %v19212_v51 = vld [vmem:[#allocation158_spill] sm:$0xff] }
 0x3b5   :  { %v8092_v56 = vunpack.i.l.bf16 %v19207_v35  ;;  %v7657_v39 = vunpack.i.l.bf16 %v19208_v19  ;;  %v8253_v15 = vunpack.i.h.bf16 %v19209_v6  ;;  %v8252_v7 = vunpack.i.l.bf16 %v19209_v6  ;;  %v8476_v35 = vpop.permute.xlu0 %8475 }
 0x3b6   :  { %v2976_v21 = vpack.c.bf16 %v2931_v49, %v2930_v37  ;;  %v2646_v11 = vsel %vm2633_vm8, %v13012_v63, %v7772_v59  ;;  %v2647_v13 = vsel %vm2633_vm8, %v13029_v58, %v7773_v0  ;;  %v8413_v48 = vunpack.i.h.bf16 %v12866_v61  ;;  %v19211_v49 = vld [vmem:[#allocation149_spill] sm:$0xff] }
 0x3b7   :  { %v8412_v29 = vunpack.i.l.bf16 %v12866_v61  ;;  %v13168_v38 = vsel %vm2568_vm6, %v12720_v24, %v7653_v57  ;;  %v7658_v3 = vunpack.i.h.bf16 %v19208_v19  ;;  %v2711_v46 = vsel %vm2698_vm7, %v2646_v11, %v7932_v12  ;;  %v19213_v12 = vld [vmem:[#allocation119_spill] sm:$0xff] }
 0x3b8   :  { %v2712_v44 = vsel %vm2698_vm7, %v2647_v13, %v7933_v60  ;;  %6866 = vmatmul.msk.bf16.gmra.mxu2 %vm3014_vm12, %v2976_v21  ;;  %v13176_v63 = vsel %vm2568_vm6, %v12730_v9, %v7652_v54  ;;  %v13180_v58 = vsel %vm2568_vm6, %v12854_v28, %v7707_v31  ;;  %v2776_v61 = vsel %vm2763_vm9, %v2711_v46, %v8092_v56  ;;  %v19215_v56 = vld [vmem:[#allocation121_spill] sm:$0xff]  ;;  %v19217_v21 = vld [vmem:[#allocation52_spill] sm:$0xff] }
 0x3b9   :  { %v2777_v24 = vsel %vm2763_vm9, %v2712_v44, %v8093_v34  ;;  %v13186_v0 = vsel %vm2568_vm6, %v19210_v4, %v7657_v39  ;;  %v13190_v59 = vsel %vm2568_vm6, %v12846_v40, %v7708_v33  ;;  %v2841_v37 = vsel %vm2828_vm11, %v2776_v61, %v8252_v7  ;;  %v19214_v40 = vld [vmem:[#allocation192_spill] sm:$0xff]  ;;  %v19216_v39 = vld [vmem:[#allocation211_spill] sm:$0xff] }
 0x3ba   :  { %v2842_v9 = vsel %vm2828_vm11, %v2777_v24, %v8253_v15  ;;  %v7838_v41 = vunpack.i.h.bf16 %v19211_v49  ;;  %v7837_v28 = vunpack.i.l.bf16 %v19211_v49  ;;  %v2906_v57 = vsel %vm2893_vm10, %v2841_v37, %v8412_v29  ;;  %v19218_v24 = vld [vmem:[#allocation123_spill] sm:$0xff] }
 0x3bb   :  { %v2907_v54 = vsel %vm2893_vm10, %v2842_v9, %v8413_v48  ;;  %v13200_v60 = vsel %vm2568_vm6, %v19212_v51, %v7658_v3  ;;  %v7722_v62 = vunpack.i.l.bf16 %v19213_v12  ;;  %v7998_v33 = vunpack.i.h.bf16 %v19214_v40  ;;  %v19219_v51 = vld [vmem:[#allocation139_spill] sm:$0xff] }
 0x3bc   :  { %v7997_v31 = vunpack.i.l.bf16 %v19214_v40  ;;  %v7723_v34 = vunpack.i.h.bf16 %v19213_v12  ;;  %v7683_v19 = vunpack.i.h.bf16 %v19215_v56  ;;  %v8158_v6 = vunpack.i.h.bf16 %v19216_v39 }
 0x3bd   :  { %v8157_v15 = vunpack.i.l.bf16 %v19216_v39  ;;  %v7682_v7 = vunpack.i.l.bf16 %v19215_v56  ;;  %v8318_v11 = vunpack.i.h.bf16 %v19217_v21  ;;  %v8317_v13 = vunpack.i.l.bf16 %v19217_v21  ;;  %v19222_v56 = vld [vmem:[#allocation162_spill] sm:$0xff]  ;;  %v19224_v21 = vld [vmem:[#allocation127_spill] sm:$0xff] }
 0x3be   :  { %v2964_v48 = vpack.c.bf16 %v2907_v54, %v2906_v57  ;;  %v2672_v29 = vsel %vm2633_vm8, %v13061_v26, %v7837_v28  ;;  %v2673_v3 = vsel %vm2633_vm8, %v13065_v25, %v7838_v41  ;;  %v8478_v46 = vunpack.i.h.bf16 %v8476_v35 }
 0x3bf   :  { %v8477_v44 = vunpack.i.l.bf16 %v8476_v35  ;;  %v13218_v61 = vsel %vm2568_vm6, %v12916_v5, %v7722_v62  ;;  %v7687_v4 = vunpack.i.l.bf16 %v19218_v24  ;;  %v2737_v37 = vsel %vm2698_vm7, %v2672_v29, %v7997_v31  ;;  %v19221_v35 = vld [vmem:[#allocation163_spill] sm:$0xff] }
 0x3c0   :  { %v2738_v9 = vsel %vm2698_vm7, %v2673_v3, %v7998_v33  ;;  %6854 = vmatmul.msk.bf16.gmra.mxu0 %vm3014_vm12, %v2964_v48  ;;  %v13226_v26 = vsel %vm2568_vm6, %v12909_v43, %v7723_v34  ;;  %v7688_v25 = vunpack.i.h.bf16 %v19218_v24  ;;  %v2802_v49 = vsel %vm2763_vm9, %v2737_v37, %v8157_v15  ;;  %v19227_v37 = vld [vmem:[#allocation87_spill] sm:$0xff] }
 0x3c1   :  { %v2803_v41 = vsel %vm2763_vm9, %v2738_v9, %v8158_v6  ;;  %v2610_v5 = vsel %vm2568_vm6, %v12813_v22, %v7683_v19  ;;  %v2609_v28 = vsel %vm2568_vm6, %v12817_v17, %v7682_v7  ;;  %v2867_v57 = vsel %vm2828_vm11, %v2802_v49, %v8317_v13  ;;  %v19220_v22 = vld [vmem:[#allocation124_spill] sm:$0xff]  ;;  %v19223_v6 = vld [vmem:[#allocation201_spill] sm:$0xff] }
 0x3c2   :  { %v2868_v54 = vsel %vm2828_vm11, %v2803_v41, %v8318_v11  ;;  %v7778_v12 = vunpack.i.h.bf16 %v19219_v51  ;;  %v7777_v43 = vunpack.i.l.bf16 %v19219_v51  ;;  %v2932_v62 = vsel %vm2893_vm10, %v2867_v57, %v8477_v44  ;;  %v19226_v44 = vld [vmem:[#allocation68_spill] sm:$0xff] }
 0x3c3   :  { %v2933_v40 = vsel %vm2893_vm10, %v2868_v54, %v8478_v46  ;;  %v13243_v33 = vsel %vm2568_vm6, %v12685_v52, %v7687_v4  ;;  %v7698_v31 = vunpack.i.h.bf16 %v19220_v22  ;;  %v7938_v17 = vunpack.i.h.bf16 %v19221_v35  ;;  %v19225_v52 = vld [vmem:[#allocation36_spill] sm:$0xff] }
 0x3c4   :  { %v7937_v34 = vunpack.i.l.bf16 %v19221_v35  ;;  %v13250_v19 = vsel %vm2568_vm6, %v19222_v56, %v7688_v25  ;;  %v7697_v39 = vunpack.i.l.bf16 %v19220_v22  ;;  %v8098_v15 = vunpack.i.h.bf16 %v19223_v6  ;;  %v19231_v35 = vld [vmem:[#allocation30_spill] sm:$0xff] }
 0x3c5   :  { %v8097_v7 = vunpack.i.l.bf16 %v19223_v6  ;;  %v7702_v11 = vunpack.i.l.bf16 %v19224_v21  ;;  %v8258_v13 = vunpack.i.h.bf16 %v19225_v52  ;;  %v8257_v48 = vunpack.i.l.bf16 %v19225_v52 }
 0x3c6   :  { %v2977_v29 = vpack.c.bf16 %v2933_v40, %v2932_v62  ;;  %v2648_v3 = vsel %vm2633_vm8, %v12920_v23, %v7777_v43  ;;  %v2649_v46 = vsel %vm2633_vm8, %v12926_v8, %v7778_v12  ;;  %v8418_v24 = vunpack.i.h.bf16 %v19226_v44  ;;  %v19228_v23 = vld [vmem:[#allocation128_spill] sm:$0xff]  ;;  %v19229_v12 = vld [vmem:[#allocation169_spill] sm:$0xff] }
 0x3c7   :  { %v8417_v4 = vunpack.i.l.bf16 %v19226_v44  ;;  %v13266_v9 = vsel %vm2568_vm6, %v19227_v37, %v7698_v31  ;;  %v7703_v25 = vunpack.i.h.bf16 %v19224_v21  ;;  %v2713_v49 = vsel %vm2698_vm7, %v2648_v3, %v7937_v34  ;;  %v19230_v62 = vld [vmem:[#allocation161_spill] sm:$0xff]  ;;  %v19236_v37 = vld [vmem:[#allocation44_spill] sm:$0xff] }
 0x3c8   :  { %v2714_v41 = vsel %vm2698_vm7, %v2649_v46, %v7938_v17  ;;  %6867 = vmatmul.msk.bf16.gmra.mxu2 %vm3014_vm12, %v2977_v29  ;;  %v7713_v57 = vunpack.i.h.bf16 %v19228_v23  ;;  %v7712_v8 = vunpack.i.l.bf16 %v19228_v23  ;;  %v2778_v54 = vsel %vm2763_vm9, %v2713_v49, %v8097_v7  ;;  %v19233_v7 = vld [vmem:[#allocation130_spill] sm:$0xff]  ;;  %v8481_v29 = vpop.permute.xlu1 %8480  ;;  %v19235_v46 = vld [vmem:[#allocation221_spill] sm:$0xff] }
 0x3c9   :  { %v2779_v51 = vsel %vm2763_vm9, %v2714_v41, %v8098_v15  ;;  %v13278_v43 = vsel %vm2568_vm6, %v19229_v12, %v7697_v39  ;;  %v13282_v40 = vsel %vm2568_vm6, %v19230_v62, %v7702_v11  ;;  %v2843_v22 = vsel %vm2828_vm11, %v2778_v54, %v8257_v48  ;;  %v19232_v15 = vld [vmem:[#allocation76_spill] sm:$0xff]  ;;  %v19234_v11 = vld [vmem:[#allocation194_spill] sm:$0xff]  ;;  %v19237_v54 = vld [vmem:[#allocation69_spill] sm:$0xff] }
 0x3ca   :  { %v2844_v31 = vsel %vm2828_vm11, %v2779_v51, %v8258_v13  ;;  %v7843_v17 = vunpack.i.h.bf16 %v19231_v35  ;;  %v7842_v34 = vunpack.i.l.bf16 %v19231_v35  ;;  %v2908_v56 = vsel %vm2893_vm10, %v2843_v22, %v8417_v4  ;;  %v13313_v41 = vld [vmem:[%s17842_s3] ss:$0 sm:$0xff] }
 0x3cb   :  { %v2909_v6 = vsel %vm2893_vm10, %v2844_v31, %v8418_v24  ;;  %v13292_v39 = vsel %vm2568_vm6, %v19232_v15, %v7703_v25  ;;  %v7717_v21 = vunpack.i.l.bf16 %v19233_v7  ;;  %v8003_v52 = vunpack.i.h.bf16 %v19234_v11  ;;  %v19238_v12 = vld [vmem:[#allocation132_spill] sm:$0xff] }
 0x3cc   :  { %v8002_v48 = vunpack.i.l.bf16 %v19234_v11  ;;  %v13299_v13 = vsel %vm2568_vm6, %v12893_v1, %v7713_v57  ;;  %v13303_v3 = vsel %vm2568_vm6, %v12900_v16, %v7712_v8  ;;  %v8163_v44 = vunpack.i.h.bf16 %v19235_v46  ;;  %v19240_v11 = vld [vmem:[#allocation165_spill] sm:$0xff] }
 0x3cd   :  { %v8162_v24 = vunpack.i.l.bf16 %v19235_v46  ;;  %v7718_v4 = vunpack.i.h.bf16 %v19233_v7  ;;  %v8323_v25 = vunpack.i.h.bf16 %v19236_v37  ;;  %v8322_v49 = vunpack.i.l.bf16 %v19236_v37  ;;  %v19242_v37 = vld [vmem:[#allocation167_spill] sm:$0xff] }
 0x3ce   :  { %v2965_v1 = vpack.c.bf16 %v2909_v6, %v2908_v56  ;;  %v2674_v23 = vsel %vm2633_vm8, %v2609_v28, %v7842_v34  ;;  %v2675_v16 = vsel %vm2633_vm8, %v2610_v5, %v7843_v17  ;;  %v8483_v57 = vunpack.i.h.bf16 %v8481_v29  ;;  %v19239_v56 = vld [vmem:[#allocation20_spill] sm:$0xff] }
 0x3cf   :  { %v8482_v8 = vunpack.i.l.bf16 %v8481_v29  ;;  %v13319_v51 = vsel %vm2568_vm6, %v19237_v54, %v7717_v21  ;;  %v7782_v62 = vunpack.i.l.bf16 %v19238_v12  ;;  %v2739_v22 = vsel %vm2698_vm7, %v2674_v23, %v8002_v48  ;;  %v19241_v48 = vld [vmem:[#allocation136_spill] sm:$0xff] }
 0x3d0   :  { %v2740_v31 = vsel %vm2698_vm7, %v2675_v16, %v8003_v52  ;;  %6855 = vmatmul.msk.bf16.gmra.mxu0 %vm3014_vm12, %v2965_v1  ;;  %v7783_v35 = vunpack.i.h.bf16 %v19238_v12  ;;  %v7797_v28 = vunpack.i.l.bf16 %v19239_v56  ;;  %v2804_v5 = vsel %vm2763_vm9, %v2739_v22, %v8162_v24  ;;  %v19243_v16 = vld [vmem:[#allocation210_spill] sm:$0xff] }
 0x3d1   :  { %v2805_v17 = vsel %vm2763_vm9, %v2740_v31, %v8163_v44  ;;  %v7798_v6 = vunpack.i.h.bf16 %v19239_v56  ;;  %v2869_v7 = vsel %vm2828_vm11, %v2804_v5, %v8322_v49  ;;  %v13335_v52 = vsel %vm2568_vm6, %v19240_v11, %v7718_v4  ;;  %v19245_v31 = vld [vmem:[#allocation164_spill] sm:$0xff] }
 0x3d2   :  { %v2870_v21 = vsel %vm2828_vm11, %v2805_v17, %v8323_v25  ;;  %v7812_v29 = vunpack.i.l.bf16 %v19241_v48  ;;  %v2934_v46 = vsel %vm2893_vm10, %v2869_v7, %v8482_v8  ;;  %v2650_v44 = vsel %vm2633_vm8, %v13054_v42, %v7782_v62  ;;  %v19244_v42 = vld [vmem:[#allocation229_spill] sm:$0xff]  ;;  %v19248_v7 = vld [vmem:[#allocation150_spill] sm:$0xff] }
 0x3d3   :  { %v3124_v34 = vpop.f32.mrf.mxu0  ;;  %v2935_v24 = vsel %vm2893_vm10, %v2870_v21, %v8483_v57  ;;  %v7943_v1 = vunpack.i.h.bf16 %v19242_v37  ;;  %v7942_v23 = vunpack.i.l.bf16 %v19242_v37  ;;  %v2651_v25 = vsel %vm2633_vm8, %v13041_v30, %v7783_v35  ;;  %v19249_v37 = vld [vmem:[#allocation175_spill] sm:$0xff] }
 0x3d4   :  { %v3125_v15 = vadd.f32 %v13313_v41, %v3124_v34  ;;  %v13348_v4 = vsel %vm2633_vm8, %v13120_v36, %v7797_v28  ;;  %v8103_v54 = vunpack.i.h.bf16 %v19243_v16  ;;  %v8102_v8 = vunpack.i.l.bf16 %v19243_v16  ;;  %v19246_v28 = vld [vmem:[#allocation140_spill] sm:$0xff] }
 0x3d5   :  { %v13354_v57 = vsel %vm2633_vm8, %v13116_v47, %v7798_v6  ;;  %v8263_v12 = vunpack.i.h.bf16 %v19244_v42  ;;  %v8262_v62 = vunpack.i.l.bf16 %v19244_v42  ;;  %v2978_v22 = vpack.c.bf16 %v2935_v24, %v2934_v46  ;;  %v19247_v6 = vld [vmem:[#allocation141_spill] sm:$0xff] }
 0x3d6   :  { %v3284_v49 = vmax.f32 %v3125_v15, 0.0  ;;  %v7813_v30 = vunpack.i.h.bf16 %v19241_v48  ;;  %v13362_v36 = vsel %vm2633_vm8, %v13176_v63, %v7812_v29  ;;  %v8423_v35 = vunpack.i.h.bf16 %v19245_v31 }
 0x3d7   :  { %v8422_v56 = vunpack.i.l.bf16 %v19245_v31  ;;  %v7788_v47 = vunpack.i.h.bf16 %v19246_v28  ;;  %v7787_v5 = vunpack.i.l.bf16 %v19246_v28  ;;  %v2715_v17 = vsel %vm2698_vm7, %v2650_v44, %v7942_v23  ;;  %v19251_v28 = vld [vmem:[#allocation50_spill] sm:$0xff] }
 0x3d8   :  { %3348 = vst.msk [vmem:[#allocation2 + $0x19] sm:$0xff] %vm22_vm0, %v3284_v49  ;;  %v2716_v34 = vsel %vm2698_vm7, %v2651_v25, %v7943_v1  ;;  %6868 = vmatmul.msk.bf16.gmra.mxu2 %vm3014_vm12, %v2978_v22  ;;  %v7793_v15 = vunpack.i.h.bf16 %v19247_v6  ;;  %v7847_v21 = vunpack.i.l.bf16 %v19248_v7  ;;  %v2780_v63 = vsel %vm2763_vm9, %v2715_v17, %v8102_v8  ;;  %v8486_v49 = vpop.permute.xlu2 %8485  ;;  %v19250_v8 = vld [vmem:[#allocation222_spill] sm:$0xff] }
 0x3d9   :  { %v2781_v11 = vsel %vm2763_vm9, %v2716_v34, %v8103_v54  ;;  %v7848_v29 = vunpack.i.h.bf16 %v19248_v7  ;;  %v2845_v24 = vsel %vm2828_vm11, %v2780_v63, %v8262_v62  ;;  %v8008_v1 = vunpack.i.h.bf16 %v19249_v37  ;;  %v19252_v17 = vld [vmem:[#allocation54_spill] sm:$0xff] }
 0x3da   :  { %v2846_v44 = vsel %vm2828_vm11, %v2781_v11, %v8263_v12  ;;  %v8007_v23 = vunpack.i.l.bf16 %v19249_v37  ;;  %v2910_v25 = vsel %vm2893_vm10, %v2845_v24, %v8422_v56  ;;  %v7792_v54 = vunpack.i.l.bf16 %v19247_v6 }
 0x3db   :  { %v3126_v48 = vpop.f32.mrf.mxu0  ;;  %v2911_v16 = vsel %vm2893_vm10, %v2846_v44, %v8423_v35  ;;  %v8168_v42 = vunpack.i.h.bf16 %v19250_v8  ;;  %v8167_v22 = vunpack.i.l.bf16 %v19250_v8  ;;  %v7802_v62 = vunpack.i.l.bf16 %v19251_v28 }
 0x3dc   :  { %v3127_v46 = vadd.f32 %v13313_v41, %v3126_v48  ;;  %v2676_v12 = vsel %vm2633_vm8, %v13243_v33, %v7847_v21  ;;  %v8328_v34 = vunpack.i.h.bf16 %v19252_v17  ;;  %v8327_v7 = vunpack.i.l.bf16 %v19252_v17 }
 0x3dd   :  { %v2677_v56 = vsel %vm2633_vm8, %v13250_v19, %v7848_v29  ;;  %v8488_v35 = vunpack.i.h.bf16 %v8486_v49  ;;  %v8487_v63 = vunpack.i.l.bf16 %v8486_v49  ;;  %v2966_v6 = vpack.c.bf16 %v2911_v16, %v2910_v25  ;;  %v19253_v19 = vld [vmem:[#allocation91_spill] sm:$0xff]  ;;  %v19255_v25 = vld [vmem:[#allocation152_spill] sm:$0xff] }
 0x3de   :  { %v3285_v31 = vmax.f32 %v3127_v46, 0.0  ;;  %v13396_v11 = vsel %vm2633_vm8, %v13168_v38, %v7813_v30  ;;  %v2652_v48 = vsel %vm2633_vm8, %v13071_v18, %v7787_v5  ;;  %v2741_v33 = vsel %vm2698_vm7, %v2676_v12, %v8007_v23  ;;  %v19254_v23 = vld [vmem:[#allocation40_spill] sm:$0xff] }
 0x3df   :  { %v2742_v21 = vsel %vm2698_vm7, %v2677_v56, %v8008_v1  ;;  %v2653_v46 = vsel %vm2633_vm8, %v13081_v20, %v7788_v47  ;;  %v7947_v29 = vunpack.i.l.bf16 %v19253_v19  ;;  %v2806_v24 = vsel %vm2763_vm9, %v2741_v33, %v8167_v22  ;;  %v19256_v16 = vld [vmem:[#allocation212_spill] sm:$0xff]  ;;  %v19257_v22 = vld [vmem:[#allocation233_spill] sm:$0xff] }
 0x3e0   :  { %3349 = vst.msk [vmem:[#allocation2 + $0x21] sm:$0xff] %vm22_vm0, %v3285_v31  ;;  %v2807_v44 = vsel %vm2763_vm9, %v2742_v21, %v8168_v42  ;;  %6856 = vmatmul.msk.bf16.gmra.mxu0 %vm3014_vm12, %v2966_v6  ;;  %v13410_v38 = vsel %vm2633_vm8, %v12933_v32, %v7792_v54  ;;  %v13414_v18 = vsel %vm2633_vm8, %v12941_v2, %v7793_v15  ;;  %v7803_v47 = vunpack.i.h.bf16 %v19251_v28  ;;  %v3415_v32 = vld [vmem:[#allocation2 + $0x18] sm:$0xff] }
 0x3e1   :  { %v2871_v30 = vsel %vm2828_vm11, %v2806_v24, %v8327_v7  ;;  %v2872_v20 = vsel %vm2828_vm11, %v2807_v44, %v8328_v34  ;;  %v13421_v5 = vsel %vm2633_vm8, %v13137_v14, %v7802_v62  ;;  %v7857_v49 = vunpack.i.l.bf16 %v19254_v23 }
 0x3e2   :  { %v2936_v37 = vsel %vm2893_vm10, %v2871_v30, %v8487_v63  ;;  %v2937_v1 = vsel %vm2893_vm10, %v2872_v20, %v8488_v35  ;;  %v7853_v2 = vunpack.i.h.bf16 %v19255_v25  ;;  %v7948_v15 = vunpack.i.h.bf16 %v19253_v19 }
 0x3e3   :  { %v8107_v54 = vunpack.i.l.bf16 %v19256_v16  ;;  %v7852_v8 = vunpack.i.l.bf16 %v19255_v25  ;;  %v2717_v42 = vsel %vm2698_vm7, %v2652_v48, %v7947_v29  ;;  %v8108_v14 = vunpack.i.h.bf16 %v19256_v16  ;;  %v19258_v48 = vld [vmem:[#allocation173_spill] sm:$0xff] }
 0x3e4   :  { %v8268_v31 = vunpack.i.h.bf16 %v19257_v22  ;;  %v8267_v28 = vunpack.i.l.bf16 %v19257_v22  ;;  %v2979_v62 = vpack.c.bf16 %v2937_v1, %v2936_v37  ;;  %v3621_v34 = vrot.slane %v3415_v32, 1 }
 0x3e5   :  { %v3781_v7 = vrot.slane %v3415_v32, 2  ;;  %v2718_v33 = vsel %vm2698_vm7, %v2653_v46, %v7948_v15  ;;  %v2782_v21 = vsel %vm2763_vm9, %v2717_v42, %v8107_v54  ;;  %v8428_v19 = vunpack.i.h.bf16 %v19258_v48  ;;  %v19261_v54 = vld [vmem:[#allocation142_spill] sm:$0xff] }
 0x3e6   :  { %v8427_v29 = vunpack.i.l.bf16 %v19258_v48  ;;  %v2783_v37 = vsel %vm2763_vm9, %v2718_v33, %v8108_v14  ;;  %v13450_v32 = vsel %vm2633_vm8, %v13141_v10, %v7803_v47  ;;  %v7858_v25 = vunpack.i.h.bf16 %v19254_v23  ;;  %v19262_v23 = vld [vmem:[#allocation195_spill] sm:$0xff]  ;;  %v3414_v48 = vld [vmem:[#allocation2 + $0x10] sm:$0x3] }
 0x3e7   :  { %v3416_v12 = vld [vmem:[#allocation2 + $0x20] sm:$0xff]  ;;  %v3417_v17 = vld [vmem:[#allocation2 + $0x28] sm:$0x3]  ;;  %v2847_v15 = vsel %vm2828_vm11, %v2782_v21, %v8267_v28  ;;  %v2848_v16 = vsel %vm2828_vm11, %v2783_v37, %v8268_v31  ;;  %v7808_v42 = vunpack.i.h.bf16 %v19261_v54  ;;  %v7807_v22 = vunpack.i.l.bf16 %v19261_v54 }
 0x3e8   :  { %v3622_v56 = vrot.slane %v3416_v12, 1  ;;  %v3624_v35 = vrot.slane %v3417_v17, 1  ;;  %v3782_v63 = vrot.slane %v3416_v12, 2  ;;  %v3784_v6 = vrot.slane %v3417_v17, 2  ;;  %6869 = vmatmul.msk.bf16.gmra.mxu2 %vm3014_vm12, %v2979_v62  ;;  %v8491_v62 = vpop.permute.xlu0 %8490  ;;  %v3413_v21 = vld [vmem:[#allocation2 + $0x8] sm:$0xff] }
 0x3e9   :  { %v2912_v14 = vsel %vm2893_vm10, %v2847_v15, %v8427_v29  ;;  %v2913_v12 = vsel %vm2893_vm10, %v2848_v16, %v8428_v19  ;;  %v13463_v10 = vsel %vm2633_vm8, %v13278_v43, %v7857_v49  ;;  %v2678_v47 = vsel %vm2633_vm8, %v13127_v45, %v7852_v8  ;;  %v3412_v8 = vld [vmem:[#allocation2] sm:$0xff] }
 0x3ea   :  { %v3623_v24 = vsel %vm529_vm2, %v3621_v34, %v3622_v56  ;;  %v3625_v44 = vsel %vm529_vm2, %v3622_v56, %v3624_v35  ;;  %v3783_v30 = vsel %vm690_vm3, %v3781_v7, %v3782_v63  ;;  %v3785_v20 = vsel %vm690_vm3, %v3782_v63, %v3784_v6  ;;  %v19263_v34 = vld [vmem:[#allocation214_spill] sm:$0xff] }
 0x3eb   :  { %v13444_v1 = vpack.i.bf16 %v3625_v44, %v3623_v24  ;;  %v13446_v46 = vpack.i.bf16 %v3785_v20, %v3783_v30  ;;  %v8013_v31 = vunpack.i.h.bf16 %v19262_v23  ;;  %v8012_v28 = vunpack.i.l.bf16 %v19262_v23  ;;  %v19264_v35 = vld [vmem:[#allocation46_spill] sm:$0xff] }
 0x3ec   :  { %v2679_v17 = vsel %vm2633_vm8, %v13131_v53, %v7853_v2  ;;  %v8173_v7 = vunpack.i.h.bf16 %v19263_v34  ;;  %v8172_v56 = vunpack.i.l.bf16 %v19263_v34  ;;  %v8333_v63 = vunpack.i.h.bf16 %v19264_v35 }
 0x3ed   :  { %19259 = vst [vmem:[#allocation92_spill] sm:$0xff] %v13444_v1  ;;  %8545 = vrot.lane.b32.xlu2 %v13444_v1, %s10021_s18  ;;  %v3129_v6 = vpop.f32.mrf.mxu0  ;;  %v8332_v43 = vunpack.i.l.bf16 %v19264_v35  ;;  %v8493_v49 = vunpack.i.h.bf16 %v8491_v62  ;;  %v2967_v45 = vpack.c.bf16 %v2913_v12, %v2912_v14  ;;  %v8492_v19 = vunpack.i.l.bf16 %v8491_v62  ;;  %v19265_v62 = vld [vmem:[#allocation178_spill] sm:$0xff] }
 0x3ee   :  { %19260 = vst [vmem:[#allocation183_spill] sm:$0xff] %v13446_v46  ;;  %v3130_v33 = vadd.f32 %v13313_v41, %v3129_v6  ;;  %v3616_v29 = vrot.slane %v3412_v8, 1  ;;  %v3617_v24 = vrot.slane %v3413_v21, 1  ;;  %v3619_v53 = vrot.slane %v3414_v48, 1  ;;  %v19271_v48 = vld [vmem:[#allocation21_spill] sm:$0xff] }
 0x3ef   :  { %v13478_v2 = vsel %vm2633_vm8, %v13266_v9, %v7858_v25  ;;  %v2743_v44 = vsel %vm2698_vm7, %v2678_v47, %v8012_v28  ;;  %v2744_v30 = vsel %vm2698_vm7, %v2679_v17, %v8013_v31  ;;  %v13489_v14 = vsel %vm2633_vm8, %v19265_v62, %v7807_v22  ;;  %v19266_v47 = vld [vmem:[#allocation143_spill] sm:$0xff]  ;;  %v19267_v22 = vld [vmem:[#allocation144_spill] sm:$0xff] }
 0x3f0   :  { %v3286_v20 = vmax.f32 %v3130_v33, 0.0  ;;  %6857 = vmatmul.msk.bf16.gmra.mxu0 %vm3014_vm12, %v2967_v45  ;;  %v2808_v37 = vsel %vm2763_vm9, %v2743_v44, %v8172_v56  ;;  %v2809_v15 = vsel %vm2763_vm9, %v2744_v30, %v8173_v7  ;;  %v3618_v16 = vsel %vm529_vm2, %v3616_v29, %v3617_v24  ;;  %v19268_v56 = vld [vmem:[#allocation172_spill] sm:$0xff] }
 0x3f1   :  { %v3620_v54 = vsel %vm529_vm2, %v3617_v24, %v3619_v53  ;;  %v2873_v9 = vsel %vm2828_vm11, %v2808_v37, %v8332_v43  ;;  %v2874_v25 = vsel %vm2828_vm11, %v2809_v15, %v8333_v63  ;;  %v7818_v23 = vunpack.i.h.bf16 %v19266_v47  ;;  %v19269_v43 = vld [vmem:[#allocation75_spill] sm:$0xff]  ;;  %v19270_v45 = vld [vmem:[#allocation204_spill] sm:$0xff] }
 0x3f2   :  { %3350 = vst.msk [vmem:[#allocation2 + $0x31] sm:$0xff] %vm22_vm0, %v3286_v20  ;;  %v8539_v12 = vpack.i.bf16 %v3620_v54, %v3618_v16  ;;  %v7817_v31 = vunpack.i.l.bf16 %v19266_v47  ;;  %v2938_v28 = vsel %vm2893_vm10, %v2873_v9, %v8492_v19  ;;  %v2939_v17 = vsel %vm2893_vm10, %v2874_v25, %v8493_v49  ;;  %v19272_v44 = vld [vmem:[#allocation168_spill] sm:$0xff] }
 0x3f3   :  { %v13500_v34 = vsel %vm2633_vm8, %v12987_v50, %v7808_v42  ;;  %v7872_v7 = vunpack.i.l.bf16 %v19267_v22  ;;  %v7953_v35 = vunpack.i.h.bf16 %v19268_v56  ;;  %v7952_v6 = vunpack.i.l.bf16 %v19268_v56 }
 0x3f4   :  { %8540 = vrot.lane.b32.xlu1 %v8539_v12, %s10021_s18  ;;  %v7873_v63 = vunpack.i.h.bf16 %v19267_v22  ;;  %v7862_v33 = vunpack.i.l.bf16 %v19269_v43  ;;  %v8113_v8 = vunpack.i.h.bf16 %v19270_v45  ;;  %v8112_v49 = vunpack.i.l.bf16 %v19270_v45  ;;  %v19278_v45 = vld [vmem:[#allocation82_spill] sm:$0xff] }
 0x3f5   :  { %v3131_v21 = vpop.f32.mrf.mxu0  ;;  %v8273_v50 = vunpack.i.h.bf16 %v19271_v48  ;;  %v8272_v42 = vunpack.i.l.bf16 %v19271_v48  ;;  %v2980_v29 = vpack.c.bf16 %v2939_v17, %v2938_v28  ;;  %v13515_v24 = vsel %vm2633_vm8, %v13186_v0, %v7817_v31  ;;  %v19279_v48 = vld [vmem:[#allocation176_spill] sm:$0xff] }
 0x3f6   :  { %v3132_v19 = vadd.f32 %v13313_v41, %v3131_v21  ;;  %v13519_v53 = vsel %vm2633_vm8, %v13200_v60, %v7818_v23  ;;  %v8433_v30 = vunpack.i.h.bf16 %v19272_v44  ;;  %v8432_v20 = vunpack.i.l.bf16 %v19272_v44 }
 0x3f7   :  { %v13525_v37 = vsel %vm2633_vm8, %v13303_v3, %v7872_v7  ;;  %v2719_v15 = vsel %vm2698_vm7, %v13410_v38, %v7952_v6  ;;  %v2720_v16 = vsel %vm2698_vm7, %v13414_v18, %v7953_v35  ;;  %v13534_v60 = vsel %vm2633_vm8, %v13299_v13, %v7873_v63  ;;  %v19273_v38 = vld [vmem:[#allocation73_spill] sm:$0xff]  ;;  %v19274_v13 = vld [vmem:[#allocation196_spill] sm:$0xff]  ;;  %v19276_v7 = vld [vmem:[#allocation223_spill] sm:$0xff]  ;;  %v8496_v6 = vpop.permute.xlu1 %8495 }
 0x3f8   :  { %v3287_v0 = vmax.f32 %v3132_v19, 0.0  ;;  %6870 = vmatmul.msk.bf16.gmra.mxu2 %vm3014_vm12, %v2980_v29  ;;  %v7863_v54 = vunpack.i.h.bf16 %v19269_v43  ;;  %v2784_v62 = vsel %vm2763_vm9, %v2719_v15, %v8112_v49  ;;  %v2785_v3 = vsel %vm2763_vm9, %v2720_v16, %v8113_v8  ;;  %v19277_v43 = vld [vmem:[#allocation70_spill] sm:$0xff] }
 0x3f9   :  { %v13541_v9 = vsel %vm2633_vm8, %v13282_v40, %v7862_v33  ;;  %v7868_v25 = vunpack.i.h.bf16 %v19273_v38  ;;  %v2849_v18 = vsel %vm2828_vm11, %v2784_v62, %v8272_v42  ;;  %v2850_v12 = vsel %vm2828_vm11, %v2785_v3, %v8273_v50  ;;  %v19275_v40 = vld [vmem:[#allocation83_spill] sm:$0xff]  ;;  %v3418_v44 = vld [vmem:[#allocation2 + $0x30] sm:$0xff] }
 0x3fa   :  { %3351 = vst.msk [vmem:[#allocation2 + $0x39] sm:$0xff] %vm22_vm0, %v3287_v0  ;;  %v8018_v47 = vunpack.i.h.bf16 %v19274_v13  ;;  %v8017_v23 = vunpack.i.l.bf16 %v19274_v13  ;;  %v2914_v31 = vsel %vm2893_vm10, %v2849_v18, %v8432_v20  ;;  %v2915_v28 = vsel %vm2893_vm10, %v2850_v12, %v8433_v30  ;;  %v19280_v0 = vld [vmem:[#allocation213_spill] sm:$0xff] }
 0x3fb   :  { %v7867_v17 = vunpack.i.l.bf16 %v19273_v38  ;;  %v7878_v22 = vunpack.i.h.bf16 %v19275_v40  ;;  %v8178_v56 = vunpack.i.h.bf16 %v19276_v7  ;;  %v8177_v35 = vunpack.i.l.bf16 %v19276_v7 }
 0x3fc   :  { %v7877_v63 = vunpack.i.l.bf16 %v19275_v40  ;;  %v7882_v33 = vunpack.i.l.bf16 %v19277_v43  ;;  %v8338_v8 = vunpack.i.h.bf16 %v19278_v45  ;;  %v8337_v49 = vunpack.i.l.bf16 %v19278_v45 }
 0x3fd   :  { %v3134_v21 = vpop.f32.mrf.mxu0  ;;  %v7958_v50 = vunpack.i.h.bf16 %v19279_v48  ;;  %v7957_v42 = vunpack.i.l.bf16 %v19279_v48  ;;  %v2968_v29 = vpack.c.bf16 %v2915_v28, %v2914_v31  ;;  %v2745_v30 = vsel %vm2698_vm7, %v13463_v10, %v8017_v23 }
 0x3fe   :  { %v3135_v19 = vadd.f32 %v13313_v41, %v3134_v21  ;;  %v2746_v20 = vsel %vm2698_vm7, %v13478_v2, %v8018_v47  ;;  %v8498_v15 = vunpack.i.h.bf16 %v8496_v6  ;;  %v8497_v16 = vunpack.i.l.bf16 %v8496_v6 }
 0x3ff   :  { %v8118_v62 = vunpack.i.h.bf16 %v19280_v0  ;;  %v2810_v3 = vsel %vm2763_vm9, %v2745_v30, %v8177_v35  ;;  %v2811_v18 = vsel %vm2763_vm9, %v2746_v20, %v8178_v56  ;;  %v3626_v28 = vrot.slane %v3418_v44, 1  ;;  %v19281_v56 = vld [vmem:[#allocation231_spill] sm:$0xff] }
 0x400   :  { %v3288_v12 = vmax.f32 %v3135_v19, 0.0  ;;  %6858 = vmatmul.msk.bf16.gmra.mxu0 %vm3014_vm12, %v2968_v29  ;;  %v2875_v7 = vsel %vm2828_vm11, %v2810_v3, %v8337_v49  ;;  %v2876_v10 = vsel %vm2828_vm11, %v2811_v18, %v8338_v8  ;;  %v3786_v23 = vrot.slane %v3418_v44, 2 }
 0x401   :  { %v3419_v13 = vld [vmem:[#allocation2 + $0x38] sm:$0xff]  ;;  %v3420_v31 = vld [vmem:[#allocation2 + $0x40] sm:$0x3]  ;;  %v8117_v35 = vunpack.i.l.bf16 %v19280_v0  ;;  %v8278_v21 = vunpack.i.h.bf16 %v19281_v56  ;;  %v2940_v48 = vsel %vm2893_vm10, %v2875_v7, %v8497_v16  ;;  %v2941_v19 = vsel %vm2893_vm10, %v2876_v10, %v8498_v15 }
 0x402   :  { %3352 = vst.msk [vmem:[#allocation2 + $0x49] sm:$0xff] %vm22_vm0, %v3288_v12  ;;  %v3627_v2 = vrot.slane %v3419_v13, 1  ;;  %v3629_v47 = vrot.slane %v3420_v31, 1  ;;  %v3787_v6 = vrot.slane %v3419_v13, 2  ;;  %v3789_v45 = vrot.slane %v3420_v31, 2  ;;  %v19284_v13 = vld [vmem:[#allocation90_spill] sm:$0xff] }
 0x403   :  { %v8277_v30 = vunpack.i.l.bf16 %v19281_v56  ;;  %v2981_v16 = vpack.c.bf16 %v2941_v19, %v2940_v48  ;;  %v2683_v15 = vsel %vm2633_vm8, %v13292_v39, %v7863_v54  ;;  %v13591_v12 = vsel %vm2633_vm8, %v13180_v58, %v7867_v17 }
 0x404   :  { %v3628_v29 = vsel %vm529_vm2, %v3626_v28, %v3627_v2  ;;  %v3630_v49 = vsel %vm529_vm2, %v3627_v2, %v3629_v47  ;;  %v3788_v8 = vsel %vm690_vm3, %v3786_v23, %v3787_v6  ;;  %v3790_v44 = vsel %vm690_vm3, %v3787_v6, %v3789_v45  ;;  %v8501_v2 = vpop.permute.xlu2 %8500  ;;  %v19288_v6 = vld [vmem:[#allocation159_spill] sm:$0xff] }
 0x405   :  { %v3136_v20 = vpop.f32.mrf.mxu0  ;;  %v13582_v3 = vpack.i.bf16 %v3630_v49, %v3628_v29  ;;  %v13584_v0 = vpack.i.bf16 %v3790_v44, %v3788_v8  ;;  %v8438_v31 = vunpack.i.h.bf16 %v19284_v13  ;;  %v8437_v28 = vunpack.i.l.bf16 %v19284_v13  ;;  %v19291_v13 = vld [vmem:[#allocation215_spill] sm:$0xff] }
 0x406   :  { %v3137_v18 = vadd.f32 %v13313_v41, %v3136_v20  ;;  %v7883_v7 = vunpack.i.h.bf16 %v19277_v43  ;;  %v2721_v10 = vsel %vm2698_vm7, %v13348_v4, %v7957_v42  ;;  %v2722_v23 = vsel %vm2698_vm7, %v13354_v57, %v7958_v50 }
 0x407   :  { %19282 = vst [vmem:[#allocation182_spill] sm:$0xff] %v13582_v3  ;;  %8550 = vrot.lane.b32.xlu0 %v13582_v3, %s10021_s18  ;;  %v13607_v58 = vsel %vm2633_vm8, %v13190_v59, %v7868_v25  ;;  %v13611_v54 = vsel %vm2633_vm8, %v13319_v51, %v7877_v63  ;;  %v2786_v17 = vsel %vm2763_vm9, %v2721_v10, %v8117_v35  ;;  %v19285_v25 = vld [vmem:[#allocation184_spill] sm:$0xff]  ;;  %v7978_v45 = vunpack.i.h.bf16 %v19288_v6  ;;  %v19289_v35 = vld [vmem:[#allocation61_spill] sm:$0xff] }
 0x408   :  { %19283 = vst [vmem:[#allocation187_spill] sm:$0xff] %v13584_v0  ;;  %v3289_v39 = vmax.f32 %v3137_v18, 0.0  ;;  %6871 = vmatmul.msk.bf16.gmra.mxu2 %vm3014_vm12, %v2981_v16  ;;  %v2787_v4 = vsel %vm2763_vm9, %v2722_v23, %v8118_v62  ;;  %v13619_v57 = vsel %vm2633_vm8, %v13335_v52, %v7878_v22  ;;  %v13623_v38 = vsel %vm2633_vm8, %v13218_v61, %v7882_v33  ;;  %v19286_v61 = vld [vmem:[#allocation94_spill] sm:$0xff]  ;;  %v19287_v33 = vld [vmem:[#allocation224_spill] sm:$0xff] }
 0x409   :  { %v2851_v59 = vsel %vm2828_vm11, %v2786_v17, %v8277_v30  ;;  %v2852_v51 = vsel %vm2828_vm11, %v2787_v4, %v8278_v21  ;;  %v8023_v63 = vunpack.i.h.bf16 %v19285_v25  ;;  %v8022_v43 = vunpack.i.l.bf16 %v19285_v25  ;;  %v3421_v44 = vld [vmem:[#allocation2 + $0x48] sm:$0xff] }
 0x40a   :  { %3353 = vst.msk [vmem:[#allocation2 + $0x51] sm:$0xff] %vm22_vm0, %v3289_v39  ;;  %v2916_v40 = vsel %vm2893_vm10, %v2851_v59, %v8437_v28  ;;  %v2917_v50 = vsel %vm2893_vm10, %v2852_v51, %v8438_v31  ;;  %v13634_v52 = vsel %vm2633_vm8, %v13226_v26, %v7883_v7  ;;  %v7963_v22 = vunpack.i.h.bf16 %v19286_v61  ;;  %v19290_v26 = vld [vmem:[#allocation181_spill] sm:$0xff] }
 0x40b   :  { %v8183_v42 = vunpack.i.h.bf16 %v19287_v33  ;;  %v8182_v62 = vunpack.i.l.bf16 %v19287_v33  ;;  %v7962_v47 = vunpack.i.l.bf16 %v19286_v61  ;;  %v8343_v56 = vunpack.i.h.bf16 %v19289_v35 }
 0x40c   :  { %v8342_v21 = vunpack.i.l.bf16 %v19289_v35  ;;  %v7977_v19 = vunpack.i.l.bf16 %v19288_v6  ;;  %v7967_v29 = vunpack.i.l.bf16 %v19290_v26  ;;  %v2969_v8 = vpack.c.bf16 %v2917_v50, %v2916_v40  ;;  %v19292_v40 = vld [vmem:[#allocation81_spill] sm:$0xff] }
 0x40d   :  { %v3139_v48 = vpop.f32.mrf.mxu0  ;;  %v2747_v30 = vsel %vm2698_vm7, %v13541_v9, %v8022_v43  ;;  %v2748_v20 = vsel %vm2698_vm7, %v2683_v15, %v8023_v63  ;;  %v8503_v18 = vunpack.i.h.bf16 %v8501_v2  ;;  %v8502_v16 = vunpack.i.l.bf16 %v8501_v2 }
 0x40e   :  { %v3140_v49 = vadd.f32 %v13313_v41, %v3139_v48  ;;  %v8123_v31 = vunpack.i.h.bf16 %v19291_v13  ;;  %v2812_v28 = vsel %vm2763_vm9, %v2747_v30, %v8182_v62  ;;  %v2813_v7 = vsel %vm2763_vm9, %v2748_v20, %v8183_v42 }
 0x40f   :  { %v3631_v17 = vrot.slane %v3421_v44, 1  ;;  %v2877_v4 = vsel %vm2828_vm11, %v2812_v28, %v8342_v21  ;;  %v2878_v9 = vsel %vm2828_vm11, %v2813_v7, %v8343_v56  ;;  %v3791_v59 = vrot.slane %v3421_v44, 2  ;;  %v19295_v28 = vld [vmem:[#allocation185_spill] sm:$0xff] }
 0x410   :  { %v3290_v10 = vmax.f32 %v3140_v49, 0.0  ;;  %6859 = vmatmul.msk.bf16.gmra.mxu0 %vm3014_vm12, %v2969_v8  ;;  %v8122_v43 = vunpack.i.l.bf16 %v19291_v13  ;;  %v8283_v50 = vunpack.i.h.bf16 %v19292_v40  ;;  %v2942_v61 = vsel %vm2893_vm10, %v2877_v4, %v8502_v16 }
 0x411   :  { %v3422_v23 = vld [vmem:[#allocation2 + $0x50] sm:$0xff]  ;;  %v3423_v39 = vld [vmem:[#allocation2 + $0x58] sm:$0x3]  ;;  %v2943_v33 = vsel %vm2893_vm10, %v2878_v9, %v8503_v18  ;;  %v8282_v35 = vunpack.i.l.bf16 %v19292_v40  ;;  %v2723_v44 = vsel %vm2698_vm7, %v13421_v5, %v7962_v47  ;;  %v7968_v30 = vunpack.i.h.bf16 %v19290_v26 }
 0x412   :  { %3354 = vst.msk [vmem:[#allocation2 + $0x61] sm:$0xff] %vm22_vm0, %v3290_v10  ;;  %v3632_v15 = vrot.slane %v3422_v23, 1  ;;  %v3634_v51 = vrot.slane %v3423_v39, 1  ;;  %v3792_v25 = vrot.slane %v3422_v23, 2  ;;  %v3794_v63 = vrot.slane %v3423_v39, 2 }
 0x413   :  { %v2982_v8 = vpack.c.bf16 %v2943_v33, %v2942_v61  ;;  %v8443_v20 = vunpack.i.h.bf16 %v12992_v55  ;;  %v8442_v18 = vunpack.i.l.bf16 %v12992_v55  ;;  %v2724_v16 = vsel %vm2698_vm7, %v13450_v32, %v7963_v22  ;;  %v19296_v55 = vld [vmem:[#allocation197_spill] sm:$0xff] }
 0x414   :  { %v3633_v42 = vsel %vm529_vm2, %v3631_v17, %v3632_v15  ;;  %v3635_v62 = vsel %vm529_vm2, %v3632_v15, %v3634_v51  ;;  %v3793_v2 = vsel %vm690_vm3, %v3791_v59, %v3792_v25  ;;  %v3795_v6 = vsel %vm690_vm3, %v3792_v25, %v3794_v63  ;;  %v19297_v17 = vld [vmem:[#allocation217_spill] sm:$0xff]  ;;  %v8506_v59 = vpop.permute.xlu0 %8505  ;;  %v19299_v63 = vld [vmem:[#allocation58_spill] sm:$0xff] }
 0x415   :  { %v3141_v56 = vpop.f32.mrf.mxu0  ;;  %v13665_v21 = vpack.i.bf16 %v3635_v62, %v3633_v42  ;;  %v13667_v48 = vpack.i.bf16 %v3795_v6, %v3793_v2  ;;  %v13681_v13 = vsel %vm2698_vm7, %v13515_v24, %v7977_v19  ;;  %v7972_v7 = vunpack.i.l.bf16 %v19295_v28  ;;  %v19300_v2 = vld [vmem:[#allocation199_spill] sm:$0xff] }
 0x416   :  { %v3142_v49 = vadd.f32 %v13313_v41, %v3141_v56  ;;  %v13687_v5 = vsel %vm2698_vm7, %v13519_v53, %v7978_v45  ;;  %v8027_v47 = vunpack.i.l.bf16 %v19296_v55  ;;  %v2788_v26 = vsel %vm2763_vm9, %v2723_v44, %v8122_v43 }
 0x417   :  { %19293 = vst [vmem:[#allocation186_spill] sm:$0xff] %v13665_v21  ;;  %8555 = vrot.lane.b32.xlu1 %v13665_v21, %s10021_s18  ;;  %v2789_v23 = vsel %vm2763_vm9, %v2724_v16, %v8123_v31  ;;  %v13694_v32 = vsel %vm2698_vm7, %v13489_v14, %v7967_v29  ;;  %v8028_v24 = vunpack.i.h.bf16 %v19296_v55  ;;  %v2853_v22 = vsel %vm2828_vm11, %v2788_v26, %v8282_v35  ;;  %v19301_v35 = vld [vmem:[#allocation205_spill] sm:$0xff] }
 0x418   :  { %19294 = vst [vmem:[#allocation96_spill] sm:$0xff] %v13667_v48  ;;  %v3291_v10 = vmax.f32 %v3142_v49, 0.0  ;;  %6872 = vmatmul.msk.bf16.gmra.mxu2 %vm3014_vm12, %v2982_v8  ;;  %v2854_v19 = vsel %vm2828_vm11, %v2789_v23, %v8283_v50  ;;  %v13702_v53 = vsel %vm2698_vm7, %v13500_v34, %v7968_v30  ;;  %v7973_v45 = vunpack.i.h.bf16 %v19295_v28  ;;  %v19298_v34 = vld [vmem:[#allocation190_spill] sm:$0xff] }
 0x419   :  { %v2918_v31 = vsel %vm2893_vm10, %v2853_v22, %v8442_v18  ;;  %v2919_v39 = vsel %vm2893_vm10, %v2854_v19, %v8443_v20  ;;  %v13709_v29 = vsel %vm2698_vm7, %v13362_v36, %v7972_v7  ;;  %v8188_v4 = vunpack.i.h.bf16 %v19297_v17  ;;  %v3424_v62 = vld [vmem:[#allocation2 + $0x60] sm:$0xff] }
 0x41a   :  { %3355 = vst.msk [vmem:[#allocation2 + $0x69] sm:$0xff] %vm22_vm0, %v3291_v10  ;;  %v8187_v9 = vunpack.i.l.bf16 %v19297_v17  ;;  %v8037_v51 = vunpack.i.l.bf16 %v19298_v34  ;;  %v2749_v25 = vsel %vm2698_vm7, %v13591_v12, %v8027_v47  ;;  %v8348_v43 = vunpack.i.h.bf16 %v19299_v63 }
 0x41b   :  { %v3204_v14 = vpop.f32.mrf.mxu2  ;;  %v8347_v40 = vunpack.i.l.bf16 %v19299_v63  ;;  %v2750_v36 = vsel %vm2698_vm7, %v13607_v58, %v8028_v24  ;;  %v2970_v42 = vpack.c.bf16 %v2919_v39, %v2918_v31  ;;  %v8032_v6 = vunpack.i.l.bf16 %v19300_v2  ;;  %v19302_v24 = vld [vmem:[#allocation13_spill] sm:$0xff] }
 0x41c   :  { %v3205_v15 = vadd.f32 %v13313_v41, %v3204_v14  ;;  %v8128_v56 = vunpack.i.h.bf16 %v19301_v35  ;;  %v8508_v49 = vunpack.i.h.bf16 %v8506_v59  ;;  %v8507_v8 = vunpack.i.l.bf16 %v8506_v59 }
 0x41d   :  { %v3144_v50 = vpop.f32.mrf.mxu0  ;;  %v8127_v12 = vunpack.i.l.bf16 %v19301_v35  ;;  %v2814_v44 = vsel %vm2763_vm9, %v2749_v25, %v8187_v9  ;;  %v2815_v30 = vsel %vm2763_vm9, %v2750_v36, %v8188_v4  ;;  %v3636_v16 = vrot.slane %v3424_v62, 1 }
 0x41e   :  { %v3316_v61 = vmax.f32 %v3205_v15, 0.0  ;;  %v3145_v33 = vadd.f32 %v13313_v41, %v3144_v50  ;;  %v2879_v28 = vsel %vm2828_vm11, %v2814_v44, %v8347_v40  ;;  %v2880_v7 = vsel %vm2828_vm11, %v2815_v30, %v8348_v43  ;;  %v8511_v44 = vpop.permute.xlu1 %8510 }
 0x41f   :  { %v3796_v10 = vrot.slane %v3424_v62, 2  ;;  %v8288_v22 = vunpack.i.h.bf16 %v19302_v24  ;;  %v8287_v19 = vunpack.i.l.bf16 %v19302_v24  ;;  %v2944_v39 = vsel %vm2893_vm10, %v2879_v28, %v8507_v8 }
 0x420   :  { %3380 = vst.msk [vmem:[#allocation2 + $0x1c9] sm:$0xff] %vm22_vm0, %v3316_v61  ;;  %v3292_v58 = vmax.f32 %v3145_v33, 0.0  ;;  %6860 = vmatmul.msk.bf16.gmra.mxu0 %vm3014_vm12, %v2970_v42  ;;  %v2945_v14 = vsel %vm2893_vm10, %v2880_v7, %v8508_v49  ;;  %v13748_v61 = vsel %vm2698_vm7, %v13396_v11, %v7973_v45  ;;  %v19305_v33 = vld [vmem:[#allocation174_spill] sm:$0xff]  ;;  %v8038_v35 = vunpack.i.h.bf16 %v19298_v34 }
 0x421   :  { %v3425_v20 = vld [vmem:[#allocation2 + $0x68] sm:$0xff]  ;;  %v3426_v18 = vld [vmem:[#allocation2 + $0x70] sm:$0x3]  ;;  %v2983_v50 = vpack.c.bf16 %v2945_v14, %v2944_v39  ;;  %v8448_v42 = vunpack.i.h.bf16 %v19305_v33  ;;  %v8447_v62 = vunpack.i.l.bf16 %v19305_v33  ;;  %v13757_v49 = vsel %vm2698_vm7, %v13611_v54, %v8037_v51 }
 0x422   :  { %3356 = vst.msk [vmem:[#allocation2 + $0x79] sm:$0xff] %vm22_vm0, %v3292_v58  ;;  %v3637_v55 = vrot.slane %v3425_v20, 1  ;;  %v3639_v47 = vrot.slane %v3426_v18, 1  ;;  %v3797_v26 = vrot.slane %v3425_v20, 2  ;;  %v3799_v23 = vrot.slane %v3426_v18, 2  ;;  %v19306_v58 = vld [vmem:[#allocation225_spill] sm:$0xff] }
 0x423   :  { %v3206_v31 = vpop.f32.mrf.mxu2  ;;  %v8033_v8 = vunpack.i.h.bf16 %v19300_v2  ;;  %v2790_v45 = vsel %vm2763_vm9, %v13694_v32, %v8127_v12  ;;  %v2791_v30 = vsel %vm2763_vm9, %v13702_v53, %v8128_v56  ;;  %v8193_v20 = vunpack.i.h.bf16 %v19306_v58 }
 0x424   :  { %v3207_v17 = vadd.f32 %v13313_v41, %v3206_v31  ;;  %v3638_v4 = vsel %vm529_vm2, %v3636_v16, %v3637_v55  ;;  %v3640_v9 = vsel %vm529_vm2, %v3637_v55, %v3639_v47  ;;  %v3798_v59 = vsel %vm690_vm3, %v3796_v10, %v3797_v26  ;;  %v19307_v16 = vld [vmem:[#allocation53_spill] sm:$0xff] }
 0x425   :  { %v3146_v15 = vpop.f32.mrf.mxu0  ;;  %v13740_v25 = vpack.i.bf16 %v3640_v9, %v3638_v4  ;;  %v3800_v63 = vsel %vm690_vm3, %v3797_v26, %v3799_v23  ;;  %v8192_v18 = vunpack.i.l.bf16 %v19306_v58  ;;  %v2751_v54 = vsel %vm2698_vm7, %v13525_v37, %v8032_v6  ;;  %v19308_v37 = vld [vmem:[#allocation216_spill] sm:$0xff] }
 0x426   :  { %v3317_v43 = vmax.f32 %v3207_v17, 0.0  ;;  %v3147_v40 = vadd.f32 %v13313_v41, %v3146_v15  ;;  %v13744_v36 = vpack.i.bf16 %v3800_v63, %v3798_v59  ;;  %v2855_v51 = vsel %vm2828_vm11, %v2790_v45, %v8287_v19 }
 0x427   :  { %19303 = vst [vmem:[#allocation97_spill] sm:$0xff] %v13740_v25  ;;  %8560 = vrot.lane.b32.xlu2 %v13740_v25, %s10021_s18  ;;  %v2856_v2 = vsel %vm2828_vm11, %v2791_v30, %v8288_v22  ;;  %v8352_v28 = vunpack.i.l.bf16 %v19307_v16  ;;  %v8353_v32 = vunpack.i.h.bf16 %v19307_v16  ;;  %v2920_v12 = vsel %vm2893_vm10, %v2855_v51, %v8447_v62  ;;  %v3469_v26 = vld [vmem:[#allocation2 + $0x1c8] sm:$0xff]  ;;  %v19309_v22 = vld [vmem:[#allocation126_spill] sm:$0xff] }
 0x428   :  { %19304 = vst [vmem:[#allocation98_spill] sm:$0xff] %v13744_v36  ;;  %v3293_v11 = vmax.f32 %v3147_v40, 0.0  ;;  %6873 = vmatmul.msk.bf16.gmra.mxu2 %vm3014_vm12, %v2983_v50  ;;  %v2921_v53 = vsel %vm2893_vm10, %v2856_v2, %v8448_v42  ;;  %v8512_v56 = vunpack.i.l.bf16 %v8511_v44  ;;  %v2752_v10 = vsel %vm2698_vm7, %v13534_v60, %v8033_v8 }
 0x429   :  { %3381 = vst.msk [vmem:[#allocation2 + $0x1d1] sm:$0xff] %vm22_vm0, %v3317_v43  ;;  %v8133_v6 = vunpack.i.h.bf16 %v19308_v37  ;;  %v8132_v55 = vunpack.i.l.bf16 %v19308_v37  ;;  %v2816_v23 = vsel %vm2763_vm9, %v2751_v54, %v8192_v18  ;;  %v2817_v24 = vsel %vm2763_vm9, %v2752_v10, %v8193_v20  ;;  %v3427_v60 = vld [vmem:[#allocation2 + $0x78] sm:$0xff] }
 0x42a   :  { %3357 = vst.msk [vmem:[#allocation2 + $0x81] sm:$0xff] %vm22_vm0, %v3293_v11  ;;  %v8293_v19 = vunpack.i.h.bf16 %v19309_v22  ;;  %v8513_v31 = vunpack.i.h.bf16 %v8511_v44  ;;  %v2971_v4 = vpack.c.bf16 %v2921_v53, %v2920_v12  ;;  %v2881_v9 = vsel %vm2828_vm11, %v2816_v23, %v8352_v28 }
 0x42b   :  { %v3209_v7 = vpop.f32.mrf.mxu2  ;;  %v8292_v59 = vunpack.i.l.bf16 %v19309_v22  ;;  %v2882_v15 = vsel %vm2828_vm11, %v2817_v24, %v8353_v32  ;;  %v2946_v63 = vsel %vm2893_vm10, %v2881_v9, %v8512_v56  ;;  %v3701_v50 = vrot.slane %v3469_v26, 1  ;;  %v13844_v22 = vld [vmem:[%s17842_s3] ss:$0 sm:$0xff] }
 0x42c   :  { %v3210_v47 = vadd.f32 %v13313_v41, %v3209_v7  ;;  %v3641_v45 = vrot.slane %v3427_v60, 1  ;;  %v2947_v30 = vsel %vm2893_vm10, %v2882_v15, %v8513_v31  ;;  %v3861_v58 = vrot.slane %v3469_v26, 2 }
 0x42d   :  { %v3149_v39 = vpop.f32.mrf.mxu0  ;;  %v3801_v2 = vrot.slane %v3427_v60, 2  ;;  %v2984_v60 = vpack.c.bf16 %v2947_v30, %v2946_v63  ;;  %v19315_v63 = vld [vmem:[#allocation227_spill] sm:$0xff] }
 0x42e   :  { %v3318_v14 = vmax.f32 %v3210_v47, 0.0  ;;  %v3150_v17 = vadd.f32 %v13313_v41, %v3149_v39  ;;  %v19310_v47 = vld [vmem:[#allocation177_spill] sm:$0xff] }
 0x42f   :  { %v8453_v26 = vunpack.i.h.bf16 %v19310_v47 }
 0x430   :  { %v3470_v43 = vld [vmem:[#allocation2 + $0x1d0] sm:$0xff]  ;;  %v3471_v40 = vld [vmem:[#allocation2 + $0x1d8] sm:$0x3]  ;;  %3382 = vst.msk [vmem:[#allocation2 + $0x1e1] sm:$0xff] %vm22_vm0, %v3318_v14  ;;  %v3294_v33 = vmax.f32 %v3150_v17, 0.0  ;;  %6861 = vmatmul.msk.bf16.gmra.mxu0 %vm3014_vm12, %v2971_v4  ;;  %v8452_v14 = vunpack.i.l.bf16 %v19310_v47  ;;  %v8457_v47 = vunpack.i.l.bf16 %v13044_v27 }
 0x431   :  { %v3702_v42 = vrot.slane %v3470_v43, 1  ;;  %v3704_v62 = vrot.slane %v3471_v40, 1  ;;  %v3862_v8 = vrot.slane %v3470_v43, 2  ;;  %v3428_v44 = vld [vmem:[#allocation2 + $0x80] sm:$0xff]  ;;  %v3429_v11 = vld [vmem:[#allocation2 + $0x88] sm:$0x3] }
 0x432   :  { %v3864_v20 = vrot.slane %v3471_v40, 2  ;;  %3358 = vst.msk [vmem:[#allocation2 + $0x91] sm:$0xff] %vm22_vm0, %v3294_v33  ;;  %v3642_v18 = vrot.slane %v3428_v44, 1  ;;  %v3644_v54 = vrot.slane %v3429_v11, 1  ;;  %v3802_v32 = vrot.slane %v3428_v44, 2  ;;  %v19314_v33 = vld [vmem:[#allocation218_spill] sm:$0xff]  ;;  %v8516_v44 = vpop.permute.xlu2 %8515 }
 0x433   :  { %v3703_v51 = vsel %vm529_vm2, %v3701_v50, %v3702_v42  ;;  %v3211_v16 = vpop.f32.mrf.mxu2  ;;  %v3705_v28 = vsel %vm529_vm2, %v3702_v42, %v3704_v62  ;;  %v3804_v12 = vrot.slane %v3429_v11, 2  ;;  %v3863_v53 = vsel %vm690_vm3, %v3861_v58, %v3862_v8 }
 0x434   :  { %v3212_v56 = vadd.f32 %v13313_v41, %v3211_v16  ;;  %v3643_v7 = vsel %vm529_vm2, %v3641_v45, %v3642_v18  ;;  %v3645_v10 = vsel %vm529_vm2, %v3642_v18, %v3644_v54  ;;  %v3865_v37 = vsel %vm690_vm3, %v3862_v8, %v3864_v20  ;;  %v19317_v45 = vld [vmem:[#allocation19_spill] sm:$0xff] }
 0x435   :  { %v3151_v23 = vpop.f32.mrf.mxu0  ;;  %v13802_v24 = vpack.i.bf16 %v3645_v10, %v3643_v7  ;;  %v3803_v31 = vsel %vm690_vm3, %v3801_v2, %v3802_v32  ;;  %v3805_v39 = vsel %vm690_vm3, %v3802_v32, %v3804_v12  ;;  %v13810_v9 = vpack.i.bf16 %v3705_v28, %v3703_v51  ;;  %v19318_v32 = vld [vmem:[#allocation22_spill] sm:$0xff] }
 0x436   :  { %v3319_v17 = vmax.f32 %v3212_v56, 0.0  ;;  %v3152_v4 = vadd.f32 %v13313_v41, %v3151_v23  ;;  %v13812_v15 = vpack.i.bf16 %v3805_v39, %v3803_v31  ;;  %v13814_v43 = vpack.i.bf16 %v3865_v37, %v3863_v53 }
 0x437   :  { %19311 = vst [vmem:[#allocation99_spill] sm:$0xff] %v13802_v24  ;;  %8565 = vrot.lane.b32.xlu0 %v13802_v24, %s10021_s18  ;;  %v2792_v40 = vsel %vm2763_vm9, %v13709_v29, %v8132_v55  ;;  %v2793_v50 = vsel %vm2763_vm9, %v13748_v61, %v8133_v6  ;;  %v8137_v42 = vunpack.i.l.bf16 %v19314_v33  ;;  %v8198_v62 = vunpack.i.h.bf16 %v19315_v63  ;;  %v19316_v55 = vld [vmem:[#allocation200_spill] sm:$0xff] }
 0x438   :  { %19312 = vst [vmem:[#allocation100_spill] sm:$0xff] %v13810_v9  ;;  %v3295_v41 = vmax.f32 %v3152_v4, 0.0  ;;  %6874 = vmatmul.msk.bf16.gmra.mxu2 %vm3014_vm12, %v2984_v60  ;;  %v8197_v8 = vunpack.i.l.bf16 %v19315_v63  ;;  %v2754_v29 = vsel %vm2698_vm7, %v13619_v57, %v8038_v35  ;;  %v8043_v11 = vunpack.i.h.bf16 %v19316_v55  ;;  %v3472_v10 = vld [vmem:[#allocation2 + $0x1e0] sm:$0xff] }
 0x439   :  { %19313 = vst [vmem:[#allocation189_spill] sm:$0xff] %v13812_v15  ;;  %v2857_v61 = vsel %vm2828_vm11, %v2792_v40, %v8292_v59  ;;  %v2858_v6 = vsel %vm2828_vm11, %v2793_v50, %v8293_v19  ;;  %v8358_v30 = vunpack.i.h.bf16 %v19317_v45  ;;  %v8357_v58 = vunpack.i.l.bf16 %v19317_v45  ;;  %v14199_v24 = vld [vmem:[%s17842_s3] ss:$0 sm:$0xff] }
 0x43a   :  { %3383 = vst.msk [vmem:[#allocation2 + $0x1e9] sm:$0xff] %vm22_vm0, %v3319_v17  ;;  %v2922_v20 = vsel %vm2893_vm10, %v2857_v61, %v8452_v14  ;;  %v2923_v34 = vsel %vm2893_vm10, %v2858_v6, %v8453_v26  ;;  %v8042_v57 = vunpack.i.l.bf16 %v19316_v55  ;;  %v8138_v35 = vunpack.i.h.bf16 %v19314_v33  ;;  %v3430_v26 = vld [vmem:[#allocation2 + $0x90] sm:$0xff] }
 0x43b   :  { %3359 = vst.msk [vmem:[#allocation2 + $0x99] sm:$0xff] %vm22_vm0, %v3295_v41  ;;  %v3214_v18 = vpop.f32.mrf.mxu2  ;;  %v8517_v59 = vunpack.i.l.bf16 %v8516_v44  ;;  %v2794_v54 = vsel %vm2763_vm9, %v13681_v13, %v8137_v42  ;;  %v2818_v51 = vsel %vm2763_vm9, %v13757_v49, %v8197_v8  ;;  %v2819_v2 = vsel %vm2763_vm9, %v2754_v29, %v8198_v62 }
 0x43c   :  { %v3215_v19 = vadd.f32 %v13844_v22, %v3214_v18  ;;  %v8518_v16 = vunpack.i.h.bf16 %v8516_v44  ;;  %v8298_v12 = vunpack.i.h.bf16 %v19318_v32  ;;  %v2972_v7 = vpack.c.bf16 %v2923_v34, %v2922_v20 }
 0x43d   :  { %v3154_v28 = vpop.f32.mrf.mxu0  ;;  %v8297_v37 = vunpack.i.l.bf16 %v19318_v32  ;;  %v2883_v13 = vsel %vm2828_vm11, %v2818_v51, %v8357_v58  ;;  %v2884_v49 = vsel %vm2828_vm11, %v2819_v2, %v8358_v30  ;;  %v3706_v33 = vrot.slane %v3472_v10, 1 }
 0x43e   :  { %v3320_v53 = vmax.f32 %v3215_v19, 0.0  ;;  %v3155_v56 = vadd.f32 %v13844_v22, %v3154_v28  ;;  %v2948_v14 = vsel %vm2893_vm10, %v2883_v13, %v8517_v59  ;;  %v2949_v50 = vsel %vm2893_vm10, %v2884_v49, %v8518_v16  ;;  %v19321_v13 = vld [vmem:[#allocation79_spill] sm:$0xff] }
 0x43f   :  { %v3646_v63 = vrot.slane %v3430_v26, 1  ;;  %v3866_v44 = vrot.slane %v3472_v10, 2  ;;  %v3806_v6 = vrot.slane %v3430_v26, 2  ;;  %v2985_v51 = vpack.c.bf16 %v2949_v50, %v2948_v14 }
 0x440   :  { %3384 = vst.msk [vmem:[#allocation2 + $0x1f9] sm:$0xff] %vm22_vm0, %v3320_v53  ;;  %v3296_v39 = vmax.f32 %v3155_v56, 0.0  ;;  %6862 = vmatmul.msk.bf16.gmra.mxu0 %vm3014_vm12, %v2972_v7  ;;  %v2795_v7 = vsel %vm2763_vm9, %v13687_v5, %v8138_v35  ;;  %v8458_v10 = vunpack.i.h.bf16 %v13044_v27  ;;  %v8203_v49 = vunpack.i.h.bf16 %v19321_v13  ;;  %v19322_v27 = vld [vmem:[#allocation155_spill] sm:$0xff] }
 0x441   :  { %v3473_v23 = vld [vmem:[#allocation2 + $0x1e8] sm:$0xff]  ;;  %v3474_v31 = vld [vmem:[#allocation2 + $0x1f0] sm:$0x3]  ;;  %v2860_v5 = vsel %vm2828_vm11, %v2795_v7, %v8298_v12  ;;  %v8363_v35 = vunpack.i.h.bf16 %v19322_v27  ;;  %v2755_v12 = vsel %vm2698_vm7, %v13623_v38, %v8042_v57 }
 0x442   :  { %v3707_v17 = vrot.slane %v3473_v23, 1  ;;  %v3709_v4 = vrot.slane %v3474_v31, 1  ;;  %v3431_v60 = vld [vmem:[#allocation2 + $0x98] sm:$0xff]  ;;  %v3432_v40 = vld [vmem:[#allocation2 + $0xa0] sm:$0x3]  ;;  %v3867_v42 = vrot.slane %v3473_v23, 2  ;;  %v8202_v23 = vunpack.i.l.bf16 %v19321_v13 }
 0x443   :  { %v3869_v41 = vrot.slane %v3474_v31, 2  ;;  %3360 = vst.msk [vmem:[#allocation2 + $0xa9] sm:$0xff] %vm22_vm0, %v3296_v39  ;;  %v3647_v62 = vrot.slane %v3431_v60, 1  ;;  %v3649_v8 = vrot.slane %v3432_v40, 1  ;;  %v3216_v29 = vpop.f32.mrf.mxu2  ;;  %v3807_v45 = vrot.slane %v3431_v60, 2  ;;  %v8521_v39 = vpop.permute.xlu0 %8520 }
 0x444   :  { %v3708_v61 = vsel %vm529_vm2, %v3706_v33, %v3707_v17  ;;  %v3809_v30 = vrot.slane %v3432_v40, 2  ;;  %v3217_v58 = vadd.f32 %v13844_v22, %v3216_v29  ;;  %v3710_v18 = vsel %vm529_vm2, %v3707_v17, %v3709_v4  ;;  %v19325_v33 = vld [vmem:[#allocation12_spill] sm:$0xff] }
 0x445   :  { %v3648_v20 = vsel %vm529_vm2, %v3646_v63, %v3647_v62  ;;  %v3650_v34 = vsel %vm529_vm2, %v3647_v62, %v3649_v8  ;;  %v3156_v59 = vpop.f32.mrf.mxu0  ;;  %v3868_v2 = vsel %vm690_vm3, %v3866_v44, %v3867_v42  ;;  %v3870_v16 = vsel %vm690_vm3, %v3867_v42, %v3869_v41 }
 0x446   :  { %v13868_v19 = vpack.i.bf16 %v3650_v34, %v3648_v20  ;;  %v3321_v28 = vmax.f32 %v3217_v58, 0.0  ;;  %v3157_v32 = vadd.f32 %v13844_v22, %v3156_v59  ;;  %v3808_v53 = vsel %vm690_vm3, %v3806_v6, %v3807_v45 }
 0x447   :  { %v3810_v56 = vsel %vm690_vm3, %v3807_v45, %v3809_v30  ;;  %v13880_v26 = vpack.i.bf16 %v3710_v18, %v3708_v61  ;;  %v2859_v31 = vsel %vm2828_vm11, %v2794_v54, %v8297_v37  ;;  %v13891_v4 = vpack.i.bf16 %v3870_v16, %v3868_v2  ;;  %v3475_v63 = vld [vmem:[#allocation2 + $0x1f8] sm:$0xff] }
 0x448   :  { %19319 = vst [vmem:[#allocation101_spill] sm:$0xff] %v13868_v19  ;;  %8570 = vrot.lane.b32.xlu1 %v13868_v19, %s10021_s18  ;;  %v3297_v14 = vmax.f32 %v3157_v32, 0.0  ;;  %6875 = vmatmul.msk.bf16.gmra.mxu2 %vm3014_vm12, %v2985_v51  ;;  %v13889_v17 = vpack.i.bf16 %v3810_v56, %v3808_v53  ;;  %v8362_v60 = vunpack.i.l.bf16 %v19322_v27  ;;  %v2924_v40 = vsel %vm2893_vm10, %v2859_v31, %v8457_v47  ;;  %v19326_v30 = vld [vmem:[#allocation131_spill] sm:$0xff] }
 0x449   :  { %19320 = vst [vmem:[#allocation102_spill] sm:$0xff] %v13880_v26  ;;  %v2925_v54 = vsel %vm2893_vm10, %v2860_v5, %v8458_v10  ;;  %v8522_v37 = vunpack.i.l.bf16 %v8521_v39  ;;  %v7568_v42 = vunpack.i.h.bf16 %v19325_v33  ;;  %v2756_v41 = vsel %vm2698_vm7, %v13634_v52, %v8043_v11 }
 0x44a   :  { %3385 = vst.msk [vmem:[#allocation2 + $0x201] sm:$0xff] %vm22_vm0, %v3321_v28  ;;  %v7567_v62 = vunpack.i.l.bf16 %v19325_v33  ;;  %v2820_v8 = vsel %vm2763_vm9, %v2755_v12, %v8202_v23  ;;  %v2821_v44 = vsel %vm2763_vm9, %v2756_v41, %v8203_v49  ;;  %v8523_v29 = vunpack.i.h.bf16 %v8521_v39  ;;  %v3433_v57 = vld [vmem:[#allocation2 + $0xa8] sm:$0xff] }
 0x44b   :  { %19323 = vst [vmem:[#allocation103_spill] sm:$0xff] %v13889_v17  ;;  %v3219_v50 = vpop.f32.mrf.mxu2  ;;  %v2885_v6 = vsel %vm2828_vm11, %v2820_v8, %v8362_v60  ;;  %v2973_v55 = vpack.c.bf16 %v2925_v54, %v2924_v40  ;;  %v7728_v52 = vunpack.i.h.bf16 %v19326_v30  ;;  %v2886_v11 = vsel %vm2828_vm11, %v2821_v44, %v8363_v35  ;;  %v19328_v8 = vld [vmem:[#allocation148_spill] sm:$0xff] }
 0x44c   :  { %19324 = vst [vmem:[#allocation10_spill] sm:$0xff] %v13891_v4  ;;  %v3220_v47 = vadd.f32 %v13844_v22, %v3219_v50  ;;  %v2950_v58 = vsel %vm2893_vm10, %v2885_v6, %v8522_v37  ;;  %v3711_v18 = vrot.slane %v3475_v63, 1  ;;  %v2951_v28 = vsel %vm2893_vm10, %v2886_v11, %v8523_v29 }
 0x44d   :  { %3361 = vst.msk [vmem:[#allocation2 + $0xb1] sm:$0xff] %vm22_vm0, %v3297_v14  ;;  %v3159_v61 = vpop.f32.mrf.mxu0  ;;  %v3651_v56 = vrot.slane %v3433_v57, 1  ;;  %v3871_v7 = vrot.slane %v3475_v63, 2  ;;  %v3811_v31 = vrot.slane %v3433_v57, 2  ;;  %v7727_v50 = vunpack.i.l.bf16 %v19326_v30  ;;  %v19332_v30 = vld [vmem:[#allocation202_spill] sm:$0xff] }
 0x44e   :  { %v3322_v45 = vmax.f32 %v3220_v47, 0.0  ;;  %v3160_v38 = vadd.f32 %v13844_v22, %v3159_v61  ;;  %v7888_v44 = vunpack.i.h.bf16 %v19328_v8  ;;  %v2986_v6 = vpack.c.bf16 %v2951_v28, %v2950_v58  ;;  %v8526_v58 = vpop.permute.xlu1 %8525 }
 0x44f   :  { %v7887_v57 = vunpack.i.l.bf16 %v19328_v8  ;;  %v8048_v11 = vunpack.i.h.bf16 %v19332_v30 }
 0x450   :  { %3386 = vst.msk [vmem:[#allocation2 + $0x211] sm:$0xff] %vm22_vm0, %v3322_v45  ;;  %v3298_v59 = vmax.f32 %v3160_v38, 0.0  ;;  %6863 = vmatmul.msk.bf16.gmra.mxu0 %vm3014_vm12, %v2973_v55 }
 0x451   :  { %v3476_v20 = vld [vmem:[#allocation2 + $0x200] sm:$0xff]  ;;  %v3477_v34 = vld [vmem:[#allocation2 + $0x208] sm:$0x3] }
 0x452   :  { %v3712_v51 = vrot.slane %v3476_v20, 1  ;;  %v3714_v2 = vrot.slane %v3477_v34, 1  ;;  %v3872_v16 = vrot.slane %v3476_v20, 2  ;;  %v3874_v10 = vrot.slane %v3477_v34, 2  ;;  %3362 = vst.msk [vmem:[#allocation2 + $0xc1] sm:$0xff] %vm22_vm0, %v3298_v59 }
 0x453   :  { %v3221_v39 = vpop.f32.mrf.mxu2  ;;  %v8047_v20 = vunpack.i.l.bf16 %v19332_v30 }
 0x454   :  { %v3434_v32 = vld [vmem:[#allocation2 + $0xb0] sm:$0xff]  ;;  %v3435_v53 = vld [vmem:[#allocation2 + $0xb8] sm:$0x3]  ;;  %v3713_v23 = vsel %vm529_vm2, %v3711_v18, %v3712_v51  ;;  %v3715_v14 = vsel %vm529_vm2, %v3712_v51, %v3714_v2  ;;  %v3873_v35 = vsel %vm690_vm3, %v3871_v7, %v3872_v16  ;;  %v3222_v60 = vadd.f32 %v13844_v22, %v3221_v39  ;;  %v19333_v18 = vld [vmem:[#allocation48_spill] sm:$0xff] }
 0x455   :  { %v3652_v13 = vrot.slane %v3434_v32, 1  ;;  %v3654_v49 = vrot.slane %v3435_v53, 1  ;;  %v3812_v5 = vrot.slane %v3434_v32, 2  ;;  %v3814_v27 = vrot.slane %v3435_v53, 2  ;;  %v3161_v12 = vpop.f32.mrf.mxu0  ;;  %v19334_v51 = vld [vmem:[#allocation62_spill] sm:$0xff]  ;;  %v19336_v7 = vld [vmem:[#allocation60_spill] sm:$0xff] }
 0x456   :  { %v3875_v37 = vsel %vm690_vm3, %v3872_v16, %v3874_v10  ;;  %v3323_v29 = vmax.f32 %v3222_v60, 0.0  ;;  %v3162_v61 = vadd.f32 %v13844_v22, %v3161_v12  ;;  %v13935_v45 = vpack.i.bf16 %v3715_v14, %v3713_v23  ;;  %v19335_v16 = vld [vmem:[#allocation228_spill] sm:$0xff] }
 0x457   :  { %v3653_v40 = vsel %vm529_vm2, %v3651_v56, %v3652_v13  ;;  %v3655_v54 = vsel %vm529_vm2, %v3652_v13, %v3654_v49  ;;  %v3813_v47 = vsel %vm690_vm3, %v3811_v31, %v3812_v5  ;;  %v3815_v63 = vsel %vm690_vm3, %v3812_v5, %v3814_v27  ;;  %v19337_v31 = vld [vmem:[#allocation133_spill] sm:$0xff] }
 0x458   :  { %v13927_v41 = vpack.i.bf16 %v3655_v54, %v3653_v40  ;;  %19329 = vst [vmem:[#allocation104_spill] sm:$0xff] %v13935_v45  ;;  %v13937_v38 = vpack.i.bf16 %v3815_v63, %v3813_v47  ;;  %v13939_v55 = vpack.i.bf16 %v3875_v37, %v3873_v35  ;;  %v3299_v34 = vmax.f32 %v3162_v61, 0.0  ;;  %6876 = vmatmul.msk.bf16.gmra.mxu2 %vm3014_vm12, %v2986_v6  ;;  %v19338_v47 = vld [vmem:[#allocation89_spill] sm:$0xff] }
 0x459   :  { %3387 = vst.msk [vmem:[#allocation2 + $0x219] sm:$0xff] %vm22_vm0, %v3323_v29  ;;  %v2563_v59 = vsel %vm2503_vm5, %v19333_v18, %v7568_v42  ;;  %v2562_v2 = vsel %vm2503_vm5, %v19334_v51, %v7567_v62  ;;  %v8208_v28 = vunpack.i.h.bf16 %v19335_v16  ;;  %v8207_v32 = vunpack.i.l.bf16 %v19335_v16  ;;  %v3436_v37 = vld [vmem:[#allocation2 + $0xc0] sm:$0xff] }
 0x45a   :  { %19327 = vst [vmem:[#allocation135_spill] sm:$0xff] %v13927_v41  ;;  %8575 = vrot.lane.b32.xlu2 %v13927_v41, %s10021_s18  ;;  %v2628_v53 = vsel %vm2568_vm6, %v2563_v59, %v7728_v52  ;;  %v2627_v56 = vsel %vm2568_vm6, %v2562_v2, %v7727_v50  ;;  %v8368_v10 = vunpack.i.h.bf16 %v19336_v7  ;;  %v8367_v13 = vunpack.i.l.bf16 %v19336_v7  ;;  %v3478_v50 = vld [vmem:[#allocation2 + $0x210] sm:$0xff] }
 0x45b   :  { %19330 = vst [vmem:[#allocation95_spill] sm:$0xff] %v13937_v38  ;;  %v3224_v42 = vpop.f32.mrf.mxu2  ;;  %v2692_v33 = vsel %vm2633_vm8, %v2627_v56, %v7887_v57  ;;  %v2693_v49 = vsel %vm2633_vm8, %v2628_v53, %v7888_v44  ;;  %v8527_v62 = vunpack.i.l.bf16 %v8526_v58  ;;  %v7733_v39 = vunpack.i.h.bf16 %v19337_v31 }
 0x45c   :  { %19331 = vst [vmem:[#allocation105_spill] sm:$0xff] %v13939_v55  ;;  %v3225_v23 = vadd.f32 %v13844_v22, %v3224_v42  ;;  %v2757_v14 = vsel %vm2698_vm7, %v2692_v33, %v8047_v20  ;;  %v2758_v52 = vsel %vm2698_vm7, %v2693_v49, %v8048_v11  ;;  %v8528_v5 = vunpack.i.h.bf16 %v8526_v58 }
 0x45d   :  { %3363 = vst.msk [vmem:[#allocation2 + $0xc9] sm:$0xff] %vm22_vm0, %v3299_v34  ;;  %v3164_v27 = vpop.f32.mrf.mxu0  ;;  %v2822_v35 = vsel %vm2763_vm9, %v2757_v14, %v8207_v32  ;;  %v2823_v60 = vsel %vm2763_vm9, %v2758_v52, %v8208_v28  ;;  %v7732_v12 = vunpack.i.l.bf16 %v19337_v31  ;;  %v7892_v63 = vunpack.i.l.bf16 %v19338_v47 }
 0x45e   :  { %v3324_v40 = vmax.f32 %v3225_v23, 0.0  ;;  %v3165_v54 = vadd.f32 %v13844_v22, %v3164_v27  ;;  %v2887_v8 = vsel %vm2828_vm11, %v2822_v35, %v8367_v13  ;;  %v2888_v44 = vsel %vm2828_vm11, %v2823_v60, %v8368_v10 }
 0x45f   :  { %v2952_v6 = vsel %vm2893_vm10, %v2887_v8, %v8527_v62  ;;  %v2953_v20 = vsel %vm2893_vm10, %v2888_v44, %v8528_v5  ;;  %v3656_v18 = vrot.slane %v3436_v37, 1  ;;  %v3716_v59 = vrot.slane %v3478_v50, 1 }
 0x460   :  { %v3479_v29 = vld [vmem:[#allocation2 + $0x218] sm:$0xff]  ;;  %v3480_v61 = vld [vmem:[#allocation2 + $0x220] sm:$0x3]  ;;  %3388 = vst.msk [vmem:[#allocation2 + $0x229] sm:$0xff] %vm22_vm0, %v3324_v40  ;;  %v3300_v57 = vmax.f32 %v3165_v54, 0.0  ;;  %v3876_v51 = vrot.slane %v3478_v50, 2  ;;  %v2987_v14 = vpack.c.bf16 %v2953_v20, %v2952_v6 }
 0x461   :  { %v3717_v30 = vrot.slane %v3479_v29, 1  ;;  %v3719_v11 = vrot.slane %v3480_v61, 1  ;;  %v3877_v28 = vrot.slane %v3479_v29, 2  ;;  %v3879_v32 = vrot.slane %v3480_v61, 2  ;;  %v19340_v54 = vld [vmem:[#allocation84_spill] sm:$0xff]  ;;  %v19341_v50 = vld [vmem:[#allocation86_spill] sm:$0xff] }
 0x462   :  { %3364 = vst.msk [vmem:[#allocation2 + $0xd9] sm:$0xff] %vm22_vm0, %v3300_v57  ;;  %v3816_v7 = vrot.slane %v3436_v37, 2  ;;  %v2629_v37 = vsel %vm2568_vm6, %v19340_v54, %v7732_v12  ;;  %v2630_v8 = vsel %vm2568_vm6, %v19341_v50, %v7733_v39  ;;  %v7893_v29 = vunpack.i.h.bf16 %v19338_v47  ;;  %v19343_v61 = vld [vmem:[#allocation193_spill] sm:$0xff]  ;;  %v8531_v57 = vpop.permute.xlu2 %8530  ;;  %v19345_v20 = vld [vmem:[#allocation230_spill] sm:$0xff] }
 0x463   :  { %v3226_v53 = vpop.f32.mrf.mxu2  ;;  %v3718_v56 = vsel %vm529_vm2, %v3716_v59, %v3717_v30  ;;  %v3720_v62 = vsel %vm529_vm2, %v3717_v30, %v3719_v11  ;;  %v3878_v60 = vsel %vm690_vm3, %v3876_v51, %v3877_v28  ;;  %v3880_v40 = vsel %vm690_vm3, %v3877_v28, %v3879_v32  ;;  %v9921_v28 = vld [vmem:[#allocation2 + $0x318] sm:$0xff]  ;;  %v19348_v32 = vld [vmem:[#allocation93_spill] sm:$0xff] }
 0x464   :  { %v3437_v34 = vld [vmem:[#allocation2 + $0xc8] sm:$0xff]  ;;  %v3438_v58 = vld [vmem:[#allocation2 + $0xd0] sm:$0x3]  ;;  %v3227_v42 = vadd.f32 %v13844_v22, %v3226_v53  ;;  %v13996_v44 = vpack.i.bf16 %v3720_v62, %v3718_v56  ;;  %v8052_v6 = vunpack.i.l.bf16 %v19343_v61  ;;  %v2694_v12 = vsel %vm2633_vm8, %v2629_v37, %v7892_v63 }
 0x465   :  { %v3657_v2 = vrot.slane %v3437_v34, 1  ;;  %v3659_v16 = vrot.slane %v3438_v58, 1  ;;  %v3817_v10 = vrot.slane %v3437_v34, 2  ;;  %v3819_v13 = vrot.slane %v3438_v58, 2  ;;  %v3166_v23 = vpop.f32.mrf.mxu0 }
 0x466   :  { %v3325_v27 = vmax.f32 %v3227_v42, 0.0  ;;  %v3167_v35 = vadd.f32 %v13844_v22, %v3166_v23  ;;  %19342 = vst [vmem:[#allocation107_spill] sm:$0xff] %v13996_v44  ;;  %v8053_v39 = vunpack.i.h.bf16 %v19343_v61  ;;  %v8212_v34 = vunpack.i.l.bf16 %v19345_v20  ;;  %v19350_v42 = vld [vmem:[#allocation23_spill] sm:$0xff] }
 0x467   :  { %v3658_v33 = vsel %vm529_vm2, %v3656_v18, %v3657_v2  ;;  %v3660_v49 = vsel %vm529_vm2, %v3657_v2, %v3659_v16  ;;  %v3818_v52 = vsel %vm690_vm3, %v3816_v7, %v3817_v10  ;;  %v3820_v5 = vsel %vm690_vm3, %v3817_v10, %v3819_v13  ;;  %v19347_v18 = vld [vmem:[#allocation154_spill] sm:$0xff]  ;;  %v3481_v13 = vld [vmem:[#allocation2 + $0x228] sm:$0xff] }
 0x468   :  { %v13983_v31 = vpack.i.bf16 %v3660_v49, %v3658_v33  ;;  %3389 = vst.msk [vmem:[#allocation2 + $0x231] sm:$0xff] %vm22_vm0, %v3325_v27  ;;  %v3301_v30 = vmax.f32 %v3167_v35, 0.0  ;;  %6877 = vmatmul.msk.bf16.gmra.mxu2 %vm3014_vm12, %v2987_v14  ;;  %v14002_v11 = vpack.i.bf16 %v3820_v5, %v3818_v52  ;;  %v14007_v58 = vpack.i.bf16 %v3880_v40, %v3878_v60 }
 0x469   :  { %v8213_v47 = vunpack.i.h.bf16 %v19345_v20  ;;  %v8372_v59 = vunpack.i.l.bf16 %v19347_v18  ;;  %v8373_v51 = vunpack.i.h.bf16 %v19347_v18  ;;  %v8532_v2 = vunpack.i.l.bf16 %v8531_v57  ;;  %v3439_v60 = vld [vmem:[#allocation2 + $0xd8] sm:$0xff] }
 0x46a   :  { %19339 = vst [vmem:[#allocation106_spill] sm:$0xff] %v13983_v31  ;;  %8580 = vrot.lane.b32.xlu0 %v13983_v31, %s10021_s18  ;;  %v19349_v53 = vunpack.i.l.bf16 %v19348_v32  ;;  %v2695_v56 = vsel %vm2633_vm8, %v2630_v8, %v7893_v29  ;;  %v2759_v7 = vsel %vm2698_vm7, %v2694_v12, %v8052_v6  ;;  %v7578_v33 = vunpack.i.h.bf16 %v19350_v42 }
 0x46b   :  { %19344 = vst [vmem:[#allocation108_spill] sm:$0xff] %v14002_v11  ;;  %v3229_v16 = vpop.f32.mrf.mxu2  ;;  %v2760_v49 = vsel %vm2698_vm7, %v2695_v56, %v8053_v39  ;;  %v2824_v62 = vsel %vm2763_vm9, %v2759_v7, %v8212_v34  ;;  %v8533_v23 = vunpack.i.h.bf16 %v8531_v57  ;;  %v7577_v40 = vunpack.i.l.bf16 %v19350_v42 }
 0x46c   :  { %19346 = vst [vmem:[#allocation109_spill] sm:$0xff] %v14007_v58  ;;  %v14016_v63 = vsel %vm22_vm0, %v9921_v28, %v19349_v53  ;;  %v3230_v10 = vadd.f32 %v13844_v22, %v3229_v16  ;;  %v2825_v52 = vsel %vm2763_vm9, %v2760_v49, %v8213_v47  ;;  %v2889_v5 = vsel %vm2828_vm11, %v2824_v62, %v8372_v59  ;;  %v19351_v62 = vld [vmem:[#allocation122_spill] sm:$0xff] }
 0x46d   :  { %3365 = vst.msk [vmem:[#allocation2 + $0xe1] sm:$0xff] %vm22_vm0, %v3301_v30  ;;  %v3169_v14 = vpop.f32.mrf.mxu0  ;;  %v2890_v54 = vsel %vm2828_vm11, %v2825_v52, %v8373_v51  ;;  %v2954_v37 = vsel %vm2893_vm10, %v2889_v5, %v8532_v2  ;;  %v3721_v29 = vrot.slane %v3481_v13, 1  ;;  %v3661_v34 = vrot.slane %v3439_v60, 1 }
 0x46e   :  { %v3326_v27 = vmax.f32 %v3230_v10, 0.0  ;;  %v3170_v35 = vadd.f32 %v13844_v22, %v3169_v14  ;;  %v2955_v12 = vsel %vm2893_vm10, %v2890_v54, %v8533_v23  ;;  %v3881_v47 = vrot.slane %v3481_v13, 2 }
 0x46f   :  { %v3482_v50 = vld [vmem:[#allocation2 + $0x230] sm:$0xff]  ;;  %v3483_v8 = vld [vmem:[#allocation2 + $0x238] sm:$0x3]  ;;  %v3821_v16 = vrot.slane %v3439_v60, 2  ;;  %v7738_v23 = vunpack.i.h.bf16 %v19351_v62 }
 0x470   :  { %3390 = vst.msk [vmem:[#allocation2 + $0x241] sm:$0xff] %vm22_vm0, %v3326_v27  ;;  %v3302_v61 = vmax.f32 %v3170_v35, 0.0  ;;  %v3722_v6 = vrot.slane %v3482_v50, 1  ;;  %v3724_v57 = vrot.slane %v3483_v8, 1  ;;  %v3882_v30 = vrot.slane %v3482_v50, 2 }
 0x471   :  { %v3884_v18 = vrot.slane %v3483_v8, 2  ;;  %v7737_v35 = vunpack.i.l.bf16 %v19351_v62  ;;  %v2988_v50 = vpack.c.bf16 %v2955_v12, %v2954_v37  ;;  %v8536_v37 = vpop.permute.xlu0 %8535  ;;  %v19358_v12 = vld [vmem:[#allocation57_spill] sm:$0xff] }
 0x472   :  { %3366 = vst.msk [vmem:[#allocation2 + $0xf1] sm:$0xff] %vm22_vm0, %v3302_v61  ;;  %v3723_v2 = vsel %vm529_vm2, %v3721_v29, %v3722_v6  ;;  %v3725_v32 = vsel %vm529_vm2, %v3722_v6, %v3724_v57  ;;  %v3883_v7 = vsel %vm690_vm3, %v3881_v47, %v3882_v30  ;;  %v19356_v6 = vld [vmem:[#allocation88_spill] sm:$0xff]  ;;  %v2567_v47 = vsel %vm2503_vm5, %v19358_v12, %v7578_v33 }
 0x473   :  { %v3231_v28 = vpop.f32.mrf.mxu2  ;;  %v3885_v49 = vsel %vm690_vm3, %v3882_v30, %v3884_v18  ;;  %v14049_v8 = vpack.i.bf16 %v3725_v32, %v3723_v2  ;;  %v7898_v57 = vunpack.i.h.bf16 %v19356_v6  ;;  %v7897_v30 = vunpack.i.l.bf16 %v19356_v6 }
 0x474   :  { %v3440_v39 = vld [vmem:[#allocation2 + $0xe0] sm:$0xff]  ;;  %v3441_v20 = vld [vmem:[#allocation2 + $0xe8] sm:$0x3]  ;;  %v3232_v10 = vadd.f32 %v13844_v22, %v3231_v28  ;;  %v14053_v61 = vpack.i.bf16 %v3885_v49, %v3883_v7  ;;  %v2566_v18 = vsel %vm2503_vm5, %v14016_v63, %v7577_v40  ;;  %v2632_v28 = vsel %vm2568_vm6, %v2567_v47, %v7738_v23 }
 0x475   :  { %v3662_v59 = vrot.slane %v3440_v39, 1  ;;  %v3664_v51 = vrot.slane %v3441_v20, 1  ;;  %v3822_v53 = vrot.slane %v3440_v39, 2  ;;  %v3824_v56 = vrot.slane %v3441_v20, 2  ;;  %v3171_v14 = vpop.f32.mrf.mxu0  ;;  %19353 = vst [vmem:[#allocation111_spill] sm:$0xff] %v14049_v8  ;;  %v19357_v39 = vld [vmem:[#allocation203_spill] sm:$0xff] }
 0x476   :  { %v3327_v60 = vmax.f32 %v3232_v10, 0.0  ;;  %v3172_v54 = vadd.f32 %v13844_v22, %v3171_v14  ;;  %19355 = vst [vmem:[#allocation125_spill] sm:$0xff] %v14053_v61  ;;  %v8057_v20 = vunpack.i.l.bf16 %v19357_v39  ;;  %v8537_v63 = vunpack.i.l.bf16 %v8536_v37 }
 0x477   :  { %v3663_v42 = vsel %vm529_vm2, %v3661_v34, %v3662_v59  ;;  %v3665_v13 = vsel %vm529_vm2, %v3662_v59, %v3664_v51  ;;  %v3823_v5 = vsel %vm690_vm3, %v3821_v16, %v3822_v53  ;;  %v3825_v27 = vsel %vm690_vm3, %v3822_v53, %v3824_v56  ;;  %v19359_v51 = vld [vmem:[#allocation80_spill] sm:$0xff]  ;;  %v19360_v53 = vld [vmem:[#allocation157_spill] sm:$0xff] }
 0x478   :  { %v14041_v52 = vpack.i.bf16 %v3665_v13, %v3663_v42  ;;  %v14051_v29 = vpack.i.bf16 %v3825_v27, %v3823_v5  ;;  %3391 = vst.msk [vmem:[#allocation2 + $0x249] sm:$0xff] %vm22_vm0, %v3327_v60  ;;  %v3303_v34 = vmax.f32 %v3172_v54, 0.0  ;;  %6878 = vmatmul.msk.bf16.gmra.mxu2 %vm3014_vm12, %v2988_v50  ;;  %v8058_v59 = vunpack.i.h.bf16 %v19357_v39 }
 0x479   :  { %v8217_v2 = vunpack.i.l.bf16 %v19359_v51  ;;  %v2631_v16 = vsel %vm2568_vm6, %v2566_v18, %v7737_v35  ;;  %v8218_v32 = vunpack.i.h.bf16 %v19359_v51  ;;  %v8377_v56 = vunpack.i.l.bf16 %v19360_v53  ;;  %v3484_v35 = vld [vmem:[#allocation2 + $0x240] sm:$0xff]  ;;  %v3442_v50 = vld [vmem:[#allocation2 + $0xf0] sm:$0xff] }
 0x47a   :  { %19352 = vst [vmem:[#allocation110_spill] sm:$0xff] %v14041_v52  ;;  %8585 = vrot.lane.b32.xlu1 %v14041_v52, %s10021_s18  ;;  %v2696_v33 = vsel %vm2633_vm8, %v2631_v16, %v7897_v30  ;;  %v8378_v10 = vunpack.i.h.bf16 %v19360_v53  ;;  %v2697_v42 = vsel %vm2633_vm8, %v2632_v28, %v7898_v57  ;;  %v8538_v49 = vunpack.i.h.bf16 %v8536_v37 }
 0x47b   :  { %19354 = vst [vmem:[#allocation34_spill] sm:$0xff] %v14051_v29  ;;  %v3234_v7 = vpop.f32.mrf.mxu2  ;;  %v2761_v13 = vsel %vm2698_vm7, %v2696_v33, %v8057_v20  ;;  %v2762_v23 = vsel %vm2698_vm7, %v2697_v42, %v8058_v59  ;;  %v3726_v47 = vrot.slane %v3484_v35, 1  ;;  %v3666_v51 = vrot.slane %v3442_v50, 1 }
 0x47c   :  { %3367 = vst.msk [vmem:[#allocation2 + $0xf9] sm:$0xff] %vm22_vm0, %v3303_v34  ;;  %v3235_v40 = vadd.f32 %v13844_v22, %v3234_v7  ;;  %v2826_v14 = vsel %vm2763_vm9, %v2761_v13, %v8217_v2  ;;  %v2827_v60 = vsel %vm2763_vm9, %v2762_v23, %v8218_v32  ;;  %v3826_v28 = vrot.slane %v3442_v50, 2 }
 0x47d   :  { %v3174_v62 = vpop.f32.mrf.mxu0  ;;  %v2891_v54 = vsel %vm2828_vm11, %v2826_v14, %v8377_v56  ;;  %v2892_v57 = vsel %vm2828_vm11, %v2827_v60, %v8378_v10  ;;  %v3886_v42 = vrot.slane %v3484_v35, 2 }
 0x47e   :  { %v3328_v5 = vmax.f32 %v3235_v40, 0.0  ;;  %v3175_v27 = vadd.f32 %v13844_v22, %v3174_v62  ;;  %v2956_v39 = vsel %vm2893_vm10, %v2891_v54, %v8537_v63  ;;  %v2957_v34 = vsel %vm2893_vm10, %v2892_v57, %v8538_v49 }
 0x47f   :  { %v3485_v6 = vld [vmem:[#allocation2 + $0x248] sm:$0xff]  ;;  %v3486_v30 = vld [vmem:[#allocation2 + $0x250] sm:$0x3]  ;;  %v2989_v40 = vpack.c.bf16 %v2957_v34, %v2956_v39 }
 0x480   :  { %3392 = vst.msk [vmem:[#allocation2 + $0x259] sm:$0xff] %vm22_vm0, %v3328_v5  ;;  %v3304_v20 = vmax.f32 %v3175_v27, 0.0  ;;  %v3727_v18 = vrot.slane %v3485_v6, 1  ;;  %v3729_v59 = vrot.slane %v3486_v30, 1  ;;  %v3887_v7 = vrot.slane %v3485_v6, 2 }
 0x481   :  { %v3889_v33 = vrot.slane %v3486_v30, 2 }
 0x482   :  { %3368 = vst.msk [vmem:[#allocation2 + $0x109] sm:$0xff] %vm22_vm0, %v3304_v20  ;;  %v3728_v62 = vsel %vm529_vm2, %v3726_v47, %v3727_v18  ;;  %v3730_v23 = vsel %vm529_vm2, %v3727_v18, %v3729_v59  ;;  %v3888_v50 = vsel %vm690_vm3, %v3886_v42, %v3887_v7 }
 0x483   :  { %v3443_v37 = vld [vmem:[#allocation2 + $0xf8] sm:$0xff]  ;;  %v3444_v12 = vld [vmem:[#allocation2 + $0x100] sm:$0x3]  ;;  %v3236_v32 = vpop.f32.mrf.mxu2  ;;  %v3890_v35 = vsel %vm690_vm3, %v3887_v7, %v3889_v33  ;;  %v14102_v30 = vpack.i.bf16 %v3730_v23, %v3728_v62 }
 0x484   :  { %v3667_v2 = vrot.slane %v3443_v37, 1  ;;  %v3669_v16 = vrot.slane %v3444_v12, 1  ;;  %v3827_v53 = vrot.slane %v3443_v37, 2  ;;  %v3829_v56 = vrot.slane %v3444_v12, 2 }
 0x485   :  { %v3237_v10 = vadd.f32 %v13844_v22, %v3236_v32  ;;  %v3176_v13 = vpop.f32.mrf.mxu0  ;;  %19362 = vst [vmem:[#allocation112_spill] sm:$0xff] %v14102_v30  ;;  %v14106_v39 = vpack.i.bf16 %v3890_v35, %v3888_v50 }
 0x486   :  { %v3668_v63 = vsel %vm529_vm2, %v3666_v51, %v3667_v2  ;;  %v3670_v49 = vsel %vm529_vm2, %v3667_v2, %v3669_v16  ;;  %v3828_v14 = vsel %vm690_vm3, %v3826_v28, %v3827_v53  ;;  %v3177_v27 = vadd.f32 %v13844_v22, %v3176_v13 }
 0x487   :  { %v3329_v5 = vmax.f32 %v3237_v10, 0.0  ;;  %v14093_v60 = vpack.i.bf16 %v3670_v49, %v3668_v63  ;;  %v3830_v54 = vsel %vm690_vm3, %v3827_v53, %v3829_v56  ;;  %19364 = vst [vmem:[#allocation113_spill] sm:$0xff] %v14106_v39  ;;  %v3487_v37 = vld [vmem:[#allocation2 + $0x258] sm:$0xff] }
 0x488   :  { %v3305_v6 = vmax.f32 %v3177_v27, 0.0  ;;  %6879 = vmatmul.msk.bf16.gmra.mxu2 %vm3014_vm12, %v2989_v40  ;;  %v14104_v57 = vpack.i.bf16 %v3830_v54, %v3828_v14  ;;  %v3731_v16 = vrot.slane %v3487_v37, 1  ;;  %v3891_v63 = vrot.slane %v3487_v37, 2 }
 0x489   :  { %19361 = vst [vmem:[#allocation153_spill] sm:$0xff] %v14093_v60  ;;  %8590 = vrot.lane.b32.xlu2 %v14093_v60, %s10021_s18  ;;  %v3445_v59 = vld [vmem:[#allocation2 + $0x108] sm:$0xff] }
 0x48a   :  { %3393 = vst.msk [vmem:[#allocation2 + $0x261] sm:$0xff] %vm22_vm0, %v3329_v5  ;;  %v3671_v10 = vrot.slane %v3445_v59, 1  ;;  %v3831_v62 = vrot.slane %v3445_v59, 2 }
 0x48b   :  { %19363 = vst [vmem:[#allocation39_spill] sm:$0xff] %v14104_v57  ;;  %v3239_v20 = vpop.f32.mrf.mxu2 }
 0x48c   :  { %3369 = vst.msk [vmem:[#allocation2 + $0x111] sm:$0xff] %vm22_vm0, %v3305_v6  ;;  %v3240_v34 = vadd.f32 %v13844_v22, %v3239_v20 }
 0x48d   :  { %v3179_v12 = vpop.f32.mrf.mxu0 }
 0x48e   :  { %v3330_v47 = vmax.f32 %v3240_v34, 0.0  ;;  %v3180_v18 = vadd.f32 %v13844_v22, %v3179_v12 }
 0x490   :  { %3394 = vst.msk [vmem:[#allocation2 + $0x271] sm:$0xff] %vm22_vm0, %v3330_v47  ;;  %v3306_v28 = vmax.f32 %v3180_v18, 0.0 }
 0x491   :  { %v3488_v51 = vld [vmem:[#allocation2 + $0x260] sm:$0xff]  ;;  %v3489_v2 = vld [vmem:[#allocation2 + $0x268] sm:$0x3] }
 0x492   :  { %v3732_v32 = vrot.slane %v3488_v51, 1  ;;  %v3734_v53 = vrot.slane %v3489_v2, 1  ;;  %v3892_v56 = vrot.slane %v3488_v51, 2  ;;  %v3894_v40 = vrot.slane %v3489_v2, 2  ;;  %3370 = vst.msk [vmem:[#allocation2 + $0x121] sm:$0xff] %vm22_vm0, %v3306_v28 }
 0x493   :  { %v3446_v7 = vld [vmem:[#allocation2 + $0x110] sm:$0xff]  ;;  %v3447_v33 = vld [vmem:[#allocation2 + $0x118] sm:$0x3]  ;;  %v3241_v23 = vpop.f32.mrf.mxu2 }
 0x494   :  { %v3672_v42 = vrot.slane %v3446_v7, 1  ;;  %v3674_v13 = vrot.slane %v3447_v33, 1  ;;  %v3733_v49 = vsel %vm529_vm2, %v3731_v16, %v3732_v32  ;;  %v3735_v14 = vsel %vm529_vm2, %v3732_v32, %v3734_v53 }
 0x495   :  { %v3832_v5 = vrot.slane %v3446_v7, 2  ;;  %v3834_v27 = vrot.slane %v3447_v33, 2  ;;  %v3893_v54 = vsel %vm690_vm3, %v3891_v63, %v3892_v56  ;;  %v3242_v50 = vadd.f32 %v13844_v22, %v3241_v23  ;;  %v3181_v34 = vpop.f32.mrf.mxu0 }
 0x496   :  { %v3673_v35 = vsel %vm529_vm2, %v3671_v10, %v3672_v42  ;;  %v3675_v6 = vsel %vm529_vm2, %v3672_v42, %v3674_v13  ;;  %v3895_v20 = vsel %vm690_vm3, %v3892_v56, %v3894_v40  ;;  %v3182_v59 = vadd.f32 %v13844_v22, %v3181_v34 }
 0x497   :  { %v14120_v37 = vpack.i.bf16 %v3675_v6, %v3673_v35  ;;  %v3833_v12 = vsel %vm690_vm3, %v3831_v62, %v3832_v5  ;;  %v3835_v47 = vsel %vm690_vm3, %v3832_v5, %v3834_v27  ;;  %v3331_v18 = vmax.f32 %v3242_v50, 0.0  ;;  %v3490_v10 = vld [vmem:[#allocation2 + $0x270] sm:$0xff] }
 0x498   :  { %v14127_v51 = vpack.i.bf16 %v3735_v14, %v3733_v49  ;;  %v14129_v2 = vpack.i.bf16 %v3835_v47, %v3833_v12  ;;  %v14131_v16 = vpack.i.bf16 %v3895_v20, %v3893_v54  ;;  %v3307_v28 = vmax.f32 %v3182_v59, 0.0 }
 0x499   :  { %19365 = vst [vmem:[#allocation114_spill] sm:$0xff] %v14120_v37  ;;  %8595 = vrot.lane.b32.xlu0 %v14120_v37, %s10021_s18  ;;  %v14137_v63 = vld [vmem:[#allocation2 + $0x120] sm:$0xff]  ;;  %v3736_v27 = vrot.slane %v3490_v10, 1  ;;  %v3896_v54 = vrot.slane %v3490_v10, 2 }
 0x49a   :  { %19366 = vst [vmem:[#allocation115_spill] sm:$0xff] %v14127_v51  ;;  %v3676_v35 = vrot.slane %v14137_v63, 1  ;;  %v3836_v34 = vrot.slane %v14137_v63, 2 }
 0x49b   :  { %19367 = vst [vmem:[#allocation116_spill] sm:$0xff] %v14129_v2  ;;  %v3244_v32 = vpop.f32.mrf.mxu2 }
 0x49c   :  { %19368 = vst [vmem:[#allocation24_spill] sm:$0xff] %v14131_v16  ;;  %v3245_v53 = vadd.f32 %v13844_v22, %v3244_v32 }
 0x49d   :  { %3395 = vst.msk [vmem:[#allocation2 + $0x279] sm:$0xff] %vm22_vm0, %v3331_v18  ;;  %v3184_v56 = vpop.f32.mrf.mxu0 }
 0x49e   :  { %3371 = vst.msk [vmem:[#allocation2 + $0x129] sm:$0xff] %vm22_vm0, %v3307_v28  ;;  %v3332_v7 = vmax.f32 %v3245_v53, 0.0  ;;  %v3185_v33 = vadd.f32 %v13844_v22, %v3184_v56 }
 0x4a0   :  { %3396 = vst.msk [vmem:[#allocation2 + $0x289] sm:$0xff] %vm22_vm0, %v3332_v7  ;;  %v3308_v13 = vmax.f32 %v3185_v33, 0.0 }
 0x4a2   :  { %3372 = vst.msk [vmem:[#allocation2 + $0x139] sm:$0xff] %vm22_vm0, %v3308_v13 }
 0x4a3   :  { %v3246_v12 = vpop.f32.mrf.mxu2 }
 0x4a4   :  { %v3491_v40 = vld [vmem:[#allocation2 + $0x278] sm:$0xff]  ;;  %v3492_v42 = vld [vmem:[#allocation2 + $0x280] sm:$0x3]  ;;  %v3247_v32 = vadd.f32 %v13844_v22, %v3246_v12 }
 0x4a5   :  { %v3737_v49 = vrot.slane %v3491_v40, 1  ;;  %v3739_v62 = vrot.slane %v3492_v42, 1  ;;  %v3897_v23 = vrot.slane %v3491_v40, 2  ;;  %v14140_v14 = vld [vmem:[#allocation2 + $0x128] sm:$0xff]  ;;  %v3450_v5 = vld [vmem:[#allocation2 + $0x130] sm:$0x3]  ;;  %v3186_v33 = vpop.f32.mrf.mxu0 }
 0x4a6   :  { %v3899_v50 = vrot.slane %v3492_v42, 2  ;;  %v3677_v6 = vrot.slane %v14140_v14, 1  ;;  %v3679_v20 = vrot.slane %v3450_v5, 1  ;;  %v3837_v59 = vrot.slane %v14140_v14, 2 }
 0x4a7   :  { %v3738_v47 = vsel %vm529_vm2, %v3736_v27, %v3737_v49  ;;  %v3740_v18 = vsel %vm529_vm2, %v3737_v49, %v3739_v62  ;;  %v3839_v28 = vrot.slane %v3450_v5, 2  ;;  %v3898_v7 = vsel %vm690_vm3, %v3896_v54, %v3897_v23 }
 0x4a8   :  { %v3678_v53 = vsel %vm529_vm2, %v3676_v35, %v3677_v6  ;;  %v3680_v56 = vsel %vm529_vm2, %v3677_v6, %v3679_v20  ;;  %v3838_v40 = vsel %vm690_vm3, %v3836_v34, %v3837_v59  ;;  %v3900_v13 = vsel %vm690_vm3, %v3897_v23, %v3899_v50  ;;  %v14170_v20 = vld [vmem:[#allocation2 + $0x1b0] sm:$0xff]  ;;  %v14172_v34 = vld [vmem:[#allocation2 + $0x1b8] sm:$0xff] }
 0x4a9   :  { %v14153_v10 = vpack.i.bf16 %v3680_v56, %v3678_v53  ;;  %v3840_v42 = vsel %vm690_vm3, %v3837_v59, %v3839_v28  ;;  %v3333_v49 = vmax.f32 %v3247_v32, 0.0  ;;  %v3187_v62 = vadd.f32 %v13844_v22, %v3186_v33  ;;  %v14177_v59 = vld [vmem:[#allocation2 + $0x138] sm:$0xff]  ;;  %v14182_v56 = vld [vmem:[#allocation2 + $0x1c0] sm:$0x3] }
 0x4aa   :  { %v14161_v5 = vpack.i.bf16 %v3740_v18, %v3738_v47  ;;  %v14163_v27 = vpack.i.bf16 %v3840_v42, %v3838_v40  ;;  %v14166_v35 = vpack.i.bf16 %v3900_v13, %v3898_v7  ;;  %v14175_v18 = vld [vmem:[#allocation2 + $0x288] sm:$0xff]  ;;  %19374 = vst [vmem:[#allocation47_spill] sm:$0xff] %v14177_v59  ;;  %v3696_v7 = vrot.slane %v14170_v20, 1 }
 0x4ab   :  { %19369 = vst [vmem:[#allocation8_spill] sm:$0xff] %v14153_v10  ;;  %8600 = vrot.lane.b32.xlu1 %v14153_v10, %s10021_s18  ;;  %v3309_v54 = vmax.f32 %v3187_v62, 0.0  ;;  %v3249_v6 = vpop.f32.mrf.mxu2  ;;  %v3697_v33 = vrot.slane %v14172_v34, 1  ;;  %v3681_v62 = vrot.slane %v14177_v59, 1  ;;  %v3699_v3 = vrot.slane %v14182_v56, 1 }
 0x4ac   :  { %19370 = vst [vmem:[#allocation7_spill] sm:$0xff] %v14161_v5  ;;  %v3250_v23 = vadd.f32 %v13844_v22, %v3249_v6  ;;  %v3901_v41 = vrot.slane %v14175_v18, 2 }
 0x4ad   :  { %19371 = vst [vmem:[#allocation16_spill] sm:$0xff] %v14163_v27  ;;  %v3189_v50 = vpop.f32.mrf.mxu0 }
 0x4ae   :  { %3397 = vst.msk [vmem:[#allocation2 + $0x291] sm:$0xff] %vm22_vm0, %v3333_v49  ;;  %v3334_v12 = vmax.f32 %v3250_v23, 0.0  ;;  %v3190_v47 = vadd.f32 %v13844_v22, %v3189_v50  ;;  %v3741_v22 = vrot.slane %v14175_v18, 1  ;;  %v3841_v23 = vrot.slane %v14177_v59, 2 }
 0x4af   :  { %19372 = vst [vmem:[#allocation6_spill] sm:$0xff] %v14166_v35 }
 0x4b0   :  { %3373 = vst.msk [vmem:[#allocation2 + $0x141] sm:$0xff] %vm22_vm0, %v3309_v54  ;;  %v3310_v53 = vmax.f32 %v3190_v47, 0.0 }
 0x4b1   :  { %19373 = vst [vmem:[#allocation171_spill] sm:$0xff] %v14175_v18 }
 0x4b2   :  { %3398 = vst.msk [vmem:[#allocation2 + $0x2a1] sm:$0xff] %vm22_vm0, %v3334_v12 }
 0x4b3   :  { %3374 = vst.msk [vmem:[#allocation2 + $0x151] sm:$0xff] %vm22_vm0, %v3310_v53  ;;  %v3251_v50 = vpop.f32.mrf.mxu2 }
 0x4b4   :  { %v3252_v53 = vadd.f32 %v14199_v24, %v3251_v50 }
 0x4b5   :  { %v14179_v28 = vld [vmem:[#allocation2 + $0x290] sm:$0xff]  ;;  %v3495_v32 = vld [vmem:[#allocation2 + $0x298] sm:$0x3]  ;;  %v3191_v10 = vpop.f32.mrf.mxu0 }
 0x4b6   :  { %19375 = vst [vmem:[#allocation17_spill] sm:$0xff] %v14179_v28  ;;  %v3742_v13 = vrot.slane %v14179_v28, 1  ;;  %v3744_v49 = vrot.slane %v3495_v32, 1  ;;  %v3902_v37 = vrot.slane %v14179_v28, 2  ;;  %v3904_v31 = vrot.slane %v3495_v32, 2 }
 0x4b7   :  { %v14186_v40 = vld [vmem:[#allocation2 + $0x140] sm:$0xff]  ;;  %v3453_v42 = vld [vmem:[#allocation2 + $0x148] sm:$0x3]  ;;  %v3335_v1 = vmax.f32 %v3252_v53, 0.0  ;;  %v3192_v19 = vadd.f32 %v14199_v24, %v3191_v10 }
 0x4b8   :  { %19376 = vst [vmem:[#allocation11_spill] sm:$0xff] %v14186_v40  ;;  %v3682_v54 = vrot.slane %v14186_v40, 1  ;;  %v3684_v6 = vrot.slane %v3453_v42, 1  ;;  %v3842_v12 = vrot.slane %v14186_v40, 2  ;;  %v3844_v47 = vrot.slane %v3453_v42, 2 }
 0x4b9   :  { %v3743_v42 = vsel %vm529_vm2, %v3741_v22, %v3742_v13  ;;  %v3745_v32 = vsel %vm529_vm2, %v3742_v13, %v3744_v49  ;;  %v3903_v50 = vsel %vm690_vm3, %v3901_v41, %v3902_v37  ;;  %v3905_v28 = vsel %vm690_vm3, %v3902_v37, %v3904_v31  ;;  %3399 = vst.msk [vmem:[#allocation2 + $0x2a9] sm:$0xff] %vm22_vm0, %v3335_v1 }
 0x4ba   :  { %v3683_v60 = vsel %vm529_vm2, %v3681_v62, %v3682_v54  ;;  %v3685_v25 = vsel %vm529_vm2, %v3682_v54, %v3684_v6  ;;  %v3843_v52 = vsel %vm690_vm3, %v3841_v23, %v3842_v12  ;;  %v3845_v62 = vsel %vm690_vm3, %v3842_v12, %v3844_v47  ;;  %v14231_v6 = vld [vmem:[#allocation2 + $0x150] sm:$0xff] }
 0x4bb   :  { %v14210_v21 = vpack.i.bf16 %v3685_v25, %v3683_v60  ;;  %v3311_v54 = vmax.f32 %v3192_v19, 0.0  ;;  %v3698_v22 = vsel %vm529_vm2, %v3696_v7, %v3697_v33  ;;  %v3700_v13 = vsel %vm529_vm2, %v3697_v33, %v3699_v3  ;;  %v3254_v41 = vpop.f32.mrf.mxu2  ;;  %v14228_v19 = vld [vmem:[#allocation2 + $0x2a0] sm:$0xff] }
 0x4bc   :  { %v14220_v49 = vpack.i.bf16 %v3745_v32, %v3743_v42  ;;  %v14222_v25 = vpack.i.bf16 %v3845_v62, %v3843_v52  ;;  %v14224_v60 = vpack.i.bf16 %v3905_v28, %v3903_v50  ;;  %v3255_v31 = vadd.f32 %v14199_v24, %v3254_v41  ;;  %19381 = vst [vmem:[#allocation32_spill] sm:$0xff] %v14228_v19 }
 0x4bd   :  { %19377 = vst [vmem:[#allocation170_spill] sm:$0xff] %v14210_v21  ;;  %8605 = vrot.lane.b32.xlu2 %v14210_v21, %s10021_s18  ;;  %v8619_v1 = vpack.i.bf16 %v3700_v13, %v3698_v22  ;;  %v3194_v37 = vpop.f32.mrf.mxu0  ;;  %v3746_v28 = vrot.slane %v14228_v19, 1  ;;  %v3686_v32 = vrot.slane %v14231_v6, 1  ;;  %v3906_v62 = vrot.slane %v14228_v19, 2 }
 0x4be   :  { %19378 = vst [vmem:[#allocation147_spill] sm:$0xff] %v14220_v49  ;;  %v3336_v10 = vmax.f32 %v3255_v31, 0.0  ;;  %v3195_v7 = vadd.f32 %v14199_v24, %v3194_v37  ;;  %v3846_v41 = vrot.slane %v14231_v6, 2 }
 0x4bf   :  { %19379 = vst [vmem:[#allocation28_spill] sm:$0xff] %v14222_v25 }
 0x4c0   :  { %19380 = vst [vmem:[#allocation29_spill] sm:$0xff] %v14224_v60  ;;  %v14233_v3 = vld [vmem:[#allocation2 + $0x2a8] sm:$0xff]  ;;  %v3498_v52 = vld [vmem:[#allocation2 + $0x2b0] sm:$0x3]  ;;  %v3312_v33 = vmax.f32 %v3195_v7, 0.0 }
 0x4c1   :  { %3375 = vst.msk [vmem:[#allocation2 + $0x159] sm:$0xff] %vm22_vm0, %v3311_v54  ;;  %v3747_v23 = vrot.slane %v14233_v3, 1  ;;  %v3749_v12 = vrot.slane %v3498_v52, 1  ;;  %v3907_v47 = vrot.slane %v14233_v3, 2  ;;  %v3909_v50 = vrot.slane %v3498_v52, 2 }
 0x4c2   :  { %19382 = vst [vmem:[#allocation180_spill] sm:$0xff] %v14233_v3 }
 0x4c3   :  { %3400 = vst.msk [vmem:[#allocation2 + $0x2b9] sm:$0xff] %vm22_vm0, %v3336_v10  ;;  %v3748_v13 = vsel %vm529_vm2, %v3746_v28, %v3747_v23  ;;  %v3256_v31 = vpop.f32.mrf.mxu2  ;;  %v3908_v7 = vsel %vm690_vm3, %v3906_v62, %v3907_v47  ;;  %v3910_v18 = vsel %vm690_vm3, %v3907_v47, %v3909_v50 }
 0x4c4   :  { %3376 = vst.msk [vmem:[#allocation2 + $0x169] sm:$0xff] %vm22_vm0, %v3312_v33  ;;  %v3257_v21 = vadd.f32 %v14199_v24, %v3256_v31 }
 0x4c5   :  { %8620 = vrot.lane.b32.xlu2 %v8619_v1, %s10021_s18  ;;  %v3750_v1 = vsel %vm529_vm2, %v3747_v23, %v3749_v12  ;;  %v3196_v3 = vpop.f32.mrf.mxu0 }
 0x4c6   :  { %v3337_v12 = vmax.f32 %v3257_v21, 0.0  ;;  %v14262_v62 = vpack.i.bf16 %v3750_v1, %v3748_v13 }
 0x4c8   :  { %v14240_v53 = vld [vmem:[#allocation2 + $0x158] sm:$0xff]  ;;  %v3456_v42 = vld [vmem:[#allocation2 + $0x160] sm:$0x3]  ;;  %19384 = vst [vmem:[#allocation26_spill] sm:$0xff] %v14262_v62 }
 0x4c9   :  { %v3687_v54 = vrot.slane %v14240_v53, 1  ;;  %v3689_v22 = vrot.slane %v3456_v42, 1  ;;  %v3847_v37 = vrot.slane %v14240_v53, 2  ;;  %v3849_v10 = vrot.slane %v3456_v42, 2  ;;  %3401 = vst.msk [vmem:[#allocation2 + $0x2c1] sm:$0xff] %vm22_vm0, %v3337_v12 }
 0x4ca   :  { %v3197_v42 = vadd.f32 %v14199_v24, %v3196_v3 }
 0x4cb   :  { %v3688_v52 = vsel %vm529_vm2, %v3686_v32, %v3687_v54  ;;  %v3690_v33 = vsel %vm529_vm2, %v3687_v54, %v3689_v22  ;;  %v3848_v19 = vsel %vm690_vm3, %v3846_v41, %v3847_v37  ;;  %v3850_v23 = vsel %vm690_vm3, %v3847_v37, %v3849_v10  ;;  %v3259_v21 = vpop.f32.mrf.mxu2  ;;  %v14274_v41 = vld [vmem:[#allocation2 + $0x2b8] sm:$0xff] }
 0x4cc   :  { %v14255_v28 = vpack.i.bf16 %v3690_v33, %v3688_v52  ;;  %v14264_v32 = vpack.i.bf16 %v3850_v23, %v3848_v19  ;;  %v14266_v54 = vpack.i.bf16 %v3910_v18, %v3908_v7  ;;  %v3313_v47 = vmax.f32 %v3197_v42, 0.0  ;;  %19387 = vst [vmem:[#allocation206_spill] sm:$0xff] %v14274_v41  ;;  %v14278_v18 = vld [vmem:[#allocation2 + $0x168] sm:$0xff] }
 0x4cd   :  { %8635 = vrot.lane.b32.xlu2 %v13935_v45, %s10021_s18  ;;  %v3260_v3 = vadd.f32 %v14199_v24, %v3259_v21  ;;  %v3199_v50 = vpop.f32.mrf.mxu0  ;;  %v3751_v23 = vrot.slane %v14274_v41, 1  ;;  %v3911_v12 = vrot.slane %v14274_v41, 2 }
 0x4ce   :  { %19383 = vst [vmem:[#allocation9_spill] sm:$0xff] %v14255_v28  ;;  %8610 = vrot.lane.b32.xlu0 %v14255_v28, %s10021_s18  ;;  %v3200_v13 = vadd.f32 %v14199_v24, %v3199_v50  ;;  %v3851_v50 = vrot.slane %v14278_v18, 2 }
 0x4cf   :  { %19385 = vst [vmem:[#allocation77_spill] sm:$0xff] %v14264_v32  ;;  %v3338_v22 = vmax.f32 %v3260_v3, 0.0 }
 0x4d0   :  { %19386 = vst [vmem:[#allocation14_spill] sm:$0xff] %v14266_v54  ;;  %v14280_v19 = vld [vmem:[#allocation2 + $0x2c0] sm:$0xff]  ;;  %v3501_v31 = vld [vmem:[#allocation2 + $0x2c8] sm:$0x3]  ;;  %v3314_v1 = vmax.f32 %v3200_v13, 0.0 }
 0x4d1   :  { %3377 = vst.msk [vmem:[#allocation2 + $0x171] sm:$0xff] %vm22_vm0, %v3313_v47  ;;  %v3752_v37 = vrot.slane %v14280_v19, 1  ;;  %v3754_v10 = vrot.slane %v3501_v31, 1  ;;  %v3912_v7 = vrot.slane %v14280_v19, 2  ;;  %v3914_v42 = vrot.slane %v3501_v31, 2 }
 0x4d2   :  { %19388 = vst [vmem:[#allocation65_spill] sm:$0xff] %v14280_v19  ;;  %v3691_v47 = vrot.slane %v14278_v18, 1 }
 0x4d3   :  { %3402 = vst.msk [vmem:[#allocation2 + $0x2d1] sm:$0xff] %vm22_vm0, %v3338_v22  ;;  %v3261_v22 = vpop.f32.mrf.mxu2  ;;  %v3753_v13 = vsel %vm529_vm2, %v3751_v23, %v3752_v37  ;;  %v3913_v19 = vsel %vm690_vm3, %v3911_v12, %v3912_v7 }
 0x4d4   :  { %3378 = vst.msk [vmem:[#allocation2 + $0x181] sm:$0xff] %vm22_vm0, %v3314_v1  ;;  %v3262_v45 = vadd.f32 %v14199_v24, %v3261_v22 }
 0x4d5   :  { %8650 = vrot.lane.b32.xlu2 %v14102_v30, %s10021_s18  ;;  %v3201_v41 = vpop.f32.mrf.mxu0 }
 0x4d6   :  { %8625 = vrot.lane.b32.xlu0 %v13810_v9, %s10021_s18  ;;  %v3755_v9 = vsel %vm529_vm2, %v3752_v37, %v3754_v10  ;;  %v3915_v37 = vsel %vm690_vm3, %v3912_v7, %v3914_v42  ;;  %v3339_v10 = vmax.f32 %v3262_v45, 0.0 }
 0x4d8   :  { %v14287_v52 = vld [vmem:[#allocation2 + $0x170] sm:$0xff]  ;;  %v3459_v33 = vld [vmem:[#allocation2 + $0x178] sm:$0x3]  ;;  %3403 = vst.msk [vmem:[#allocation2 + $0x2d9] sm:$0xff] %vm22_vm0, %v3339_v10 }
 0x4d9   :  { %v3692_v21 = vrot.slane %v14287_v52, 1  ;;  %v3694_v3 = vrot.slane %v3459_v33, 1  ;;  %v3852_v30 = vrot.slane %v14287_v52, 2  ;;  %v3854_v28 = vrot.slane %v3459_v33, 2 }
 0x4da   :  { %v3202_v33 = vadd.f32 %v14199_v24, %v3201_v41  ;;  %v14323_v41 = vld [vmem:[#allocation2 + $0x2d0] sm:$0xff] }
 0x4db   :  { %v3693_v31 = vsel %vm529_vm2, %v3691_v47, %v3692_v21  ;;  %v3695_v1 = vsel %vm529_vm2, %v3692_v21, %v3694_v3  ;;  %v3853_v59 = vsel %vm690_vm3, %v3851_v50, %v3852_v30  ;;  %v3855_v23 = vsel %vm690_vm3, %v3852_v30, %v3854_v28  ;;  %v3264_v45 = vpop.f32.mrf.mxu2  ;;  %v3460_v22 = vld [vmem:[#allocation2 + $0x180] sm:$0xff] }
 0x4dc   :  { %v14302_v40 = vpack.i.bf16 %v3695_v1, %v3693_v31  ;;  %v14312_v47 = vpack.i.bf16 %v3755_v9, %v3753_v13  ;;  %v14314_v12 = vpack.i.bf16 %v3855_v23, %v3853_v59  ;;  %v3315_v21 = vmax.f32 %v3202_v33, 0.0 }
 0x4dd   :  { %8665 = vrot.lane.b32.xlu2 %v14220_v49, %s10021_s18  ;;  %v14319_v30 = vpack.i.bf16 %v3915_v37, %v3913_v19  ;;  %v3265_v28 = vadd.f32 %v14199_v24, %v3264_v45  ;;  %v3756_v19 = vrot.slane %v14323_v41, 1  ;;  %v3916_v13 = vrot.slane %v14323_v41, 2 }
 0x4de   :  { %19389 = vst [vmem:[#allocation179_spill] sm:$0xff] %v14302_v40  ;;  %8615 = vrot.lane.b32.xlu1 %v14302_v40, %s10021_s18  ;;  %8640 = vrot.lane.b32.xlu0 %v13996_v44, %s10021_s18 }
 0x4df   :  { %19390 = vst [vmem:[#allocation25_spill] sm:$0xff] %v14312_v47  ;;  %v3340_v7 = vmax.f32 %v3265_v28, 0.0  ;;  %v14329_v9 = vld [vmem:[#allocation2 + $0x2d8] sm:$0xff]  ;;  %v3504_v59 = vld [vmem:[#allocation2 + $0x2e0] sm:$0x3]  ;;  %v3942_v28 = vrot.slane %v3460_v22, 1 }
 0x4e0   :  { %19391 = vst [vmem:[#allocation15_spill] sm:$0xff] %v14314_v12  ;;  %v3757_v42 = vrot.slane %v14329_v9, 1  ;;  %v3759_v3 = vrot.slane %v3504_v59, 1  ;;  %v3917_v50 = vrot.slane %v14329_v9, 2  ;;  %v3919_v31 = vrot.slane %v3504_v59, 2 }
 0x4e1   :  { %19392 = vst [vmem:[#allocation43_spill] sm:$0xff] %v14319_v30  ;;  %v3952_v59 = vrot.slane %v3460_v22, 2 }
 0x4e2   :  { %3379 = vst.msk [vmem:[#allocation2 + $0x189] sm:$0xff] %vm22_vm0, %v3315_v21  ;;  %v3758_v37 = vsel %vm529_vm2, %v3756_v19, %v3757_v42  ;;  %v3760_v10 = vsel %vm529_vm2, %v3757_v42, %v3759_v3  ;;  %v3918_v45 = vsel %vm690_vm3, %v3916_v13, %v3917_v50 }
 0x4e3   :  { %3404 = vst.msk [vmem:[#allocation2 + $0x2e9] sm:$0xff] %vm22_vm0, %v3340_v7  ;;  %v3266_v33 = vpop.f32.mrf.mxu2  ;;  %v14338_v21 = vpack.i.bf16 %v3760_v10, %v3758_v37 }
 0x4e4   :  { %v3267_v7 = vadd.f32 %v14199_v24, %v3266_v33 }
 0x4e5   :  { %19393 = vst [vmem:[#allocation38_spill] sm:$0xff] %v14338_v21  ;;  %8680 = vrot.lane.b32.xlu2 %v14338_v21, %s10021_s18 }
 0x4e6   :  { %8630 = vrot.lane.b32.xlu1 %v13880_v26, %s10021_s18  ;;  %8655 = vrot.lane.b32.xlu0 %v14127_v51, %s10021_s18  ;;  %v3920_v51 = vsel %vm690_vm3, %v3917_v50, %v3919_v31  ;;  %v3341_v19 = vmax.f32 %v3267_v7, 0.0 }
 0x4e7   :  { %v14354_v31 = vpack.i.bf16 %v3920_v51, %v3918_v45 }
 0x4e8   :  { %3405 = vst.msk [vmem:[#allocation2 + $0x2f1] sm:$0xff] %vm22_vm0, %v3341_v19 }
 0x4e9   :  { %v3461_v1 = vld [vmem:[#allocation2 + $0x188] sm:$0xff]  ;;  %v3462_v23 = vld [vmem:[#allocation2 + $0x190] sm:$0x3]  ;;  %19395 = vst [vmem:[#allocation66_spill] sm:$0xff] %v14354_v31 }
 0x4ea   :  { %v3943_v44 = vrot.slane %v3461_v1, 1  ;;  %v3945_v49 = vrot.slane %v3462_v23, 1  ;;  %v3953_v26 = vrot.slane %v3461_v1, 2  ;;  %v3955_v37 = vrot.slane %v3462_v23, 2 }
 0x4eb   :  { %v14358_v33 = vpack.i.bf16 %v3461_v1, %v3460_v22 }
 0x4ec   :  { %v3944_v42 = vsel %vm529_vm2, %v3942_v28, %v3943_v44  ;;  %v3946_v3 = vsel %vm529_vm2, %v3943_v44, %v3945_v49  ;;  %v3954_v13 = vsel %vm690_vm3, %v3952_v59, %v3953_v26  ;;  %v3956_v10 = vsel %vm690_vm3, %v3953_v26, %v3955_v37  ;;  %v3269_v49 = vpop.f32.mrf.mxu2  ;;  %v14363_v28 = vld [vmem:[#allocation2 + $0x2e8] sm:$0xff] }
 0x4ed   :  { %v14351_v50 = vpack.i.bf16 %v3946_v3, %v3944_v42  ;;  %19396 = vst [vmem:[#allocation134_spill] sm:$0xff] %v14358_v33  ;;  %v14360_v44 = vpack.i.bf16 %v3956_v10, %v3954_v13  ;;  %v3270_v23 = vadd.f32 %v14199_v24, %v3269_v49  ;;  %v3761_v45 = vrot.slane %v14363_v28, 1  ;;  %v14374_v3 = vld [vmem:[#allocation2] sm:$0xff]  ;;  %v14377_v13 = vld [vmem:[#allocation2 + $0x8] sm:$0xff]  ;;  %v9925_v49 = vld [vmem:[#allocation2 + $0x10] sm:$0x3] }
 0x4ee   :  { %8645 = vrot.lane.b32.xlu1 %v14049_v8, %s10021_s18  ;;  %8670 = vrot.lane.b32.xlu0 %v14262_v62, %s10021_s18  ;;  %v3921_v26 = vrot.slane %v14363_v28, 2  ;;  %19398 = vst [vmem:[#allocation37_spill] sm:$0xff] %v14374_v3  ;;  %v3776_v37 = vrot.slane %v14374_v3, 2  ;;  %v3777_v10 = vrot.slane %v14377_v13, 2 }
 0x4ef   :  { %19394 = vst [vmem:[#allocation27_spill] sm:$0xff] %v14351_v50  ;;  %v3342_v7 = vmax.f32 %v3270_v23, 0.0  ;;  %v14367_v59 = vld [vmem:[#allocation2 + $0x2f0] sm:$0xff]  ;;  %v3507_v51 = vld [vmem:[#allocation2 + $0x2f8] sm:$0x3]  ;;  %v3779_v23 = vrot.slane %v9925_v49, 2 }
 0x4f0   :  { %19397 = vst [vmem:[#allocation45_spill] sm:$0xff] %v14360_v44  ;;  %v3762_v22 = vrot.slane %v14367_v59, 1  ;;  %v3764_v1 = vrot.slane %v3507_v51, 1  ;;  %v3922_v19 = vrot.slane %v14367_v59, 2  ;;  %v3924_v42 = vrot.slane %v3507_v51, 2 }
 0x4f1   :  { %3406 = vst.msk [vmem:[#allocation2 + $0x301] sm:$0xff] %vm22_vm0, %v3342_v7  ;;  %v3778_v49 = vsel %vm690_vm3, %v3776_v37, %v3777_v10 }
 0x4f2   :  { %19399 = vst [vmem:[#allocation145_spill] sm:$0xff] %v14377_v13  ;;  %v3763_v44 = vsel %vm529_vm2, %v3761_v45, %v3762_v22  ;;  %v3765_v7 = vsel %vm529_vm2, %v3762_v22, %v3764_v1  ;;  %v3923_v62 = vsel %vm690_vm3, %v3921_v26, %v3922_v19  ;;  %v3925_v21 = vsel %vm690_vm3, %v3922_v19, %v3924_v42 }
 0x4f3   :  { %v14384_v51 = vpack.i.bf16 %v3765_v7, %v3763_v44  ;;  %v14386_v50 = vpack.i.bf16 %v3925_v21, %v3923_v62  ;;  %v3780_v45 = vsel %vm690_vm3, %v3777_v10, %v3779_v23 }
 0x4f4   :  { %v8699_v26 = vpack.i.bf16 %v3780_v45, %v3778_v49 }
 0x4f5   :  { %19400 = vst [vmem:[#allocation188_spill] sm:$0xff] %v14384_v51 }
 0x4f6   :  { %8660 = vrot.lane.b32.xlu1 %v14161_v5, %s10021_s18  ;;  %v3271_v5 = vpop.f32.mrf.mxu2  ;;  %19401 = vst [vmem:[#allocation208_spill] sm:$0xff] %v14386_v50  ;;  %8685 = vrot.lane.b32.xlu0 %v14384_v51, %s10021_s18 }
 0x4f7   :  { %v3272_v3 = vadd.f32 %v14199_v24, %v3271_v5 }
 0x4f8   :  { %v14397_v21 = vld [vmem:[#allocation2 + $0x300] sm:$0xff] }
 0x4f9   :  { %v3343_v13 = vmax.f32 %v3272_v3, 0.0  ;;  %v3766_v19 = vrot.slane %v14397_v21, 1  ;;  %v3926_v42 = vrot.slane %v14397_v21, 2 }
 0x4fb   :  { %3407 = vst.msk [vmem:[#allocation2 + $0x309] sm:$0xff] %vm22_vm0, %v3343_v13 }
 0x4fe   :  { %8675 = vrot.lane.b32.xlu1 %v14312_v47, %s10021_s18  ;;  %v3274_v44 = vpop.f32.mrf.mxu2  ;;  %8700 = vrot.lane.b32.xlu0 %v8699_v26, %s10022_s6 }
 0x4ff   :  { %v3275_v62 = vadd.f32 %v14199_v24, %v3274_v44 }
 0x501   :  { %v3344_v5 = vmax.f32 %v3275_v62, 0.0 }
 0x502   :  { %v14400_v22 = vld [vmem:[#allocation2 + $0x308] sm:$0xff]  ;;  %v3510_v1 = vld [vmem:[#allocation2 + $0x310] sm:$0x3] }
 0x503   :  { %3408 = vst.msk [vmem:[#allocation2 + $0x319] sm:$0xff] %vm22_vm0, %v3344_v5  ;;  %v3767_v3 = vrot.slane %v14400_v22, 1  ;;  %v3769_v37 = vrot.slane %v3510_v1, 1  ;;  %v3927_v13 = vrot.slane %v14400_v22, 2  ;;  %v3929_v10 = vrot.slane %v3510_v1, 2 }
 0x505   :  { %v3768_v23 = vsel %vm529_vm2, %v3766_v19, %v3767_v3  ;;  %v3770_v7 = vsel %vm529_vm2, %v3767_v3, %v3769_v37  ;;  %v3928_v49 = vsel %vm690_vm3, %v3926_v42, %v3927_v13  ;;  %v3930_v45 = vsel %vm690_vm3, %v3927_v13, %v3929_v10 }
 0x506   :  { %v3276_v26 = vpop.f32.mrf.mxu2  ;;  %v14411_v44 = vpack.i.bf16 %v3770_v7, %v3768_v23  ;;  %v14413_v62 = vpack.i.bf16 %v3930_v45, %v3928_v49  ;;  %8715 = vrot.lane.b32.xlu0 %v13667_v48, %s10022_s6 }
 0x507   :  { %v3277_v5 = vadd.f32 %v14199_v24, %v3276_v26 }
 0x508   :  { %19402 = vst [vmem:[#allocation18_spill] sm:$0xff] %v14411_v44  ;;  %8690 = vrot.lane.b32.xlu1 %v14411_v44, %s10021_s18 }
 0x509   :  { %19403 = vst [vmem:[#allocation117_spill] sm:$0xff] %v14413_v62  ;;  %v3345_v1 = vmax.f32 %v3277_v5, 0.0 }
 0x50a   :  { %v14422_v3 = vld [vmem:[#allocation2 + $0x318] sm:$0xff] }
 0x50b   :  { %3409 = vst.msk [vmem:[#allocation2 + $0x321] sm:$0xff] %vm22_vm0, %v3345_v1  ;;  %v3771_v23 = vrot.slane %v14422_v3, 1  ;;  %v3931_v7 = vrot.slane %v14422_v3, 2 }
 0x50e   :  { %v3279_v19 = vpop.f32.mrf.mxu2  ;;  %8730 = vrot.lane.b32.xlu0 %v13889_v17, %s10022_s6 }
 0x50f   :  { %v3280_v42 = vadd.f32 %v14199_v24, %v3279_v19 }
 0x510   :  { %8705 = vrot.lane.b32.xlu1 %v13446_v46, %s10022_s6 }
 0x511   :  { %v3346_v37 = vmax.f32 %v3280_v42, 0.0 }
 0x512   :  { %v14428_v13 = vld [vmem:[#allocation2 + $0x320] sm:$0xff]  ;;  %v3513_v10 = vld [vmem:[#allocation2 + $0x328] sm:$0x3] }
 0x513   :  { %3410 = vst.msk [vmem:[#allocation2 + $0x331] sm:$0xff] %vm22_vm0, %v3346_v37  ;;  %v3772_v49 = vrot.slane %v14428_v13, 1  ;;  %v3774_v45 = vrot.slane %v3513_v10, 1  ;;  %v3932_v26 = vrot.slane %v14428_v13, 2  ;;  %v3934_v5 = vrot.slane %v3513_v10, 2 }
 0x515   :  { %v3773_v1 = vsel %vm529_vm2, %v3771_v23, %v3772_v49  ;;  %v3775_v19 = vsel %vm529_vm2, %v3772_v49, %v3774_v45  ;;  %v3933_v42 = vsel %vm690_vm3, %v3931_v7, %v3932_v26  ;;  %v3935_v17 = vsel %vm690_vm3, %v3932_v26, %v3934_v5  ;;  %v14450_v23 = vpop.permute.xlu2 %8545  ;;  %v14453_v7 = vpop.permute.xlu0 %8550 }
 0x516   :  { %v3281_v48 = vpop.f32.mrf.mxu2  ;;  %v14439_v51 = vpack.i.bf16 %v3775_v19, %v3773_v1  ;;  %v14442_v37 = vpack.i.bf16 %v3935_v17, %v3933_v42  ;;  %8745 = vrot.lane.b32.xlu0 %v14051_v29, %s10022_s6  ;;  %19406 = vst [vmem:[#allocation198_spill] sm:$0xff] %v14450_v23 }
 0x517   :  { %v3282_v46 = vadd.f32 %v14199_v24, %v3281_v48  ;;  %19407 = vst [vmem:[#allocation232_spill] sm:$0xff] %v14453_v7 }
 0x518   :  { %19404 = vst [vmem:[#allocation137_spill] sm:$0xff] %v14439_v51  ;;  %8720 = vrot.lane.b32.xlu1 %v13744_v36, %s10022_s6  ;;  %8695 = vrot.lane.b32.xlu2 %v14439_v51, %s10021_s18 }
 0x519   :  { %19405 = vst [vmem:[#allocation156_spill] sm:$0xff] %v14442_v37  ;;  %v3347_v10 = vmax.f32 %v3282_v46, 0.0  ;;  %v14461_v46 = vpop.permute.xlu1 %8540 }
 0x51a   :  { %v3514_v49 = vld [vmem:[#allocation2 + $0x330] sm:$0xff]  ;;  %19408 = vst [vmem:[#allocation41_spill] sm:$0xff] %v14461_v46 }
 0x51b   :  { %3411 = vst.msk [vmem:[#allocation2 + $0x339] sm:$0xff] %vm22_vm0, %v3347_v10  ;;  %v3947_v17 = vrot.slane %v3514_v49, 1  ;;  %v3957_v1 = vrot.slane %v3514_v49, 2 }
 0x51d   :  { %v14463_v45 = vpop.permute.xlu2 %8560  ;;  %v14465_v42 = vpop.permute.xlu0 %8565 }
 0x51e   :  { %8760 = vrot.lane.b32.xlu0 %v14163_v27, %s10022_s6  ;;  %19409 = vst [vmem:[#allocation118_spill] sm:$0xff] %v14463_v45 }
 0x520   :  { %8735 = vrot.lane.b32.xlu1 %v13937_v38, %s10022_s6  ;;  %8710 = vrot.lane.b32.xlu2 %v13584_v0, %s10022_s6 }
 0x522   :  { %v3515_v48 = vld [vmem:[#allocation2 + $0x338] sm:$0xff]  ;;  %v3516_v24 = vld [vmem:[#allocation2 + $0x340] sm:$0x3] }
 0x523   :  { %v3948_v26 = vrot.slane %v3515_v48, 1  ;;  %v3950_v5 = vrot.slane %v3516_v24, 1  ;;  %v3958_v19 = vrot.slane %v3515_v48, 2  ;;  %v3960_v10 = vrot.slane %v3516_v24, 2 }
 0x524   :  { %v14467_v7 = vpack.i.bf16 %v3515_v48, %v3514_v49  ;;  %v14485_v48 = vpop.permute.xlu1 %8555 }
 0x525   :  { %v3949_v23 = vsel %vm529_vm2, %v3947_v17, %v3948_v26  ;;  %v3951_v27 = vsel %vm529_vm2, %v3948_v26, %v3950_v5  ;;  %v3959_v46 = vsel %vm690_vm3, %v3957_v1, %v3958_v19  ;;  %v3961_v0 = vsel %vm690_vm3, %v3958_v19, %v3960_v10  ;;  %v14483_v49 = vpop.permute.xlu2 %8575  ;;  %v14487_v24 = vpop.permute.xlu0 %8580 }
 0x526   :  { %19410 = vst [vmem:[#allocation138_spill] sm:$0xff] %v14467_v7  ;;  %v14472_v29 = vpack.i.bf16 %v3951_v27, %v3949_v23  ;;  %v14475_v45 = vpack.i.bf16 %v3961_v0, %v3959_v46  ;;  %8775 = vrot.lane.b32.xlu0 %v14314_v12, %s10022_s6  ;;  %v3856_v27 = vrot.slane %v14170_v20, 2  ;;  %v3857_v0 = vrot.slane %v14172_v34, 2 }
 0x527   :  { %v3859_v23 = vrot.slane %v14182_v56, 2 }
 0x528   :  { %19411 = vst [vmem:[#allocation64_spill] sm:$0xff] %v14472_v29  ;;  %8750 = vrot.lane.b32.xlu1 %v14104_v57, %s10022_s6  ;;  %8725 = vrot.lane.b32.xlu2 %v13812_v15, %s10022_s6  ;;  %v3858_v46 = vsel %vm690_vm3, %v3856_v27, %v3857_v0 }
 0x529   :  { %19412 = vst [vmem:[#allocation191_spill] sm:$0xff] %v14475_v45  ;;  %v3860_v17 = vsel %vm690_vm3, %v3857_v0, %v3859_v23  ;;  %v14551_v45 = vld [vmem:[#allocation2 + $0x38] sm:$0xff] }
 0x52a   :  { %v8779_v56 = vpack.i.bf16 %v3860_v17, %v3858_v46 }
 0x52c   :  { %v14502_v20 = vpop.permute.xlu1 %8570 }
 0x52d   :  { %v14500_v26 = vpop.permute.xlu2 %8590  ;;  %v14504_v34 = vpop.permute.xlu0 %8595 }
 0x52e   :  { %8790 = vrot.lane.b32.xlu0 %v13891_v4, %s10022_s6  ;;  %19413 = vst [vmem:[#allocation51_spill] sm:$0xff] %v14504_v34  ;;  %v8924_v34 = vpack.i.bf16 %v14240_v53, %v14231_v6 }
 0x530   :  { %8765 = vrot.lane.b32.xlu1 %v14222_v25, %s10022_s6  ;;  %8740 = vrot.lane.b32.xlu2 %v14002_v11, %s10022_s6 }
 0x534   :  { %v14513_v1 = vpop.permute.xlu1 %8585 }
 0x535   :  { %v14511_v5 = vpop.permute.xlu2 %8605 }
 0x536   :  { %8805 = vrot.lane.b32.xlu0 %v14053_v61, %s10022_s6  ;;  %19414 = vst [vmem:[#allocation219_spill] sm:$0xff] %v14511_v5  ;;  %v14615_v61 = vld [vmem:[#allocation2 + $0x108] sm:$0xff] }
 0x537   :  { %19437 = vst [vmem:[#allocation71_spill] sm:$0xff] %v14615_v61 }
 0x538   :  { %8780 = vrot.lane.b32.xlu1 %v8779_v56, %s10022_s6  ;;  %8755 = vrot.lane.b32.xlu2 %v14129_v2, %s10022_s6 }
 0x53c   :  { %v14523_v10 = vpop.permute.xlu1 %8600 }
 0x53d   :  { %19416 = vst [vmem:[#allocation151_spill] sm:$0xff] %v14523_v10  ;;  %v14527_v0 = vpop.permute.xlu2 %8620 }
 0x53e   :  { %8820 = vrot.lane.b32.xlu0 %v14166_v35, %s10022_s6  ;;  %19418 = vst [vmem:[#allocation49_spill] sm:$0xff] %v14527_v0  ;;  %v14587_v35 = vld [vmem:[#allocation2 + $0xc0] sm:$0xff]  ;;  %v14595_v0 = vld [vmem:[#allocation2 + $0x48] sm:$0xff] }
 0x53f   :  { %19430 = vst [vmem:[#allocation220_spill] sm:$0xff] %v14587_v35 }
 0x540   :  { %v14515_v19 = vpop.permute.xlu0 %8610  ;;  %8795 = vrot.lane.b32.xlu1 %v13939_v55, %s10022_s6  ;;  %8770 = vrot.lane.b32.xlu2 %v14264_v32, %s10022_s6 }
 0x541   :  { %19415 = vst [vmem:[#allocation42_spill] sm:$0xff] %v14515_v19 }
 0x545   :  { %v14539_v17 = vpop.permute.xlu2 %8635 }
 0x546   :  { %8835 = vrot.lane.b32.xlu0 %v14319_v30, %s10022_s6  ;;  %19421 = vst [vmem:[#allocation207_spill] sm:$0xff] %v14539_v17  ;;  %v14549_v30 = vld [vmem:[#allocation2 + $0x30] sm:$0xff] }
 0x548   :  { %v14525_v27 = vpop.permute.xlu0 %8625  ;;  %8810 = vrot.lane.b32.xlu1 %v14106_v39, %s10022_s6  ;;  %8785 = vrot.lane.b32.xlu2 %v13814_v43, %s10022_s6 }
 0x549   :  { %19417 = vst [vmem:[#allocation55_spill] sm:$0xff] %v14525_v27  ;;  %v14571_v27 = vld [vmem:[#allocation2 + $0x80] sm:$0xff] }
 0x54e   :  { %8850 = vrot.lane.b32.xlu0 %v14413_v62, %s10022_s6  ;;  %v14563_v62 = vpop.permute.xlu2 %8650 }
 0x54f   :  { %19425 = vst [vmem:[#allocation120_spill] sm:$0xff] %v14563_v62  ;;  %v14589_v62 = vld [vmem:[#allocation2 + $0xc8] sm:$0xff] }
 0x550   :  { %v14535_v23 = vpop.permute.xlu1 %8615  ;;  %v14537_v46 = vpop.permute.xlu0 %8640  ;;  %8825 = vrot.lane.b32.xlu1 %v14224_v60, %s10022_s6  ;;  %8800 = vrot.lane.b32.xlu2 %v14007_v58, %s10022_s6  ;;  %19431 = vst [vmem:[#allocation35_spill] sm:$0xff] %v14589_v62  ;;  %v14593_v17 = vpack.i.bf16 %v14589_v62, %v14587_v35  ;;  %v14617_v35 = vld [vmem:[#allocation2 + $0x110] sm:$0xff]  ;;  %v14650_v62 = vld [vmem:[#allocation2 + $0xd8] sm:$0xff] }
 0x551   :  { %19419 = vst [vmem:[#allocation129_spill] sm:$0xff] %v14535_v23  ;;  %v14569_v23 = vld [vmem:[#allocation2 + $0x78] sm:$0xff] }
 0x552   :  { %19420 = vst [vmem:[#allocation160_spill] sm:$0xff] %v14537_v46  ;;  %v14555_v46 = vpack.i.bf16 %v14551_v45, %v14549_v30 }
 0x553   :  { %19432 = vst [vmem:[#allocation33_spill] sm:$0xff] %v14593_v17 }
 0x554   :  { %19423 = vst [vmem:[#allocation226_spill] sm:$0xff] %v14555_v46 }
 0x555   :  { %19438 = vst [vmem:[#allocation31_spill] sm:$0xff] %v14617_v35 }
 0x556   :  { %8865 = vrot.lane.b32.xlu0 %v14555_v46, %s10023_s9  ;;  %19446 = vst [vmem:[#allocation52_spill] sm:$0xff] %v14650_v62 }
 0x558   :  { %v14547_v56 = vpop.permute.xlu1 %8630  ;;  %v14557_v19 = vpop.permute.xlu0 %8655  ;;  %8840 = vrot.lane.b32.xlu1 %v14354_v31, %s10022_s6  ;;  %8815 = vrot.lane.b32.xlu2 %v14131_v16, %s10022_s6 }
 0x559   :  { %19422 = vst [vmem:[#allocation56_spill] sm:$0xff] %v14547_v56 }
 0x55a   :  { %19424 = vst [vmem:[#allocation63_spill] sm:$0xff] %v14557_v19  ;;  %v14575_v19 = vpack.i.bf16 %v14571_v27, %v14569_v23 }
 0x55c   :  { %19427 = vst [vmem:[#allocation146_spill] sm:$0xff] %v14575_v19 }
 0x55e   :  { %8880 = vrot.lane.b32.xlu0 %v14575_v19, %s10023_s9  ;;  %v14597_v19 = vld [vmem:[#allocation2 + $0x50] sm:$0xff] }
 0x55f   :  { %v14601_v10 = vpack.i.bf16 %v14597_v19, %v14595_v0 }
 0x560   :  { %v14567_v56 = vpop.permute.xlu1 %8645  ;;  %8855 = vrot.lane.b32.xlu1 %v14442_v37, %s10022_s6  ;;  %8830 = vrot.lane.b32.xlu2 %v14266_v54, %s10022_s6  ;;  %v14583_v46 = vpop.permute.xlu0 %8670  ;;  %v14623_v54 = vld [vmem:[#allocation2 + $0x90] sm:$0xff] }
 0x561   :  { %19426 = vst [vmem:[#allocation67_spill] sm:$0xff] %v14567_v56  ;;  %v14585_v56 = vpop.permute.xlu2 %8665 }
 0x562   :  { %19428 = vst [vmem:[#allocation59_spill] sm:$0xff] %v14583_v46 }
 0x563   :  { %19429 = vst [vmem:[#allocation166_spill] sm:$0xff] %v14585_v56 }
 0x564   :  { %19433 = vst [vmem:[#allocation74_spill] sm:$0xff] %v14601_v10 }
 0x565   :  { %19440 = vst [vmem:[#allocation149_spill] sm:$0xff] %v14623_v54 }
 0x566   :  { %8895 = vrot.lane.b32.xlu0 %v14593_v17, %s10023_s9  ;;  %v14625_v17 = vld [vmem:[#allocation2 + $0x98] sm:$0xff] }
 0x567   :  { %19441 = vst [vmem:[#allocation158_spill] sm:$0xff] %v14625_v17 }
 0x568   :  { %v14603_v5 = vpop.permute.xlu1 %8660  ;;  %8870 = vrot.lane.b32.xlu1 %v14601_v10, %s10023_s9  ;;  %8845 = vrot.lane.b32.xlu2 %v14386_v50, %s10022_s6  ;;  %v14611_v46 = vpop.permute.xlu0 %8685  ;;  %v14629_v10 = vpack.i.bf16 %v14625_v17, %v14623_v54  ;;  %v14631_v50 = vld [vmem:[#allocation2 + $0x18] sm:$0xff]  ;;  %v14652_v54 = vld [vmem:[#allocation2 + $0xe0] sm:$0xff]  ;;  %v14687_v17 = vld [vmem:[#allocation2 + $0xb0] sm:$0xff] }
 0x569   :  { %19434 = vst [vmem:[#allocation85_spill] sm:$0xff] %v14603_v5  ;;  %v14613_v56 = vpop.permute.xlu2 %8680  ;;  %v14621_v5 = vpack.i.bf16 %v14617_v35, %v14615_v61 }
 0x56a   :  { %19435 = vst [vmem:[#allocation78_spill] sm:$0xff] %v14611_v46  ;;  %v14633_v46 = vld [vmem:[#allocation2 + $0x20] sm:$0xff] }
 0x56b   :  { %19436 = vst [vmem:[#allocation209_spill] sm:$0xff] %v14613_v56  ;;  %v8859_v56 = vpack.i.bf16 %v14633_v46, %v14631_v50 }
 0x56c   :  { %19439 = vst [vmem:[#allocation72_spill] sm:$0xff] %v14621_v5 }
 0x56d   :  { %19442 = vst [vmem:[#allocation119_spill] sm:$0xff] %v14629_v10 }
 0x56e   :  { %8910 = vrot.lane.b32.xlu0 %v14621_v5, %s10023_s9  ;;  %19447 = vst [vmem:[#allocation123_spill] sm:$0xff] %v14652_v54  ;;  %v14656_v5 = vpack.i.bf16 %v14652_v54, %v14650_v62  ;;  %v14679_v62 = vld [vmem:[#allocation2 + $0x1d0] sm:$0xff] }
 0x56f   :  { %19454 = vst [vmem:[#allocation36_spill] sm:$0xff] %v14679_v62 }
 0x570   :  { %8885 = vrot.lane.b32.xlu1 %v14629_v10, %s10023_s9  ;;  %8860 = vrot.lane.b32.xlu2 %v8859_v56, %s10023_s9  ;;  %v14642_v61 = vpop.permute.xlu1 %8675  ;;  %v14644_v35 = vpop.permute.xlu0 %8700  ;;  %19448 = vst [vmem:[#allocation139_spill] sm:$0xff] %v14656_v5  ;;  %v14658_v10 = vld [vmem:[#allocation2 + $0x60] sm:$0xff]  ;;  %v14660_v56 = vld [vmem:[#allocation2 + $0x68] sm:$0xff] }
 0x571   :  { %19443 = vst [vmem:[#allocation192_spill] sm:$0xff] %v14642_v61  ;;  %v14677_v61 = vld [vmem:[#allocation2 + $0x1c8] sm:$0xff] }
 0x572   :  { %19444 = vst [vmem:[#allocation121_spill] sm:$0xff] %v14644_v35  ;;  %v14646_v37 = vpop.permute.xlu2 %8695  ;;  %v14664_v35 = vpack.i.bf16 %v14660_v56, %v14658_v10  ;;  %v8939_v54 = vpack.i.bf16 %v14679_v62, %v14677_v61 }
 0x573   :  { %19445 = vst [vmem:[#allocation211_spill] sm:$0xff] %v14646_v37 }
 0x574   :  { %19449 = vst [vmem:[#allocation124_spill] sm:$0xff] %v14664_v35 }
 0x575   :  { %19453 = vst [vmem:[#allocation127_spill] sm:$0xff] %v14677_v61 }
 0x576   :  { %8925 = vrot.lane.b32.xlu0 %v8924_v34, %s10023_s9  ;;  %v8914_v34 = vpack.i.bf16 %v14140_v14, %v14137_v63  ;;  %v14703_v14 = vld [vmem:[#allocation2 + $0x210] sm:$0xff] }
 0x577   :  { %19459 = vst [vmem:[#allocation161_spill] sm:$0xff] %v14703_v14 }
 0x578   :  { %8900 = vrot.lane.b32.xlu1 %v14656_v5, %s10023_s9  ;;  %8875 = vrot.lane.b32.xlu2 %v14664_v35, %s10023_s9  ;;  %v14673_v53 = vpop.permute.xlu0 %8715  ;;  %v14685_v5 = vld [vmem:[#allocation2 + $0xa8] sm:$0xff] }
 0x579   :  { %19451 = vst [vmem:[#allocation162_spill] sm:$0xff] %v14673_v53  ;;  %v14691_v35 = vpack.i.bf16 %v14687_v17, %v14685_v5 }
 0x57a   :  { %v14671_v6 = vpop.permute.xlu1 %8690  ;;  %v14675_v37 = vpop.permute.xlu2 %8710 }
 0x57b   :  { %19450 = vst [vmem:[#allocation163_spill] sm:$0xff] %v14671_v6  ;;  %v14705_v6 = vld [vmem:[#allocation2 + $0x218] sm:$0xff] }
 0x57c   :  { %19452 = vst [vmem:[#allocation201_spill] sm:$0xff] %v14675_v37  ;;  %v14709_v61 = vpack.i.bf16 %v14705_v6, %v14703_v14  ;;  %v14734_v14 = vld [vmem:[#allocation2 + $0x260] sm:$0xff] }
 0x57d   :  { %19455 = vst [vmem:[#allocation68_spill] sm:$0xff] %v14691_v35 }
 0x57e   :  { %8940 = vrot.lane.b32.xlu0 %v8939_v54, %s10023_s9  ;;  %19460 = vst [vmem:[#allocation30_spill] sm:$0xff] %v14705_v6  ;;  %v8929_v54 = vpack.i.bf16 %v14287_v52, %v14278_v18  ;;  %v14732_v52 = vld [vmem:[#allocation2 + $0x258] sm:$0xff] }
 0x57f   :  { %19461 = vst [vmem:[#allocation76_spill] sm:$0xff] %v14709_v61  ;;  %v14738_v6 = vpack.i.bf16 %v14734_v14, %v14732_v52 }
 0x580   :  { %8915 = vrot.lane.b32.xlu1 %v8914_v34, %s10023_s9  ;;  %8890 = vrot.lane.b32.xlu2 %v14691_v35, %s10023_s9  ;;  %v14697_v37 = vpop.permute.xlu0 %8730  ;;  %v14713_v34 = vld [vmem:[#allocation2 + $0xf0] sm:$0xff]  ;;  %v14715_v35 = vld [vmem:[#allocation2 + $0xf8] sm:$0xff]  ;;  %19468 = vst [vmem:[#allocation20_spill] sm:$0xff] %v14732_v52 }
 0x581   :  { %19456 = vst [vmem:[#allocation87_spill] sm:$0xff] %v14697_v37 }
 0x582   :  { %v14699_v53 = vpop.permute.xlu1 %8705  ;;  %v14701_v63 = vpop.permute.xlu2 %8725  ;;  %19462 = vst [vmem:[#allocation130_spill] sm:$0xff] %v14713_v34 }
 0x583   :  { %19457 = vst [vmem:[#allocation128_spill] sm:$0xff] %v14699_v53  ;;  %v14719_v53 = vpack.i.bf16 %v14715_v35, %v14713_v34  ;;  %v19479_v34 = vld [vmem:[#allocation32_spill] sm:$0xff] }
 0x584   :  { %19458 = vst [vmem:[#allocation169_spill] sm:$0xff] %v14701_v63 }
 0x585   :  { %19463 = vst [vmem:[#allocation194_spill] sm:$0xff] %v14715_v35  ;;  %v14763_v35 = vld [vmem:[#allocation2 + $0x228] sm:$0xff] }
 0x586   :  { %19464 = vst [vmem:[#allocation221_spill] sm:$0xff] %v14719_v53  ;;  %8955 = vrot.lane.b32.xlu0 %v14709_v61, %s10023_s9  ;;  %v14740_v61 = vld [vmem:[#allocation2 + $0x1e0] sm:$0xff] }
 0x587   :  { %19469 = vst [vmem:[#allocation165_spill] sm:$0xff] %v14734_v14 }
 0x588   :  { %8930 = vrot.lane.b32.xlu1 %v8929_v54, %s10023_s9  ;;  %8905 = vrot.lane.b32.xlu2 %v14719_v53, %s10023_s9  ;;  %v14726_v63 = vpop.permute.xlu0 %8745  ;;  %19470 = vst [vmem:[#allocation136_spill] sm:$0xff] %v14738_v6  ;;  %v14742_v54 = vld [vmem:[#allocation2 + $0x1e8] sm:$0xff] }
 0x589   :  { %19465 = vst [vmem:[#allocation44_spill] sm:$0xff] %v14726_v63  ;;  %v14746_v53 = vpack.i.bf16 %v14742_v54, %v14740_v61  ;;  %v19474_v63 = vld [vmem:[#allocation47_spill] sm:$0xff] }
 0x58a   :  { %v14728_v37 = vpop.permute.xlu1 %8720  ;;  %v14730_v18 = vpop.permute.xlu2 %8740  ;;  %19471 = vst [vmem:[#allocation167_spill] sm:$0xff] %v14740_v61  ;;  %v19480_v61 = vld [vmem:[#allocation180_spill] sm:$0xff] }
 0x58b   :  { %19466 = vst [vmem:[#allocation69_spill] sm:$0xff] %v14728_v37  ;;  %v19475_v37 = vld [vmem:[#allocation11_spill] sm:$0xff] }
 0x58c   :  { %19467 = vst [vmem:[#allocation132_spill] sm:$0xff] %v14730_v18  ;;  %v8919_v62 = vpack.i.bf16 %v19475_v37, %v19474_v63  ;;  %v14765_v37 = vld [vmem:[#allocation2 + $0x230] sm:$0xff] }
 0x58d   :  { %19472 = vst [vmem:[#allocation210_spill] sm:$0xff] %v14742_v54  ;;  %v8984_v54 = vpack.i.bf16 %v19480_v61, %v19479_v34  ;;  %v14769_v63 = vpack.i.bf16 %v14765_v37, %v14763_v35  ;;  %v14784_v34 = vpack.i.bf16 %v14367_v59, %v14363_v28 }
 0x58e   :  { %19473 = vst [vmem:[#allocation229_spill] sm:$0xff] %v14746_v53  ;;  %8970 = vrot.lane.b32.xlu0 %v14738_v6, %s10023_s9 }
 0x58f   :  { %19481 = vst [vmem:[#allocation150_spill] sm:$0xff] %v14769_v63 }
 0x590   :  { %8945 = vrot.lane.b32.xlu1 %v14746_v53, %s10023_s9  ;;  %8920 = vrot.lane.b32.xlu2 %v8919_v62, %s10023_s9  ;;  %v14755_v18 = vpop.permute.xlu0 %8760  ;;  %19485 = vst [vmem:[#allocation54_spill] sm:$0xff] %v14784_v34  ;;  %v14786_v53 = vld [vmem:[#allocation2 + $0x270] sm:$0xff] }
 0x591   :  { %19476 = vst [vmem:[#allocation164_spill] sm:$0xff] %v14755_v18 }
 0x592   :  { %v14757_v52 = vpop.permute.xlu1 %8735  ;;  %v14759_v14 = vpop.permute.xlu2 %8755  ;;  %19486 = vst [vmem:[#allocation91_spill] sm:$0xff] %v14786_v53 }
 0x593   :  { %19477 = vst [vmem:[#allocation140_spill] sm:$0xff] %v14757_v52  ;;  %v19494_v52 = vld [vmem:[#allocation65_spill] sm:$0xff] }
 0x594   :  { %19478 = vst [vmem:[#allocation141_spill] sm:$0xff] %v14759_v14  ;;  %v14788_v14 = vld [vmem:[#allocation2 + $0x278] sm:$0xff] }
 0x595   :  { %19487 = vst [vmem:[#allocation40_spill] sm:$0xff] %v14788_v14 }
 0x596   :  { %8985 = vrot.lane.b32.xlu0 %v8984_v54, %s10023_s9  ;;  %v14792_v54 = vpack.i.bf16 %v14788_v14, %v14786_v53  ;;  %v14816_v53 = vld [vmem:[#allocation2 + $0x240] sm:$0xff]  ;;  %v14818_v14 = vld [vmem:[#allocation2 + $0x248] sm:$0xff] }
 0x598   :  { %8960 = vrot.lane.b32.xlu1 %v14769_v63, %s10023_s9  ;;  %8935 = vrot.lane.b32.xlu2 %v14358_v33, %s10023_s9  ;;  %v14776_v62 = vpop.permute.xlu0 %8775  ;;  %19488 = vst [vmem:[#allocation152_spill] sm:$0xff] %v14792_v54  ;;  %v14794_v63 = vld [vmem:[#allocation2 + $0x1f8] sm:$0xff]  ;;  %v14796_v33 = vld [vmem:[#allocation2 + $0x200] sm:$0xff] }
 0x599   :  { %19482 = vst [vmem:[#allocation175_spill] sm:$0xff] %v14776_v62  ;;  %v19493_v62 = vld [vmem:[#allocation206_spill] sm:$0xff] }
 0x59a   :  { %v14778_v6 = vpop.permute.xlu1 %8750  ;;  %v14780_v61 = vpop.permute.xlu2 %8770  ;;  %v8989_v18 = vpack.i.bf16 %v19494_v52, %v19493_v62  ;;  %v14837_v62 = vpack.i.bf16 %v14400_v22, %v14397_v21  ;;  %v8994_v21 = vpack.i.bf16 %v14329_v9, %v14323_v41  ;;  %v19504_v22 = vld [vmem:[#allocation101_spill] sm:$0xff]  ;;  %v19510_v41 = vld [vmem:[#allocation110_spill] sm:$0xff] }
 0x59b   :  { %19483 = vst [vmem:[#allocation222_spill] sm:$0xff] %v14778_v6  ;;  %v14800_v6 = vpack.i.bf16 %v14796_v33, %v14794_v63  ;;  %v19511_v9 = vld [vmem:[#allocation97_spill] sm:$0xff] }
 0x59c   :  { %19484 = vst [vmem:[#allocation50_spill] sm:$0xff] %v14780_v61 }
 0x59d   :  { %19489 = vst [vmem:[#allocation212_spill] sm:$0xff] %v14800_v6 }
 0x59e   :  { %9000 = vrot.lane.b32.xlu0 %v14784_v34, %s10023_s9  ;;  %v14822_v34 = vpack.i.bf16 %v14818_v14, %v14816_v53  ;;  %19497 = vst [vmem:[#allocation46_spill] sm:$0xff] %v14837_v62 }
 0x5a0   :  { %8975 = vrot.lane.b32.xlu1 %v14792_v54, %s10023_s9  ;;  %8950 = vrot.lane.b32.xlu2 %v14800_v6, %s10023_s9  ;;  %v14808_v28 = vpop.permute.xlu0 %8790  ;;  %19495 = vst [vmem:[#allocation195_spill] sm:$0xff] %v14822_v34 }
 0x5a1   :  { %19490 = vst [vmem:[#allocation233_spill] sm:$0xff] %v14808_v28 }
 0x5a2   :  { %v14810_v59 = vpop.permute.xlu1 %8765  ;;  %v14812_v61 = vpop.permute.xlu2 %8785 }
 0x5a3   :  { %19491 = vst [vmem:[#allocation173_spill] sm:$0xff] %v14810_v59  ;;  %v19499_v59 = vld [vmem:[#allocation17_spill] sm:$0xff] }
 0x5a4   :  { %19492 = vst [vmem:[#allocation142_spill] sm:$0xff] %v14812_v61  ;;  %v19498_v61 = vld [vmem:[#allocation171_spill] sm:$0xff] }
 0x5a5   :  { %v8979_v28 = vpack.i.bf16 %v19499_v59, %v19498_v61  ;;  %v19505_v61 = vld [vmem:[#allocation92_spill] sm:$0xff] }
 0x5a6   :  { %9015 = vrot.lane.b32.xlu0 %v14467_v7, %s10023_s9  ;;  %v19500_v7 = vld [vmem:[#allocation186_spill] sm:$0xff] }
 0x5a8   :  { %8990 = vrot.lane.b32.xlu1 %v8989_v18, %s10023_s9  ;;  %8965 = vrot.lane.b32.xlu2 %v14822_v34, %s10023_s9  ;;  %v14829_v6 = vpop.permute.xlu0 %8805 }
 0x5aa   :  { %v14831_v54 = vpop.permute.xlu1 %8780  ;;  %v14833_v52 = vpop.permute.xlu2 %8800 }
 0x5ab   :  { %19496 = vst [vmem:[#allocation214_spill] sm:$0xff] %v14833_v52 }
 0x5ae   :  { %9030 = vrot.lane.b32.xlu0 %v19500_v7, %s10024_s12 }
 0x5b0   :  { %9005 = vrot.lane.b32.xlu1 %v14837_v62, %s10023_s9  ;;  %8980 = vrot.lane.b32.xlu2 %v8979_v28, %s10023_s9  ;;  %v14846_v18 = vpop.permute.xlu0 %8820  ;;  %v14867_v62 = vpack.i.bf16 %v14428_v13, %v14422_v3  ;;  %v19516_v3 = vld [vmem:[#allocation135_spill] sm:$0xff]  ;;  %v19517_v13 = vld [vmem:[#allocation182_spill] sm:$0xff] }
 0x5b1   :  { %19501 = vst [vmem:[#allocation178_spill] sm:$0xff] %v14846_v18  ;;  %v19633_v18 = vld [vmem:[#allocation71_spill] sm:$0xff] }
 0x5b2   :  { %v14848_v34 = vpop.permute.xlu1 %8795  ;;  %v14850_v52 = vpop.permute.xlu2 %8815  ;;  %19509 = vst [vmem:[#allocation21_spill] sm:$0xff] %v14867_v62 }
 0x5b3   :  { %19502 = vst [vmem:[#allocation143_spill] sm:$0xff] %v14848_v34 }
 0x5b4   :  { %19503 = vst [vmem:[#allocation144_spill] sm:$0xff] %v14850_v52  ;;  %v19632_v52 = vld [vmem:[#allocation120_spill] sm:$0xff] }
 0x5b5   :  { %v8652_v34 = vunpack.i.l.bf16 %v19632_v52 }
 0x5b6   :  { %9045 = vrot.lane.b32.xlu0 %v19504_v22, %s10024_s12 }
 0x5b8   :  { %9020 = vrot.lane.b32.xlu1 %v19505_v61, %s10024_s12  ;;  %8995 = vrot.lane.b32.xlu2 %v8994_v21, %s10023_s9  ;;  %v14859_v59 = vpop.permute.xlu0 %8835 }
 0x5b9   :  { %19506 = vst [vmem:[#allocation172_spill] sm:$0xff] %v14859_v59  ;;  %v19631_v59 = vld [vmem:[#allocation207_spill] sm:$0xff] }
 0x5ba   :  { %v14861_v28 = vpop.permute.xlu1 %8810  ;;  %v14863_v7 = vpop.permute.xlu2 %8830 }
 0x5bb   :  { %19507 = vst [vmem:[#allocation75_spill] sm:$0xff] %v14861_v28 }
 0x5bc   :  { %19508 = vst [vmem:[#allocation204_spill] sm:$0xff] %v14863_v7  ;;  %v19515_v7 = vld [vmem:[#allocation8_spill] sm:$0xff] }
 0x5be   :  { %9060 = vrot.lane.b32.xlu0 %v19510_v41, %s10024_s12 }
 0x5c0   :  { %9035 = vrot.lane.b32.xlu1 %v19511_v9, %s10024_s12  ;;  %9010 = vrot.lane.b32.xlu2 %v14867_v62, %s10023_s9  ;;  %v14875_v21 = vpop.permute.xlu0 %8850 }
 0x5c1   :  { %19512 = vst [vmem:[#allocation168_spill] sm:$0xff] %v14875_v21 }
 0x5c2   :  { %v14877_v61 = vpop.permute.xlu1 %8825  ;;  %v14879_v22 = vpop.permute.xlu2 %8845 }
 0x5c3   :  { %19513 = vst [vmem:[#allocation73_spill] sm:$0xff] %v14877_v61 }
 0x5c4   :  { %19514 = vst [vmem:[#allocation196_spill] sm:$0xff] %v14879_v22  ;;  %v19521_v22 = vld [vmem:[#allocation153_spill] sm:$0xff] }
 0x5c6   :  { %9075 = vrot.lane.b32.xlu0 %v19515_v7, %s10024_s12  ;;  %v19522_v7 = vld [vmem:[#allocation99_spill] sm:$0xff] }
 0x5c8   :  { %9050 = vrot.lane.b32.xlu1 %v19516_v3, %s10024_s12  ;;  %9025 = vrot.lane.b32.xlu2 %v19517_v13, %s10024_s12  ;;  %v14887_v41 = vpop.permute.xlu0 %8865 }
 0x5c9   :  { %19518 = vst [vmem:[#allocation83_spill] sm:$0xff] %v14887_v41  ;;  %v19526_v41 = vld [vmem:[#allocation102_spill] sm:$0xff] }
 0x5ca   :  { %v14889_v9 = vpop.permute.xlu1 %8840  ;;  %v14891_v62 = vpop.permute.xlu2 %8860 }
 0x5cb   :  { %19519 = vst [vmem:[#allocation223_spill] sm:$0xff] %v14889_v9 }
 0x5cc   :  { %19520 = vst [vmem:[#allocation70_spill] sm:$0xff] %v14891_v62  ;;  %v19527_v62 = vld [vmem:[#allocation170_spill] sm:$0xff] }
 0x5ce   :  { %9090 = vrot.lane.b32.xlu0 %v14302_v40, %s10024_s12  ;;  %v19528_v40 = vld [vmem:[#allocation106_spill] sm:$0xff] }
 0x5d0   :  { %9065 = vrot.lane.b32.xlu1 %v19521_v22, %s10024_s12  ;;  %9040 = vrot.lane.b32.xlu2 %v19522_v7, %s10024_s12  ;;  %v14899_v61 = vpop.permute.xlu0 %8880 }
 0x5d1   :  { %19523 = vst [vmem:[#allocation82_spill] sm:$0xff] %v14899_v61  ;;  %v19627_v61 = vld [vmem:[#allocation151_spill] sm:$0xff] }
 0x5d2   :  { %v14901_v3 = vpop.permute.xlu1 %8855  ;;  %v14903_v13 = vpop.permute.xlu2 %8875  ;;  %v8602_v21 = vunpack.i.l.bf16 %v19627_v61 }
 0x5d3   :  { %19524 = vst [vmem:[#allocation176_spill] sm:$0xff] %v14901_v3 }
 0x5d4   :  { %19525 = vst [vmem:[#allocation213_spill] sm:$0xff] %v14903_v13  ;;  %v19532_v13 = vld [vmem:[#allocation27_spill] sm:$0xff] }
 0x5d6   :  { %9105 = vrot.lane.b32.xlu0 %v19526_v41, %s10024_s12  ;;  %v19533_v41 = vld [vmem:[#allocation114_spill] sm:$0xff] }
 0x5d8   :  { %9080 = vrot.lane.b32.xlu1 %v19527_v62, %s10024_s12  ;;  %9055 = vrot.lane.b32.xlu2 %v19528_v40, %s10024_s12  ;;  %v14911_v9 = vpop.permute.xlu0 %8895 }
 0x5d9   :  { %19529 = vst [vmem:[#allocation231_spill] sm:$0xff] %v14911_v9  ;;  %v19537_v9 = vld [vmem:[#allocation7_spill] sm:$0xff] }
 0x5da   :  { %v14913_v22 = vpop.permute.xlu1 %8870  ;;  %v14915_v7 = vpop.permute.xlu2 %8890 }
 0x5db   :  { %19530 = vst [vmem:[#allocation90_spill] sm:$0xff] %v14913_v22 }
 0x5dc   :  { %19531 = vst [vmem:[#allocation184_spill] sm:$0xff] %v14915_v7  ;;  %v19538_v7 = vld [vmem:[#allocation104_spill] sm:$0xff] }
 0x5de   :  { %9120 = vrot.lane.b32.xlu0 %v14049_v8, %s10024_s12  ;;  %v19539_v8 = vld [vmem:[#allocation9_spill] sm:$0xff] }
 0x5e0   :  { %9095 = vrot.lane.b32.xlu1 %v19532_v13, %s10024_s12  ;;  %9070 = vrot.lane.b32.xlu2 %v19533_v41, %s10024_s12  ;;  %v14923_v3 = vpop.permute.xlu0 %8910 }
 0x5e1   :  { %19534 = vst [vmem:[#allocation94_spill] sm:$0xff] %v14923_v3 }
 0x5e2   :  { %v14925_v62 = vpop.permute.xlu1 %8885  ;;  %v14927_v40 = vpop.permute.xlu2 %8905 }
 0x5e3   :  { %19535 = vst [vmem:[#allocation224_spill] sm:$0xff] %v14925_v62 }
 0x5e4   :  { %19536 = vst [vmem:[#allocation159_spill] sm:$0xff] %v14927_v40  ;;  %v19543_v40 = vld [vmem:[#allocation112_spill] sm:$0xff] }
 0x5e6   :  { %9135 = vrot.lane.b32.xlu0 %v19537_v9, %s10024_s12  ;;  %v19544_v9 = vld [vmem:[#allocation100_spill] sm:$0xff] }
 0x5e8   :  { %9110 = vrot.lane.b32.xlu1 %v19538_v7, %s10024_s12  ;;  %9085 = vrot.lane.b32.xlu2 %v19539_v8, %s10024_s12  ;;  %v14935_v22 = vpop.permute.xlu0 %8925 }
 0x5e9   :  { %19540 = vst [vmem:[#allocation61_spill] sm:$0xff] %v14935_v22 }
 0x5ea   :  { %v14937_v13 = vpop.permute.xlu1 %8900  ;;  %v14939_v41 = vpop.permute.xlu2 %8920 }
 0x5eb   :  { %19541 = vst [vmem:[#allocation181_spill] sm:$0xff] %v14937_v13 }
 0x5ec   :  { %19542 = vst [vmem:[#allocation215_spill] sm:$0xff] %v14939_v41  ;;  %v19548_v41 = vld [vmem:[#allocation147_spill] sm:$0xff] }
 0x5ee   :  { %9150 = vrot.lane.b32.xlu0 %v14312_v47, %s10024_s12  ;;  %v19549_v47 = vld [vmem:[#allocation107_spill] sm:$0xff] }
 0x5f0   :  { %9125 = vrot.lane.b32.xlu1 %v19543_v40, %s10024_s12  ;;  %9100 = vrot.lane.b32.xlu2 %v19544_v9, %s10024_s12  ;;  %v14947_v62 = vpop.permute.xlu0 %8940 }
 0x5f1   :  { %19545 = vst [vmem:[#allocation81_spill] sm:$0xff] %v14947_v62  ;;  %v19553_v62 = vld [vmem:[#allocation183_spill] sm:$0xff] }
 0x5f2   :  { %v14949_v7 = vpop.permute.xlu1 %8915  ;;  %v14951_v8 = vpop.permute.xlu2 %8935 }
 0x5f3   :  { %19546 = vst [vmem:[#allocation185_spill] sm:$0xff] %v14949_v7 }
 0x5f4   :  { %19547 = vst [vmem:[#allocation197_spill] sm:$0xff] %v14951_v8  ;;  %v19554_v8 = vld [vmem:[#allocation38_spill] sm:$0xff] }
 0x5f6   :  { %9165 = vrot.lane.b32.xlu0 %v14411_v44, %s10024_s12  ;;  %v19555_v44 = vld [vmem:[#allocation115_spill] sm:$0xff] }
 0x5f8   :  { %9140 = vrot.lane.b32.xlu1 %v19548_v41, %s10024_s12  ;;  %9115 = vrot.lane.b32.xlu2 %v19549_v47, %s10024_s12  ;;  %v14959_v13 = vpop.permute.xlu0 %8955 }
 0x5f9   :  { %19550 = vst [vmem:[#allocation217_spill] sm:$0xff] %v14959_v13  ;;  %v15236_v13 = vld [vmem:[#allocation2 + $0x2d0] sm:$0xff] }
 0x5fa   :  { %v14961_v40 = vpop.permute.xlu1 %8930  ;;  %v14963_v9 = vpop.permute.xlu2 %8950  ;;  %19620 = vst [vmem:[#allocation11_spill] sm:$0xff] %v15236_v13 }
 0x5fb   :  { %19551 = vst [vmem:[#allocation190_spill] sm:$0xff] %v14961_v40 }
 0x5fc   :  { %19552 = vst [vmem:[#allocation58_spill] sm:$0xff] %v14963_v9 }
 0x5fe   :  { %9180 = vrot.lane.b32.xlu0 %v19553_v62, %s10025_s13  ;;  %v19559_v62 = vld [vmem:[#allocation26_spill] sm:$0xff] }
 0x600   :  { %9155 = vrot.lane.b32.xlu1 %v19554_v8, %s10024_s12  ;;  %9130 = vrot.lane.b32.xlu2 %v19555_v44, %s10024_s12  ;;  %v14971_v7 = vpop.permute.xlu0 %8970 }
 0x601   :  { %19556 = vst [vmem:[#allocation199_spill] sm:$0xff] %v14971_v7  ;;  %v19618_v7 = vld [vmem:[#allocation130_spill] sm:$0xff] }
 0x602   :  { %v14973_v41 = vpop.permute.xlu1 %8945  ;;  %v14975_v47 = vpop.permute.xlu2 %8965 }
 0x603   :  { %19557 = vst [vmem:[#allocation205_spill] sm:$0xff] %v14973_v41 }
 0x604   :  { %19558 = vst [vmem:[#allocation13_spill] sm:$0xff] %v14975_v47  ;;  %v19563_v47 = vld [vmem:[#allocation187_spill] sm:$0xff] }
 0x606   :  { %9195 = vrot.lane.b32.xlu0 %v13744_v36, %s10025_s13  ;;  %v19564_v36 = vld [vmem:[#allocation188_spill] sm:$0xff] }
 0x608   :  { %9170 = vrot.lane.b32.xlu1 %v14439_v51, %s10024_s12  ;;  %9145 = vrot.lane.b32.xlu2 %v19559_v62, %s10024_s12  ;;  %v14983_v40 = vpop.permute.xlu0 %8985 }
 0x609   :  { %19560 = vst [vmem:[#allocation174_spill] sm:$0xff] %v14983_v40  ;;  %v19617_v40 = vld [vmem:[#allocation194_spill] sm:$0xff] }
 0x60a   :  { %v14985_v8 = vpop.permute.xlu1 %8960  ;;  %v14987_v44 = vpop.permute.xlu2 %8980 }
 0x60b   :  { %19561 = vst [vmem:[#allocation225_spill] sm:$0xff] %v14985_v8  ;;  %v15218_v8 = vld [vmem:[#allocation2 + $0x2c0] sm:$0xff] }
 0x60c   :  { %19562 = vst [vmem:[#allocation53_spill] sm:$0xff] %v14987_v44  ;;  %v19619_v44 = vld [vmem:[#allocation125_spill] sm:$0xff] }
 0x60d   :  { %19615 = vst [vmem:[#allocation47_spill] sm:$0xff] %v15218_v8 }
 0x60e   :  { %9210 = vrot.lane.b32.xlu0 %v13937_v38, %s10025_s13 }
 0x610   :  { %9185 = vrot.lane.b32.xlu1 %v19563_v47, %s10025_s13  ;;  %9160 = vrot.lane.b32.xlu2 %v19564_v36, %s10024_s12  ;;  %v14995_v41 = vpop.permute.xlu0 %9000 }
 0x611   :  { %19565 = vst [vmem:[#allocation216_spill] sm:$0xff] %v14995_v41  ;;  %v15212_v41 = vld [vmem:[#allocation2 + $0x170] sm:$0xff] }
 0x612   :  { %v14997_v51 = vpop.permute.xlu1 %8975  ;;  %v14999_v62 = vpop.permute.xlu2 %8995 }
 0x613   :  { %19566 = vst [vmem:[#allocation126_spill] sm:$0xff] %v14997_v51  ;;  %v19613_v51 = vld [vmem:[#allocation14_spill] sm:$0xff] }
 0x614   :  { %19567 = vst [vmem:[#allocation177_spill] sm:$0xff] %v14999_v62 }
 0x616   :  { %9225 = vrot.lane.b32.xlu0 %v14104_v57, %s10025_s13  ;;  %v19571_v57 = vld [vmem:[#allocation96_spill] sm:$0xff] }
 0x618   :  { %9200 = vrot.lane.b32.xlu1 %v13812_v15, %s10025_s13  ;;  %9175 = vrot.lane.b32.xlu2 %v14472_v29, %s10024_s12  ;;  %v15007_v38 = vpop.permute.xlu0 %9015 }
 0x619   :  { %19568 = vst [vmem:[#allocation218_spill] sm:$0xff] %v15007_v38  ;;  %v19575_v38 = vld [vmem:[#allocation45_spill] sm:$0xff] }
 0x61a   :  { %v15009_v47 = vpop.permute.xlu1 %8990  ;;  %v15011_v36 = vpop.permute.xlu2 %9010 }
 0x61b   :  { %19569 = vst [vmem:[#allocation227_spill] sm:$0xff] %v15009_v47  ;;  %v15197_v47 = vld [vmem:[#allocation2 + $0x2a8] sm:$0xff] }
 0x61c   :  { %19570 = vst [vmem:[#allocation200_spill] sm:$0xff] %v15011_v36 }
 0x61d   :  { %19609 = vst [vmem:[#allocation80_spill] sm:$0xff] %v15197_v47 }
 0x61e   :  { %9240 = vrot.lane.b32.xlu0 %v14222_v25, %s10025_s13  ;;  %v19576_v25 = vld [vmem:[#allocation103_spill] sm:$0xff] }
 0x620   :  { %9215 = vrot.lane.b32.xlu1 %v14002_v11, %s10025_s13  ;;  %9190 = vrot.lane.b32.xlu2 %v19571_v57, %s10025_s13  ;;  %v15019_v62 = vpop.permute.xlu0 %9030 }
 0x621   :  { %19572 = vst [vmem:[#allocation19_spill] sm:$0xff] %v15019_v62 }
 0x622   :  { %v15021_v15 = vpop.permute.xlu1 %9005  ;;  %v15023_v29 = vpop.permute.xlu2 %9025 }
 0x623   :  { %19573 = vst [vmem:[#allocation22_spill] sm:$0xff] %v15021_v15  ;;  %v19595_v15 = vld [vmem:[#allocation145_spill] sm:$0xff] }
 0x624   :  { %19574 = vst [vmem:[#allocation79_spill] sm:$0xff] %v15023_v29 }
 0x626   :  { %9255 = vrot.lane.b32.xlu0 %v19575_v38, %s10025_s13  ;;  %v19580_v38 = vld [vmem:[#allocation34_spill] sm:$0xff] }
 0x628   :  { %9230 = vrot.lane.b32.xlu1 %v14129_v2, %s10025_s13  ;;  %9205 = vrot.lane.b32.xlu2 %v19576_v25, %s10025_s13  ;;  %v15031_v36 = vpop.permute.xlu0 %9045 }
 0x629   :  { %19577 = vst [vmem:[#allocation155_spill] sm:$0xff] %v15031_v36  ;;  %v19594_v36 = vld [vmem:[#allocation118_spill] sm:$0xff] }
 0x62a   :  { %v15033_v11 = vpop.permute.xlu1 %9020  ;;  %v15035_v57 = vpop.permute.xlu2 %9040 }
 0x62b   :  { %19578 = vst [vmem:[#allocation12_spill] sm:$0xff] %v15033_v11 }
 0x62c   :  { %19579 = vst [vmem:[#allocation131_spill] sm:$0xff] %v15035_v57 }
 0x62e   :  { %9270 = vrot.lane.b32.xlu0 %v13939_v55, %s10025_s13  ;;  %v19584_v55 = vld [vmem:[#allocation16_spill] sm:$0xff] }
 0x630   :  { %9245 = vrot.lane.b32.xlu1 %v14264_v32, %s10025_s13  ;;  %9220 = vrot.lane.b32.xlu2 %v19580_v38, %s10025_s13  ;;  %v15043_v29 = vpop.permute.xlu0 %9060 }
 0x631   :  { %19581 = vst [vmem:[#allocation148_spill] sm:$0xff] %v15043_v29  ;;  %v19588_v29 = vld [vmem:[#allocation198_spill] sm:$0xff] }
 0x632   :  { %v15045_v2 = vpop.permute.xlu1 %9035  ;;  %v15047_v25 = vpop.permute.xlu2 %9055  ;;  %v8548_v11 = vunpack.i.h.bf16 %v19588_v29 }
 0x633   :  { %19582 = vst [vmem:[#allocation202_spill] sm:$0xff] %v15045_v2  ;;  %v8547_v2 = vunpack.i.l.bf16 %v19588_v29 }
 0x634   :  { %19583 = vst [vmem:[#allocation48_spill] sm:$0xff] %v15047_v25  ;;  %v15077_v29 = vsel %vm22_vm0, %v14633_v46, %v8548_v11  ;;  %v19596_v46 = vld [vmem:[#allocation37_spill] sm:$0xff] }
 0x636   :  { %9285 = vrot.lane.b32.xlu0 %v14106_v39, %s10025_s13 }
 0x638   :  { %9260 = vrot.lane.b32.xlu1 %v13814_v43, %s10025_s13  ;;  %9235 = vrot.lane.b32.xlu2 %v19584_v55, %s10025_s13  ;;  %v15055_v57 = vpop.permute.xlu0 %9075  ;;  %v19589_v43 = vld [vmem:[#allocation41_spill] sm:$0xff] }
 0x639   :  { %19585 = vst [vmem:[#allocation62_spill] sm:$0xff] %v15055_v57  ;;  %v8543_v55 = vunpack.i.h.bf16 %v19589_v43  ;;  %v8542_v39 = vunpack.i.l.bf16 %v19589_v43  ;;  %v8563_v43 = vunpack.i.h.bf16 %v19594_v36 }
 0x63a   :  { %v15057_v32 = vpop.permute.xlu1 %9050  ;;  %v15059_v38 = vpop.permute.xlu2 %9070 }
 0x63b   :  { %19586 = vst [vmem:[#allocation228_spill] sm:$0xff] %v15057_v32  ;;  %v19592_v32 = vld [vmem:[#allocation232_spill] sm:$0xff]  ;;  %v15092_v11 = vsel %vm22_vm0, %v19595_v15, %v8543_v55  ;;  %v15096_v62 = vsel %vm22_vm0, %v19596_v46, %v8542_v39  ;;  %v8568_v15 = vunpack.i.h.bf16 %v14465_v42  ;;  %v8567_v55 = vunpack.i.l.bf16 %v14465_v42 }
 0x63c   :  { %19587 = vst [vmem:[#allocation60_spill] sm:$0xff] %v15059_v38  ;;  %v8552_v25 = vunpack.i.l.bf16 %v19592_v32  ;;  %v8583_v46 = vunpack.i.h.bf16 %v14487_v24 }
 0x63e   :  { %9300 = vrot.lane.b32.xlu0 %v14224_v60, %s10025_s13  ;;  %v8553_v60 = vunpack.i.h.bf16 %v19592_v32  ;;  %v8557_v32 = vunpack.i.l.bf16 %v14485_v48 }
 0x640   :  { %9275 = vrot.lane.b32.xlu1 %v14007_v58, %s10025_s13  ;;  %9250 = vrot.lane.b32.xlu2 %v14314_v12, %s10025_s13  ;;  %v15071_v57 = vpop.permute.xlu0 %9090  ;;  %v15085_v12 = vsel %vm22_vm0, %v14631_v50, %v8547_v2  ;;  %v15101_v2 = vsel %vm22_vm0, %v14551_v45, %v8553_v60  ;;  %v15105_v50 = vsel %vm22_vm0, %v14549_v30, %v8552_v25  ;;  %v8578_v60 = vunpack.i.h.bf16 %v14483_v49 }
 0x641   :  { %19590 = vst [vmem:[#allocation133_spill] sm:$0xff] %v15071_v57  ;;  %v8562_v57 = vunpack.i.l.bf16 %v19594_v36  ;;  %v15109_v36 = vsel %vm22_vm0, %v14660_v56, %v8563_v43  ;;  %v15130_v30 = vsel %vm22_vm0, %v14595_v0, %v8557_v32  ;;  %v8577_v45 = vunpack.i.l.bf16 %v14483_v49  ;;  %v15143_v56 = vld [vmem:[#allocation2 + $0x128] sm:$0xff]  ;;  %v15158_v32 = vld [vmem:[#allocation2 + $0x290] sm:$0xff] }
 0x642   :  { %v15073_v38 = vpop.permute.xlu1 %9065  ;;  %v15081_v58 = vpop.permute.xlu2 %9085  ;;  %v15149_v49 = vsel %vm22_vm0, %v14571_v27, %v8568_v15  ;;  %v15153_v43 = vsel %vm22_vm0, %v14569_v23, %v8567_v55  ;;  %19601 = vst [vmem:[#allocation93_spill] sm:$0xff] %v15158_v32  ;;  %v15164_v0 = vsel %vm22_vm0, %v14687_v17, %v8578_v60  ;;  %v8582_v27 = vunpack.i.l.bf16 %v14487_v24  ;;  %v19604_v24 = vld [vmem:[#allocation158_spill] sm:$0xff]  ;;  %v15216_v17 = vld [vmem:[#allocation2 + $0x2b8] sm:$0xff] }
 0x643   :  { %19591 = vst [vmem:[#allocation89_spill] sm:$0xff] %v15073_v38  ;;  %v8558_v38 = vunpack.i.h.bf16 %v14485_v48  ;;  %v15119_v39 = vsel %vm22_vm0, %v14658_v10, %v8562_v57  ;;  %v8573_v57 = vunpack.i.h.bf16 %v14502_v20  ;;  %v15141_v10 = vld [vmem:[#allocation2 + $0x120] sm:$0xff]  ;;  %v8593_v15 = vunpack.i.h.bf16 %v14500_v26 }
 0x644   :  { %19593 = vst [vmem:[#allocation84_spill] sm:$0xff] %v15081_v58  ;;  %v8592_v23 = vunpack.i.l.bf16 %v14500_v26  ;;  %v15171_v55 = vsel %vm22_vm0, %v14685_v5, %v8577_v45  ;;  %v19605_v26 = vld [vmem:[#allocation149_spill] sm:$0xff]  ;;  %v15189_v5 = vld [vmem:[#allocation2 + $0x150] sm:$0xff]  ;;  %v15191_v45 = vld [vmem:[#allocation2 + $0x158] sm:$0xff] }
 0x645   :  { %v15123_v25 = vsel %vm22_vm0, %v14597_v19, %v8558_v38  ;;  %v8572_v38 = vunpack.i.l.bf16 %v14502_v20  ;;  %v15156_v20 = vld [vmem:[#allocation2 + $0x288] sm:$0xff]  ;;  %v15183_v60 = vsel %vm22_vm0, %v19604_v24, %v8573_v57  ;;  %19606 = vst [vmem:[#allocation88_spill] sm:$0xff] %v15189_v5  ;;  %v15195_v58 = vld [vmem:[#allocation2 + $0x2a0] sm:$0xff]  ;;  %v19610_v57 = vld [vmem:[#allocation35_spill] sm:$0xff] }
 0x646   :  { %9315 = vrot.lane.b32.xlu0 %v14354_v31, %s10025_s13  ;;  %19600 = vst [vmem:[#allocation154_spill] sm:$0xff] %v15156_v20  ;;  %v15177_v31 = vld [vmem:[#allocation2 + $0x140] sm:$0xff]  ;;  %v15203_v24 = vsel %vm22_vm0, %v19610_v57, %v8583_v46  ;;  %v15232_v9 = vsel %vm22_vm0, %v19618_v7, %v8592_v23  ;;  %v15238_v5 = vld [vmem:[#allocation2 + $0x2d8] sm:$0xff]  ;;  %v8603_v46 = vunpack.i.h.bf16 %v19627_v61 }
 0x647   :  { %19603 = vst [vmem:[#allocation122_spill] sm:$0xff] %v15177_v31  ;;  %v19616_v57 = vld [vmem:[#allocation220_spill] sm:$0xff]  ;;  %v19624_v23 = vld [vmem:[#allocation219_spill] sm:$0xff] }
 0x648   :  { %9290 = vrot.lane.b32.xlu1 %v14131_v16, %s10025_s13  ;;  %9265 = vrot.lane.b32.xlu2 %v13891_v4, %s10025_s13  ;;  %v15133_v42 = vpop.permute.xlu0 %9105  ;;  %v8588_v16 = vunpack.i.h.bf16 %v14513_v1  ;;  %v8587_v4 = vunpack.i.l.bf16 %v14513_v1  ;;  %19607 = vst [vmem:[#allocation203_spill] sm:$0xff] %v15191_v45  ;;  %v15210_v1 = vld [vmem:[#allocation2 + $0x168] sm:$0xff]  ;;  %v8608_v45 = vunpack.i.h.bf16 %v19624_v23  ;;  %v8607_v3 = vunpack.i.l.bf16 %v19624_v23 }
 0x649   :  { %19597 = vst [vmem:[#allocation86_spill] sm:$0xff] %v15133_v42  ;;  %v19612_v42 = vld [vmem:[#allocation156_spill] sm:$0xff]  ;;  %v8653_v23 = vunpack.i.h.bf16 %v19632_v52  ;;  %v15290_v52 = vsel %vm22_vm0, %v15141_v10, %v8602_v21 }
 0x64a   :  { %v15135_v48 = vpop.permute.xlu1 %9080  ;;  %v15139_v19 = vpop.permute.xlu2 %9100  ;;  %19608 = vst [vmem:[#allocation57_spill] sm:$0xff] %v15195_v58  ;;  %v19641_v21 = vld [vmem:[#allocation208_spill] sm:$0xff] }
 0x64b   :  { %19598 = vst [vmem:[#allocation193_spill] sm:$0xff] %v15135_v48  ;;  %v15187_v48 = vsel %vm22_vm0, %v19605_v26, %v8572_v38  ;;  %v19611_v38 = vld [vmem:[#allocation51_spill] sm:$0xff] }
 0x64c   :  { %19599 = vst [vmem:[#allocation230_spill] sm:$0xff] %v15139_v19  ;;  %v15175_v19 = vld [vmem:[#allocation2 + $0x138] sm:$0xff]  ;;  %v8598_v26 = vunpack.i.h.bf16 %v19611_v38  ;;  %v8597_v7 = vunpack.i.l.bf16 %v19611_v38 }
 0x64d   :  { %19602 = vst [vmem:[#allocation23_spill] sm:$0xff] %v15175_v19 }
 0x64e   :  { %9330 = vrot.lane.b32.xlu0 %v19612_v42, %s10025_s13  ;;  %19614 = vst [vmem:[#allocation157_spill] sm:$0xff] %v15216_v17  ;;  %v15224_v42 = vsel %vm22_vm0, %v19616_v57, %v8582_v27  ;;  %v19622_v27 = vld [vmem:[#allocation123_spill] sm:$0xff]  ;;  %v15273_v61 = vsel %vm22_vm0, %v19633_v18, %v8597_v7 }
 0x64f   :  { %19621 = vst [vmem:[#allocation32_spill] sm:$0xff] %v15238_v5  ;;  %v15244_v57 = vsel %vm22_vm0, %v19622_v27, %v8588_v16  ;;  %v19629_v27 = vld [vmem:[#allocation31_spill] sm:$0xff] }
 0x650   :  { %9305 = vrot.lane.b32.xlu1 %v19613_v51, %s10025_s13  ;;  %v15228_v51 = vsel %vm22_vm0, %v19617_v40, %v8593_v15  ;;  %9280 = vrot.lane.b32.xlu2 %v19619_v44, %s10025_s13  ;;  %v19623_v40 = vld [vmem:[#allocation52_spill] sm:$0xff]  ;;  %v15252_v44 = vpop.permute.xlu0 %9120  ;;  %v9980_v7 = vld [vmem:[#allocation2 + $0x1b8] sm:$0xff] }
 0x651   :  { %v15248_v15 = vsel %vm22_vm0, %v19623_v40, %v8587_v4  ;;  %19625 = vst [vmem:[#allocation180_spill] sm:$0xff] %v15252_v44  ;;  %v15263_v4 = vsel %vm22_vm0, %v19629_v27, %v8598_v26  ;;  %v19630_v40 = vld [vmem:[#allocation49_spill] sm:$0xff]  ;;  %v8638_v44 = vunpack.i.h.bf16 %v19631_v59  ;;  %v15277_v26 = vsel %vm22_vm0, %v15177_v31, %v8608_v45  ;;  %v19635_v27 = vld [vmem:[#allocation166_spill] sm:$0xff] }
 0x652   :  { %v15254_v22 = vpop.permute.xlu1 %9095  ;;  %v15259_v16 = vpop.permute.xlu2 %9115  ;;  %v8623_v38 = vunpack.i.h.bf16 %v19630_v40  ;;  %v8622_v28 = vunpack.i.l.bf16 %v19630_v40  ;;  %19634 = vst [vmem:[#allocation171_spill] sm:$0xff] %v15277_v26  ;;  %v15282_v40 = vsel %vm22_vm0, %v15175_v19, %v8607_v3  ;;  %v8667_v18 = vunpack.i.l.bf16 %v19635_v27  ;;  %v9981_v31 = vld [vmem:[#allocation2 + $0x1b0] sm:$0xff]  ;;  %v19639_v3 = vld [vmem:[#allocation209_spill] sm:$0xff] }
 0x653   :  { %19626 = vst [vmem:[#allocation206_spill] sm:$0xff] %v15254_v22  ;;  %v8637_v22 = vunpack.i.l.bf16 %v19631_v59  ;;  %v15286_v59 = vsel %vm22_vm0, %v15143_v56, %v8603_v46  ;;  %v8683_v19 = vunpack.i.h.bf16 %v19639_v3  ;;  %v19640_v46 = vld [vmem:[#allocation74_spill] sm:$0xff] }
 0x654   :  { %19628 = vst [vmem:[#allocation65_spill] sm:$0xff] %v15259_v16  ;;  %v8668_v16 = vunpack.i.h.bf16 %v19635_v27  ;;  %v15294_v45 = vsel %vm22_vm0, %v9980_v7, %v8623_v38  ;;  %v15297_v26 = vsel %vm22_vm0, %v9981_v31, %v8622_v28  ;;  %v15307_v27 = vsel %vm22_vm0, %v14796_v33, %v8638_v44  ;;  %v19646_v7 = vld [vmem:[#allocation6_spill] sm:$0xff]  ;;  %v19648_v33 = vld [vmem:[#allocation55_spill] sm:$0xff] }
 0x655   :  { %19636 = vst [vmem:[#allocation17_spill] sm:$0xff] %v15282_v40  ;;  %v8682_v40 = vunpack.i.l.bf16 %v19639_v3  ;;  %v15311_v38 = vsel %vm22_vm0, %v14794_v63, %v8637_v22  ;;  %v15315_v31 = vsel %vm22_vm0, %v14818_v14, %v8653_v23  ;;  %v15319_v28 = vsel %vm22_vm0, %v14816_v53, %v8652_v34  ;;  %v19649_v22 = vld [vmem:[#allocation129_spill] sm:$0xff]  ;;  %v19659_v34 = vld [vmem:[#allocation63_spill] sm:$0xff] }
 0x656   :  { %19637 = vst [vmem:[#allocation92_spill] sm:$0xff] %v15294_v45  ;;  %9345 = vrot.lane.b32.xlu0 %v19640_v46, %s10026_s14  ;;  %v15325_v3 = vsel %vm22_vm0, %v15158_v32, %v8668_v16  ;;  %v8628_v44 = vunpack.i.h.bf16 %v19648_v33  ;;  %v8627_v63 = vunpack.i.l.bf16 %v19648_v33  ;;  %v8618_v46 = vunpack.i.h.bf16 %v19649_v22  ;;  %v19671_v45 = vld [vmem:[#allocation210_spill] sm:$0xff] }
 0x657   :  { %19638 = vst [vmem:[#allocation100_spill] sm:$0xff] %v15297_v26  ;;  %v15336_v53 = vsel %vm22_vm0, %v15156_v20, %v8667_v18  ;;  %v8617_v16 = vunpack.i.l.bf16 %v19649_v22  ;;  %v15345_v33 = vsel %vm22_vm0, %v15238_v5, %v8683_v19  ;;  %v19658_v20 = vld [vmem:[#allocation56_spill] sm:$0xff]  ;;  %v8658_v22 = vunpack.i.h.bf16 %v19659_v34  ;;  %v19661_v5 = vld [vmem:[#allocation127_spill] sm:$0xff] }
 0x658   :  { %9320 = vrot.lane.b32.xlu1 %v19641_v21, %s10025_s13  ;;  %19642 = vst [vmem:[#allocation183_spill] sm:$0xff] %v15307_v27  ;;  %9295 = vrot.lane.b32.xlu2 %v19646_v7, %s10025_s13  ;;  %v15330_v21 = vpop.permute.xlu0 %9135  ;;  %v8633_v23 = vunpack.i.h.bf16 %v19658_v20  ;;  %v8632_v7 = vunpack.i.l.bf16 %v19658_v20 }
 0x659   :  { %19643 = vst [vmem:[#allocation198_spill] sm:$0xff] %v15311_v38  ;;  %v15372_v20 = vsel %vm22_vm0, %v15210_v1, %v8617_v16  ;;  %v19669_v16 = vld [vmem:[#allocation119_spill] sm:$0xff] }
 0x65a   :  { %19644 = vst [vmem:[#allocation41_spill] sm:$0xff] %v15315_v31  ;;  %v15332_v14 = vpop.permute.xlu1 %9110  ;;  %v15341_v32 = vpop.permute.xlu2 %9130 }
 0x65b   :  { %19645 = vst [vmem:[#allocation232_spill] sm:$0xff] %v15319_v28  ;;  %v19668_v28 = vld [vmem:[#allocation85_spill] sm:$0xff] }
 0x65c   :  { %19647 = vst [vmem:[#allocation118_spill] sm:$0xff] %v15325_v3  ;;  %v8663_v27 = vunpack.i.h.bf16 %v19668_v28  ;;  %v8662_v38 = vunpack.i.l.bf16 %v19668_v28 }
 0x65d   :  { %19650 = vst [vmem:[#allocation145_spill] sm:$0xff] %v15330_v21  ;;  %v15349_v21 = vsel %vm22_vm0, %v15236_v13, %v8682_v40  ;;  %v15363_v40 = vsel %vm22_vm0, %v19661_v5, %v8627_v63  ;;  %v15367_v13 = vsel %vm22_vm0, %v15212_v41, %v8618_v46  ;;  %v19666_v63 = vld [vmem:[#allocation161_spill] sm:$0xff] }
 0x65e   :  { %19651 = vst [vmem:[#allocation37_spill] sm:$0xff] %v15332_v14  ;;  %v19657_v14 = vld [vmem:[#allocation160_spill] sm:$0xff]  ;;  %9360 = vrot.lane.b32.xlu0 %v19669_v16, %s10026_s14  ;;  %v19677_v16 = vld [vmem:[#allocation43_spill] sm:$0xff] }
 0x65f   :  { %19652 = vst [vmem:[#allocation158_spill] sm:$0xff] %v15336_v53  ;;  %v8643_v3 = vunpack.i.h.bf16 %v19657_v14  ;;  %v8642_v18 = vunpack.i.l.bf16 %v19657_v14  ;;  %v19660_v53 = vld [vmem:[#allocation36_spill] sm:$0xff]  ;;  %v19662_v14 = vld [vmem:[#allocation67_spill] sm:$0xff] }
 0x660   :  { %19654 = vst [vmem:[#allocation149_spill] sm:$0xff] %v15341_v32  ;;  %v8657_v32 = vunpack.i.l.bf16 %v19659_v34  ;;  %v15359_v19 = vsel %vm22_vm0, %v19660_v53, %v8628_v44  ;;  %v8647_v34 = vunpack.i.l.bf16 %v19662_v14  ;;  %v19664_v53 = vld [vmem:[#allocation30_spill] sm:$0xff]  ;;  %9310 = vrot.lane.b32.xlu2 %v19677_v16, %s10025_s13  ;;  %v15416_v26 = vpop.permute.xlu0 %9150 }
 0x661   :  { %19655 = vst [vmem:[#allocation35_spill] sm:$0xff] %v15345_v33  ;;  %v8648_v33 = vunpack.i.h.bf16 %v19662_v14  ;;  %v15379_v5 = vsel %vm22_vm0, %v19664_v53, %v8643_v3  ;;  %v15383_v46 = vsel %vm22_vm0, %v19666_v63, %v8642_v18  ;;  %v19670_v14 = vld [vmem:[#allocation191_spill] sm:$0xff]  ;;  %v19673_v18 = vld [vmem:[#allocation165_spill] sm:$0xff] }
 0x662   :  { %19656 = vst [vmem:[#allocation51_spill] sm:$0xff] %v15349_v21  ;;  %v19663_v21 = vld [vmem:[#allocation59_spill] sm:$0xff]  ;;  %9335 = vrot.lane.b32.xlu1 %v19670_v14, %s10025_s13  ;;  %v15401_v63 = vsel %vm22_vm0, %v19673_v18, %v8658_v22  ;;  %v15418_v22 = vpop.permute.xlu1 %9125  ;;  %v15433_v18 = vpop.permute.xlu2 %9145 }
 0x663   :  { %v8673_v31 = vunpack.i.h.bf16 %v19663_v21  ;;  %v8672_v44 = vunpack.i.l.bf16 %v19663_v21  ;;  %19665 = vst [vmem:[#allocation220_spill] sm:$0xff] %v15379_v5  ;;  %v15393_v21 = vsel %vm22_vm0, %v19671_v45, %v8633_v23  ;;  %v19672_v3 = vld [vmem:[#allocation167_spill] sm:$0xff]  ;;  %v15411_v14 = vsel %vm22_vm0, %v14765_v37, %v8648_v33  ;;  %v19678_v45 = vld [vmem:[#allocation78_spill] sm:$0xff] }
 0x664   :  { %19667 = vst [vmem:[#allocation194_spill] sm:$0xff] %v15383_v46  ;;  %v15397_v53 = vsel %vm22_vm0, %v19672_v3, %v8632_v7  ;;  %v19675_v46 = vld [vmem:[#allocation20_spill] sm:$0xff]  ;;  %v8688_v23 = vunpack.i.h.bf16 %v19678_v45  ;;  %v8687_v7 = vunpack.i.l.bf16 %v19678_v45 }
 0x665   :  { %19674 = vst [vmem:[#allocation130_spill] sm:$0xff] %v15401_v63  ;;  %v15405_v28 = vsel %vm22_vm0, %v19675_v46, %v8657_v32  ;;  %v19679_v3 = vld [vmem:[#allocation192_spill] sm:$0xff]  ;;  %v15422_v32 = vsel %vm22_vm0, %v14763_v35, %v8647_v34  ;;  %v15426_v46 = vsel %vm22_vm0, %v15197_v47, %v8673_v31  ;;  %v15430_v37 = vsel %vm22_vm0, %v15195_v58, %v8672_v44  ;;  %v19688_v34 = vld [vmem:[#allocation121_spill] sm:$0xff]  ;;  %v19689_v47 = vld [vmem:[#allocation211_spill] sm:$0xff] }
 0x666   :  { %19676 = vst [vmem:[#allocation123_spill] sm:$0xff] %v15405_v28  ;;  %v8678_v5 = vunpack.i.h.bf16 %v19679_v3  ;;  %v8677_v33 = vunpack.i.l.bf16 %v19679_v3  ;;  %v19685_v45 = vld [vmem:[#allocation40_spill] sm:$0xff]  ;;  %v8702_v31 = vunpack.i.l.bf16 %v19688_v34  ;;  %v8697_v44 = vunpack.i.l.bf16 %v19689_v47  ;;  %v19690_v58 = vld [vmem:[#allocation163_spill] sm:$0xff]  ;;  %v19692_v63 = vld [vmem:[#allocation201_spill] sm:$0xff] }
 0x667   :  { %19680 = vst [vmem:[#allocation52_spill] sm:$0xff] %v15416_v26  ;;  %v15437_v16 = vsel %vm22_vm0, %v19685_v45, %v8663_v27  ;;  %v19686_v26 = vld [vmem:[#allocation91_spill] sm:$0xff]  ;;  %v8693_v3 = vunpack.i.h.bf16 %v19690_v58  ;;  %v9983_v45 = vld [vmem:[#allocation2 + $0x2e8] sm:$0xff] }
 0x668   :  { %19681 = vst [vmem:[#allocation219_spill] sm:$0xff] %v15418_v22  ;;  %v15441_v35 = vsel %vm22_vm0, %v19686_v26, %v8662_v38  ;;  %v8703_v22 = vunpack.i.h.bf16 %v19688_v34  ;;  %v15453_v26 = vsel %vm22_vm0, %v9983_v45, %v8687_v7  ;;  %v15457_v38 = vsel %vm22_vm0, %v15218_v8, %v8678_v5  ;;  %v19691_v34 = vld [vmem:[#allocation162_spill] sm:$0xff] }
 0x669   :  { %19682 = vst [vmem:[#allocation151_spill] sm:$0xff] %v15426_v46  ;;  %v8698_v46 = vunpack.i.h.bf16 %v19689_v47  ;;  %v8718_v28 = vunpack.i.h.bf16 %v19691_v34  ;;  %v15462_v47 = vsel %vm22_vm0, %v15216_v17, %v8677_v33  ;;  %v15473_v5 = vsel %vm2503_vm5, %v15096_v62, %v8702_v31  ;;  %v19695_v33 = vld [vmem:[#allocation139_spill] sm:$0xff]  ;;  %v9984_v17 = vld [vmem:[#allocation2 + $0x320] sm:$0xff]  ;;  %v9986_v62 = vld [vmem:[#allocation2 + $0x308] sm:$0xff] }
 0x66a   :  { %19683 = vst [vmem:[#allocation31_spill] sm:$0xff] %v15430_v37  ;;  %v9982_v37 = vld [vmem:[#allocation2 + $0x2f0] sm:$0xff]  ;;  %v15469_v7 = vsel %vm2503_vm5, %v15092_v11, %v8703_v22  ;;  %9375 = vrot.lane.b32.xlu0 %v19695_v33, %s10026_s14  ;;  %v9985_v11 = vld [vmem:[#allocation2 + $0x318] sm:$0xff]  ;;  %v15488_v31 = vsel %vm22_vm0, %v9986_v62, %v8693_v3  ;;  %v19699_v33 = vld [vmem:[#allocation117_spill] sm:$0xff]  ;;  %v15504_v3 = vpop.permute.xlu1 %9140  ;;  %v15519_v62 = vpop.permute.xlu2 %9160 }
 0x66b   :  { %19684 = vst [vmem:[#allocation49_spill] sm:$0xff] %v15433_v18  ;;  %v8692_v18 = vunpack.i.l.bf16 %v19690_v58  ;;  %v15450_v27 = vsel %vm22_vm0, %v9982_v37, %v8688_v23  ;;  %v8717_v58 = vunpack.i.l.bf16 %v19691_v34  ;;  %v8712_v23 = vunpack.i.l.bf16 %v19692_v63  ;;  %v19694_v37 = vld [vmem:[#allocation87_spill] sm:$0xff]  ;;  %v19696_v34 = vld [vmem:[#allocation124_spill] sm:$0xff]  ;;  %9325 = vrot.lane.b32.xlu2 %v19699_v33, %s10025_s13 }
 0x66c   :  { %19687 = vst [vmem:[#allocation207_spill] sm:$0xff] %v15441_v35  ;;  %v8713_v35 = vunpack.i.h.bf16 %v19692_v63  ;;  %v8733_v45 = vunpack.i.h.bf16 %v19694_v37  ;;  %v8732_v8 = vunpack.i.l.bf16 %v19694_v37  ;;  %9350 = vrot.lane.b32.xlu1 %v19696_v34, %s10026_s14  ;;  %v15482_v63 = vsel %vm22_vm0, %v9984_v17, %v8698_v46  ;;  %v19700_v17 = vld [vmem:[#allocation128_spill] sm:$0xff] }
 0x66d   :  { %19693 = vst [vmem:[#allocation120_spill] sm:$0xff] %v15473_v5  ;;  %v15485_v22 = vsel %vm22_vm0, %v9985_v11, %v8697_v44  ;;  %v9987_v5 = vld [vmem:[#allocation2 + $0x300] sm:$0xff]  ;;  %v15497_v34 = vsel %vm2503_vm5, %v15123_v25, %v8718_v28  ;;  %v8708_v46 = vunpack.i.h.bf16 %v19700_v17  ;;  %v8707_v44 = vunpack.i.l.bf16 %v19700_v17  ;;  %v19701_v11 = vld [vmem:[#allocation169_spill] sm:$0xff] }
 0x66e   :  { %19697 = vst [vmem:[#allocation71_spill] sm:$0xff] %v15482_v63  ;;  %v15491_v37 = vsel %vm22_vm0, %v9987_v5, %v8692_v18  ;;  %v8728_v63 = vunpack.i.h.bf16 %v19701_v11  ;;  %v15508_v18 = vsel %vm2503_vm5, %v15130_v30, %v8717_v58  ;;  %v15512_v5 = vsel %vm2503_vm5, %v15101_v2, %v8713_v35  ;;  %v19706_v58 = vld [vmem:[#allocation44_spill] sm:$0xff]  ;;  %v19707_v35 = vld [vmem:[#allocation69_spill] sm:$0xff] }
 0x66f   :  { %19698 = vst [vmem:[#allocation166_spill] sm:$0xff] %v15485_v22  ;;  %v15502_v22 = vpop.permute.xlu0 %9165  ;;  %v15516_v25 = vsel %vm2503_vm5, %v15105_v50, %v8712_v23  ;;  %v8727_v28 = vunpack.i.l.bf16 %v19701_v11  ;;  %v15523_v17 = vsel %vm2503_vm5, %v15183_v60, %v8733_v45  ;;  %v15527_v30 = vsel %vm2503_vm5, %v15187_v48, %v8732_v8  ;;  %v19708_v23 = vld [vmem:[#allocation132_spill] sm:$0xff] }
 0x670   :  { %19702 = vst [vmem:[#allocation209_spill] sm:$0xff] %v15502_v22  ;;  %v8748_v33 = vunpack.i.h.bf16 %v19706_v58  ;;  %v8747_v2 = vunpack.i.l.bf16 %v19706_v58  ;;  %v8723_v22 = vunpack.i.h.bf16 %v19707_v35  ;;  %v8722_v50 = vunpack.i.l.bf16 %v19707_v35  ;;  %v19709_v45 = vld [vmem:[#allocation164_spill] sm:$0xff] }
 0x671   :  { %19703 = vst [vmem:[#allocation74_spill] sm:$0xff] %v15504_v3  ;;  %v8743_v11 = vunpack.i.h.bf16 %v19708_v23  ;;  %v15537_v60 = vsel %vm2503_vm5, %v15085_v12, %v8707_v44  ;;  %v15541_v8 = vsel %vm2503_vm5, %v15077_v29, %v8708_v46  ;;  %v15545_v48 = vsel %vm2503_vm5, %v15149_v49, %v8728_v63  ;;  %v19710_v3 = vld [vmem:[#allocation140_spill] sm:$0xff]  ;;  %v19711_v63 = vld [vmem:[#allocation141_spill] sm:$0xff] }
 0x672   :  { %19704 = vst [vmem:[#allocation55_spill] sm:$0xff] %v15519_v62  ;;  %v8742_v62 = vunpack.i.l.bf16 %v19708_v23  ;;  %v8763_v58 = vunpack.i.h.bf16 %v19709_v45  ;;  %v15550_v35 = vsel %vm2503_vm5, %v15153_v43, %v8727_v28  ;;  %v8762_v23 = vunpack.i.l.bf16 %v19709_v45  ;;  %v19713_v28 = vld [vmem:[#allocation68_spill] sm:$0xff] }
 0x673   :  { %19705 = vst [vmem:[#allocation129_spill] sm:$0xff] %v15527_v30  ;;  %v8738_v30 = vunpack.i.h.bf16 %v19710_v3  ;;  %v8737_v12 = vunpack.i.l.bf16 %v19710_v3  ;;  %v15557_v29 = vsel %vm2503_vm5, %v15244_v57, %v8748_v33  ;;  %v15561_v49 = vsel %vm2503_vm5, %v15248_v15, %v8747_v2 }
 0x674   :  { %v8758_v46 = vunpack.i.h.bf16 %v19711_v63  ;;  %v8757_v44 = vunpack.i.l.bf16 %v19711_v63  ;;  %v19712_v43 = vpack.i.bf16 %v15143_v56, %v15141_v10  ;;  %9365 = vrot.lane.b32.xlu1 %v19713_v28, %s10026_s14  ;;  %v15573_v57 = vsel %vm2503_vm5, %v15119_v39, %v8722_v50  ;;  %v19714_v10 = vld [vmem:[#allocation226_spill] sm:$0xff]  ;;  %v19715_v39 = vld [vmem:[#allocation175_spill] sm:$0xff] }
 0x675   :  { %v15577_v15 = vsel %vm2503_vm5, %v15109_v36, %v8723_v22  ;;  %v15581_v33 = vsel %vm2503_vm5, %v15203_v24, %v8743_v11  ;;  %v15585_v3 = vsel %vm2503_vm5, %v15224_v42, %v8742_v62  ;;  %9340 = vrot.lane.b32.xlu2 %v19714_v10, %s10026_s14  ;;  %v15591_v56 = vsel %vm2503_vm5, %v15286_v59, %v8763_v58  ;;  %v19716_v22 = vld [vmem:[#allocation222_spill] sm:$0xff]  ;;  %v15598_v24 = vpop.permute.xlu1 %9155  ;;  %v15613_v58 = vpop.permute.xlu2 %9175 }
 0x676   :  { %9390 = vrot.lane.b32.xlu0 %v19712_v43, %s10026_s14  ;;  %v8778_v2 = vunpack.i.h.bf16 %v19715_v39  ;;  %v8777_v36 = vunpack.i.l.bf16 %v19715_v39  ;;  %v8752_v50 = vunpack.i.l.bf16 %v19716_v22  ;;  %19718 = vst [vmem:[#allocation56_spill] sm:$0xff] %v15598_v24  ;;  %v15602_v42 = vsel %vm2503_vm5, %v15290_v52, %v8762_v23 }
 0x677   :  { %v15596_v45 = vpop.permute.xlu0 %9180  ;;  %v15606_v62 = vsel %vm2503_vm5, %v15171_v55, %v8737_v12  ;;  %v15610_v59 = vsel %vm2503_vm5, %v15164_v0, %v8738_v30  ;;  %v8753_v11 = vunpack.i.h.bf16 %v19716_v22  ;;  %19719 = vst [vmem:[#allocation63_spill] sm:$0xff] %v15613_v58  ;;  %v15617_v63 = vsel %vm2503_vm5, %v15263_v4, %v8758_v46  ;;  %v19721_v55 = vld [vmem:[#allocation233_spill] sm:$0xff]  ;;  %v19749_v58 = vld [vmem:[#allocation183_spill] sm:$0xff] }
 0x678   :  { %19717 = vst [vmem:[#allocation160_spill] sm:$0xff] %v15596_v45  ;;  %v15621_v52 = vsel %vm2503_vm5, %v15273_v61, %v8757_v44  ;;  %v8793_v12 = vunpack.i.h.bf16 %v19721_v55  ;;  %v8792_v0 = vunpack.i.l.bf16 %v19721_v55  ;;  %v19722_v30 = vld [vmem:[#allocation173_spill] sm:$0xff]  ;;  %v15631_v4 = vsel %vm2503_vm5, %v15367_v13, %v8778_v2  ;;  %v19725_v44 = vld [vmem:[#allocation142_spill] sm:$0xff]  ;;  %v19750_v45 = vld [vmem:[#allocation204_spill] sm:$0xff] }
 0x679   :  { %v8768_v10 = vunpack.i.h.bf16 %v19722_v30  ;;  %v8767_v39 = vunpack.i.l.bf16 %v19722_v30  ;;  %19723 = vst [vmem:[#allocation36_spill] sm:$0xff] %v15631_v4  ;;  %v15635_v61 = vsel %vm2503_vm5, %v15372_v20, %v8777_v36  ;;  %v15639_v46 = vsel %vm2503_vm5, %v15232_v9, %v8752_v50  ;;  %v19726_v36 = vld [vmem:[#allocation214_spill] sm:$0xff] }
 0x67a   :  { %19724 = vst [vmem:[#allocation127_spill] sm:$0xff] %v15635_v61  ;;  %v8788_v22 = vunpack.i.h.bf16 %v19725_v44  ;;  %v15644_v55 = vsel %vm2503_vm5, %v15228_v51, %v8753_v11  ;;  %v8787_v30 = vunpack.i.l.bf16 %v19725_v44  ;;  %v8808_v28 = vunpack.i.h.bf16 %v14829_v6  ;;  %v19728_v11 = vld [vmem:[#allocation221_spill] sm:$0xff]  ;;  %v19730_v44 = vld [vmem:[#allocation171_spill] sm:$0xff]  ;;  %v19738_v61 = vld [vmem:[#allocation92_spill] sm:$0xff] }
 0x67b   :  { %v8807_v13 = vunpack.i.l.bf16 %v14829_v6  ;;  %v15651_v20 = vsel %vm2503_vm5, %v15393_v21, %v8793_v12  ;;  %v8783_v2 = vunpack.i.h.bf16 %v14831_v54  ;;  %v8782_v9 = vunpack.i.l.bf16 %v14831_v54  ;;  %v19729_v21 = vld [vmem:[#allocation17_spill] sm:$0xff] }
 0x67c   :  { %v8803_v50 = vunpack.i.h.bf16 %v19726_v36  ;;  %v19727_v51 = vpack.i.bf16 %v15212_v41, %v15210_v1  ;;  %9380 = vrot.lane.b32.xlu1 %v19728_v11, %s10026_s14  ;;  %v15664_v6 = vsel %vm2503_vm5, %v15397_v53, %v8792_v0  ;;  %v15668_v12 = vsel %vm2503_vm5, %v19729_v21, %v8767_v39  ;;  %v19731_v41 = vld [vmem:[#allocation146_spill] sm:$0xff]  ;;  %v19733_v11 = vld [vmem:[#allocation143_spill] sm:$0xff] }
 0x67d   :  { %v15672_v54 = vsel %vm2503_vm5, %v19730_v44, %v8768_v10  ;;  %v8802_v43 = vunpack.i.l.bf16 %v19726_v36  ;;  %9355 = vrot.lane.b32.xlu2 %v19731_v41, %s10026_s14  ;;  %v15679_v1 = vsel %vm2503_vm5, %v15359_v19, %v8788_v22  ;;  %v8797_v39 = vunpack.i.l.bf16 %v19733_v11  ;;  %v15686_v23 = vpop.permute.xlu1 %9170  ;;  %v15701_v44 = vpop.permute.xlu2 %9190  ;;  %v19737_v41 = vld [vmem:[#allocation100_spill] sm:$0xff] }
 0x67e   :  { %9405 = vrot.lane.b32.xlu0 %v19727_v51, %s10026_s14  ;;  %v19732_v51 = vld [vmem:[#allocation178_spill] sm:$0xff]  ;;  %19735 = vst [vmem:[#allocation59_spill] sm:$0xff] %v15686_v23  ;;  %v15690_v10 = vsel %vm2503_vm5, %v15363_v40, %v8787_v30  ;;  %v15694_v36 = vsel %vm2503_vm5, %v15411_v14, %v8808_v28  ;;  %v15698_v19 = vsel %vm2503_vm5, %v15422_v32, %v8807_v13  ;;  %v8798_v22 = vunpack.i.h.bf16 %v19733_v11  ;;  %v19739_v30 = vld [vmem:[#allocation220_spill] sm:$0xff] }
 0x67f   :  { %v8823_v53 = vunpack.i.h.bf16 %v19732_v51  ;;  %v8822_v0 = vunpack.i.l.bf16 %v19732_v51  ;;  %v15684_v21 = vpop.permute.xlu0 %9195  ;;  %19736 = vst [vmem:[#allocation30_spill] sm:$0xff] %v15701_v44  ;;  %v15705_v51 = vsel %vm2503_vm5, %v19737_v41, %v8782_v9  ;;  %v15709_v40 = vsel %vm2503_vm5, %v19738_v61, %v8783_v2  ;;  %v19741_v28 = vld [vmem:[#allocation144_spill] sm:$0xff]  ;;  %v19742_v32 = vld [vmem:[#allocation194_spill] sm:$0xff]  ;;  %v19745_v2 = vld [vmem:[#allocation207_spill] sm:$0xff] }
 0x680   :  { %19734 = vst [vmem:[#allocation67_spill] sm:$0xff] %v15684_v21  ;;  %v15713_v14 = vsel %vm2503_vm5, %v19739_v30, %v8803_v50  ;;  %v8818_v4 = vunpack.i.h.bf16 %v19741_v28  ;;  %v15718_v13 = vsel %vm2503_vm5, %v19742_v32, %v8802_v43  ;;  %v8817_v11 = vunpack.i.l.bf16 %v19741_v28  ;;  %v19743_v44 = vld [vmem:[#allocation172_spill] sm:$0xff]  ;;  %v19747_v41 = vld [vmem:[#allocation198_spill] sm:$0xff]  ;;  %v19748_v43 = vld [vmem:[#allocation75_spill] sm:$0xff] }
 0x681   :  { %19740 = vst [vmem:[#allocation161_spill] sm:$0xff] %v15713_v14  ;;  %v8838_v21 = vunpack.i.h.bf16 %v19743_v44  ;;  %v8837_v9 = vunpack.i.l.bf16 %v19743_v44  ;;  %v15725_v61 = vsel %vm2503_vm5, %v15437_v16, %v8823_v53  ;;  %v15729_v50 = vsel %vm2503_vm5, %v19745_v2, %v8822_v0  ;;  %v19751_v53 = vld [vmem:[#allocation130_spill] sm:$0xff]  ;;  %v19753_v2 = vld [vmem:[#allocation168_spill] sm:$0xff]  ;;  %v19759_v14 = vld [vmem:[#allocation123_spill] sm:$0xff] }
 0x682   :  { %19744 = vst [vmem:[#allocation85_spill] sm:$0xff] %v15725_v61  ;;  %v15733_v30 = vsel %vm2503_vm5, %v19747_v41, %v8797_v39  ;;  %v8812_v32 = vunpack.i.l.bf16 %v19748_v43  ;;  %v15738_v28 = vsel %vm2503_vm5, %v19749_v58, %v8798_v22  ;;  %v8813_v44 = vunpack.i.h.bf16 %v19748_v43  ;;  %v19754_v41 = vld [vmem:[#allocation73_spill] sm:$0xff]  ;;  %v19756_v58 = vld [vmem:[#allocation122_spill] sm:$0xff]  ;;  %v19757_v22 = vld [vmem:[#allocation23_spill] sm:$0xff] }
 0x683   :  { %19746 = vst [vmem:[#allocation119_spill] sm:$0xff] %v15729_v50  ;;  %v8833_v23 = vunpack.i.h.bf16 %v19750_v45  ;;  %v8832_v16 = vunpack.i.l.bf16 %v19750_v45  ;;  %v15745_v0 = vsel %vm2503_vm5, %v19751_v53, %v8818_v4  ;;  %v8853_v24 = vunpack.i.h.bf16 %v19753_v2  ;;  %v19755_v61 = vld [vmem:[#allocation229_spill] sm:$0xff] }
 0x684   :  { %19752 = vst [vmem:[#allocation210_spill] sm:$0xff] %v15745_v0  ;;  %v8852_v39 = vunpack.i.l.bf16 %v19753_v2  ;;  %v8827_v50 = vunpack.i.l.bf16 %v19754_v41  ;;  %v19758_v43 = vpack.i.bf16 %v19756_v58, %v19757_v22  ;;  %v15758_v45 = vsel %vm2503_vm5, %v19759_v14, %v8817_v11  ;;  %v19763_v0 = vld [vmem:[#allocation232_spill] sm:$0xff] }
 0x685   :  { %v15762_v4 = vsel %vm2503_vm5, %v15457_v38, %v8838_v21  ;;  %v15766_v53 = vsel %vm2503_vm5, %v15462_v47, %v8837_v9  ;;  %v8828_v2 = vunpack.i.h.bf16 %v19754_v41  ;;  %v15773_v58 = vsel %vm2503_vm5, %v19763_v0, %v8812_v32  ;;  %v19764_v22 = vld [vmem:[#allocation196_spill] sm:$0xff]  ;;  %v19768_v47 = vld [vmem:[#allocation41_spill] sm:$0xff]  ;;  %v19769_v41 = vld [vmem:[#allocation151_spill] sm:$0xff] }
 0x686   :  { %9420 = vrot.lane.b32.xlu0 %v19755_v61, %s10026_s14  ;;  %9395 = vrot.lane.b32.xlu1 %v19758_v43, %s10026_s14  ;;  %19760 = vst [vmem:[#allocation167_spill] sm:$0xff] %v15762_v4  ;;  %v19762_v61 = vld [vmem:[#allocation33_spill] sm:$0xff]  ;;  %v8848_v14 = vunpack.i.h.bf16 %v19764_v22  ;;  %v8847_v11 = vunpack.i.l.bf16 %v19764_v22  ;;  %v19765_v43 = vld [vmem:[#allocation83_spill] sm:$0xff]  ;;  %v15780_v4 = vpop.permute.xlu1 %9185  ;;  %v15784_v9 = vsel %vm2503_vm5, %v19768_v47, %v8813_v44  ;;  %v15803_v44 = vsel %vm2503_vm5, %v15491_v37, %v8852_v39  ;;  %v19774_v47 = vld [vmem:[#allocation158_spill] sm:$0xff] }
 0x687   :  { %19761 = vst [vmem:[#allocation165_spill] sm:$0xff] %v15766_v53  ;;  %9370 = vrot.lane.b32.xlu2 %v19762_v61, %s10026_s14  ;;  %v8867_v38 = vunpack.i.l.bf16 %v19765_v43  ;;  %v15778_v21 = vpop.permute.xlu0 %9210  ;;  %v15788_v61 = vsel %vm2503_vm5, %v19769_v41, %v8833_v23  ;;  %v19771_v32 = vld [vmem:[#allocation31_spill] sm:$0xff]  ;;  %v8868_v22 = vunpack.i.h.bf16 %v19765_v43  ;;  %v15795_v53 = vpop.permute.xlu2 %9205  ;;  %v15807_v23 = vsel %vm2503_vm5, %v19774_v47, %v8827_v50  ;;  %v19781_v39 = vld [vmem:[#allocation82_spill] sm:$0xff] }
 0x688   :  { %19766 = vst [vmem:[#allocation20_spill] sm:$0xff] %v15778_v21  ;;  %v15792_v0 = vsel %vm2503_vm5, %v19771_v32, %v8832_v16  ;;  %v15799_v21 = vsel %vm2503_vm5, %v15488_v31, %v8853_v24  ;;  %v19775_v41 = vld [vmem:[#allocation223_spill] sm:$0xff]  ;;  %v19776_v16 = vld [vmem:[#allocation118_spill] sm:$0xff]  ;;  %v15819_v37 = vsel %vm2503_vm5, %v15450_v27, %v8848_v14  ;;  %v15823_v24 = vsel %vm2503_vm5, %v15453_v26, %v8847_v11  ;;  %v19785_v11 = vld [vmem:[#allocation213_spill] sm:$0xff] }
 0x689   :  { %19767 = vst [vmem:[#allocation78_spill] sm:$0xff] %v15780_v4  ;;  %v8842_v4 = vunpack.i.l.bf16 %v19775_v41  ;;  %v15812_v32 = vsel %vm2503_vm5, %v19776_v16, %v8828_v2  ;;  %v8843_v43 = vunpack.i.h.bf16 %v19775_v41  ;;  %v15827_v50 = vsel %vm2568_vm6, %v15537_v60, %v8867_v38  ;;  %v19783_v41 = vld [vmem:[#allocation176_spill] sm:$0xff]  ;;  %v19784_v14 = vld [vmem:[#allocation51_spill] sm:$0xff] }
 0x68a   :  { %19770 = vst [vmem:[#allocation192_spill] sm:$0xff] %v15788_v61  ;;  %v8882_v2 = vunpack.i.l.bf16 %v19781_v39  ;;  %v15832_v47 = vsel %vm2568_vm6, %v15541_v8, %v8868_v22  ;;  %v8858_v16 = vunpack.i.h.bf16 %v19783_v41  ;;  %v8857_v27 = vunpack.i.l.bf16 %v19783_v41  ;;  %v19786_v38 = vld [vmem:[#allocation231_spill] sm:$0xff]  ;;  %v19788_v8 = vld [vmem:[#allocation134_spill] sm:$0xff]  ;;  %v19791_v41 = vld [vmem:[#allocation120_spill] sm:$0xff] }
 0x68b   :  { %19772 = vst [vmem:[#allocation40_spill] sm:$0xff] %v15795_v53  ;;  %v19777_v53 = vld [vmem:[#allocation70_spill] sm:$0xff]  ;;  %v15839_v26 = vsel %vm2503_vm5, %v19784_v14, %v8842_v4  ;;  %v8877_v60 = vunpack.i.l.bf16 %v19785_v11  ;;  %v19789_v22 = vld [vmem:[#allocation35_spill] sm:$0xff] }
 0x68c   :  { %19773 = vst [vmem:[#allocation91_spill] sm:$0xff] %v15803_v44  ;;  %v8863_v61 = vunpack.i.h.bf16 %v19777_v53  ;;  %v8862_v31 = vunpack.i.l.bf16 %v19777_v53  ;;  %v8883_v53 = vunpack.i.h.bf16 %v19781_v39  ;;  %v15850_v39 = vsel %vm2503_vm5, %v19789_v22, %v8843_v43  ;;  %v19794_v44 = vld [vmem:[#allocation184_spill] sm:$0xff] }
 0x68d   :  { %19778 = vst [vmem:[#allocation121_spill] sm:$0xff] %v15819_v37  ;;  %v8878_v37 = vunpack.i.h.bf16 %v19785_v11  ;;  %v8898_v11 = vunpack.i.h.bf16 %v19786_v38 }
 0x68e   :  { %19779 = vst [vmem:[#allocation211_spill] sm:$0xff] %v15823_v24  ;;  %v19787_v24 = vld [vmem:[#allocation150_spill] sm:$0xff]  ;;  %9410 = vrot.lane.b32.xlu1 %v19788_v8, %s10026_s14  ;;  %v15854_v4 = vsel %vm2568_vm6, %v15469_v7, %v8863_v61  ;;  %v15858_v14 = vsel %vm2568_vm6, %v19791_v41, %v8862_v31  ;;  %v8893_v7 = vunpack.i.h.bf16 %v19794_v44  ;;  %v15876_v31 = vsel %vm2568_vm6, %v15577_v15, %v8883_v53 }
 0x68f   :  { %19780 = vst [vmem:[#allocation163_spill] sm:$0xff] %v15827_v50  ;;  %v8897_v50 = vunpack.i.l.bf16 %v19786_v38  ;;  %9435 = vrot.lane.b32.xlu0 %v19787_v24, %s10026_s14  ;;  %v15865_v24 = vsel %vm2568_vm6, %v15573_v57, %v8882_v2  ;;  %v19793_v8 = vld [vmem:[#allocation90_spill] sm:$0xff]  ;;  %v15870_v61 = vpop.permute.xlu0 %9225  ;;  %v19798_v57 = vld [vmem:[#allocation71_spill] sm:$0xff]  ;;  %v8892_v41 = vunpack.i.l.bf16 %v19794_v44  ;;  %v15895_v15 = vsel %vm2568_vm6, %v15508_v18, %v8877_v60  ;;  %v19808_v60 = vld [vmem:[#allocation129_spill] sm:$0xff] }
 0x690   :  { %19782 = vst [vmem:[#allocation162_spill] sm:$0xff] %v15832_v47  ;;  %v19792_v47 = vld [vmem:[#allocation72_spill] sm:$0xff]  ;;  %v8873_v43 = vunpack.i.h.bf16 %v19793_v8  ;;  %v8872_v22 = vunpack.i.l.bf16 %v19793_v8  ;;  %v19797_v38 = vld [vmem:[#allocation166_spill] sm:$0xff]  ;;  %v15884_v2 = vsel %vm2503_vm5, %v19798_v57, %v8858_v16  ;;  %v15887_v8 = vpop.permute.xlu2 %9220  ;;  %v15904_v16 = vsel %vm2568_vm6, %v15610_v59, %v8898_v11  ;;  %v19807_v59 = vld [vmem:[#allocation159_spill] sm:$0xff] }
 0x691   :  { %19790 = vst [vmem:[#allocation201_spill] sm:$0xff] %v15854_v4  ;;  %9385 = vrot.lane.b32.xlu2 %v19792_v47, %s10026_s14  ;;  %v15872_v4 = vpop.permute.xlu1 %9200  ;;  %v15880_v47 = vsel %vm2503_vm5, %v19797_v38, %v8857_v27  ;;  %v15899_v53 = vsel %vm2568_vm6, %v15606_v62, %v8897_v50  ;;  %v19803_v27 = vld [vmem:[#allocation94_spill] sm:$0xff]  ;;  %v19805_v57 = vld [vmem:[#allocation224_spill] sm:$0xff]  ;;  %v8908_v50 = vunpack.i.h.bf16 %v19807_v59  ;;  %v15924_v11 = vsel %vm2568_vm6, %v19808_v60, %v8892_v41 }
 0x692   :  { %19795 = vst [vmem:[#allocation87_spill] sm:$0xff] %v15870_v61  ;;  %v15891_v61 = vsel %vm2568_vm6, %v15497_v34, %v8878_v37  ;;  %v8912_v38 = vunpack.i.l.bf16 %v19803_v27  ;;  %v8913_v44 = vunpack.i.h.bf16 %v19803_v27  ;;  %v8887_v34 = vunpack.i.l.bf16 %v19805_v57  ;;  %v19815_v41 = vld [vmem:[#allocation212_spill] sm:$0xff] }
 0x693   :  { %19796 = vst [vmem:[#allocation139_spill] sm:$0xff] %v15872_v4  ;;  %v15911_v18 = vsel %vm2568_vm6, %v15516_v25, %v8872_v22  ;;  %v15915_v62 = vsel %vm2568_vm6, %v15512_v5, %v8873_v43  ;;  %v15919_v37 = vsel %vm2568_vm6, %v15523_v17, %v8893_v7  ;;  %v8907_v27 = vunpack.i.l.bf16 %v19807_v59  ;;  %v19812_v43 = vld [vmem:[#allocation181_spill] sm:$0xff]  ;;  %v19813_v7 = vld [vmem:[#allocation215_spill] sm:$0xff] }
 0x694   :  { %19799 = vst [vmem:[#allocation124_spill] sm:$0xff] %v15887_v8  ;;  %v8888_v8 = vunpack.i.h.bf16 %v19805_v57  ;;  %v19810_v57 = vld [vmem:[#allocation61_spill] sm:$0xff]  ;;  %v15931_v5 = vsel %vm2568_vm6, %v15639_v46, %v8912_v38  ;;  %v8903_v22 = vunpack.i.h.bf16 %v19812_v43  ;;  %v8902_v17 = vunpack.i.l.bf16 %v19812_v43 }
 0x695   :  { %19800 = vst [vmem:[#allocation128_spill] sm:$0xff] %v15891_v61  ;;  %v8928_v4 = vunpack.i.h.bf16 %v19810_v57  ;;  %v8927_v25 = vunpack.i.l.bf16 %v19810_v57  ;;  %v15942_v59 = vsel %vm2568_vm6, %v15644_v55, %v8913_v44  ;;  %v15946_v46 = vsel %vm2568_vm6, %v15550_v35, %v8887_v34  ;;  %v19817_v57 = vld [vmem:[#allocation203_spill] sm:$0xff]  ;;  %v19821_v55 = vld [vmem:[#allocation81_spill] sm:$0xff] }
 0x696   :  { %19801 = vst [vmem:[#allocation169_spill] sm:$0xff] %v15895_v15  ;;  %9425 = vrot.lane.b32.xlu1 %v19815_v41, %s10026_s14  ;;  %v15950_v38 = vsel %vm2568_vm6, %v15545_v48, %v8888_v8  ;;  %v8922_v60 = vunpack.i.l.bf16 %v19813_v7  ;;  %v15959_v41 = vsel %vm2568_vm6, %v15557_v29, %v8908_v50  ;;  %v8943_v44 = vunpack.i.h.bf16 %v19821_v55  ;;  %v19822_v34 = vld [vmem:[#allocation185_spill] sm:$0xff]  ;;  %v15968_v8 = vld [vmem:[#allocation2 + $0x198] sm:$0xff] }
 0x697   :  { %19802 = vst [vmem:[#allocation44_spill] sm:$0xff] %v15899_v53  ;;  %v8942_v35 = vunpack.i.l.bf16 %v19821_v55  ;;  %v15978_v29 = vsel %vm2568_vm6, %v15668_v12, %v8927_v25  ;;  %v15982_v50 = vsel %vm2568_vm6, %v15672_v54, %v8928_v4  ;;  %v15989_v55 = vsel %vm2568_vm6, %v15585_v3, %v8902_v17  ;;  %v19837_v17 = vld [vmem:[#allocation58_spill] sm:$0xff] }
 0x698   :  { %19804 = vst [vmem:[#allocation69_spill] sm:$0xff] %v15904_v16  ;;  %v19814_v16 = vld [vmem:[#allocation152_spill] sm:$0xff]  ;;  %v16002_v54 = vsel %vm2568_vm6, %v15602_v42, %v8922_v60  ;;  %v8953_v60 = vunpack.i.h.bf16 %v19837_v17 }
 0x699   :  { %19806 = vst [vmem:[#allocation132_spill] sm:$0xff] %v15919_v37  ;;  %v8923_v37 = vunpack.i.h.bf16 %v19813_v7  ;;  %9450 = vrot.lane.b32.xlu0 %v19814_v16, %s10026_s14  ;;  %v19818_v16 = vld [vmem:[#allocation88_spill] sm:$0xff]  ;;  %v15966_v48 = vpop.permute.xlu1 %9215 }
 0x69a   :  { %19809 = vst [vmem:[#allocation164_spill] sm:$0xff] %v15924_v11  ;;  %v19819_v43 = vpack.i.bf16 %v19817_v57, %v19818_v16  ;;  %v15970_v7 = vld [vmem:[#allocation2 + $0x1a0] sm:$0xff]  ;;  %v15974_v57 = vsel %vm2568_vm6, %v15561_v49, %v8907_v27  ;;  %v8918_v16 = vunpack.i.h.bf16 %v19822_v34  ;;  %v15993_v49 = vsel %vm2568_vm6, %v15581_v33, %v8903_v22  ;;  %v19830_v27 = vld [vmem:[#allocation217_spill] sm:$0xff] }
 0x69b   :  { %19811 = vst [vmem:[#allocation140_spill] sm:$0xff] %v15931_v5  ;;  %v15964_v5 = vpop.permute.xlu0 %9240  ;;  %v15997_v12 = vsel %vm2568_vm6, %v15591_v56, %v8923_v37  ;;  %v8957_v25 = vunpack.i.l.bf16 %v19830_v27  ;;  %v9414_v3 = vpack.i.bf16 %v15970_v7, %v15968_v8  ;;  %v16010_v33 = vsel %vm2568_vm6, %v15705_v51, %v8942_v35  ;;  %v19838_v51 = vld [vmem:[#allocation199_spill] sm:$0xff] }
 0x69c   :  { %19816 = vst [vmem:[#allocation141_spill] sm:$0xff] %v15942_v59  ;;  %9400 = vrot.lane.b32.xlu2 %v19819_v43, %s10026_s14  ;;  %v8917_v59 = vunpack.i.l.bf16 %v19822_v34  ;;  %v15985_v43 = vpop.permute.xlu2 %9235  ;;  %v16014_v56 = vsel %vm2568_vm6, %v15709_v40, %v8943_v44  ;;  %v16023_v22 = vsel %vm2568_vm6, %v15617_v63, %v8918_v16  ;;  %v8972_v35 = vunpack.i.l.bf16 %v19838_v51  ;;  %v19840_v34 = vld [vmem:[#allocation47_spill] sm:$0xff]  ;;  %v19841_v63 = vld [vmem:[#allocation157_spill] sm:$0xff] }
 0x69d   :  { %19820 = vst [vmem:[#allocation68_spill] sm:$0xff] %v15959_v41  ;;  %v16030_v40 = vsel %vm2568_vm6, %v15733_v30, %v8957_v25  ;;  %v8973_v44 = vunpack.i.h.bf16 %v19838_v51  ;;  %v19842_v16 = vpack.i.bf16 %v19840_v34, %v19841_v63  ;;  %v19844_v30 = vld [vmem:[#allocation13_spill] sm:$0xff] }
 0x69e   :  { %19823 = vst [vmem:[#allocation226_spill] sm:$0xff] %v15964_v5  ;;  %v16018_v37 = vsel %vm2568_vm6, %v15621_v52, %v8917_v59  ;;  %v19839_v52 = vld [vmem:[#allocation205_spill] sm:$0xff]  ;;  %v8968_v25 = vunpack.i.h.bf16 %v19844_v30  ;;  %v8967_v51 = vunpack.i.l.bf16 %v19844_v30 }
 0x69f   :  { %19824 = vst [vmem:[#allocation175_spill] sm:$0xff] %v15966_v48  ;;  %v8948_v59 = vunpack.i.h.bf16 %v19839_v52  ;;  %v8947_v42 = vunpack.i.l.bf16 %v19839_v52 }
 0x6a0   :  { %19825 = vst [vmem:[#allocation222_spill] sm:$0xff] %v15974_v57 }
 0x6a1   :  { %19826 = vst [vmem:[#allocation233_spill] sm:$0xff] %v15978_v29  ;;  %9465 = vrot.lane.b32.xlu0 %v19842_v16, %s10026_s14  ;;  %v19847_v16 = vld [vmem:[#allocation53_spill] sm:$0xff]  ;;  %v19865_v29 = vld [vmem:[#allocation227_spill] sm:$0xff] }
 0x6a2   :  { %19827 = vst [vmem:[#allocation173_spill] sm:$0xff] %v15982_v50 }
 0x6a3   :  { %19828 = vst [vmem:[#allocation142_spill] sm:$0xff] %v15985_v43  ;;  %v8958_v43 = vunpack.i.h.bf16 %v19830_v27  ;;  %v8952_v27 = vunpack.i.l.bf16 %v19837_v17  ;;  %v16053_v4 = vpop.permute.xlu0 %9255 }
 0x6a4   :  { %19829 = vst [vmem:[#allocation214_spill] sm:$0xff] %v15997_v12  ;;  %9415 = vrot.lane.b32.xlu2 %v9414_v3, %s10026_s14  ;;  %v16063_v3 = vsel %vm2568_vm6, %v15773_v58, %v8972_v35  ;;  %v16066_v12 = vpop.permute.xlu2 %9250  ;;  %v16079_v58 = vsel %vm2568_vm6, %v15694_v36, %v8968_v25  ;;  %v19852_v36 = vld [vmem:[#allocation161_spill] sm:$0xff] }
 0x6a5   :  { %19831 = vst [vmem:[#allocation221_spill] sm:$0xff] %v16002_v54  ;;  %v16043_v17 = vsel %vm2568_vm6, %v15738_v28, %v8958_v43  ;;  %v16055_v28 = vpop.permute.xlu1 %9230  ;;  %v5689_v43 = vsel %vm2568_vm6, %v15651_v20, %v8953_v60  ;;  %v5688_v30 = vsel %vm2568_vm6, %v15664_v6, %v8952_v27  ;;  %v5687_v20 = vsel %vm2568_vm6, %v15679_v1, %v8948_v59  ;;  %v19851_v60 = vld [vmem:[#allocation216_spill] sm:$0xff]  ;;  %v19855_v59 = vld [vmem:[#allocation126_spill] sm:$0xff]  ;;  %v3517_v54 = vld [vmem:[#allocation2 + $0x348] sm:$0xff] }
 0x6a6   :  { %19833 = vst [vmem:[#allocation17_spill] sm:$0xff] %v16010_v33  ;;  %v19845_v33 = vld [vmem:[#allocation174_spill] sm:$0xff]  ;;  %v9002_v6 = vunpack.i.l.bf16 %v19851_v60  ;;  %v16083_v27 = vsel %vm2568_vm6, %v15698_v19, %v8967_v51  ;;  %v9003_v35 = vunpack.i.h.bf16 %v19851_v60  ;;  %v19853_v19 = vld [vmem:[#allocation85_spill] sm:$0xff]  ;;  %v8978_v25 = vunpack.i.h.bf16 %v19855_v59 }
 0x6a7   :  { %19834 = vst [vmem:[#allocation171_spill] sm:$0xff] %v16014_v56  ;;  %v19843_v56 = vld [vmem:[#allocation195_spill] sm:$0xff]  ;;  %v8988_v52 = vunpack.i.h.bf16 %v19845_v33  ;;  %v19856_v51 = vld [vmem:[#allocation37_spill] sm:$0xff]  ;;  %v19858_v60 = vld [vmem:[#allocation46_spill] sm:$0xff] }
 0x6a8   :  { %19835 = vst [vmem:[#allocation146_spill] sm:$0xff] %v16018_v37  ;;  %9440 = vrot.lane.b32.xlu1 %v19843_v56, %s10026_s14  ;;  %v19846_v37 = vld [vmem:[#allocation225_spill] sm:$0xff]  ;;  %v8983_v56 = vunpack.i.h.bf16 %v19847_v16 }
 0x6a9   :  { %19836 = vst [vmem:[#allocation178_spill] sm:$0xff] %v16023_v22  ;;  %v8987_v22 = vunpack.i.l.bf16 %v19845_v33  ;;  %v8963_v34 = vunpack.i.h.bf16 %v19846_v37  ;;  %v8962_v63 = vunpack.i.l.bf16 %v19846_v37  ;;  %v8982_v33 = vunpack.i.l.bf16 %v19847_v16  ;;  %9480 = vrot.lane.b32.xlu0 %v19858_v60, %s10026_s14  ;;  %v3518_v60 = vld [vmem:[#allocation2 + $0x350] sm:$0xff] }
 0x6aa   :  { %19848 = vst [vmem:[#allocation143_spill] sm:$0xff] %v16053_v4  ;;  %v16070_v37 = vsel %vm2568_vm6, %v15784_v9, %v8973_v44  ;;  %v5686_v4 = vsel %vm2568_vm6, %v15690_v10, %v8947_v42  ;;  %v16092_v10 = vsel %vm2568_vm6, %v15812_v32, %v8988_v52  ;;  %v16104_v44 = vsel %vm2568_vm6, %v19853_v19, %v8983_v56 }
 0x6ab   :  { %19849 = vst [vmem:[#allocation100_spill] sm:$0xff] %v16055_v28  ;;  %v16087_v9 = vsel %vm2568_vm6, %v15807_v23, %v8987_v22  ;;  %v16096_v1 = vsel %vm2568_vm6, %v15718_v13, %v8962_v63  ;;  %v16100_v42 = vsel %vm2568_vm6, %v19852_v36, %v8963_v34  ;;  %v19854_v23 = vld [vmem:[#allocation119_spill] sm:$0xff]  ;;  %v8977_v32 = vunpack.i.l.bf16 %v19855_v59  ;;  %v19857_v34 = vld [vmem:[#allocation177_spill] sm:$0xff]  ;;  %v19860_v36 = vld [vmem:[#allocation154_spill] sm:$0xff] }
 0x6ac   :  { %19850 = vst [vmem:[#allocation92_spill] sm:$0xff] %v16066_v12  ;;  %v16108_v22 = vsel %vm2568_vm6, %v19854_v23, %v8982_v33  ;;  %v9112_v52 = vunpack.i.l.bf16 %v19856_v51  ;;  %v16115_v13 = vsel %vm2568_vm6, %v15839_v26, %v9002_v6  ;;  %v8998_v63 = vunpack.i.h.bf16 %v19857_v34  ;;  %v19859_v33 = vld [vmem:[#allocation93_spill] sm:$0xff]  ;;  %v19862_v26 = vld [vmem:[#allocation218_spill] sm:$0xff] }
 0x6ad   :  { %v8997_v16 = vunpack.i.l.bf16 %v19857_v34  ;;  %v9113_v56 = vunpack.i.h.bf16 %v19856_v51  ;;  %v19861_v19 = vpack.i.bf16 %v19859_v33, %v19860_v36  ;;  %v16128_v23 = vsel %vm2568_vm6, %v15850_v39, %v9003_v35  ;;  %v19863_v59 = vld [vmem:[#allocation86_spill] sm:$0xff]  ;;  %v19864_v51 = vld [vmem:[#allocation76_spill] sm:$0xff]  ;;  %v9271_v35 = vpop.permute.xlu0 %9270  ;;  %v16139_v5 = vpop.permute.xlu1 %9245 }
 0x6ae   :  { %v9018_v6 = vunpack.i.h.bf16 %v19862_v26  ;;  %v9108_v12 = vunpack.i.h.bf16 %v19863_v59  ;;  %v9107_v34 = vunpack.i.l.bf16 %v19863_v59  ;;  %9430 = vrot.lane.b32.xlu2 %v19864_v51, %s10026_s14  ;;  %v9017_v50 = vunpack.i.l.bf16 %v19862_v26  ;;  %19867 = vst [vmem:[#allocation220_spill] sm:$0xff] %v16139_v5  ;;  %v9266_v51 = vpop.permute.xlu2 %9265 }
 0x6af   :  { %v8993_v33 = vunpack.i.h.bf16 %v19865_v29  ;;  %v8992_v36 = vunpack.i.l.bf16 %v19865_v29  ;;  %v5752_v59 = vsel %vm2633_vm8, %v5688_v30, %v9112_v52  ;;  %v9273_v41 = vunpack.i.h.bf16 %v9271_v35  ;;  %v19868_v52 = vld [vmem:[#allocation210_spill] sm:$0xff] }
 0x6b0   :  { %9455 = vrot.lane.b32.xlu1 %v19861_v19, %s10026_s14  ;;  %v19866_v19 = vld [vmem:[#allocation200_spill] sm:$0xff]  ;;  %v9272_v57 = vunpack.i.l.bf16 %v9271_v35  ;;  %v5753_v48 = vsel %vm2633_vm8, %v5689_v43, %v9113_v56  ;;  %v9268_v11 = vunpack.i.h.bf16 %v9266_v51  ;;  %v9267_v26 = vunpack.i.l.bf16 %v9266_v51 }
 0x6b1   :  { %v9013_v39 = vunpack.i.h.bf16 %v19866_v19  ;;  %v9012_v28 = vunpack.i.l.bf16 %v19866_v19  ;;  %v9494_v53 = vpack.i.bf16 %v3518_v60, %v3517_v54  ;;  %v5750_v61 = vsel %vm2633_vm8, %v5686_v4, %v9107_v34  ;;  %v19869_v4 = vld [vmem:[#allocation167_spill] sm:$0xff] }
 0x6b2   :  { %v5751_v29 = vsel %vm2633_vm8, %v5687_v20, %v9108_v12  ;;  %v16147_v15 = vsel %vm2698_vm7, %v5752_v59, %v9272_v57  ;;  %v16150_v5 = vsel %vm2698_vm7, %v5753_v48, %v9273_v41  ;;  %v5698_v30 = vsel %vm2568_vm6, %v15758_v45, %v8977_v32  ;;  %v19870_v57 = vld [vmem:[#allocation165_spill] sm:$0xff]  ;;  %v19880_v59 = vld [vmem:[#allocation22_spill] sm:$0xff] }
 0x6b3   :  { %v5699_v19 = vsel %vm2568_vm6, %v19868_v52, %v8978_v25  ;;  %v16157_v43 = vsel %vm2698_vm7, %v5750_v61, %v9267_v26  ;;  %v16160_v54 = vsel %vm2698_vm7, %v5751_v29, %v9268_v11  ;;  %v16164_v12 = vsel %vm2568_vm6, %v19869_v4, %v8998_v63  ;;  %v19871_v11 = vld [vmem:[#allocation192_spill] sm:$0xff]  ;;  %v19872_v25 = vld [vmem:[#allocation219_spill] sm:$0xff]  ;;  %9495 = vrot.lane.b32.xlu0 %v9494_v53, %s10026_s14 }
 0x6b4   :  { %v16168_v41 = vsel %vm2568_vm6, %v19870_v57, %v8997_v16  ;;  %v16172_v45 = vsel %vm2568_vm6, %v15880_v47, %v9017_v50  ;;  %v16176_v48 = vsel %vm2568_vm6, %v15884_v2, %v9018_v6  ;;  %v16180_v61 = vsel %vm2568_vm6, %v15792_v0, %v8992_v36  ;;  %v19873_v47 = vld [vmem:[#allocation32_spill] sm:$0xff]  ;;  %v19874_v50 = vld [vmem:[#allocation11_spill] sm:$0xff] }
 0x6b5   :  { %v16184_v20 = vsel %vm2568_vm6, %v19871_v11, %v8993_v33  ;;  %v9128_v32 = vunpack.i.h.bf16 %v19872_v25  ;;  %v9127_v63 = vunpack.i.l.bf16 %v19872_v25  ;;  %v19875_v16 = vpack.i.bf16 %v19873_v47, %v19874_v50  ;;  %v19876_v0 = vld [vmem:[#allocation91_spill] sm:$0xff]  ;;  %v19877_v6 = vld [vmem:[#allocation180_spill] sm:$0xff]  ;;  %v16209_v26 = vpop.permute.xlu1 %9260 }
 0x6b6   :  { %v16195_v2 = vsel %vm2568_vm6, %v15799_v21, %v9013_v39  ;;  %v16199_v56 = vsel %vm2568_vm6, %v19876_v0, %v9012_v28  ;;  %v9123_v34 = vunpack.i.h.bf16 %v19877_v6  ;;  %v9122_v60 = vunpack.i.l.bf16 %v19877_v6  ;;  %v19878_v33 = vld [vmem:[#allocation136_spill] sm:$0xff]  ;;  %v19879_v53 = vld [vmem:[#allocation19_spill] sm:$0xff]  ;;  %v9286_v39 = vpop.permute.xlu0 %9285  ;;  %v19881_v28 = vld [vmem:[#allocation65_spill] sm:$0xff]  ;;  %v9281_v11 = vpop.permute.xlu2 %9280 }
 0x6b7   :  { %9445 = vrot.lane.b32.xlu2 %v19878_v33, %s10026_s14  ;;  %v9033_v36 = vunpack.i.h.bf16 %v19879_v53  ;;  %v9032_v35 = vunpack.i.l.bf16 %v19879_v53  ;;  %v9008_v51 = vunpack.i.h.bf16 %v19880_v59  ;;  %v9007_v21 = vunpack.i.l.bf16 %v19880_v59  ;;  %v19882_v59 = vld [vmem:[#allocation145_spill] sm:$0xff] }
 0x6b8   :  { %9470 = vrot.lane.b32.xlu1 %v19875_v16, %s10026_s14  ;;  %v9118_v29 = vunpack.i.h.bf16 %v19881_v28  ;;  %v9117_v52 = vunpack.i.l.bf16 %v19881_v28  ;;  %v9288_v4 = vunpack.i.h.bf16 %v9286_v39  ;;  %v9287_v57 = vunpack.i.l.bf16 %v9286_v39  ;;  %v19886_v28 = vld [vmem:[#allocation211_spill] sm:$0xff] }
 0x6b9   :  { %v5758_v25 = vsel %vm2633_vm8, %v16083_v27, %v9127_v63  ;;  %v5759_v47 = vsel %vm2633_vm8, %v16079_v58, %v9128_v32  ;;  %v9283_v50 = vunpack.i.h.bf16 %v9281_v11  ;;  %v9282_v16 = vunpack.i.l.bf16 %v9281_v11  ;;  %v19885_v63 = vld [vmem:[#allocation79_spill] sm:$0xff] }
 0x6ba   :  { %v5756_v0 = vsel %vm2633_vm8, %v16096_v1, %v9122_v60  ;;  %v5757_v6 = vsel %vm2633_vm8, %v16100_v42, %v9123_v34  ;;  %v16222_v33 = vsel %vm2698_vm7, %v5758_v25, %v9287_v57  ;;  %v16225_v53 = vsel %vm2698_vm7, %v5759_v47, %v9288_v4  ;;  %v19887_v57 = vld [vmem:[#allocation121_spill] sm:$0xff]  ;;  %v19888_v25 = vld [vmem:[#allocation74_spill] sm:$0xff] }
 0x6bb   :  { %v9138_v39 = vunpack.i.h.bf16 %v19882_v59  ;;  %v9137_v27 = vunpack.i.l.bf16 %v19882_v59  ;;  %v16230_v58 = vsel %vm2698_vm7, %v5756_v0, %v9282_v16  ;;  %v16233_v32 = vsel %vm2698_vm7, %v5757_v6, %v9283_v50  ;;  %v19891_v50 = vld [vmem:[#allocation149_spill] sm:$0xff]  ;;  %v19892_v0 = vld [vmem:[#allocation80_spill] sm:$0xff] }
 0x6bc   :  { %19883 = vst [vmem:[#allocation144_spill] sm:$0xff] %v16230_v58  ;;  %v16237_v1 = vsel %vm2633_vm8, %v15911_v18, %v9032_v35  ;;  %v16241_v42 = vsel %vm2633_vm8, %v15915_v62, %v9033_v36  ;;  %v9028_v34 = vunpack.i.h.bf16 %v19885_v63  ;;  %v9027_v60 = vunpack.i.l.bf16 %v19885_v63  ;;  %v19889_v35 = vld [vmem:[#allocation97_spill] sm:$0xff] }
 0x6bd   :  { %19884 = vst [vmem:[#allocation194_spill] sm:$0xff] %v16233_v32  ;;  %v16247_v4 = vsel %vm2568_vm6, %v19886_v28, %v9007_v21  ;;  %v16251_v11 = vsel %vm2568_vm6, %v19887_v57, %v9008_v51  ;;  %v9143_v47 = vunpack.i.h.bf16 %v19888_v25  ;;  %v9142_v18 = vunpack.i.l.bf16 %v19888_v25  ;;  %9510 = vrot.lane.b32.xlu0 %v19889_v35, %s10027_s15  ;;  %v19890_v62 = vld [vmem:[#allocation21_spill] sm:$0xff]  ;;  %v19895_v57 = vld [vmem:[#allocation52_spill] sm:$0xff]  ;;  %v9276_v35 = vpop.permute.xlu1 %9275 }
 0x6be   :  { %v5754_v36 = vsel %vm2633_vm8, %v16030_v40, %v9117_v52  ;;  %v5755_v21 = vsel %vm2633_vm8, %v16043_v17, %v9118_v29  ;;  %v9133_v16 = vunpack.i.h.bf16 %v19891_v50  ;;  %v9132_v51 = vunpack.i.l.bf16 %v19891_v50  ;;  %v19893_v6 = vld [vmem:[#allocation57_spill] sm:$0xff]  ;;  %v9301_v52 = vpop.permute.xlu0 %9300  ;;  %v9296_v50 = vpop.permute.xlu2 %9295 }
 0x6bf   :  { %v19894_v59 = vpack.i.bf16 %v19892_v0, %v19893_v6  ;;  %v5762_v63 = vsel %vm2633_vm8, %v5698_v30, %v9137_v27  ;;  %v5763_v28 = vsel %vm2633_vm8, %v5699_v19, %v9138_v39  ;;  %v9153_v25 = vunpack.i.h.bf16 %v19895_v57 }
 0x6c0   :  { %9485 = vrot.lane.b32.xlu1 %v19890_v62, %s10026_s14  ;;  %v9152_v40 = vunpack.i.l.bf16 %v19895_v57  ;;  %v9303_v17 = vunpack.i.h.bf16 %v9301_v52  ;;  %v9302_v29 = vunpack.i.l.bf16 %v9301_v52  ;;  %v9278_v62 = vunpack.i.h.bf16 %v9276_v35  ;;  %v19897_v57 = vld [vmem:[#allocation56_spill] sm:$0xff] }
 0x6c1   :  { %9460 = vrot.lane.b32.xlu2 %v19894_v59, %s10026_s14  ;;  %v9277_v32 = vunpack.i.l.bf16 %v9276_v35  ;;  %v5764_v58 = vsel %vm2633_vm8, %v16108_v22, %v9142_v18  ;;  %v5765_v0 = vsel %vm2633_vm8, %v16104_v44, %v9143_v47  ;;  %v9298_v30 = vunpack.i.h.bf16 %v9296_v50  ;;  %v19901_v35 = vld [vmem:[#allocation162_spill] sm:$0xff] }
 0x6c2   :  { %v9297_v27 = vunpack.i.l.bf16 %v9296_v50  ;;  %v16278_v19 = vsel %vm2698_vm7, %v5764_v58, %v9302_v29  ;;  %v16281_v39 = vsel %vm2698_vm7, %v5765_v0, %v9303_v17  ;;  %v16287_v59 = vsel %vm2698_vm7, %v5755_v21, %v9278_v62  ;;  %v19900_v58 = vld [vmem:[#allocation163_spill] sm:$0xff]  ;;  %v19903_v29 = vld [vmem:[#allocation12_spill] sm:$0xff] }
 0x6c3   :  { %19896 = vst [vmem:[#allocation172_spill] sm:$0xff] %v16281_v39  ;;  %v16284_v6 = vsel %vm2698_vm7, %v5754_v36, %v9277_v32  ;;  %v9158_v52 = vunpack.i.h.bf16 %v19897_v57  ;;  %v9157_v22 = vunpack.i.l.bf16 %v19897_v57  ;;  %v16295_v47 = vsel %vm2698_vm7, %v5763_v28, %v9298_v30  ;;  %v19902_v36 = vld [vmem:[#allocation155_spill] sm:$0xff]  ;;  %v19906_v30 = vld [vmem:[#allocation182_spill] sm:$0xff]  ;;  %v19907_v57 = vld [vmem:[#allocation49_spill] sm:$0xff] }
 0x6c4   :  { %v16292_v44 = vsel %vm2698_vm7, %v5762_v63, %v9297_v27  ;;  %19899 = vst [vmem:[#allocation198_spill] sm:$0xff] %v16295_v47  ;;  %v16299_v18 = vsel %vm2633_vm8, %v19900_v58, %v9027_v60  ;;  %v16303_v32 = vsel %vm2633_vm8, %v19901_v35, %v9028_v34  ;;  %v9048_v21 = vunpack.i.h.bf16 %v19902_v36  ;;  %v19904_v50 = vld [vmem:[#allocation131_spill] sm:$0xff] }
 0x6c5   :  { %19898 = vst [vmem:[#allocation207_spill] sm:$0xff] %v16292_v44  ;;  %v9047_v17 = vunpack.i.l.bf16 %v19902_v36  ;;  %v9023_v62 = vunpack.i.h.bf16 %v19903_v29  ;;  %v9022_v63 = vunpack.i.l.bf16 %v19903_v29  ;;  %v5760_v28 = vsel %vm2633_vm8, %v16063_v3, %v9132_v51  ;;  %v19905_v60 = vld [vmem:[#allocation135_spill] sm:$0xff]  ;;  %v19908_v36 = vld [vmem:[#allocation54_spill] sm:$0xff]  ;;  %v19909_v51 = vld [vmem:[#allocation209_spill] sm:$0xff] }
 0x6c6   :  { %9525 = vrot.lane.b32.xlu0 %v19905_v60, %s10027_s15  ;;  %v5761_v34 = vsel %vm2633_vm8, %v16070_v37, %v9133_v16  ;;  %v5768_v27 = vsel %vm2633_vm8, %v16180_v61, %v9152_v40  ;;  %v9148_v58 = vunpack.i.h.bf16 %v19907_v57  ;;  %v9147_v35 = vunpack.i.l.bf16 %v19907_v57  ;;  %v9316_v16 = vpop.permute.xlu0 %9315  ;;  %v9291_v61 = vpop.permute.xlu1 %9290 }
 0x6c7   :  { %v5769_v3 = vsel %vm2633_vm8, %v16184_v20, %v9153_v25  ;;  %v9168_v29 = vunpack.i.h.bf16 %v19909_v51  ;;  %v5770_v60 = vsel %vm2633_vm8, %v16168_v41, %v9157_v22  ;;  %v5771_v37 = vsel %vm2633_vm8, %v16164_v12, %v9158_v52  ;;  %v9311_v47 = vpop.permute.xlu2 %9310 }
 0x6c8   :  { %9500 = vrot.lane.b32.xlu1 %v19906_v30, %s10027_s15  ;;  %v9318_v40 = vunpack.i.h.bf16 %v9316_v16  ;;  %v9317_v30 = vunpack.i.l.bf16 %v9316_v16  ;;  %v9293_v0 = vunpack.i.h.bf16 %v9291_v61  ;;  %v9292_v57 = vunpack.i.l.bf16 %v9291_v61  ;;  %v19910_v16 = vld [vmem:[#allocation59_spill] sm:$0xff] }
 0x6c9   :  { %9475 = vrot.lane.b32.xlu2 %v19908_v36, %s10026_s14  ;;  %v3969_v36 = vrot.slane %v15970_v7, 1  ;;  %v3968_v44 = vrot.slane %v15968_v8, 1  ;;  %v9313_v20 = vunpack.i.h.bf16 %v9311_v47  ;;  %v9312_v25 = vunpack.i.l.bf16 %v9311_v47 }
 0x6ca   :  { %v16334_v39 = vsel %vm2698_vm7, %v5770_v60, %v9317_v30  ;;  %v16337_v41 = vsel %vm2698_vm7, %v5771_v37, %v9318_v40  ;;  %v16340_v12 = vsel %vm2698_vm7, %v5760_v28, %v9292_v57  ;;  %v16343_v52 = vsel %vm2698_vm7, %v5761_v34, %v9293_v0 }
 0x6cb   :  { %v9167_v22 = vunpack.i.l.bf16 %v19909_v51  ;;  %v9172_v7 = vunpack.i.l.bf16 %v19910_v16  ;;  %v16348_v8 = vsel %vm2698_vm7, %v5768_v27, %v9312_v25  ;;  %v16351_v47 = vsel %vm2698_vm7, %v5769_v3, %v9313_v20  ;;  %v19911_v51 = vld [vmem:[#allocation201_spill] sm:$0xff] }
 0x6cc   :  { %v16355_v60 = vsel %vm2633_vm8, %v15946_v46, %v9047_v17  ;;  %v16359_v28 = vsel %vm2633_vm8, %v15950_v38, %v9048_v21  ;;  %v5716_v0 = vsel %vm2633_vm8, %v15858_v14, %v9022_v63  ;;  %v9042_v34 = vunpack.i.l.bf16 %v19904_v50  ;;  %v19912_v46 = vld [vmem:[#allocation153_spill] sm:$0xff]  ;;  %v19913_v17 = vld [vmem:[#allocation99_spill] sm:$0xff] }
 0x6cd   :  { %v5717_v27 = vsel %vm2633_vm8, %v19911_v51, %v9023_v62  ;;  %v5766_v3 = vsel %vm2633_vm8, %v16087_v9, %v9147_v35  ;;  %v9173_v37 = vunpack.i.h.bf16 %v19910_v16  ;;  %v16373_v38 = vld [vmem:[#allocation2 + $0x1a8] sm:$0x3]  ;;  %v16376_v14 = vsel %vm529_vm2, %v3968_v44, %v3969_v36  ;;  %v19915_v62 = vld [vmem:[#allocation55_spill] sm:$0xff]  ;;  %v19916_v35 = vld [vmem:[#allocation138_spill] sm:$0xff] }
 0x6ce   :  { %9540 = vrot.lane.b32.xlu0 %v19912_v46, %s10027_s15  ;;  %19914 = vst [vmem:[#allocation75_spill] sm:$0xff] %v16373_v38  ;;  %v5767_v21 = vsel %vm2633_vm8, %v16092_v10, %v9148_v58  ;;  %v9163_v63 = vunpack.i.h.bf16 %v19915_v62  ;;  %v9162_v9 = vunpack.i.l.bf16 %v19915_v62  ;;  %v3971_v61 = vrot.slane %v16373_v38, 1  ;;  %v19917_v44 = vld [vmem:[#allocation160_spill] sm:$0xff]  ;;  %v9331_v58 = vpop.permute.xlu0 %9330  ;;  %v9306_v20 = vpop.permute.xlu1 %9305 }
 0x6cf   :  { %v5774_v40 = vsel %vm2633_vm8, %v16247_v4, %v9167_v22  ;;  %v5775_v30 = vsel %vm2633_vm8, %v16251_v11, %v9168_v29  ;;  %v9183_v57 = vunpack.i.h.bf16 %v19917_v44  ;;  %v5776_v10 = vsel %vm2633_vm8, %v16199_v56, %v9172_v7 }
 0x6d0   :  { %9515 = vrot.lane.b32.xlu1 %v19913_v17, %s10027_s15  ;;  %v9333_v25 = vunpack.i.h.bf16 %v9331_v58  ;;  %v9332_v16 = vunpack.i.l.bf16 %v9331_v58  ;;  %v9308_v51 = vunpack.i.h.bf16 %v9306_v20  ;;  %v9307_v46 = vunpack.i.l.bf16 %v9306_v20  ;;  %v9326_v17 = vpop.permute.xlu2 %9325  ;;  %v19921_v20 = vld [vmem:[#allocation202_spill] sm:$0xff] }
 0x6d1   :  { %9490 = vrot.lane.b32.xlu2 %v19916_v35, %s10026_s14  ;;  %v5777_v62 = vsel %vm2633_vm8, %v16195_v2, %v9173_v37  ;;  %v9328_v35 = vunpack.i.h.bf16 %v9326_v17  ;;  %v9327_v4 = vunpack.i.l.bf16 %v9326_v17  ;;  %v16395_v22 = vsel %vm529_vm2, %v3969_v36, %v3971_v61 }
 0x6d2   :  { %v16398_v11 = vsel %vm2698_vm7, %v5776_v10, %v9332_v16  ;;  %v16401_v56 = vsel %vm2698_vm7, %v5777_v62, %v9333_v25  ;;  %v16404_v29 = vsel %vm2698_vm7, %v5766_v3, %v9307_v46  ;;  %v16407_v7 = vsel %vm2698_vm7, %v5767_v21, %v9308_v51  ;;  %v19922_v16 = vld [vmem:[#allocation78_spill] sm:$0xff] }
 0x6d3   :  { %v9182_v58 = vunpack.i.l.bf16 %v19917_v44  ;;  %v16411_v2 = vsel %vm2698_vm7, %v5774_v40, %v9327_v4  ;;  %v16414_v36 = vsel %vm2698_vm7, %v5775_v30, %v9328_v35  ;;  %v16420_v61 = vsel %vm2633_vm8, %v15865_v24, %v9042_v34  ;;  %v19920_v44 = vld [vmem:[#allocation148_spill] sm:$0xff]  ;;  %v19923_v24 = vld [vmem:[#allocation170_spill] sm:$0xff] }
 0x6d4   :  { %19918 = vst [vmem:[#allocation183_spill] sm:$0xff] %v16414_v36  ;;  %v19919_v3 = vunpack.i.h.bf16 %v19904_v50  ;;  %v9063_v10 = vunpack.i.h.bf16 %v19920_v44  ;;  %v9062_v40 = vunpack.i.l.bf16 %v19920_v44  ;;  %v9038_v30 = vunpack.i.h.bf16 %v19921_v20  ;;  %v19924_v50 = vld [vmem:[#allocation106_spill] sm:$0xff] }
 0x6d5   :  { %v9037_v25 = vunpack.i.l.bf16 %v19921_v20  ;;  %v9188_v51 = vunpack.i.h.bf16 %v19922_v16  ;;  %v9187_v46 = vunpack.i.l.bf16 %v19922_v16  ;;  %v5772_v62 = vsel %vm2633_vm8, %v16115_v13, %v9162_v9  ;;  %v19926_v4 = vld [vmem:[#allocation186_spill] sm:$0xff]  ;;  %v19927_v20 = vld [vmem:[#allocation63_spill] sm:$0xff] }
 0x6d6   :  { %v16426_v21 = vsel %vm2633_vm8, %v15876_v31, %v19919_v3  ;;  %9555 = vrot.lane.b32.xlu0 %v19923_v24, %s10027_s15  ;;  %v19925_v31 = vld [vmem:[#allocation48_spill] sm:$0xff]  ;;  %v5773_v35 = vsel %vm2633_vm8, %v16128_v23, %v9163_v63  ;;  %v5780_v3 = vsel %vm2698_vm7, %v5716_v0, %v9182_v58  ;;  %v5781_v44 = vsel %vm2698_vm7, %v5717_v27, %v9183_v57  ;;  %v9321_v37 = vpop.permute.xlu1 %9320 }
 0x6d7   :  { %v9058_v34 = vunpack.i.h.bf16 %v19925_v31  ;;  %v9057_v17 = vunpack.i.l.bf16 %v19925_v31  ;;  %v9178_v16 = vunpack.i.h.bf16 %v19927_v20  ;;  %v9177_v24 = vunpack.i.l.bf16 %v19927_v20  ;;  %v19928_v20 = vld [vmem:[#allocation67_spill] sm:$0xff] }
 0x6d8   :  { %9530 = vrot.lane.b32.xlu1 %v19924_v50, %s10027_s15  ;;  %v9346_v50 = vpop.permute.xlu0 %9345  ;;  %v9323_v36 = vunpack.i.h.bf16 %v9321_v37  ;;  %v9322_v13 = vunpack.i.l.bf16 %v9321_v37  ;;  %v9341_v9 = vpop.permute.xlu2 %9340  ;;  %v5782_v23 = vsel %vm2698_vm7, %v16299_v18, %v9187_v46  ;;  %v5783_v63 = vsel %vm2698_vm7, %v16303_v32, %v9188_v51 }
 0x6d9   :  { %9505 = vrot.lane.b32.xlu2 %v19926_v4, %s10027_s15  ;;  %v9348_v31 = vunpack.i.h.bf16 %v9346_v50  ;;  %v9347_v38 = vunpack.i.l.bf16 %v9346_v50  ;;  %v9343_v0 = vunpack.i.h.bf16 %v9341_v9  ;;  %v9342_v58 = vunpack.i.l.bf16 %v9341_v9  ;;  %v19934_v9 = vld [vmem:[#allocation69_spill] sm:$0xff] }
 0x6da   :  { %v16461_v4 = vsel %vm2698_vm7, %v5772_v62, %v9322_v13  ;;  %v16464_v37 = vsel %vm2698_vm7, %v5773_v35, %v9323_v36  ;;  %v9198_v50 = vunpack.i.h.bf16 %v19928_v20  ;;  %v9197_v18 = vunpack.i.l.bf16 %v19928_v20  ;;  %v19931_v36 = vld [vmem:[#allocation169_spill] sm:$0xff]  ;;  %v19932_v35 = vld [vmem:[#allocation128_spill] sm:$0xff] }
 0x6db   :  { %v16455_v27 = vsel %vm2763_vm9, %v5782_v23, %v9347_v38  ;;  %v16458_v57 = vsel %vm2763_vm9, %v5783_v63, %v9348_v31  ;;  %v16469_v32 = vsel %vm2763_vm9, %v5780_v3, %v9342_v58  ;;  %v16472_v51 = vsel %vm2763_vm9, %v5781_v44, %v9343_v0  ;;  %v19933_v13 = vld [vmem:[#allocation44_spill] sm:$0xff]  ;;  %v19935_v23 = vld [vmem:[#allocation139_spill] sm:$0xff]  ;;  %v19939_v0 = vld [vmem:[#allocation101_spill] sm:$0xff] }
 0x6dc   :  { %19929 = vst [vmem:[#allocation204_spill] sm:$0xff] %v16469_v32  ;;  %v16476_v38 = vsel %vm2633_vm8, %v15989_v55, %v9062_v40  ;;  %v16480_v46 = vsel %vm2633_vm8, %v15993_v49, %v9063_v10  ;;  %v5722_v62 = vsel %vm2633_vm8, %v19931_v36, %v9037_v25  ;;  %v5723_v31 = vsel %vm2633_vm8, %v19932_v35, %v9038_v30  ;;  %v19936_v40 = vld [vmem:[#allocation27_spill] sm:$0xff]  ;;  %v19937_v49 = vld [vmem:[#allocation114_spill] sm:$0xff]  ;;  %v19938_v10 = vld [vmem:[#allocation228_spill] sm:$0xff] }
 0x6dd   :  { %19930 = vst [vmem:[#allocation130_spill] sm:$0xff] %v16472_v51  ;;  %v5730_v3 = vsel %vm2633_vm8, %v19933_v13, %v9057_v17  ;;  %v5731_v44 = vsel %vm2633_vm8, %v19934_v9, %v9058_v34  ;;  %v9203_v63 = vunpack.i.h.bf16 %v19935_v23  ;;  %v9202_v55 = vunpack.i.l.bf16 %v19935_v23  ;;  %v19940_v36 = vld [vmem:[#allocation30_spill] sm:$0xff] }
 0x6de   :  { %9570 = vrot.lane.b32.xlu0 %v19936_v40, %s10027_s15  ;;  %v9053_v25 = vunpack.i.h.bf16 %v19938_v10  ;;  %v9052_v30 = vunpack.i.l.bf16 %v19938_v10  ;;  %v5778_v17 = vsel %vm2633_vm8, %v16172_v45, %v9177_v24  ;;  %v5779_v34 = vsel %vm2633_vm8, %v16176_v48, %v9178_v16  ;;  %v9336_v23 = vpop.permute.xlu1 %9335 }
 0x6df   :  { %v5786_v58 = vsel %vm2698_vm7, %v5722_v62, %v9197_v18  ;;  %v5787_v20 = vsel %vm2698_vm7, %v5723_v31, %v9198_v50  ;;  %v9193_v35 = vunpack.i.h.bf16 %v19940_v36  ;;  %v9192_v13 = vunpack.i.l.bf16 %v19940_v36 }
 0x6e0   :  { %9545 = vrot.lane.b32.xlu1 %v19937_v49, %s10027_s15  ;;  %v9361_v9 = vpop.permute.xlu0 %9360  ;;  %v9338_v10 = vunpack.i.h.bf16 %v9336_v23  ;;  %v9337_v45 = vunpack.i.l.bf16 %v9336_v23  ;;  %v9356_v24 = vpop.permute.xlu2 %9355  ;;  %v5788_v48 = vsel %vm2698_vm7, %v16420_v61, %v9202_v55  ;;  %v5789_v16 = vsel %vm2698_vm7, %v16426_v21, %v9203_v63  ;;  %v19946_v55 = vld [vmem:[#allocation62_spill] sm:$0xff] }
 0x6e1   :  { %9520 = vrot.lane.b32.xlu2 %v19939_v0, %s10027_s15  ;;  %v9363_v40 = vunpack.i.h.bf16 %v9361_v9  ;;  %v9362_v49 = vunpack.i.l.bf16 %v9361_v9  ;;  %v9358_v18 = vunpack.i.h.bf16 %v9356_v24  ;;  %v9357_v62 = vunpack.i.l.bf16 %v9356_v24  ;;  %v19943_v9 = vld [vmem:[#allocation20_spill] sm:$0xff] }
 0x6e2   :  { %v16519_v0 = vsel %vm2698_vm7, %v5778_v17, %v9337_v45  ;;  %v16522_v36 = vsel %vm2698_vm7, %v5779_v34, %v9338_v10  ;;  %v9213_v23 = vunpack.i.h.bf16 %v19943_v9  ;;  %v9212_v61 = vunpack.i.l.bf16 %v19943_v9  ;;  %v19947_v24 = vld [vmem:[#allocation60_spill] sm:$0xff]  ;;  %v19950_v9 = vld [vmem:[#allocation175_spill] sm:$0xff] }
 0x6e3   :  { %v16513_v50 = vsel %vm2763_vm9, %v5788_v48, %v9362_v49  ;;  %v16516_v31 = vsel %vm2763_vm9, %v5789_v16, %v9363_v40  ;;  %v16527_v21 = vsel %vm2763_vm9, %v5786_v58, %v9357_v62  ;;  %v16530_v63 = vsel %vm2763_vm9, %v5787_v20, %v9358_v18  ;;  %v19948_v34 = vld [vmem:[#allocation164_spill] sm:$0xff]  ;;  %v19952_v18 = vld [vmem:[#allocation9_spill] sm:$0xff] }
 0x6e4   :  { %19941 = vst [vmem:[#allocation168_spill] sm:$0xff] %v16513_v50  ;;  %v9073_v17 = vunpack.i.h.bf16 %v19947_v24  ;;  %v9072_v45 = vunpack.i.l.bf16 %v19947_v24  ;;  %v5728_v10 = vsel %vm2633_vm8, %v19948_v34, %v9052_v30  ;;  %v19949_v48 = vld [vmem:[#allocation132_spill] sm:$0xff]  ;;  %v9218_v58 = vunpack.i.h.bf16 %v19950_v9  ;;  %v19953_v49 = vld [vmem:[#allocation89_spill] sm:$0xff]  ;;  %v19954_v34 = vld [vmem:[#allocation110_spill] sm:$0xff] }
 0x6e5   :  { %19942 = vst [vmem:[#allocation73_spill] sm:$0xff] %v16516_v31  ;;  %v5729_v16 = vsel %vm2633_vm8, %v19949_v48, %v9053_v25  ;;  %v9217_v62 = vunpack.i.l.bf16 %v19950_v9  ;;  %v19951_v20 = vld [vmem:[#allocation104_spill] sm:$0xff]  ;;  %v9068_v40 = vunpack.i.h.bf16 %v19953_v49  ;;  %v9067_v24 = vunpack.i.l.bf16 %v19953_v49 }
 0x6e6   :  { %19944 = vst [vmem:[#allocation229_spill] sm:$0xff] %v16527_v21  ;;  %9585 = vrot.lane.b32.xlu0 %v19951_v20, %s10027_s15  ;;  %v5784_v30 = vsel %vm2698_vm7, %v16237_v1, %v9192_v13  ;;  %v5785_v25 = vsel %vm2698_vm7, %v16241_v42, %v9193_v35  ;;  %v5792_v48 = vsel %vm2698_vm7, %v5728_v10, %v9212_v61  ;;  %v19955_v20 = vld [vmem:[#allocation40_spill] sm:$0xff] }
 0x6e7   :  { %19945 = vst [vmem:[#allocation122_spill] sm:$0xff] %v16530_v63  ;;  %v5793_v9 = vsel %vm2698_vm7, %v5729_v16, %v9213_v23  ;;  %v9208_v51 = vunpack.i.h.bf16 %v19955_v20  ;;  %v9351_v63 = vpop.permute.xlu1 %9350  ;;  %v5794_v42 = vsel %vm2698_vm7, %v5730_v3, %v9217_v62  ;;  %v5795_v35 = vsel %vm2698_vm7, %v5731_v44, %v9218_v58 }
 0x6e8   :  { %9560 = vrot.lane.b32.xlu1 %v19952_v18, %s10027_s15  ;;  %v9207_v18 = vunpack.i.l.bf16 %v19955_v20  ;;  %v9376_v32 = vpop.permute.xlu0 %9375  ;;  %v9353_v31 = vunpack.i.h.bf16 %v9351_v63  ;;  %v9352_v1 = vunpack.i.l.bf16 %v9351_v63  ;;  %v9371_v13 = vpop.permute.xlu2 %9370  ;;  %v19956_v63 = vld [vmem:[#allocation87_spill] sm:$0xff]  ;;  %v19960_v20 = vld [vmem:[#allocation141_spill] sm:$0xff] }
 0x6e9   :  { %9535 = vrot.lane.b32.xlu2 %v19954_v34, %s10027_s15  ;;  %v9378_v49 = vunpack.i.h.bf16 %v9376_v32  ;;  %v9377_v21 = vunpack.i.l.bf16 %v9376_v32  ;;  %v9373_v34 = vunpack.i.h.bf16 %v9371_v13  ;;  %v9372_v50 = vunpack.i.l.bf16 %v9371_v13 }
 0x6ea   :  { %v16567_v10 = vsel %vm2763_vm9, %v5784_v30, %v9352_v1  ;;  %v16570_v32 = vsel %vm2763_vm9, %v5785_v25, %v9353_v31  ;;  %v9228_v16 = vunpack.i.h.bf16 %v19956_v63  ;;  %v9227_v3 = vunpack.i.l.bf16 %v19956_v63  ;;  %v19962_v25 = vld [vmem:[#allocation222_spill] sm:$0xff] }
 0x6eb   :  { %v16561_v61 = vsel %vm2763_vm9, %v5794_v42, %v9377_v21  ;;  %v16564_v23 = vsel %vm2763_vm9, %v5795_v35, %v9378_v49  ;;  %v16575_v44 = vsel %vm2763_vm9, %v5792_v48, %v9372_v50  ;;  %v16578_v58 = vsel %vm2763_vm9, %v5793_v9, %v9373_v34  ;;  %v19959_v21 = vld [vmem:[#allocation140_spill] sm:$0xff] }
 0x6ec   :  { %19957 = vst [vmem:[#allocation23_spill] sm:$0xff] %v16575_v44  ;;  %v5736_v62 = vsel %vm2633_vm8, %v19959_v21, %v9072_v45  ;;  %v5737_v30 = vsel %vm2633_vm8, %v19960_v20, %v9073_v17  ;;  %v19961_v49 = vld [vmem:[#allocation84_spill] sm:$0xff]  ;;  %v5734_v13 = vsel %vm2633_vm8, %v19962_v25, %v9067_v24  ;;  %v19966_v17 = vpack.i.bf16 %v16395_v22, %v16376_v14  ;;  %v19967_v45 = vld [vmem:[#allocation193_spill] sm:$0xff] }
 0x6ed   :  { %19958 = vst [vmem:[#allocation123_spill] sm:$0xff] %v16578_v58  ;;  %v9088_v1 = vunpack.i.h.bf16 %v19961_v49  ;;  %v9087_v31 = vunpack.i.l.bf16 %v19961_v49  ;;  %v19963_v42 = vld [vmem:[#allocation68_spill] sm:$0xff]  ;;  %v9083_v63 = vunpack.i.h.bf16 %v19967_v45  ;;  %v9082_v21 = vunpack.i.l.bf16 %v19967_v45 }
 0x6ee   :  { %v5735_v50 = vsel %vm2633_vm8, %v19963_v42, %v9068_v40  ;;  %v19964_v48 = vld [vmem:[#allocation100_spill] sm:$0xff]  ;;  %v5790_v24 = vsel %vm2698_vm7, %v16355_v60, %v9207_v18  ;;  %v5791_v40 = vsel %vm2698_vm7, %v16359_v28, %v9208_v51  ;;  %v5798_v49 = vsel %vm2698_vm7, %v5734_v13, %v9227_v3 }
 0x6ef   :  { %v9233_v35 = vunpack.i.h.bf16 %v19964_v48  ;;  %v9232_v9 = vunpack.i.l.bf16 %v19964_v48  ;;  %v19965_v34 = vld [vmem:[#allocation112_spill] sm:$0xff]  ;;  %v5799_v25 = vsel %vm2698_vm7, %v5735_v50, %v9228_v16 }
 0x6f0   :  { %9600 = vrot.lane.b32.xlu0 %v19965_v34, %s10027_s15  ;;  %9575 = vrot.lane.b32.xlu1 %v19966_v17, %s10027_s15  ;;  %v19968_v20 = vld [vmem:[#allocation8_spill] sm:$0xff]  ;;  %v9391_v48 = vpop.permute.xlu0 %9390  ;;  %v9366_v34 = vpop.permute.xlu1 %9365 }
 0x6f1   :  { %9550 = vrot.lane.b32.xlu2 %v19968_v20, %s10027_s15  ;;  %v19969_v42 = vld [vmem:[#allocation124_spill] sm:$0xff]  ;;  %v9393_v17 = vunpack.i.h.bf16 %v9391_v48  ;;  %v9392_v45 = vunpack.i.l.bf16 %v9391_v48  ;;  %v9368_v58 = vunpack.i.h.bf16 %v9366_v34  ;;  %v9367_v60 = vunpack.i.l.bf16 %v9366_v34  ;;  %v9386_v18 = vpop.permute.xlu2 %9385 }
 0x6f2   :  { %v9223_v14 = vunpack.i.h.bf16 %v19969_v42  ;;  %v9222_v22 = vunpack.i.l.bf16 %v19969_v42  ;;  %v5800_v28 = vsel %vm2698_vm7, %v5736_v62, %v9232_v9  ;;  %v5801_v51 = vsel %vm2698_vm7, %v5737_v30, %v9233_v35  ;;  %v19972_v42 = vld [vmem:[#allocation226_spill] sm:$0xff]  ;;  %v19975_v9 = vld [vmem:[#allocation233_spill] sm:$0xff] }
 0x6f3   :  { %v9388_v20 = vunpack.i.h.bf16 %v9386_v18  ;;  %v9387_v44 = vunpack.i.l.bf16 %v9386_v18  ;;  %v16613_v3 = vsel %vm2763_vm9, %v5800_v28, %v9392_v45  ;;  %v16616_v16 = vsel %vm2763_vm9, %v5801_v51, %v9393_v17  ;;  %v19976_v17 = vld [vmem:[#allocation173_spill] sm:$0xff]  ;;  %v19977_v45 = vld [vmem:[#allocation230_spill] sm:$0xff] }
 0x6f4   :  { %19970 = vst [vmem:[#allocation33_spill] sm:$0xff] %v16613_v3  ;;  %v16619_v13 = vsel %vm2763_vm9, %v5790_v24, %v9367_v60  ;;  %v16622_v50 = vsel %vm2763_vm9, %v5791_v40, %v9368_v58  ;;  %v9243_v48 = vunpack.i.h.bf16 %v19972_v42  ;;  %v9242_v62 = vunpack.i.l.bf16 %v19972_v42  ;;  %v19978_v40 = vld [vmem:[#allocation221_spill] sm:$0xff]  ;;  %v19979_v28 = vld [vmem:[#allocation214_spill] sm:$0xff] }
 0x6f5   :  { %19971 = vst [vmem:[#allocation232_spill] sm:$0xff] %v16616_v16  ;;  %v16627_v30 = vsel %vm2763_vm9, %v5798_v49, %v9387_v44  ;;  %v16630_v35 = vsel %vm2763_vm9, %v5799_v25, %v9388_v20  ;;  %v5742_v34 = vsel %vm2633_vm8, %v19975_v9, %v9087_v31  ;;  %v5743_v24 = vsel %vm2633_vm8, %v19976_v17, %v9088_v1  ;;  %v19980_v49 = vld [vmem:[#allocation220_spill] sm:$0xff]  ;;  %v19981_v20 = vld [vmem:[#allocation10_spill] sm:$0xff]  ;;  %v19982_v31 = vld [vmem:[#allocation107_spill] sm:$0xff] }
 0x6f6   :  { %19973 = vst [vmem:[#allocation196_spill] sm:$0xff] %v16627_v30  ;;  %v9103_v60 = vunpack.i.h.bf16 %v19977_v45  ;;  %v9102_v58 = vunpack.i.l.bf16 %v19977_v45  ;;  %v5740_v18 = vsel %vm2633_vm8, %v19978_v40, %v9082_v21  ;;  %v5741_v44 = vsel %vm2633_vm8, %v19979_v28, %v9083_v63  ;;  %v19983_v1 = vld [vmem:[#allocation206_spill] sm:$0xff]  ;;  %v19984_v17 = vld [vmem:[#allocation179_spill] sm:$0xff] }
 0x6f7   :  { %19974 = vst [vmem:[#allocation83_spill] sm:$0xff] %v16630_v35  ;;  %v9248_v51 = vunpack.i.h.bf16 %v19980_v49  ;;  %v9247_v25 = vunpack.i.l.bf16 %v19980_v49  ;;  %v9098_v42 = vunpack.i.h.bf16 %v19983_v1  ;;  %v9097_v9 = vunpack.i.l.bf16 %v19983_v1  ;;  %v19985_v28 = vld [vmem:[#allocation142_spill] sm:$0xff] }
 0x6f8   :  { %9615 = vrot.lane.b32.xlu0 %v19981_v20, %s10028_s16  ;;  %9590 = vrot.lane.b32.xlu1 %v19982_v31, %s10027_s15  ;;  %v5796_v21 = vsel %vm2698_vm7, %v16476_v38, %v9222_v22  ;;  %v5797_v63 = vsel %vm2698_vm7, %v16480_v46, %v9223_v14  ;;  %v5804_v45 = vsel %vm2698_vm7, %v5740_v18, %v9242_v62  ;;  %v9238_v49 = vunpack.i.h.bf16 %v19985_v28  ;;  %v9406_v31 = vpop.permute.xlu0 %9405  ;;  %v9381_v35 = vpop.permute.xlu1 %9380 }
 0x6f9   :  { %9565 = vrot.lane.b32.xlu2 %v19984_v17, %s10027_s15  ;;  %v5805_v40 = vsel %vm2698_vm7, %v5741_v44, %v9243_v48  ;;  %v9237_v20 = vunpack.i.l.bf16 %v19985_v28  ;;  %v9408_v1 = vunpack.i.h.bf16 %v9406_v31  ;;  %v9407_v30 = vunpack.i.l.bf16 %v9406_v31  ;;  %v9401_v22 = vpop.permute.xlu2 %9400  ;;  %v19992_v31 = vld [vmem:[#allocation36_spill] sm:$0xff] }
 0x6fa   :  { %v9383_v16 = vunpack.i.h.bf16 %v9381_v35  ;;  %v9382_v38 = vunpack.i.l.bf16 %v9381_v35  ;;  %v5806_v46 = vsel %vm2698_vm7, %v5742_v34, %v9247_v25  ;;  %v5807_v14 = vsel %vm2698_vm7, %v5743_v24, %v9248_v51  ;;  %v19987_v35 = vld [vmem:[#allocation143_spill] sm:$0xff] }
 0x6fb   :  { %v9403_v17 = vunpack.i.h.bf16 %v9401_v22  ;;  %v9402_v3 = vunpack.i.l.bf16 %v9401_v22  ;;  %v16663_v62 = vsel %vm2763_vm9, %v5806_v46, %v9407_v30  ;;  %v16666_v48 = vsel %vm2763_vm9, %v5807_v14, %v9408_v1  ;;  %v19990_v30 = vld [vmem:[#allocation197_spill] sm:$0xff] }
 0x6fc   :  { %19986 = vst [vmem:[#allocation41_spill] sm:$0xff] %v16666_v48  ;;  %v16669_v18 = vsel %vm2763_vm9, %v5796_v21, %v9382_v38  ;;  %v16672_v44 = vsel %vm2763_vm9, %v5797_v63, %v9383_v16  ;;  %v9258_v28 = vunpack.i.h.bf16 %v19987_v35  ;;  %v9257_v34 = vunpack.i.l.bf16 %v19987_v35  ;;  %v19994_v38 = vld [vmem:[#allocation127_spill] sm:$0xff]  ;;  %v19995_v63 = vld [vmem:[#allocation190_spill] sm:$0xff] }
 0x6fd   :  { %v16677_v24 = vsel %vm2763_vm9, %v5804_v45, %v9402_v3  ;;  %v16680_v51 = vsel %vm2763_vm9, %v5805_v40, %v9403_v17  ;;  %v19991_v25 = vunpack.i.h.bf16 %v19990_v30  ;;  %v19993_v21 = vunpack.i.l.bf16 %v19990_v30  ;;  %v19997_v45 = vld [vmem:[#allocation146_spill] sm:$0xff] }
 0x6fe   :  { %19988 = vst [vmem:[#allocation151_spill] sm:$0xff] %v16677_v24  ;;  %v8933_v22 = vunpack.i.h.bf16 %v19995_v63  ;;  %v8932_v46 = vunpack.i.l.bf16 %v19995_v63  ;;  %v19996_v3 = vunpack.i.l.bf16 %v19946_v55  ;;  %v19998_v14 = vunpack.i.h.bf16 %v19946_v55  ;;  %v19999_v17 = vld [vmem:[#allocation178_spill] sm:$0xff] }
 0x6ff   :  { %19989 = vst [vmem:[#allocation31_spill] sm:$0xff] %v16680_v51  ;;  %v5683_v1 = vsel %vm2568_vm6, %v19992_v31, %v19991_v25  ;;  %v5682_v16 = vsel %vm2568_vm6, %v19994_v38, %v19993_v21  ;;  %v9263_v25 = vunpack.i.h.bf16 %v16209_v26  ;;  %v9262_v30 = vunpack.i.l.bf16 %v16209_v26  ;;  %v20000_v31 = vld [vmem:[#allocation105_spill] sm:$0xff]  ;;  %v20001_v21 = vld [vmem:[#allocation115_spill] sm:$0xff] }
 0x700   :  { %v5738_v40 = vsel %vm2633_vm8, %v19997_v45, %v19996_v3  ;;  %v5739_v35 = vsel %vm2633_vm8, %v19999_v17, %v19998_v14  ;;  %9630 = vrot.lane.b32.xlu0 %v20000_v31, %s10028_s16  ;;  %9605 = vrot.lane.b32.xlu1 %v20001_v21, %s10027_s15  ;;  %v20002_v38 = vld [vmem:[#allocation17_spill] sm:$0xff]  ;;  %v20003_v51 = vld [vmem:[#allocation171_spill] sm:$0xff]  ;;  %v5746_v55 = vsel %vm2633_vm8, %v5682_v16, %v9097_v9  ;;  %v20004_v14 = vld [vmem:[#allocation102_spill] sm:$0xff]  ;;  %v9421_v24 = vpop.permute.xlu0 %9420 }
 0x701   :  { %v5748_v63 = vsel %vm2633_vm8, %v20002_v38, %v9102_v58  ;;  %v5749_v3 = vsel %vm2633_vm8, %v20003_v51, %v9103_v60  ;;  %v5747_v45 = vsel %vm2633_vm8, %v5683_v1, %v9098_v42  ;;  %9580 = vrot.lane.b32.xlu2 %v20004_v14, %s10027_s15  ;;  %v5802_v26 = vsel %vm2698_vm7, %v5738_v40, %v9237_v20  ;;  %v9396_v58 = vpop.permute.xlu1 %9395  ;;  %v9416_v9 = vpop.permute.xlu2 %9415 }
 0x702   :  { %v5803_v17 = vsel %vm2698_vm7, %v5739_v35, %v9238_v49  ;;  %v5810_v31 = vsel %vm2698_vm7, %v5746_v55, %v9257_v34  ;;  %v5811_v21 = vsel %vm2698_vm7, %v5747_v45, %v9258_v28  ;;  %v9423_v38 = vunpack.i.h.bf16 %v9421_v24  ;;  %v9989_v45 = vld [vmem:[#allocation2 + $0x150] sm:$0xff] }
 0x703   :  { %v9422_v48 = vunpack.i.l.bf16 %v9421_v24  ;;  %v9398_v60 = vunpack.i.h.bf16 %v9396_v58  ;;  %v9397_v51 = vunpack.i.l.bf16 %v9396_v58  ;;  %v5812_v42 = vsel %vm2698_vm7, %v5748_v63, %v9262_v30  ;;  %v20005_v24 = vld [vmem:[#allocation133_spill] sm:$0xff]  ;;  %v20006_v63 = vld [vmem:[#allocation42_spill] sm:$0xff] }
 0x704   :  { %v5813_v1 = vsel %vm2698_vm7, %v5749_v3, %v9263_v25  ;;  %v9418_v16 = vunpack.i.h.bf16 %v9416_v9  ;;  %v9417_v14 = vunpack.i.l.bf16 %v9416_v9  ;;  %v9093_v40 = vunpack.i.h.bf16 %v20005_v24  ;;  %v20009_v58 = vld [vmem:[#allocation50_spill] sm:$0xff] }
 0x705   :  { %v16721_v20 = vsel %vm2763_vm9, %v5812_v42, %v9422_v48  ;;  %v16724_v49 = vsel %vm2763_vm9, %v5813_v1, %v9423_v38  ;;  %v16727_v28 = vsel %vm2763_vm9, %v5802_v26, %v9397_v51  ;;  %v16730_v34 = vsel %vm2763_vm9, %v5803_v17, %v9398_v60  ;;  %v9988_v48 = vld [vmem:[#allocation2 + $0x158] sm:$0xff]  ;;  %v20013_v1 = vld [vmem:[#allocation98_spill] sm:$0xff] }
 0x706   :  { %v9092_v35 = vunpack.i.l.bf16 %v20005_v24  ;;  %v16735_v25 = vsel %vm2763_vm9, %v5810_v31, %v9417_v14  ;;  %v16738_v30 = vsel %vm2763_vm9, %v5811_v21, %v9418_v16  ;;  %v20007_v3 = vunpack.i.h.bf16 %v20006_v63  ;;  %v20012_v21 = vld [vmem:[#allocation92_spill] sm:$0xff]  ;;  %v20014_v16 = vld [vmem:[#allocation187_spill] sm:$0xff] }
 0x707   :  { %v20008_v26 = vunpack.i.l.bf16 %v20006_v63  ;;  %v20010_v38 = vunpack.i.h.bf16 %v20009_v58  ;;  %v20011_v31 = vunpack.i.l.bf16 %v20009_v58  ;;  %v9253_v9 = vunpack.i.h.bf16 %v20012_v21 }
 0x708   :  { %v5553_v55 = vsel %vm22_vm0, %v9988_v48, %v20007_v3  ;;  %v9252_v42 = vunpack.i.l.bf16 %v20012_v21  ;;  %9645 = vrot.lane.b32.xlu0 %v20013_v1, %s10028_s16  ;;  %9620 = vrot.lane.b32.xlu1 %v20014_v16, %s10028_s16  ;;  %v20015_v48 = vld [vmem:[#allocation111_spill] sm:$0xff] }
 0x709   :  { %v5552_v17 = vsel %vm22_vm0, %v9989_v45, %v20008_v26  ;;  %v5617_v60 = vsel %vm2503_vm5, %v5553_v55, %v20010_v38  ;;  %9595 = vrot.lane.b32.xlu2 %v20015_v48, %s10027_s15  ;;  %v9436_v55 = vpop.permute.xlu0 %9435  ;;  %v9411_v45 = vpop.permute.xlu1 %9410  ;;  %v20018_v16 = vld [vmem:[#allocation7_spill] sm:$0xff] }
 0x70a   :  { %v5616_v51 = vsel %vm2503_vm5, %v5552_v17, %v20011_v31  ;;  %v5681_v24 = vsel %vm2568_vm6, %v5617_v60, %v8933_v22  ;;  %v9438_v26 = vunpack.i.h.bf16 %v9436_v55  ;;  %v9437_v17 = vunpack.i.l.bf16 %v9436_v55  ;;  %v9431_v31 = vpop.permute.xlu2 %9430 }
 0x70b   :  { %v5680_v14 = vsel %vm2568_vm6, %v5616_v51, %v8932_v46  ;;  %v5745_v3 = vsel %vm2633_vm8, %v5681_v24, %v9093_v40  ;;  %v9413_v58 = vunpack.i.h.bf16 %v9411_v45  ;;  %v9412_v38 = vunpack.i.l.bf16 %v9411_v45 }
 0x70c   :  { %v5744_v63 = vsel %vm2633_vm8, %v5680_v14, %v9092_v35  ;;  %v5809_v46 = vsel %vm2698_vm7, %v5745_v3, %v9253_v9  ;;  %v9433_v51 = vunpack.i.h.bf16 %v9431_v31  ;;  %v9432_v22 = vunpack.i.l.bf16 %v9431_v31 }
 0x70d   :  { %v5808_v21 = vsel %vm2698_vm7, %v5744_v63, %v9252_v42  ;;  %v16768_v60 = vsel %vm2763_vm9, %v16284_v6, %v9437_v17  ;;  %v16772_v40 = vsel %vm2763_vm9, %v16287_v59, %v9438_v26  ;;  %v16778_v1 = vsel %vm2763_vm9, %v5809_v46, %v9413_v58  ;;  %v20016_v6 = vld [vmem:[#allocation189_spill] sm:$0xff]  ;;  %v20017_v59 = vld [vmem:[#allocation96_spill] sm:$0xff] }
 0x70e   :  { %v16775_v35 = vsel %vm2763_vm9, %v5808_v21, %v9412_v38  ;;  %v16782_v42 = vsel %vm2763_vm9, %v16147_v15, %v9432_v22  ;;  %v16786_v9 = vsel %vm2763_vm9, %v16150_v5, %v9433_v51  ;;  %v20019_v21 = vld [vmem:[#allocation103_spill] sm:$0xff] }
 0x710   :  { %9660 = vrot.lane.b32.xlu0 %v20016_v6, %s10028_s16  ;;  %9635 = vrot.lane.b32.xlu1 %v20017_v59, %s10028_s16 }
 0x711   :  { %9610 = vrot.lane.b32.xlu2 %v20018_v16, %s10027_s15  ;;  %v9451_v14 = vpop.permute.xlu0 %9450  ;;  %v9426_v24 = vpop.permute.xlu1 %9425 }
 0x712   :  { %v9453_v48 = vunpack.i.h.bf16 %v9451_v14  ;;  %v9452_v63 = vunpack.i.l.bf16 %v9451_v14  ;;  %v9428_v3 = vunpack.i.h.bf16 %v9426_v24  ;;  %v9427_v15 = vunpack.i.l.bf16 %v9426_v24  ;;  %v9446_v55 = vpop.permute.xlu2 %9445 }
 0x713   :  { %v9448_v45 = vunpack.i.h.bf16 %v9446_v55  ;;  %v9447_v26 = vunpack.i.l.bf16 %v9446_v55 }
 0x714   :  { %v16796_v5 = vsel %vm2763_vm9, %v16340_v12, %v9452_v63  ;;  %v16800_v17 = vsel %vm2763_vm9, %v16343_v52, %v9453_v48  ;;  %v16804_v58 = vsel %vm2763_vm9, %v16157_v43, %v9427_v15  ;;  %v16808_v38 = vsel %vm2763_vm9, %v16160_v54, %v9428_v3  ;;  %v20020_v52 = vld [vmem:[#allocation26_spill] sm:$0xff]  ;;  %v20021_v43 = vld [vmem:[#allocation147_spill] sm:$0xff]  ;;  %v20022_v48 = vld [vmem:[#allocation144_spill] sm:$0xff] }
 0x715   :  { %v16812_v31 = vsel %vm2763_vm9, %v16222_v33, %v9447_v26  ;;  %v16816_v12 = vsel %vm2763_vm9, %v16225_v53, %v9448_v45  ;;  %v20023_v3 = vld [vmem:[#allocation194_spill] sm:$0xff]  ;;  %v20024_v45 = vld [vmem:[#allocation172_spill] sm:$0xff] }
 0x716   :  { %v20025_v26 = vld [vmem:[#allocation38_spill] sm:$0xff] }
 0x718   :  { %9675 = vrot.lane.b32.xlu0 %v20019_v21, %s10028_s16  ;;  %9650 = vrot.lane.b32.xlu1 %v20020_v52, %s10027_s15  ;;  %v20027_v21 = vld [vmem:[#allocation109_spill] sm:$0xff] }
 0x719   :  { %9625 = vrot.lane.b32.xlu2 %v20021_v43, %s10027_s15  ;;  %v9466_v46 = vpop.permute.xlu0 %9465 }
 0x71a   :  { %v9441_v54 = vpop.permute.xlu1 %9440  ;;  %v9468_v51 = vunpack.i.h.bf16 %v9466_v46  ;;  %v9467_v22 = vunpack.i.l.bf16 %v9466_v46 }
 0x71b   :  { %v9443_v6 = vunpack.i.h.bf16 %v9441_v54  ;;  %v9442_v33 = vunpack.i.l.bf16 %v9441_v54  ;;  %v9461_v59 = vpop.permute.xlu2 %9460 }
 0x71c   :  { %v9463_v16 = vunpack.i.h.bf16 %v9461_v59  ;;  %v9462_v14 = vunpack.i.l.bf16 %v9461_v59  ;;  %v16826_v53 = vsel %vm2763_vm9, %v16404_v29, %v9467_v22  ;;  %v16830_v24 = vsel %vm2763_vm9, %v16407_v7, %v9468_v51  ;;  %v20026_v7 = vld [vmem:[#allocation25_spill] sm:$0xff] }
 0x71d   :  { %v16834_v63 = vsel %vm2763_vm9, %v20022_v48, %v9442_v33  ;;  %v16838_v15 = vsel %vm2763_vm9, %v20023_v3, %v9443_v6  ;;  %v20031_v3 = vld [vmem:[#allocation198_spill] sm:$0xff] }
 0x71e   :  { %v16842_v55 = vsel %vm2763_vm9, %v16278_v19, %v9462_v14  ;;  %v16846_v29 = vsel %vm2763_vm9, %v20024_v45, %v9463_v16  ;;  %v20030_v14 = vld [vmem:[#allocation207_spill] sm:$0xff] }
 0x720   :  { %9690 = vrot.lane.b32.xlu0 %v20025_v26, %s10027_s15  ;;  %9665 = vrot.lane.b32.xlu1 %v20026_v7, %s10027_s15  ;;  %v20034_v7 = vld [vmem:[#allocation188_spill] sm:$0xff] }
 0x721   :  { %9640 = vrot.lane.b32.xlu2 %v20027_v21, %s10028_s16  ;;  %v9481_v52 = vpop.permute.xlu0 %9480  ;;  %v20036_v21 = vld [vmem:[#allocation125_spill] sm:$0xff] }
 0x722   :  { %v9456_v43 = vpop.permute.xlu1 %9455  ;;  %v9483_v46 = vunpack.i.h.bf16 %v9481_v52  ;;  %v9482_v54 = vunpack.i.l.bf16 %v9481_v52 }
 0x723   :  { %v9458_v51 = vunpack.i.h.bf16 %v9456_v43  ;;  %v9457_v19 = vunpack.i.l.bf16 %v9456_v43  ;;  %v9476_v22 = vpop.permute.xlu2 %9475 }
 0x724   :  { %v9478_v6 = vunpack.i.h.bf16 %v9476_v22  ;;  %v9477_v33 = vunpack.i.l.bf16 %v9476_v22  ;;  %v16856_v59 = vsel %vm2763_vm9, %v16461_v4, %v9482_v54  ;;  %v16860_v16 = vsel %vm2763_vm9, %v16464_v37, %v9483_v46  ;;  %v20035_v37 = vld [vmem:[#allocation24_spill] sm:$0xff] }
 0x725   :  { %20028 = vst [vmem:[#allocation158_spill] sm:$0xff] %v16856_v59  ;;  %v16864_v48 = vsel %vm2763_vm9, %v20030_v14, %v9457_v19  ;;  %v16868_v45 = vsel %vm2763_vm9, %v20031_v3, %v9458_v51 }
 0x726   :  { %20029 = vst [vmem:[#allocation223_spill] sm:$0xff] %v16860_v16  ;;  %v16872_v26 = vsel %vm2763_vm9, %v16334_v39, %v9477_v33  ;;  %v16876_v4 = vsel %vm2763_vm9, %v16337_v41, %v9478_v6 }
 0x727   :  { %20032 = vst [vmem:[#allocation118_spill] sm:$0xff] %v16872_v26 }
 0x728   :  { %20033 = vst [vmem:[#allocation70_spill] sm:$0xff] %v16876_v4  ;;  %9705 = vrot.lane.b32.xlu0 %v20034_v7, %s10027_s15  ;;  %9680 = vrot.lane.b32.xlu1 %v20035_v37, %s10028_s16  ;;  %v20042_v37 = vld [vmem:[#allocation14_spill] sm:$0xff] }
 0x729   :  { %9655 = vrot.lane.b32.xlu2 %v20036_v21, %s10028_s16  ;;  %v9496_v52 = vpop.permute.xlu0 %9495 }
 0x72a   :  { %v9471_v43 = vpop.permute.xlu1 %9470  ;;  %v9498_v46 = vunpack.i.h.bf16 %v9496_v52  ;;  %v9497_v54 = vunpack.i.l.bf16 %v9496_v52 }
 0x72b   :  { %v9473_v51 = vunpack.i.h.bf16 %v9471_v43  ;;  %v9472_v39 = vunpack.i.l.bf16 %v9471_v43  ;;  %v9491_v19 = vpop.permute.xlu2 %9490 }
 0x72c   :  { %v9493_v22 = vunpack.i.h.bf16 %v9491_v19  ;;  %v9492_v33 = vunpack.i.l.bf16 %v9491_v19  ;;  %v16886_v41 = vsel %vm2763_vm9, %v16519_v0, %v9497_v54  ;;  %v16890_v6 = vsel %vm2763_vm9, %v16522_v36, %v9498_v46  ;;  %v20043_v36 = vld [vmem:[#allocation6_spill] sm:$0xff] }
 0x72d   :  { %20037 = vst [vmem:[#allocation82_spill] sm:$0xff] %v16886_v41  ;;  %v16894_v14 = vsel %vm2763_vm9, %v16348_v8, %v9472_v39  ;;  %v16898_v3 = vsel %vm2763_vm9, %v16351_v47, %v9473_v51  ;;  %v20044_v8 = vld [vmem:[#allocation113_spill] sm:$0xff] }
 0x72e   :  { %20038 = vst [vmem:[#allocation176_spill] sm:$0xff] %v16890_v6  ;;  %v16902_v7 = vsel %vm2763_vm9, %v16398_v11, %v9492_v33  ;;  %v16906_v0 = vsel %vm2763_vm9, %v16401_v56, %v9493_v22  ;;  %v20046_v33 = vld [vmem:[#allocation183_spill] sm:$0xff]  ;;  %v20052_v41 = vld [vmem:[#allocation73_spill] sm:$0xff] }
 0x72f   :  { %20039 = vst [vmem:[#allocation51_spill] sm:$0xff] %v16898_v3 }
 0x730   :  { %20040 = vst [vmem:[#allocation213_spill] sm:$0xff] %v16902_v7  ;;  %9720 = vrot.lane.b32.xlu0 %v20042_v37, %s10028_s16  ;;  %9695 = vrot.lane.b32.xlu1 %v20043_v36, %s10028_s16 }
 0x731   :  { %20041 = vst [vmem:[#allocation231_spill] sm:$0xff] %v16906_v0  ;;  %9670 = vrot.lane.b32.xlu2 %v20044_v8, %s10028_s16  ;;  %v9511_v21 = vpop.permute.xlu0 %9510  ;;  %v20048_v8 = vld [vmem:[#allocation43_spill] sm:$0xff] }
 0x732   :  { %v9486_v47 = vpop.permute.xlu1 %9485  ;;  %v9513_v52 = vunpack.i.h.bf16 %v9511_v21  ;;  %v9512_v43 = vunpack.i.l.bf16 %v9511_v21  ;;  %v9990_v21 = vld [vmem:[#allocation2 + $0x1a0] sm:$0xff] }
 0x733   :  { %v9488_v46 = vunpack.i.h.bf16 %v9486_v47  ;;  %v9487_v11 = vunpack.i.l.bf16 %v9486_v47  ;;  %v9506_v54 = vpop.permute.xlu2 %9505  ;;  %v3979_v47 = vrot.slane %v9990_v21, 2 }
 0x734   :  { %v9508_v51 = vunpack.i.h.bf16 %v9506_v54  ;;  %v9507_v39 = vunpack.i.l.bf16 %v9506_v54  ;;  %v16916_v56 = vsel %vm2828_vm11, %v16567_v10, %v9512_v43  ;;  %v16920_v19 = vsel %vm2828_vm11, %v16570_v32, %v9513_v52  ;;  %v20049_v32 = vld [vmem:[#allocation29_spill] sm:$0xff]  ;;  %v9991_v52 = vld [vmem:[#allocation2 + $0x198] sm:$0xff] }
 0x735   :  { %v16924_v22 = vsel %vm2763_vm9, %v16411_v2, %v9487_v11  ;;  %v16928_v37 = vsel %vm2763_vm9, %v20046_v33, %v9488_v46  ;;  %v20050_v2 = vld [vmem:[#allocation95_spill] sm:$0xff]  ;;  %v3978_v43 = vrot.slane %v9991_v52, 2  ;;  %v16949_v33 = vld [vmem:[#allocation2 + $0x348] sm:$0xff] }
 0x736   :  { %20045 = vst [vmem:[#allocation150_spill] sm:$0xff] %v16924_v22  ;;  %v16932_v36 = vsel %vm2828_vm11, %v16455_v27, %v9507_v39  ;;  %v16936_v10 = vsel %vm2828_vm11, %v16458_v57, %v9508_v51  ;;  %v16946_v51 = vld [vmem:[#allocation2 + $0x350] sm:$0xff] }
 0x737   :  { %20047 = vst [vmem:[#allocation134_spill] sm:$0xff] %v16928_v37  ;;  %v3974_v39 = vrot.slane %v16946_v51, 1  ;;  %v16969_v7 = vsel %vm690_vm3, %v3978_v43, %v3979_v47  ;;  %v20059_v43 = vld [vmem:[#allocation229_spill] sm:$0xff] }
 0x738   :  { %9735 = vrot.lane.b32.xlu0 %v20048_v8, %s10028_s16  ;;  %9710 = vrot.lane.b32.xlu1 %v20049_v32, %s10028_s16  ;;  %v3973_v8 = vrot.slane %v16949_v33, 1 }
 0x739   :  { %9685 = vrot.lane.b32.xlu2 %v20050_v2, %s10028_s16  ;;  %v9526_v46 = vpop.permute.xlu0 %9525 }
 0x73a   :  { %v16944_v27 = vpop.permute.xlu1 %9500  ;;  %v9528_v11 = vunpack.i.h.bf16 %v9526_v46  ;;  %v9527_v54 = vunpack.i.l.bf16 %v9526_v46  ;;  %v20051_v46 = vld [vmem:[#allocation168_spill] sm:$0xff] }
 0x73b   :  { %v9521_v57 = vpop.permute.xlu2 %9520 }
 0x73c   :  { %v9523_v32 = vunpack.i.h.bf16 %v9521_v57  ;;  %v9522_v2 = vunpack.i.l.bf16 %v9521_v57  ;;  %v16954_v21 = vsel %vm2828_vm11, %v16619_v13, %v9527_v54  ;;  %v16958_v52 = vsel %vm2828_vm11, %v16622_v50, %v9528_v11  ;;  %v20053_v57 = vld [vmem:[#allocation75_spill] sm:$0xff]  ;;  %v20054_v13 = vld [vmem:[#allocation66_spill] sm:$0xff] }
 0x73d   :  { %v3981_v37 = vrot.slane %v20053_v57, 2  ;;  %v20055_v54 = vld [vmem:[#allocation39_spill] sm:$0xff] }
 0x73e   :  { %v16962_v6 = vsel %vm2828_vm11, %v20051_v46, %v9522_v2  ;;  %v16966_v0 = vsel %vm2828_vm11, %v20052_v41, %v9523_v32  ;;  %v3519_v11 = vld [vmem:[#allocation2 + $0x358] sm:$0x3]  ;;  %v16980_v2 = vsel %vm529_vm2, %v3973_v8, %v3974_v39  ;;  %v20056_v41 = vld [vmem:[#allocation108_spill] sm:$0xff] }
 0x73f   :  { %v16977_v50 = vsel %vm690_vm3, %v3979_v47, %v3981_v37  ;;  %v3976_v32 = vrot.slane %v3519_v11, 1 }
 0x740   :  { %9750 = vrot.lane.b32.xlu0 %v20054_v13, %s10028_s16  ;;  %9725 = vrot.lane.b32.xlu1 %v20055_v54, %s10028_s16 }
 0x741   :  { %9700 = vrot.lane.b32.xlu2 %v20056_v41, %s10028_s16  ;;  %v9541_v46 = vpop.permute.xlu0 %9540  ;;  %v16987_v4 = vsel %vm529_vm2, %v3974_v39, %v3976_v32 }
 0x742   :  { %v9516_v57 = vpop.permute.xlu1 %9515  ;;  %v9543_v13 = vunpack.i.h.bf16 %v9541_v46  ;;  %v9542_v22 = vunpack.i.l.bf16 %v9541_v46  ;;  %v20060_v46 = vld [vmem:[#allocation122_spill] sm:$0xff] }
 0x743   :  { %v9518_v16 = vunpack.i.h.bf16 %v9516_v57  ;;  %v9517_v54 = vunpack.i.l.bf16 %v9516_v57  ;;  %v9536_v59 = vpop.permute.xlu2 %9535 }
 0x744   :  { %v9538_v37 = vunpack.i.h.bf16 %v9536_v59  ;;  %v9537_v47 = vunpack.i.l.bf16 %v9536_v59  ;;  %v16991_v8 = vsel %vm2828_vm11, %v16669_v18, %v9542_v22  ;;  %v16995_v41 = vsel %vm2828_vm11, %v16672_v44, %v9543_v13  ;;  %v6072_v22 = vld [vmem:[%s17841_s2 + $0x10] sm:$0x3] }
 0x745   :  { %20057 = vst [vmem:[#allocation35_spill] sm:$0xff] %v16991_v8  ;;  %v16999_v26 = vsel %vm2828_vm11, %v20059_v43, %v9517_v54  ;;  %v17003_v57 = vsel %vm2828_vm11, %v20060_v46, %v9518_v16  ;;  %v6086_v39 = vunpack.c.l.b16 %v6072_v22  ;;  %v20061_v43 = vld [vmem:[#allocation28_spill] sm:$0xff]  ;;  %v3983_v13 = vrot.slane %v16949_v33, 2  ;;  %v20064_v33 = vld [vmem:[#allocation23_spill] sm:$0xff] }
 0x746   :  { %20058 = vst [vmem:[#allocation120_spill] sm:$0xff] %v16995_v41  ;;  %v17007_v59 = vsel %vm2828_vm11, %v16561_v61, %v9537_v47  ;;  %v17011_v18 = vsel %vm2828_vm11, %v16564_v23, %v9538_v37  ;;  %v20062_v16 = vld [vmem:[#allocation116_spill] sm:$0xff]  ;;  %v20063_v61 = vld [vmem:[#allocation34_spill] sm:$0xff]  ;;  %v3984_v23 = vrot.slane %v16946_v51, 2 }
 0x747   :  { %v6089_v32 = vpack.c.b16 %v6086_v39, %v6086_v39 }
 0x748   :  { %9765 = vrot.lane.b32.xlu0 %v20061_v43, %s10028_s16  ;;  %9740 = vrot.lane.b32.xlu1 %v20062_v16, %s10028_s16 }
 0x749   :  { %9715 = vrot.lane.b32.xlu2 %v20063_v61, %s10028_s16  ;;  %v9556_v54 = vpop.permute.xlu0 %9555  ;;  %v6189_v3 = vsel %vm3111_vm4, %v6089_v32, 0  ;;  %v20065_v61 = vld [vmem:[#allocation123_spill] sm:$0xff]  ;;  %v20066_v32 = vld [vmem:[#allocation33_spill] sm:$0xff] }
 0x74a   :  { %v9531_v37 = vpop.permute.xlu1 %9530  ;;  %v9558_v47 = vunpack.i.h.bf16 %v9556_v54  ;;  %v9557_v46 = vunpack.i.l.bf16 %v9556_v54  ;;  %7245 = vmatpush.bf16.msra.mxu3 %v6189_v3  ;;  %6196 = vmatpush.bf16.msra.mxu1 %v6189_v3 }
 0x74b   :  { %v9533_v44 = vunpack.i.h.bf16 %v9531_v37  ;;  %v9532_v22 = vunpack.i.l.bf16 %v9531_v37  ;;  %v9551_v41 = vpop.permute.xlu2 %9550  ;;  %v20068_v37 = vld [vmem:[#allocation232_spill] sm:$0xff] }
 0x74c   :  { %v9553_v8 = vunpack.i.h.bf16 %v9551_v41  ;;  %v9552_v43 = vunpack.i.l.bf16 %v9551_v41  ;;  %v17029_v16 = vsel %vm2828_vm11, %v16727_v28, %v9557_v46  ;;  %v17033_v51 = vsel %vm2828_vm11, %v16730_v34, %v9558_v47  ;;  %v6923_v41 = vld [vmem:[%s17841_s2 + $0x8] sm:$0xff] }
 0x74d   :  { %v17037_v39 = vsel %vm2828_vm11, %v20064_v33, %v9532_v22  ;;  %v17041_v54 = vsel %vm2828_vm11, %v20065_v61, %v9533_v44  ;;  %v17055_v47 = vsel %vm690_vm3, %v3983_v13, %v3984_v23  ;;  %v3986_v46 = vrot.slane %v3519_v11, 2  ;;  %v20070_v44 = vld [vmem:[#allocation77_spill] sm:$0xff]  ;;  %v20071_v22 = vld [vmem:[#allocation16_spill] sm:$0xff] }
 0x74e   :  { %v17048_v28 = vsel %vm2828_vm11, %v20066_v32, %v9552_v43  ;;  %v17052_v34 = vsel %vm2828_vm11, %v20068_v37, %v9553_v8  ;;  %v20072_v43 = vld [vmem:[#allocation18_spill] sm:$0xff]  ;;  %7246 = vmatpush.bf16.msra.mxu3 %v6923_v41  ;;  %v6922_v8 = vld [vmem:[%s17841_s2] sm:$0xff]  ;;  %6197 = vmatpush.bf16.msra.mxu1 %v6923_v41  ;;  %v20076_v41 = vld [vmem:[#allocation83_spill] sm:$0xff] }
 0x74f   :  { %20067 = vst [vmem:[#allocation72_spill] sm:$0xff] %v17048_v28  ;;  %v17062_v33 = vsel %vm690_vm3, %v3984_v23, %v3986_v46  ;;  %v20075_v28 = vld [vmem:[#allocation196_spill] sm:$0xff] }
 0x750   :  { %20069 = vst [vmem:[#allocation90_spill] sm:$0xff] %v17052_v34  ;;  %9780 = vrot.lane.b32.xlu0 %v20070_v44, %s10028_s16  ;;  %9755 = vrot.lane.b32.xlu1 %v20071_v22, %s10028_s16  ;;  %v9814_v3 = vpack.i.bf16 %v17062_v33, %v17055_v47 }
 0x751   :  { %9730 = vrot.lane.b32.xlu2 %v20072_v43, %s10027_s15  ;;  %v9571_v11 = vpop.permute.xlu0 %9570 }
 0x752   :  { %v9546_v13 = vpop.permute.xlu1 %9545  ;;  %v9573_v61 = vunpack.i.h.bf16 %v9571_v11  ;;  %v9572_v32 = vunpack.i.l.bf16 %v9571_v11  ;;  %7247 = vmatpush.bf16.msra.mxu3 %v6922_v8  ;;  %6198 = vmatpush.bf16.msra.mxu1 %v6922_v8 }
 0x753   :  { %v9548_v37 = vunpack.i.h.bf16 %v9546_v13  ;;  %v9547_v44 = vunpack.i.l.bf16 %v9546_v13  ;;  %v9566_v23 = vpop.permute.xlu2 %9565  ;;  %v20077_v13 = vld [vmem:[#allocation41_spill] sm:$0xff] }
 0x754   :  { %v9568_v46 = vunpack.i.h.bf16 %v9566_v23  ;;  %v9567_v22 = vunpack.i.l.bf16 %v9566_v23  ;;  %v17073_v43 = vsel %vm2828_vm11, %v16775_v35, %v9572_v32  ;;  %v17077_v34 = vsel %vm2828_vm11, %v16778_v1, %v9573_v61  ;;  %v20078_v1 = vld [vmem:[#allocation15_spill] sm:$0xff]  ;;  %v20080_v61 = vld [vmem:[#allocation137_spill] sm:$0xff] }
 0x755   :  { %20073 = vst [vmem:[#allocation184_spill] sm:$0xff] %v17073_v43  ;;  %v17081_v47 = vsel %vm2828_vm11, %v20075_v28, %v9547_v44  ;;  %v17085_v33 = vsel %vm2828_vm11, %v20076_v41, %v9548_v37  ;;  %v20079_v28 = vld [vmem:[#allocation64_spill] sm:$0xff] }
 0x756   :  { %20074 = vst [vmem:[#allocation166_spill] sm:$0xff] %v17077_v34  ;;  %v17089_v11 = vsel %vm2828_vm11, %v16663_v62, %v9567_v22  ;;  %v17093_v35 = vsel %vm2828_vm11, %v20077_v13, %v9568_v46  ;;  %v20081_v22 = vld [vmem:[#allocation151_spill] sm:$0xff]  ;;  %v20083_v13 = vpack.i.bf16 %v16977_v50, %v16969_v7 }
 0x757   :  { %v20082_v46 = vld [vmem:[#allocation31_spill] sm:$0xff] }
 0x758   :  { %9795 = vrot.lane.b32.xlu0 %v20078_v1, %s10028_s16  ;;  %9770 = vrot.lane.b32.xlu1 %v20079_v28, %s10027_s15  ;;  %v20084_v1 = vpack.i.bf16 %v16987_v4, %v16980_v2  ;;  %v20085_v28 = vld [vmem:[#allocation208_spill] sm:$0xff] }
 0x759   :  { %9745 = vrot.lane.b32.xlu2 %v20080_v61, %s10027_s15  ;;  %v9586_v32 = vpop.permute.xlu0 %9585 }
 0x75a   :  { %v9561_v37 = vpop.permute.xlu1 %9560 }
 0x75b   :  { %v9563_v44 = vunpack.i.h.bf16 %v9561_v37  ;;  %v9562_v23 = vunpack.i.l.bf16 %v9561_v37  ;;  %v9581_v62 = vpop.permute.xlu2 %9580 }
 0x75d   :  { %v17103_v41 = vsel %vm2828_vm11, %v20081_v22, %v9562_v23  ;;  %v17107_v8 = vsel %vm2828_vm11, %v20082_v46, %v9563_v44 }
 0x760   :  { %9810 = vrot.lane.b32.xlu0 %v20083_v13, %s10028_s16  ;;  %9785 = vrot.lane.b32.xlu1 %v20084_v1, %s10027_s15  ;;  %v9583_v13 = vunpack.i.h.bf16 %v9581_v62  ;;  %v9582_v1 = vunpack.i.l.bf16 %v9581_v62 }
 0x761   :  { %9760 = vrot.lane.b32.xlu2 %v20085_v28, %s10028_s16  ;;  %v20087_v28 = vld [vmem:[#allocation191_spill] sm:$0xff] }
 0x762   :  { %v9601_v61 = vpop.permute.xlu0 %9600  ;;  %v9576_v37 = vpop.permute.xlu1 %9575 }
 0x763   :  { %v9603_v23 = vunpack.i.h.bf16 %v9601_v61  ;;  %v9602_v22 = vunpack.i.l.bf16 %v9601_v61  ;;  %v9578_v34 = vunpack.i.h.bf16 %v9576_v37  ;;  %v9577_v44 = vunpack.i.l.bf16 %v9576_v37  ;;  %v17119_v46 = vpop.permute.xlu2 %9595 }
 0x765   :  { %v17123_v7 = vsel %vm2828_vm11, %v16834_v63, %v9602_v22  ;;  %v17127_v50 = vsel %vm2828_vm11, %v16838_v15, %v9603_v23  ;;  %v17131_v4 = vsel %vm2828_vm11, %v16735_v25, %v9577_v44  ;;  %v17135_v2 = vsel %vm2828_vm11, %v16738_v30, %v9578_v34  ;;  %v20088_v63 = vld [vmem:[#allocation117_spill] sm:$0xff] }
 0x766   :  { %20086 = vst [vmem:[#allocation71_spill] sm:$0xff] %v17135_v2  ;;  %v5940_v25 = vsel %vm2828_vm11, %v16721_v20, %v9582_v1  ;;  %v5941_v30 = vsel %vm2828_vm11, %v16724_v49, %v9583_v13  ;;  %v9588_v2 = vunpack.i.h.bf16 %v9586_v32  ;;  %v9587_v20 = vunpack.i.l.bf16 %v9586_v32  ;;  %v20089_v49 = vld [vmem:[#allocation156_spill] sm:$0xff] }
 0x767   :  { %v9503_v13 = vunpack.i.h.bf16 %v16944_v27 }
 0x768   :  { %9800 = vrot.lane.b32.xlu1 %v20087_v28, %s10028_s16 }
 0x769   :  { %9775 = vrot.lane.b32.xlu2 %v20088_v63, %s10028_s16 }
 0x76a   :  { %v9616_v61 = vpop.permute.xlu0 %9615  ;;  %v9591_v37 = vpop.permute.xlu1 %9590 }
 0x76b   :  { %v9618_v15 = vunpack.i.h.bf16 %v9616_v61  ;;  %v9617_v23 = vunpack.i.l.bf16 %v9616_v61  ;;  %v9611_v22 = vpop.permute.xlu2 %9610 }
 0x76c   :  { %v9613_v34 = vunpack.i.h.bf16 %v9611_v22  ;;  %v9612_v44 = vunpack.i.l.bf16 %v9611_v22 }
 0x76d   :  { %v6004_v62 = vsel %vm2893_vm10, %v5940_v25, %v9617_v23  ;;  %v6005_v28 = vsel %vm2893_vm10, %v5941_v30, %v9618_v15  ;;  %v5942_v30 = vsel %vm2828_vm11, %v16804_v58, %v9587_v20  ;;  %v9592_v20 = vunpack.i.l.bf16 %v9591_v37 }
 0x76e   :  { %v17149_v63 = vsel %vm2828_vm11, %v16796_v5, %v9612_v44  ;;  %v17153_v61 = vsel %vm2828_vm11, %v16800_v17, %v9613_v34  ;;  %v6052_v43 = vpack.c.bf16 %v6005_v28, %v6004_v62 }
 0x770   :  { %9815 = vrot.lane.b32.xlu1 %v9814_v3, %s10028_s16  ;;  %6904 = vmatmul.msk.bf16.vlgmr.msra.gmra.mxu3 %vm3014_vm12, %v6052_v43  ;;  %v5943_v3 = vsel %vm2828_vm11, %v16808_v38, %v9588_v2  ;;  %v9593_v2 = vunpack.i.h.bf16 %v9591_v37 }
 0x771   :  { %9790 = vrot.lane.b32.xlu2 %v20089_v49, %s10028_s16  ;;  %v9502_v49 = vunpack.i.l.bf16 %v16944_v27 }
 0x772   :  { %v9631_v1 = vpop.permute.xlu0 %9630  ;;  %v9606_v15 = vpop.permute.xlu1 %9605  ;;  %v5945_v37 = vsel %vm2828_vm11, %v16786_v9, %v9593_v2 }
 0x773   :  { %v9633_v5 = vunpack.i.h.bf16 %v9631_v1  ;;  %v9632_v23 = vunpack.i.l.bf16 %v9631_v1  ;;  %v9608_v22 = vunpack.i.h.bf16 %v9606_v15  ;;  %v9607_v25 = vunpack.i.l.bf16 %v9606_v15  ;;  %v9626_v17 = vpop.permute.xlu2 %9625  ;;  %v20091_v1 = vld [vmem:[#allocation204_spill] sm:$0xff] }
 0x774   :  { %v9628_v32 = vunpack.i.h.bf16 %v9626_v17  ;;  %v9627_v43 = vunpack.i.l.bf16 %v9626_v17  ;;  %v5908_v15 = vsel %vm2828_vm11, %v20091_v1, %v9502_v49  ;;  %v9598_v1 = vunpack.i.h.bf16 %v17119_v46 }
 0x775   :  { %v17166_v34 = vsel %vm2828_vm11, %v16812_v31, %v9607_v25  ;;  %v17170_v44 = vsel %vm2828_vm11, %v16816_v12, %v9608_v22  ;;  %v6006_v62 = vsel %vm2893_vm10, %v5942_v30, %v9632_v23  ;;  %v6007_v28 = vsel %vm2893_vm10, %v5943_v3, %v9633_v5  ;;  %v20090_v12 = vld [vmem:[#allocation45_spill] sm:$0xff]  ;;  %v20092_v5 = vld [vmem:[#allocation130_spill] sm:$0xff] }
 0x776   :  { %v17177_v58 = vsel %vm2828_vm11, %v16864_v48, %v9627_v43  ;;  %v17181_v38 = vsel %vm2828_vm11, %v16868_v45, %v9628_v32  ;;  %v6053_v31 = vpack.c.bf16 %v6007_v28, %v6006_v62  ;;  %v5909_v27 = vsel %vm2828_vm11, %v20092_v5, %v9503_v13 }
 0x777   :  { %v5944_v3 = vsel %vm2828_vm11, %v16782_v42, %v9592_v20 }
 0x779   :  { %9805 = vrot.lane.b32.xlu2 %v20090_v12, %s10028_s16 }
 0x77a   :  { %v9646_v23 = vpop.permute.xlu0 %9645  ;;  %v9621_v22 = vpop.permute.xlu1 %9620 }
 0x77b   :  { %v9648_v48 = vunpack.i.h.bf16 %v9646_v23  ;;  %v9647_v25 = vunpack.i.l.bf16 %v9646_v23  ;;  %v9623_v17 = vunpack.i.h.bf16 %v9621_v22  ;;  %v9622_v30 = vunpack.i.l.bf16 %v9621_v22  ;;  %v9641_v45 = vpop.permute.xlu2 %9640 }
 0x77c   :  { %v9643_v32 = vunpack.i.h.bf16 %v9641_v45  ;;  %v9642_v43 = vunpack.i.l.bf16 %v9641_v45 }
 0x77d   :  { %v5972_v62 = vsel %vm2893_vm10, %v5908_v15, %v9622_v30  ;;  %v5973_v28 = vsel %vm2893_vm10, %v5909_v27, %v9623_v17  ;;  %v17197_v13 = vsel %vm2893_vm10, %v16916_v56, %v9647_v25  ;;  %v17201_v49 = vsel %vm2893_vm10, %v16920_v19, %v9648_v48 }
 0x77e   :  { %v6036_v12 = vpack.c.bf16 %v5973_v28, %v5972_v62  ;;  %v6008_v42 = vsel %vm2893_vm10, %v5944_v3, %v9642_v43  ;;  %v6009_v20 = vsel %vm2893_vm10, %v5945_v37, %v9643_v32  ;;  %v6038_v9 = vpack.c.bf16 %v17201_v49, %v17197_v13 }
 0x77f   :  { %v6054_v2 = vpack.c.bf16 %v6009_v20, %v6008_v42  ;;  %v9597_v15 = vunpack.i.l.bf16 %v17119_v46  ;;  %v5947_v17 = vsel %vm2828_vm11, %v16772_v40, %v9598_v1 }
 0x780   :  { %6888 = vmatmul.msk.bf16.vlgmr.msra.gmra.mxu1 %vm3014_vm12, %v6036_v12  ;;  %6905 = vmatmul.msk.bf16.gmra.mxu3 %vm3014_vm12, %v6053_v31 }
 0x781   :  { %v5946_v25 = vsel %vm2828_vm11, %v16768_v60, %v9597_v15 }
 0x782   :  { %v9661_v56 = vpop.permute.xlu0 %9660  ;;  %v9636_v19 = vpop.permute.xlu1 %9635 }
 0x783   :  { %v9663_v5 = vunpack.i.h.bf16 %v9661_v56  ;;  %v9662_v27 = vunpack.i.l.bf16 %v9661_v56  ;;  %v9638_v23 = vunpack.i.h.bf16 %v9636_v19  ;;  %v9637_v22 = vunpack.i.l.bf16 %v9636_v19  ;;  %v9656_v48 = vpop.permute.xlu2 %9655 }
 0x784   :  { %v9658_v30 = vunpack.i.h.bf16 %v9656_v48  ;;  %v9657_v45 = vunpack.i.l.bf16 %v9656_v48 }
 0x785   :  { %v5974_v46 = vsel %vm2893_vm10, %v16932_v36, %v9637_v22  ;;  %v5975_v31 = vsel %vm2893_vm10, %v16936_v10, %v9638_v23  ;;  %v17221_v3 = vsel %vm2893_vm10, %v16999_v26, %v9662_v27  ;;  %v17225_v37 = vsel %vm2893_vm10, %v17003_v57, %v9663_v5 }
 0x786   :  { %v6037_v60 = vpack.c.bf16 %v5975_v31, %v5974_v46  ;;  %v6010_v32 = vsel %vm2893_vm10, %v5946_v25, %v9657_v45  ;;  %v6011_v40 = vsel %vm2893_vm10, %v5947_v17, %v9658_v30  ;;  %v6039_v43 = vpack.c.bf16 %v17225_v37, %v17221_v3  ;;  %v20094_v37 = vld [vmem:[#allocation35_spill] sm:$0xff] }
 0x787   :  { %v6055_v36 = vpack.c.bf16 %v6011_v40, %v6010_v32 }
 0x78a   :  { %v9676_v62 = vpop.permute.xlu0 %9675  ;;  %v9651_v28 = vpop.permute.xlu1 %9650 }
 0x78b   :  { %v9678_v10 = vunpack.i.h.bf16 %v9676_v62  ;;  %v9677_v12 = vunpack.i.l.bf16 %v9676_v62  ;;  %v9671_v42 = vpop.permute.xlu2 %9670 }
 0x78c   :  { %v9673_v26 = vunpack.i.h.bf16 %v9671_v42  ;;  %v9672_v20 = vunpack.i.l.bf16 %v9671_v42  ;;  %v9652_v42 = vunpack.i.l.bf16 %v9651_v28 }
 0x78d   :  { %v17233_v57 = vsel %vm2893_vm10, %v16962_v6, %v9677_v12  ;;  %v17237_v1 = vsel %vm2893_vm10, %v16966_v0, %v9678_v10 }
 0x78e   :  { %v17241_v15 = vsel %vm2893_vm10, %v17123_v7, %v9672_v20  ;;  %v17245_v56 = vsel %vm2893_vm10, %v17127_v50, %v9673_v26  ;;  %v6040_v19 = vpack.c.bf16 %v17237_v1, %v17233_v57 }
 0x78f   :  { %v6056_v5 = vpack.c.bf16 %v17245_v56, %v17241_v15  ;;  %v20095_v15 = vld [vmem:[#allocation120_spill] sm:$0xff] }
 0x790   :  { %6889 = vmatmul.msk.bf16.gmra.mxu1 %vm3014_vm12, %v6037_v60  ;;  %6906 = vmatmul.msk.bf16.gmra.mxu3 %vm3014_vm12, %v6054_v2 }
 0x792   :  { %v17253_v6 = vpop.permute.xlu0 %9690  ;;  %v9666_v0 = vpop.permute.xlu1 %9665 }
 0x793   :  { %v9668_v27 = vunpack.i.h.bf16 %v9666_v0  ;;  %v9667_v7 = vunpack.i.l.bf16 %v9666_v0  ;;  %v9686_v23 = vpop.permute.xlu2 %9685 }
 0x794   :  { %v9688_v22 = vunpack.i.h.bf16 %v9686_v23  ;;  %v9687_v48 = vunpack.i.l.bf16 %v9686_v23 }
 0x795   :  { %v5958_v50 = vsel %vm2828_vm11, %v16826_v53, %v9667_v7  ;;  %v5959_v25 = vsel %vm2828_vm11, %v16830_v24, %v9668_v27  ;;  %v5956_v7 = vsel %vm2828_vm11, %v16842_v55, %v9652_v42 }
 0x796   :  { %v17261_v17 = vsel %vm2893_vm10, %v16954_v21, %v9687_v48  ;;  %v17265_v2 = vsel %vm2893_vm10, %v16958_v52, %v9688_v22 }
 0x797   :  { %v6041_v30 = vpack.c.bf16 %v17265_v2, %v17261_v17  ;;  %v20108_v2 = vld [vmem:[#allocation231_spill] sm:$0xff] }
 0x79a   :  { %v17269_v45 = vpop.permute.xlu0 %9705  ;;  %v9681_v46 = vpop.permute.xlu1 %9680 }
 0x79b   :  { %v9683_v31 = vunpack.i.h.bf16 %v9681_v46  ;;  %v9682_v60 = vunpack.i.l.bf16 %v9681_v46  ;;  %v9701_v53 = vpop.permute.xlu2 %9700 }
 0x79c   :  { %v9703_v32 = vunpack.i.h.bf16 %v9701_v53  ;;  %v9702_v40 = vunpack.i.l.bf16 %v9701_v53 }
 0x79d   :  { %v17273_v24 = vsel %vm2893_vm10, %v17166_v34, %v9682_v60  ;;  %v17277_v21 = vsel %vm2893_vm10, %v17170_v44, %v9683_v31  ;;  %v9653_v34 = vunpack.i.h.bf16 %v9651_v28 }
 0x79e   :  { %v6057_v52 = vpack.c.bf16 %v17277_v21, %v17273_v24  ;;  %v17283_v62 = vsel %vm2893_vm10, %v17037_v39, %v9702_v40  ;;  %v17287_v10 = vsel %vm2893_vm10, %v17041_v54, %v9703_v32 }
 0x79f   :  { %v6042_v12 = vpack.c.bf16 %v17287_v10, %v17283_v62  ;;  %v5957_v28 = vsel %vm2828_vm11, %v16846_v29, %v9653_v34 }
 0x7a0   :  { %6890 = vmatmul.msk.bf16.gmra.mxu1 %vm3014_vm12, %v6038_v9  ;;  %6907 = vmatmul.msk.bf16.gmra.mxu3 %vm3014_vm12, %v6055_v36 }
 0x7a2   :  { %v9721_v44 = vpop.permute.xlu0 %9720  ;;  %v9696_v26 = vpop.permute.xlu1 %9695 }
 0x7a3   :  { %v9723_v39 = vunpack.i.h.bf16 %v9721_v44  ;;  %v9722_v20 = vunpack.i.l.bf16 %v9721_v44  ;;  %v9698_v0 = vunpack.i.h.bf16 %v9696_v26  ;;  %v9697_v27 = vunpack.i.l.bf16 %v9696_v26  ;;  %v9716_v54 = vpop.permute.xlu2 %9715 }
 0x7a4   :  { %v9718_v23 = vunpack.i.h.bf16 %v9716_v54  ;;  %v9717_v22 = vunpack.i.l.bf16 %v9716_v54 }
 0x7a5   :  { %v17302_v13 = vsel %vm2893_vm10, %v17149_v63, %v9697_v27  ;;  %v17306_v49 = vsel %vm2893_vm10, %v17153_v61, %v9698_v0  ;;  %v17309_v9 = vsel %vm2893_vm10, %v5956_v7, %v9722_v20  ;;  %v17312_v36 = vsel %vm2893_vm10, %v5957_v28, %v9723_v39  ;;  %v20093_v28 = vld [vmem:[#allocation51_spill] sm:$0xff] }
 0x7a6   :  { %v6058_v55 = vpack.c.bf16 %v17306_v49, %v17302_v13  ;;  %v17318_v29 = vsel %vm2893_vm10, %v17007_v59, %v9717_v22  ;;  %v17322_v63 = vsel %vm2893_vm10, %v17011_v18, %v9718_v23  ;;  %v6060_v61 = vpack.c.bf16 %v17312_v36, %v17309_v9  ;;  %v20106_v49 = vld [vmem:[#allocation166_spill] sm:$0xff] }
 0x7a7   :  { %v6043_v48 = vpack.c.bf16 %v17322_v63, %v17318_v29  ;;  %v9693_v20 = vunpack.i.h.bf16 %v17253_v6  ;;  %v7053_v29 = vld [vmem:[%s17839_s0] sm:$0xff]  }
 0x7a9   :  { %v5961_v3 = vsel %vm2828_vm11, %v20093_v28, %v9693_v20 }
 0x7aa   :  { %v9736_v46 = vpop.permute.xlu0 %9735  ;;  %v9711_v31 = vpop.permute.xlu1 %9710 }
 0x7ab   :  { %v9738_v60 = vunpack.i.h.bf16 %v9736_v46  ;;  %v9737_v53 = vunpack.i.l.bf16 %v9736_v46  ;;  %v9713_v32 = vunpack.i.h.bf16 %v9711_v31  ;;  %v9712_v40 = vunpack.i.l.bf16 %v9711_v31  ;;  %v9731_v34 = vpop.permute.xlu2 %9730 }
 0x7ac   :  { %v9708_v46 = vunpack.i.h.bf16 %v17269_v45  ;;  %v9707_v31 = vunpack.i.l.bf16 %v17269_v45 }
 0x7ad   :  { %v17330_v59 = vsel %vm2893_vm10, %v17177_v58, %v9712_v40  ;;  %v17334_v18 = vsel %vm2893_vm10, %v17181_v38, %v9713_v32  ;;  %v17337_v42 = vsel %vm2893_vm10, %v5958_v50, %v9737_v53  ;;  %v17340_v44 = vsel %vm2893_vm10, %v5959_v25, %v9738_v60 }
 0x7ae   :  { %v6059_v26 = vpack.c.bf16 %v17334_v18, %v17330_v59  ;;  %v6061_v39 = vpack.c.bf16 %v17340_v44, %v17337_v42  ;;  %v9692_v58 = vunpack.i.l.bf16 %v17253_v6  ;;  %v17552_v59 = vld [vmem:[%s17843_s4] ss:$0 sm:$0xff] }
 0x7b0   :  { %6891 = vmatmul.msk.bf16.gmra.mxu1 %vm3014_vm12, %v6039_v43  ;;  %6908 = vmatmul.msk.bf16.gmra.mxu3 %vm3014_vm12, %v6056_v5  ;;  %v5960_v6 = vsel %vm2828_vm11, %v16894_v14, %v9692_v58 }
 0x7b2   :  { %v9751_v38 = vpop.permute.xlu0 %9750  ;;  %v9726_v50 = vpop.permute.xlu1 %9725 }
 0x7b3   :  { %v9753_v25 = vunpack.i.h.bf16 %v9751_v38  ;;  %v9752_v0 = vunpack.i.l.bf16 %v9751_v38  ;;  %v9728_v27 = vunpack.i.h.bf16 %v9726_v50  ;;  %v9727_v54 = vunpack.i.l.bf16 %v9726_v50  ;;  %v17356_v7 = vpop.permute.xlu2 %9745  ;;  %v20096_v50 = vld [vmem:[#allocation118_spill] sm:$0xff] }
 0x7b5   :  { %v17364_v43 = vsel %vm2893_vm10, %v20094_v37, %v9727_v54  ;;  %v17368_v56 = vsel %vm2893_vm10, %v20095_v15, %v9728_v27  ;;  %v17371_v5 = vsel %vm2893_vm10, %v5960_v6, %v9752_v0  ;;  %v17374_v23 = vsel %vm2893_vm10, %v5961_v3, %v9753_v25  ;;  %v20097_v0 = vld [vmem:[#allocation70_spill] sm:$0xff] }
 0x7b6   :  { %v6044_v14 = vpack.c.bf16 %v17368_v56, %v17364_v43  ;;  %v6062_v22 = vpack.c.bf16 %v17374_v23, %v17371_v5  ;;  %v5962_v25 = vsel %vm2828_vm11, %v20096_v50, %v9707_v31  ;;  %v5963_v27 = vsel %vm2828_vm11, %v20097_v0, %v9708_v46  ;;  %v20098_v50 = vld [vmem:[#allocation158_spill] sm:$0xff] }
 0x7b7   :  { %v9733_v31 = vunpack.i.h.bf16 %v9731_v34 }
 0x7ba   :  { %v9766_v60 = vpop.permute.xlu0 %9765  ;;  %v9741_v53 = vpop.permute.xlu1 %9740 }
 0x7bb   :  { %v9768_v32 = vunpack.i.h.bf16 %v9766_v60  ;;  %v9767_v40 = vunpack.i.l.bf16 %v9766_v60  ;;  %v9743_v20 = vunpack.i.h.bf16 %v9741_v53  ;;  %v9742_v58 = vunpack.i.l.bf16 %v9741_v53  ;;  %v9761_v38 = vpop.permute.xlu2 %9760 }
 0x7bc   :  { %v9763_v54 = vunpack.i.h.bf16 %v9761_v38  ;;  %v9762_v6 = vunpack.i.l.bf16 %v9761_v38  ;;  %v9732_v60 = vunpack.i.l.bf16 %v9731_v34 }
 0x7bd   :  { %v17388_v28 = vsel %vm2893_vm10, %v17081_v47, %v9742_v58  ;;  %v17392_v45 = vsel %vm2893_vm10, %v17085_v33, %v9743_v20  ;;  %v17396_v3 = vsel %vm2893_vm10, %v17029_v16, %v9767_v40  ;;  %v17400_v37 = vsel %vm2893_vm10, %v17033_v51, %v9768_v32 }
 0x7be   :  { %v6045_v15 = vpack.c.bf16 %v17392_v45, %v17388_v28  ;;  %v17405_v46 = vsel %vm2893_vm10, %v5962_v25, %v9762_v6  ;;  %v17408_v47 = vsel %vm2893_vm10, %v5963_v27, %v9763_v54  ;;  %v6047_v33 = vpack.c.bf16 %v17400_v37, %v17396_v3  ;;  %v20099_v25 = vld [vmem:[#allocation223_spill] sm:$0xff]  ;;  %v20101_v27 = vld [vmem:[#allocation90_spill] sm:$0xff] }
 0x7bf   :  { %v6063_v16 = vpack.c.bf16 %v17408_v47, %v17405_v46  ;;  %v5964_v34 = vsel %vm2828_vm11, %v20098_v50, %v9732_v60  ;;  %v5965_v57 = vsel %vm2828_vm11, %v20099_v25, %v9733_v31  ;;  %v20102_v25 = vld [vmem:[#allocation150_spill] sm:$0xff] }
 0x7c0   :  { %6892 = vmatmul.msk.bf16.gmra.mxu1 %vm3014_vm12, %v6040_v19  ;;  %6909 = vmatmul.msk.bf16.gmra.mxu3 %vm3014_vm12, %v6057_v52  ;;  %v20100_v52 = vld [vmem:[#allocation72_spill] sm:$0xff] }
 0x7c2   :  { %v9781_v51 = vpop.permute.xlu0 %9780  ;;  %v9756_v53 = vpop.permute.xlu1 %9755 }
 0x7c3   :  { %v9783_v32 = vunpack.i.h.bf16 %v9781_v51  ;;  %v9782_v40 = vunpack.i.l.bf16 %v9781_v51  ;;  %v9758_v20 = vunpack.i.h.bf16 %v9756_v53  ;;  %v9757_v58 = vunpack.i.l.bf16 %v9756_v53  ;;  %v9776_v38 = vpop.permute.xlu2 %9775 }
 0x7c4   :  { %v9778_v1 = vunpack.i.h.bf16 %v9776_v38  ;;  %v9777_v19 = vunpack.i.l.bf16 %v9776_v38  ;;  %v9748_v51 = vunpack.i.h.bf16 %v17356_v7  ;;  %v9747_v53 = vunpack.i.l.bf16 %v17356_v7 }
 0x7c5   :  { %v17428_v24 = vsel %vm2893_vm10, %v17103_v41, %v9782_v40  ;;  %v17432_v21 = vsel %vm2893_vm10, %v17107_v8, %v9783_v32  ;;  %v17436_v0 = vsel %vm2893_vm10, %v20100_v52, %v9757_v58  ;;  %v17440_v54 = vsel %vm2893_vm10, %v20101_v27, %v9758_v20 }
 0x7c6   :  { %v6048_v6 = vpack.c.bf16 %v17432_v21, %v17428_v24  ;;  %v17445_v31 = vsel %vm2893_vm10, %v5964_v34, %v9777_v19  ;;  %v17448_v41 = vsel %vm2893_vm10, %v5965_v57, %v9778_v1  ;;  %v6046_v8 = vpack.c.bf16 %v17440_v54, %v17436_v0  ;;  %v20103_v1 = vld [vmem:[#allocation134_spill] sm:$0xff] }
 0x7c7   :  { %v6064_v60 = vpack.c.bf16 %v17448_v41, %v17445_v31  ;;  %v5966_v57 = vsel %vm2828_vm11, %v20102_v25, %v9747_v53  ;;  %v5967_v19 = vsel %vm2828_vm11, %v20103_v1, %v9748_v51 }
 0x7ca   :  { %v9796_v32 = vpop.permute.xlu0 %9795  ;;  %v9771_v40 = vpop.permute.xlu1 %9770 }
 0x7cb   :  { %v9798_v20 = vunpack.i.h.bf16 %v9796_v32  ;;  %v9797_v58 = vunpack.i.l.bf16 %v9796_v32  ;;  %v9791_v38 = vpop.permute.xlu2 %9790 }
 0x7cc   :  { %v9793_v50 = vunpack.i.h.bf16 %v9791_v38  ;;  %v9792_v34 = vunpack.i.l.bf16 %v9791_v38 }
 0x7cd   :  { %v17462_v52 = vsel %vm2893_vm10, %v17089_v11, %v9797_v58  ;;  %v17466_v7 = vsel %vm2893_vm10, %v17093_v35, %v9798_v20 }
 0x7ce   :  { %v17471_v32 = vsel %vm2893_vm10, %v5966_v57, %v9792_v34  ;;  %v17474_v38 = vsel %vm2893_vm10, %v5967_v19, %v9793_v50  ;;  %v20104_v57 = vld [vmem:[#allocation71_spill] sm:$0xff]  ;;  %v9772_v19 = vunpack.i.l.bf16 %v9771_v40 }
 0x7cf   :  { %v6065_v51 = vpack.c.bf16 %v17474_v38, %v17471_v32  ;;  %v7215_v38 = vld [vmem:[%s17839_s0 + $0x28] sm:$0xff]  }
 0x7d0   :  { %6893 = vmatmul.msk.bf16.gmra.mxu1 %vm3014_vm12, %v6041_v30  ;;  %6910 = vmatmul.msk.bf16.gmra.mxu3 %vm3014_vm12, %v6058_v55  ;;  %v20105_v30 = vld [vmem:[#allocation184_spill] sm:$0xff] }
 0x7d2   :  { %v9811_v11 = vpop.permute.xlu0 %9810  ;;  %v9786_v35 = vpop.permute.xlu1 %9785 }
 0x7d3   :  { %v9813_v53 = vunpack.i.h.bf16 %v9811_v11  ;;  %v9812_v20 = vunpack.i.l.bf16 %v9811_v11  ;;  %v9806_v58 = vpop.permute.xlu2 %9805 }
 0x7d4   :  { %v9808_v50 = vunpack.i.h.bf16 %v9806_v58  ;;  %v9807_v34 = vunpack.i.l.bf16 %v9806_v58  ;;  %v20107_v58 = vld [vmem:[#allocation213_spill] sm:$0xff] }
 0x7d5   :  { %v17488_v25 = vsel %vm2893_vm10, %v17131_v4, %v9812_v20  ;;  %v17492_v17 = vsel %vm2893_vm10, %v20104_v57, %v9813_v53  ;;  %v9773_v4 = vunpack.i.h.bf16 %v9771_v40  ;;  %v5968_v57 = vsel %vm2828_vm11, %v20107_v58, %v9772_v19 }
 0x7d6   :  { %v17498_v13 = vsel %vm2893_vm10, %v20105_v30, %v9807_v34  ;;  %v17502_v55 = vsel %vm2893_vm10, %v20106_v49, %v9808_v50  ;;  %v9788_v49 = vunpack.i.h.bf16 %v9786_v35  ;;  %v9787_v40 = vunpack.i.l.bf16 %v9786_v35 }
 0x7d7   :  { %v6050_v1 = vpack.c.bf16 %v17502_v55, %v17498_v13  ;;  %v5969_v27 = vsel %vm2828_vm11, %v20108_v2, %v9773_v4 }
 0x7da   :  { %v9801_v11 = vpop.permute.xlu1 %9800 }
 0x7db   :  { %v9803_v20 = vunpack.i.h.bf16 %v9801_v11  ;;  %v9802_v53 = vunpack.i.l.bf16 %v9801_v11 }
 0x7dd   :  { %v17511_v34 = vsel %vm2893_vm10, %v5968_v57, %v9802_v53  ;;  %v17514_v50 = vsel %vm2893_vm10, %v5969_v27, %v9803_v20  ;;  %v20109_v27 = vld [vmem:[#allocation82_spill] sm:$0xff]  ;;  %v20110_v20 = vld [vmem:[#allocation176_spill] sm:$0xff] }
 0x7de   :  { %v6066_v30 = vpack.c.bf16 %v17514_v50, %v17511_v34  ;;  %v5970_v11 = vsel %vm2828_vm11, %v20109_v27, %v9787_v40  ;;  %v5971_v53 = vsel %vm2828_vm11, %v20110_v20, %v9788_v49  ;;  %v7216_v50 = vld [vmem:[%s17839_s0 + $0x30] sm:$0xff]  }
 0x7e0   :  { %6894 = vmatmul.msk.bf16.gmra.mxu1 %vm3014_vm12, %v6042_v12  ;;  %6911 = vmatmul.msk.bf16.gmra.mxu3 %vm3014_vm12, %v6059_v26  ;;  %v7226_v12 = vld [vmem:[%s17839_s0 + $0x80] sm:$0xff]  }
 0x7e1   :  { %v7118_v18 = vunpack.c.l.bf16 %v7226_v12  ;;  %v7119_v63 = vunpack.c.h.bf16 %v7226_v12 }
 0x7e2   :  { %v9816_v2 = vpop.permute.xlu1 %9815 }
 0x7e3   :  { %v9818_v4 = vunpack.i.h.bf16 %v9816_v2  ;;  %v9817_v19 = vunpack.i.l.bf16 %v9816_v2 }
 0x7e5   :  { %v17531_v35 = vsel %vm2893_vm10, %v5970_v11, %v9817_v19  ;;  %v17534_v62 = vsel %vm2893_vm10, %v5971_v53, %v9818_v4  ;;  %v7227_v19 = vld [vmem:[%s17839_s0 + $0x88] sm:$0xff]  }
 0x7e6   :  { %v6067_v10 = vpack.c.bf16 %v17534_v62, %v17531_v35  ;;  %v7122_v53 = vunpack.c.l.bf16 %v7227_v19  ;;  %v7217_v62 = vld [vmem:[%s17839_s0 + $0x38] sm:$0xff]  }
 0x7f0   :  { %6895 = vmatmul.msk.bf16.gmra.mxu1 %vm3014_vm12, %v6043_v48  ;;  %6912 = vmatmul.msk.bf16.gmra.mxu3 %vm3014_vm12, %v6060_v61  ;;  %v7054_v48 = vunpack.c.l.bf16 %v7053_v29 }
 0x7f3   :  { %v6280_v26 = vpop.f32.mrf.mxu3 }
 0x7f4   :  { %v6281_v58 = vadd.f32 %v17552_v59, %v6280_v26 }
 0x7f6   :  { %v6520_v57 = vadd.f32 %v7118_v18, %v6281_v58  ;;  %v7055_v58 = vunpack.c.h.bf16 %v7053_v29 }
 0x7f8   :  { %v6584_v49 = vmax.f32 %v6520_v57, 0.0 }
 0x7fa   :  { %v6648_v9 = vsel %vm22_vm0, %v6584_v49, 0.0  ;;  %v7123_v49 = vunpack.c.h.bf16 %v7227_v19 }
 0x7fb   :  { %v6282_v36 = vpop.f32.mrf.mxu3  ;;  %6744 = vxpose.xlu1.b32.start [1/16] (narrow) %v6648_v9, 8 }
 0x7fc   :  { %v6283_v61 = vadd.f32 %v17552_v59, %v6282_v36 }
 0x7fd   :  { %v6200_v40 = vpop.f32.mrf.mxu1 }
 0x7fe   :  { %v6521_v2 = vadd.f32 %v7119_v63, %v6283_v61  ;;  %v6201_v4 = vadd.f32 %v17552_v59, %v6200_v40 }
 0x800   :  { %v6488_v27 = vadd.f32 %v7054_v48, %v6201_v4  ;;  %6896 = vmatmul.msk.bf16.gmra.mxu1 %vm3014_vm12, %v6044_v14  ;;  %6913 = vmatmul.msk.bf16.gmra.mxu3 %vm3014_vm12, %v6061_v39  ;;  %v6585_v11 = vmax.f32 %v6521_v2, 0.0  ;;  %v7211_v39 = vld [vmem:[%s17839_s0 + $0x8] sm:$0xff]  }
 0x801   :  { %v7058_v48 = vunpack.c.l.bf16 %v7211_v39 }
 0x802   :  { %v6552_v20 = vmax.f32 %v6488_v27, 0.0  ;;  %v6649_v12 = vsel %vm22_vm0, %v6585_v11, 0.0  ;;  %v7228_v27 = vld [vmem:[%s17839_s0 + $0x90] sm:$0xff]  }
 0x803   :  { %v6285_v18 = vpop.f32.mrf.mxu3  ;;  %6745 = vxpose.xlu1.b32.cont [2/16] (narrow) %v6649_v12, 8 }
 0x804   :  { %v6286_v26 = vadd.f32 %v17552_v59, %v6285_v18  ;;  %v6616_v57 = vsel %vm22_vm0, %v6552_v20, 0.0 }
 0x805   :  { %v6202_v43 = vpop.f32.mrf.mxu1  ;;  %6680 = vxpose.xlu2.b32.start [1/16] (narrow) %v6616_v57, 8 }
 0x806   :  { %v6522_v56 = vadd.f32 %v7122_v53, %v6286_v26  ;;  %v6203_v14 = vadd.f32 %v17552_v59, %v6202_v43  ;;  %v7126_v53 = vunpack.c.l.bf16 %v7228_v27  ;;  %v7127_v43 = vunpack.c.h.bf16 %v7228_v27 }
 0x808   :  { %v6586_v42 = vmax.f32 %v6522_v56, 0.0  ;;  %v6489_v44 = vadd.f32 %v7055_v58, %v6203_v14  ;;  %v7059_v58 = vunpack.c.h.bf16 %v7211_v39 }
 0x80a   :  { %v6650_v63 = vsel %vm22_vm0, %v6586_v42, 0.0  ;;  %v6553_v9 = vmax.f32 %v6489_v44, 0.0 }
 0x80b   :  { %v6287_v36 = vpop.f32.mrf.mxu3  ;;  %6746 = vxpose.xlu1.b32.cont [3/16] (narrow) %v6650_v63, 8 }
 0x80c   :  { %v6288_v29 = vadd.f32 %v17552_v59, %v6287_v36  ;;  %v6617_v61 = vsel %vm22_vm0, %v6553_v9, 0.0 }
 0x80d   :  { %6681 = vxpose.xlu2.b32.cont [2/16] (narrow) %v6617_v61, 8  ;;  %v6205_v40 = vpop.f32.mrf.mxu1 }
 0x80e   :  { %v6523_v2 = vadd.f32 %v7123_v49, %v6288_v29  ;;  %v6206_v4 = vadd.f32 %v17552_v59, %v6205_v40  ;;  %v7229_v29 = vld [vmem:[%s17839_s0 + $0x98] sm:$0xff]  }
 0x810   :  { %v6490_v19 = vadd.f32 %v7058_v48, %v6206_v4  ;;  %6897 = vmatmul.msk.bf16.gmra.mxu1 %vm3014_vm12, %v6045_v15  ;;  %6914 = vmatmul.msk.bf16.gmra.mxu3 %vm3014_vm12, %v6062_v22  ;;  %v6587_v11 = vmax.f32 %v6523_v2, 0.0  ;;  %v7212_v22 = vld [vmem:[%s17839_s0 + $0x10] sm:$0xff]   ;;  %v7130_v2 = vunpack.c.l.bf16 %v7229_v29 }
 0x811   :  { %v7062_v39 = vunpack.c.l.bf16 %v7212_v22 }
 0x812   :  { %v6554_v20 = vmax.f32 %v6490_v19, 0.0  ;;  %v6651_v12 = vsel %vm22_vm0, %v6587_v11, 0.0  ;;  %v7063_v11 = vunpack.c.h.bf16 %v7212_v22 }
 0x813   :  { %v6290_v18 = vpop.f32.mrf.mxu3  ;;  %6747 = vxpose.xlu1.b32.cont [4/16] (narrow) %v6651_v12, 8 }
 0x814   :  { %v6291_v26 = vadd.f32 %v17552_v59, %v6290_v18  ;;  %v6618_v57 = vsel %vm22_vm0, %v6554_v20, 0.0 }
 0x815   :  { %v6207_v28 = vpop.f32.mrf.mxu1  ;;  %6682 = vxpose.xlu2.b32.cont [3/16] (narrow) %v6618_v57, 8 }
 0x816   :  { %v6524_v45 = vadd.f32 %v7126_v53, %v6291_v26  ;;  %v6208_v15 = vadd.f32 %v17552_v59, %v6207_v28  ;;  %v7131_v53 = vunpack.c.h.bf16 %v7229_v29 }
 0x818   :  { %v6588_v5 = vmax.f32 %v6524_v45, 0.0  ;;  %v6491_v23 = vadd.f32 %v7059_v58, %v6208_v15 }
 0x81a   :  { %v6652_v56 = vsel %vm22_vm0, %v6588_v5, 0.0  ;;  %v6555_v14 = vmax.f32 %v6491_v23, 0.0  ;;  %v7230_v23 = vld [vmem:[%s17839_s0 + $0xa0] sm:$0xff]  }
 0x81b   :  { %v6292_v42 = vpop.f32.mrf.mxu3  ;;  %6748 = vxpose.xlu1.b32.cont [5/16] (narrow) %v6652_v56, 8 }
 0x81c   :  { %v6293_v44 = vadd.f32 %v17552_v59, %v6292_v42  ;;  %v6619_v49 = vsel %vm22_vm0, %v6555_v14, 0.0  ;;  %v7134_v14 = vunpack.c.l.bf16 %v7230_v23 }
 0x81d   :  { %v6210_v63 = vpop.f32.mrf.mxu1  ;;  %6683 = vxpose.xlu2.b32.cont [4/16] (narrow) %v6619_v49, 8 }
 0x81e   :  { %v6525_v9 = vadd.f32 %v7127_v43, %v6293_v44  ;;  %v6211_v36 = vadd.f32 %v17552_v59, %v6210_v63 }
 0x820   :  { %v6492_v61 = vadd.f32 %v7062_v39, %v6211_v36  ;;  %6898 = vmatmul.msk.bf16.gmra.mxu1 %vm3014_vm12, %v6046_v8  ;;  %6915 = vmatmul.msk.bf16.gmra.mxu3 %vm3014_vm12, %v6063_v16  ;;  %v6589_v48 = vmax.f32 %v6525_v9, 0.0  ;;  %v7213_v16 = vld [vmem:[%s17839_s0 + $0x18] sm:$0xff]   ;;  %v7135_v9 = vunpack.c.h.bf16 %v7230_v23 }
 0x821   :  { %v7066_v57 = vunpack.c.l.bf16 %v7213_v16  ;;  %v7067_v49 = vunpack.c.h.bf16 %v7213_v16 }
 0x822   :  { %v6556_v40 = vmax.f32 %v6492_v61, 0.0  ;;  %v6653_v4 = vsel %vm22_vm0, %v6589_v48, 0.0 }
 0x823   :  { %v6295_v27 = vpop.f32.mrf.mxu3  ;;  %6749 = vxpose.xlu1.b32.cont [6/16] (narrow) %v6653_v4, 8 }
 0x824   :  { %v6296_v19 = vadd.f32 %v17552_v59, %v6295_v27  ;;  %v6620_v20 = vsel %vm22_vm0, %v6556_v40, 0.0 }
 0x825   :  { %v6212_v0 = vpop.f32.mrf.mxu1  ;;  %6684 = vxpose.xlu2.b32.cont [5/16] (narrow) %v6620_v20, 8 }
 0x826   :  { %v6526_v54 = vadd.f32 %v7130_v2, %v6296_v19  ;;  %v6213_v8 = vadd.f32 %v17552_v59, %v6212_v0 }
 0x828   :  { %v6590_v46 = vmax.f32 %v6526_v54, 0.0  ;;  %v6493_v47 = vadd.f32 %v7063_v11, %v6213_v8  ;;  %v7231_v11 = vld [vmem:[%s17839_s0 + $0xa8] sm:$0xff]  }
 0x829   :  { %v7138_v8 = vunpack.c.l.bf16 %v7231_v11 }
 0x82a   :  { %v6654_v12 = vsel %vm22_vm0, %v6590_v46, 0.0  ;;  %v6557_v18 = vmax.f32 %v6493_v47, 0.0 }
 0x82b   :  { %v6297_v26 = vpop.f32.mrf.mxu3  ;;  %6750 = vxpose.xlu1.b32.cont [7/16] (narrow) %v6654_v12, 8 }
 0x82c   :  { %v6298_v58 = vadd.f32 %v17552_v59, %v6297_v26  ;;  %v6621_v28 = vsel %vm22_vm0, %v6557_v18, 0.0  ;;  %v7139_v26 = vunpack.c.h.bf16 %v7231_v11 }
 0x82d   :  { %v6215_v45 = vpop.f32.mrf.mxu1  ;;  %6685 = vxpose.xlu2.b32.cont [6/16] (narrow) %v6621_v28, 8 }
 0x82e   :  { %v6527_v15 = vadd.f32 %v7131_v53, %v6298_v58  ;;  %v6216_v5 = vadd.f32 %v17552_v59, %v6215_v45  ;;  %v7074_v45 = vunpack.c.l.bf16 %v7215_v38 }
 0x830   :  { %v6494_v22 = vadd.f32 %v7066_v57, %v6216_v5  ;;  %6899 = vmatmul.msk.bf16.gmra.mxu1 %vm3014_vm12, %v6047_v33  ;;  %6916 = vmatmul.msk.bf16.gmra.mxu3 %vm3014_vm12, %v6064_v60  ;;  %v6591_v43 = vmax.f32 %v6527_v15, 0.0  ;;  %v7214_v60 = vld [vmem:[%s17839_s0 + $0x20] sm:$0xff]  }
 0x831   :  { %v7070_v40 = vunpack.c.l.bf16 %v7214_v60  ;;  %v7071_v53 = vunpack.c.h.bf16 %v7214_v60 }
 0x832   :  { %v6558_v56 = vmax.f32 %v6494_v22, 0.0  ;;  %v6655_v42 = vsel %vm22_vm0, %v6591_v43, 0.0  ;;  %v7232_v43 = vld [vmem:[%s17839_s0 + $0xb0] sm:$0xff]  }
 0x833   :  { %v6300_v44 = vpop.f32.mrf.mxu3  ;;  %6751 = vxpose.xlu1.b32.cont [8/16] (narrow) %v6655_v42, 8  ;;  %v20111_v42 = vpack.c.bf16 %v17466_v7, %v17462_v52  ;;  %v7143_v60 = vunpack.c.h.bf16 %v7232_v43 }
 0x834   :  { %v6301_v39 = vadd.f32 %v17552_v59, %v6300_v44  ;;  %v6622_v63 = vsel %vm22_vm0, %v6558_v56, 0.0 }
 0x835   :  { %v6217_v3 = vpop.f32.mrf.mxu1  ;;  %6686 = vxpose.xlu2.b32.cont [7/16] (narrow) %v6622_v63, 8 }
 0x836   :  { %v6528_v37 = vadd.f32 %v7134_v14, %v6301_v39  ;;  %v6218_v33 = vadd.f32 %v17552_v59, %v6217_v3  ;;  %v7142_v39 = vunpack.c.l.bf16 %v7232_v43  ;;  %v7234_v43 = vld [vmem:[%s17839_s0 + $0xc0] sm:$0xff]  }
 0x838   :  { %v6592_v31 = vmax.f32 %v6528_v37, 0.0  ;;  %v6495_v41 = vadd.f32 %v7067_v49, %v6218_v33  ;;  %v7075_v37 = vunpack.c.h.bf16 %v7215_v38 }
 0x83a   :  { %v6656_v36 = vsel %vm22_vm0, %v6592_v31, 0.0  ;;  %v6559_v29 = vmax.f32 %v6495_v41, 0.0 }
 0x83b   :  { %v6302_v61 = vpop.f32.mrf.mxu3  ;;  %6752 = vxpose.xlu1.b32.cont [9/16] (narrow) %v6656_v36, 8 }
 0x83c   :  { %v6303_v48 = vadd.f32 %v17552_v59, %v6302_v61  ;;  %v6623_v2 = vsel %vm22_vm0, %v6559_v29, 0.0  ;;  %v7078_v61 = vunpack.c.l.bf16 %v7216_v50 }
 0x83d   :  { %v6220_v4 = vpop.f32.mrf.mxu1  ;;  %6687 = vxpose.xlu2.b32.cont [8/16] (narrow) %v6623_v2, 8 }
 0x83e   :  { %v6529_v27 = vadd.f32 %v7135_v9, %v6303_v48  ;;  %v6221_v19 = vadd.f32 %v17552_v59, %v6220_v4 }
 0x840   :  { %v6593_v20 = vmax.f32 %v6529_v27, 0.0  ;;  %v6496_v0 = vadd.f32 %v7070_v40, %v6221_v19  ;;  %6900 = vmatmul.msk.bf16.gmra.mxu1 %vm3014_vm12, %v6048_v6  ;;  %6917 = vmatmul.msk.bf16.gmra.mxu3 %vm3014_vm12, %v6065_v51  ;;  %v7233_v27 = vld [vmem:[%s17839_s0 + $0xb8] sm:$0xff]  }
 0x842   :  { %v6560_v54 = vmax.f32 %v6496_v0, 0.0  ;;  %v6657_v46 = vsel %vm22_vm0, %v6593_v20, 0.0  ;;  %v7146_v0 = vunpack.c.l.bf16 %v7233_v27 }
 0x843   :  { %v6305_v47 = vpop.f32.mrf.mxu3  ;;  %6753 = vxpose.xlu1.b32.cont [10/16] (narrow) %v6657_v46, 8 }
 0x844   :  { %v6306_v16 = vadd.f32 %v17552_v59, %v6305_v47  ;;  %v6624_v12 = vsel %vm22_vm0, %v6560_v54, 0.0  ;;  %v7079_v47 = vunpack.c.h.bf16 %v7216_v50 }
 0x845   :  { %v6222_v18 = vpop.f32.mrf.mxu1  ;;  %6688 = vxpose.xlu2.b32.cont [9/16] (narrow) %v6624_v12, 8  ;;  %v7147_v12 = vunpack.c.h.bf16 %v7233_v27 }
 0x846   :  { %v6530_v24 = vadd.f32 %v7138_v8, %v6306_v16  ;;  %v6223_v21 = vadd.f32 %v17552_v59, %v6222_v18 }
 0x848   :  { %v6594_v6 = vmax.f32 %v6530_v24, 0.0  ;;  %v6497_v32 = vadd.f32 %v7071_v53, %v6223_v21 }
 0x84a   :  { %v6561_v51 = vmax.f32 %v6497_v32, 0.0  ;;  %v6658_v58 = vsel %vm22_vm0, %v6594_v6, 0.0  ;;  %v7082_v6 = vunpack.c.l.bf16 %v7217_v62 }
 0x84b   :  { %v6307_v57 = vpop.f32.mrf.mxu3  ;;  %6754 = vxpose.xlu1.b32.cont [11/16] (narrow) %v6658_v58, 8 }
 0x84c   :  { %v6308_v28 = vadd.f32 %v17552_v59, %v6307_v57  ;;  %v6625_v15 = vsel %vm22_vm0, %v6561_v51, 0.0 }
 0x84d   :  { %v6225_v5 = vpop.f32.mrf.mxu1  ;;  %6689 = vxpose.xlu2.b32.cont [10/16] (narrow) %v6625_v15, 8 }
 0x84e   :  { %v6531_v23 = vadd.f32 %v7139_v26, %v6308_v28  ;;  %v6226_v22 = vadd.f32 %v17552_v59, %v6225_v5  ;;  %v20112_v28 = vpack.c.bf16 %v17492_v17, %v17488_v25  ;;  %v7150_v17 = vunpack.c.l.bf16 %v7234_v43 }
 0x850   :  { %v6595_v56 = vmax.f32 %v6531_v23, 0.0  ;;  %v6498_v14 = vadd.f32 %v7074_v45, %v6226_v22  ;;  %6901 = vmatmul.msk.bf16.gmra.mxu1 %vm3014_vm12, %v20111_v42  ;;  %6918 = vmatmul.msk.bf16.gmra.mxu3 %vm3014_vm12, %v6066_v30  ;;  %v7083_v23 = vunpack.c.h.bf16 %v7217_v62 }
 0x852   :  { %v6562_v44 = vmax.f32 %v6498_v14, 0.0  ;;  %v6659_v49 = vsel %vm22_vm0, %v6595_v56, 0.0 }
 0x853   :  { %v6310_v63 = vpop.f32.mrf.mxu3  ;;  %6755 = vxpose.xlu1.b32.cont [12/16] (narrow) %v6659_v49, 8 }
 0x854   :  { %v6311_v3 = vadd.f32 %v17552_v59, %v6310_v63  ;;  %v6626_v33 = vsel %vm22_vm0, %v6562_v44, 0.0  ;;  %v7218_v44 = vld [vmem:[%s17839_s0 + $0x40] sm:$0xff]  }
 0x855   :  { %v6227_v31 = vpop.f32.mrf.mxu1  ;;  %6690 = vxpose.xlu2.b32.cont [11/16] (narrow) %v6626_v33, 8 }
 0x856   :  { %v6532_v52 = vadd.f32 %v7142_v39, %v6311_v3  ;;  %v6228_v7 = vadd.f32 %v17552_v59, %v6227_v31  ;;  %v7086_v3 = vunpack.c.l.bf16 %v7218_v44 }
 0x858   :  { %v6596_v41 = vmax.f32 %v6532_v52, 0.0  ;;  %v6499_v34 = vadd.f32 %v7075_v37, %v6228_v7 }
 0x85a   :  { %v6563_v30 = vmax.f32 %v6499_v34, 0.0  ;;  %v6660_v9 = vsel %vm22_vm0, %v6596_v41, 0.0  ;;  %v7151_v41 = vunpack.c.h.bf16 %v7234_v43 }
 0x85b   :  { %v6312_v36 = vpop.f32.mrf.mxu3  ;;  %6756 = vxpose.xlu1.b32.cont [13/16] (narrow) %v6660_v9, 8  ;;  %v7087_v9 = vunpack.c.h.bf16 %v7218_v44 }
 0x85c   :  { %v6313_v29 = vadd.f32 %v17552_v59, %v6312_v36  ;;  %v6627_v48 = vsel %vm22_vm0, %v6563_v30, 0.0 }
 0x85d   :  { %v6230_v40 = vpop.f32.mrf.mxu1  ;;  %6691 = vxpose.xlu2.b32.cont [12/16] (narrow) %v6627_v48, 8 }
 0x85e   :  { %v6533_v2 = vadd.f32 %v7143_v60, %v6313_v29  ;;  %v6231_v4 = vadd.f32 %v17552_v59, %v6230_v40 }
 0x860   :  { %v6597_v19 = vmax.f32 %v6533_v2, 0.0  ;;  %v6500_v11 = vadd.f32 %v7078_v61, %v6231_v4  ;;  %6902 = vmatmul.msk.bf16.gmra.mxu1 %vm3014_vm12, %v6050_v1  ;;  %6919 = vmatmul.msk.bf16.gmra.mxu3 %vm3014_vm12, %v6067_v10  ;;  %v7235_v61 = vld [vmem:[%s17839_s0 + $0xc8] sm:$0xff]  }
 0x861   :  { %v7154_v27 = vunpack.c.l.bf16 %v7235_v61 }
 0x862   :  { %v6564_v20 = vmax.f32 %v6500_v11, 0.0  ;;  %v6661_v54 = vsel %vm22_vm0, %v6597_v19, 0.0  ;;  %v7219_v11 = vld [vmem:[%s17839_s0 + $0x48] sm:$0xff]  }
 0x863   :  { %v6315_v8 = vpop.f32.mrf.mxu3  ;;  %6757 = vxpose.xlu1.b32.cont [14/16] (narrow) %v6661_v54, 8 }
 0x864   :  { %v6316_v46 = vadd.f32 %v17552_v59, %v6315_v8  ;;  %v6628_v16 = vsel %vm22_vm0, %v6564_v20, 0.0  ;;  %v7090_v8 = vunpack.c.l.bf16 %v7219_v11 }
 0x865   :  { %v6232_v53 = vpop.f32.mrf.mxu1  ;;  %6692 = vxpose.xlu2.b32.cont [13/16] (narrow) %v6628_v16, 8 }
 0x866   :  { %v6534_v13 = vadd.f32 %v7146_v0, %v6316_v46  ;;  %v6233_v55 = vadd.f32 %v17552_v59, %v6232_v53 }
 0x868   :  { %v6598_v1 = vmax.f32 %v6534_v13, 0.0  ;;  %v6501_v35 = vadd.f32 %v7079_v47, %v6233_v55 }
 0x86a   :  { %v6565_v10 = vmax.f32 %v6501_v35, 0.0  ;;  %v6662_v18 = vsel %vm22_vm0, %v6598_v1, 0.0  ;;  %v7155_v1 = vunpack.c.h.bf16 %v7235_v61 }
 0x86b   :  { %v6317_v24 = vpop.f32.mrf.mxu3  ;;  %6758 = vxpose.xlu1.b32.cont [15/16] (narrow) %v6662_v18, 8  ;;  %v7091_v18 = vunpack.c.h.bf16 %v7219_v11 }
 0x86c   :  { %v6318_v21 = vadd.f32 %v17552_v59, %v6317_v24  ;;  %v6629_v32 = vsel %vm22_vm0, %v6565_v10, 0.0 }
 0x86d   :  { %v6235_v38 = vpop.f32.mrf.mxu1  ;;  %6693 = vxpose.xlu2.b32.cont [14/16] (narrow) %v6629_v32, 8 }
 0x86e   :  { %v6535_v51 = vadd.f32 %v7147_v12, %v6318_v21  ;;  %v6236_v26 = vadd.f32 %v17552_v59, %v6235_v38 }
 0x870   :  { %v6599_v58 = vmax.f32 %v6535_v51, 0.0  ;;  %v6502_v57 = vadd.f32 %v7082_v6, %v6236_v26  ;;  %6903 = vmatmul.msk.bf16.gmra.mxu1 %vm3014_vm12, %v20112_v28  ;;  %v7236_v6 = vld [vmem:[%s17839_s0 + $0xd0] sm:$0xff]  }
 0x871   :  { %v7220_v28 = vld [vmem:[%s17839_s0 + $0x50] sm:$0xff]  }
 0x872   :  { %v6566_v45 = vmax.f32 %v6502_v57, 0.0  ;;  %v6663_v15 = vsel %vm22_vm0, %v6599_v58, 0.0  ;;  %v7158_v58 = vunpack.c.l.bf16 %v7236_v6 }
 0x873   :  { %v6320_v5 = vpop.f32.mrf.mxu3  ;;  %6759 = vxpose.xlu1.b32.end [16/16] (narrow) %v6663_v15, 8 }
 0x874   :  { %v6630_v22 = vsel %vm22_vm0, %v6566_v45, 0.0  ;;  %v6321_v25 = vadd.f32 %v17552_v59, %v6320_v5 }
 0x875   :  { %v6237_v56 = vpop.f32.mrf.mxu1  ;;  %6694 = vxpose.xlu2.b32.cont [15/16] (narrow) %v6630_v22, 8 }
 0x876   :  { %v6238_v14 = vadd.f32 %v17552_v59, %v6237_v56  ;;  %v6536_v63 = vadd.f32 %v7150_v17, %v6321_v25 }
 0x878   :  { %v6503_v42 = vadd.f32 %v7083_v23, %v6238_v14  ;;  %v6600_v52 = vmax.f32 %v6536_v63, 0.0  ;;  %v7094_v23 = vunpack.c.l.bf16 %v7220_v28 }
 0x87a   :  { %v6567_v39 = vmax.f32 %v6503_v42, 0.0  ;;  %v6664_v29 = vsel %vm22_vm0, %v6600_v52, 0.0  ;;  %v7159_v42 = vunpack.c.h.bf16 %v7236_v6 }
 0x87b   :  { %v6322_v49 = vpop.f32.mrf.mxu3 }
 0x87c   :  { %v6631_v37 = vsel %vm22_vm0, %v6567_v39, 0.0  ;;  %v6323_v7 = vadd.f32 %v17552_v59, %v6322_v49 }
 0x87d   :  { %v6240_v33 = vpop.f32.mrf.mxu1  ;;  %6695 = vxpose.xlu2.b32.end [16/16] (narrow) %v6631_v37, 8 }
 0x87e   :  { %v6241_v31 = vadd.f32 %v17552_v59, %v6240_v33  ;;  %v6537_v60 = vadd.f32 %v7151_v41, %v6323_v7 }
 0x880   :  { %v6504_v34 = vadd.f32 %v7086_v3, %v6241_v31  ;;  %v6601_v2 = vmax.f32 %v6537_v60, 0.0  ;;  %v7095_v3 = vunpack.c.h.bf16 %v7220_v28  ;;  %v7237_v31 = vld [vmem:[%s17839_s0 + $0xd8] sm:$0xff]  }
 0x881   :  { %v7221_v60 = vld [vmem:[%s17839_s0 + $0x58] sm:$0xff]   ;;  %v7163_v11 = vunpack.c.h.bf16 %v7237_v31 }
 0x882   :  { %v6568_v50 = vmax.f32 %v6504_v34, 0.0  ;;  %v6665_v47 = vsel %vm22_vm0, %v6601_v2, 0.0  ;;  %v7098_v61 = vunpack.c.l.bf16 %v7221_v60 }
 0x883   :  { %v6325_v30 = vpop.f32.mrf.mxu3 }
 0x884   :  { %v6632_v36 = vsel %vm22_vm0, %v6568_v50, 0.0  ;;  %v6326_v4 = vadd.f32 %v17552_v59, %v6325_v30  ;;  %v7162_v50 = vunpack.c.l.bf16 %v7237_v31 }
 0x885   :  { %v6242_v48 = vpop.f32.mrf.mxu1  ;;  %6712 = vxpose.xlu0.b32.start [1/16] (narrow) %v6632_v36, 8  ;;  %6776 = vxpose.xlu2.b32.start [1/16] (narrow) %v6664_v29, 8 }
 0x886   :  { %v6243_v40 = vadd.f32 %v17552_v59, %v6242_v48  ;;  %v6538_v54 = vadd.f32 %v7154_v27, %v6326_v4 }
 0x888   :  { %v6505_v19 = vadd.f32 %v7087_v9, %v6243_v40  ;;  %v6602_v13 = vmax.f32 %v6538_v54, 0.0 }
 0x88a   :  { %v6569_v20 = vmax.f32 %v6505_v19, 0.0  ;;  %v6666_v21 = vsel %vm22_vm0, %v6602_v13, 0.0 }
 0x88b   :  { %v6327_v0 = vpop.f32.mrf.mxu3 }
 0x88c   :  { %v6633_v46 = vsel %vm22_vm0, %v6569_v20, 0.0  ;;  %v6328_v55 = vadd.f32 %v17552_v59, %v6327_v0 }
 0x88d   :  { %v6245_v16 = vpop.f32.mrf.mxu1  ;;  %6713 = vxpose.xlu0.b32.cont [2/16] (narrow) %v6633_v46, 8  ;;  %6777 = vxpose.xlu2.b32.cont [2/16] (narrow) %v6665_v47, 8  ;;  %v7099_v46 = vunpack.c.h.bf16 %v7221_v60 }
 0x88e   :  { %v6246_v53 = vadd.f32 %v17552_v59, %v6245_v16  ;;  %v6539_v12 = vadd.f32 %v7155_v1, %v6328_v55 }
 0x890   :  { %v6506_v35 = vadd.f32 %v7090_v8, %v6246_v53  ;;  %v6603_v51 = vmax.f32 %v6539_v12, 0.0  ;;  %v7238_v53 = vld [vmem:[%s17839_s0 + $0xe0] sm:$0xff]  }
 0x891   :  { %v7222_v12 = vld [vmem:[%s17839_s0 + $0x60] sm:$0xff]   ;;  %v7167_v28 = vunpack.c.h.bf16 %v7238_v53 }
 0x892   :  { %v6570_v62 = vmax.f32 %v6506_v35, 0.0  ;;  %v6667_v43 = vsel %vm22_vm0, %v6603_v51, 0.0  ;;  %v7102_v6 = vunpack.c.l.bf16 %v7222_v12 }
 0x893   :  { %v6330_v10 = vpop.f32.mrf.mxu3 }
 0x894   :  { %v6634_v24 = vsel %vm22_vm0, %v6570_v62, 0.0  ;;  %v6331_v26 = vadd.f32 %v17552_v59, %v6330_v10  ;;  %v7166_v62 = vunpack.c.l.bf16 %v7238_v53 }
 0x895   :  { %v6247_v32 = vpop.f32.mrf.mxu1  ;;  %6714 = vxpose.xlu0.b32.cont [3/16] (narrow) %v6634_v24, 8  ;;  %6778 = vxpose.xlu2.b32.cont [3/16] (narrow) %v6666_v21, 8 }
 0x896   :  { %v6248_v38 = vadd.f32 %v17552_v59, %v6247_v32  ;;  %v6540_v5 = vadd.f32 %v7158_v58, %v6331_v26 }
 0x898   :  { %v6507_v57 = vadd.f32 %v7091_v18, %v6248_v38  ;;  %v6604_v25 = vmax.f32 %v6540_v5, 0.0 }
 0x89a   :  { %v6571_v45 = vmax.f32 %v6507_v57, 0.0  ;;  %v6668_v33 = vsel %vm22_vm0, %v6604_v25, 0.0 }
 0x89b   :  { %v6332_v15 = vpop.f32.mrf.mxu3 }
 0x89c   :  { %v6635_v22 = vsel %vm22_vm0, %v6571_v45, 0.0  ;;  %v6333_v17 = vadd.f32 %v17552_v59, %v6332_v15 }
 0x89d   :  { %v6250_v56 = vpop.f32.mrf.mxu1  ;;  %6715 = vxpose.xlu0.b32.cont [4/16] (narrow) %v6635_v22, 8  ;;  %6779 = vxpose.xlu2.b32.cont [4/16] (narrow) %v6667_v43, 8  ;;  %v7103_v22 = vunpack.c.h.bf16 %v7222_v12 }
 0x89e   :  { %v6251_v14 = vadd.f32 %v17552_v59, %v6250_v56  ;;  %v6541_v63 = vadd.f32 %v7159_v42, %v6333_v17 }
 0x8a0   :  { %v6508_v44 = vadd.f32 %v7094_v23, %v6251_v14  ;;  %v6605_v41 = vmax.f32 %v6541_v63, 0.0  ;;  %v7239_v14 = vld [vmem:[%s17839_s0 + $0xe8] sm:$0xff]  }
 0x8a1   :  { %v7223_v63 = vld [vmem:[%s17839_s0 + $0x68] sm:$0xff]   ;;  %v7171_v60 = vunpack.c.h.bf16 %v7239_v14 }
 0x8a2   :  { %v6572_v39 = vmax.f32 %v6508_v44, 0.0  ;;  %v6669_v40 = vsel %vm22_vm0, %v6605_v41, 0.0  ;;  %v7106_v31 = vunpack.c.l.bf16 %v7223_v63 }
 0x8a3   :  { %v6335_v49 = vpop.f32.mrf.mxu3 }
 0x8a4   :  { %v6636_v37 = vsel %vm22_vm0, %v6572_v39, 0.0  ;;  %v6336_v34 = vadd.f32 %v17552_v59, %v6335_v49  ;;  %v7170_v39 = vunpack.c.l.bf16 %v7239_v14 }
 0x8a5   :  { %v6252_v52 = vpop.f32.mrf.mxu1  ;;  %6716 = vxpose.xlu0.b32.cont [5/16] (narrow) %v6636_v37, 8  ;;  %6780 = vxpose.xlu2.b32.cont [5/16] (narrow) %v6668_v33, 8 }
 0x8a6   :  { %v6253_v7 = vadd.f32 %v17552_v59, %v6252_v52  ;;  %v6542_v29 = vadd.f32 %v7162_v50, %v6336_v34 }
 0x8a8   :  { %v6509_v30 = vadd.f32 %v7095_v3, %v6253_v7  ;;  %v6606_v27 = vmax.f32 %v6542_v29, 0.0 }
 0x8aa   :  { %v6573_v9 = vmax.f32 %v6509_v30, 0.0  ;;  %v6670_v16 = vsel %vm22_vm0, %v6606_v27, 0.0 }
 0x8ab   :  { %v6337_v36 = vpop.f32.mrf.mxu3 }
 0x8ac   :  { %v6637_v48 = vsel %vm22_vm0, %v6573_v9, 0.0  ;;  %v6338_v19 = vadd.f32 %v17552_v59, %v6337_v36 }
 0x8ad   :  { %v6255_v2 = vpop.f32.mrf.mxu1  ;;  %6717 = vxpose.xlu0.b32.cont [6/16] (narrow) %v6637_v48, 8  ;;  %6781 = vxpose.xlu2.b32.cont [6/16] (narrow) %v6669_v40, 8  ;;  %v7107_v48 = vunpack.c.h.bf16 %v7223_v63 }
 0x8ae   :  { %v6256_v4 = vadd.f32 %v17552_v59, %v6255_v2  ;;  %v6543_v8 = vadd.f32 %v7163_v11, %v6338_v19 }
 0x8b0   :  { %v6510_v20 = vadd.f32 %v7098_v61, %v6256_v4  ;;  %v6607_v1 = vmax.f32 %v6543_v8, 0.0  ;;  %v7240_v4 = vld [vmem:[%s17839_s0 + $0xf0] sm:$0xff]  }
 0x8b1   :  { %v7224_v8 = vld [vmem:[%s17839_s0 + $0x70] sm:$0xff]   ;;  %v7175_v12 = vunpack.c.h.bf16 %v7240_v4 }
 0x8b2   :  { %v6574_v0 = vmax.f32 %v6510_v20, 0.0  ;;  %v6671_v38 = vsel %vm22_vm0, %v6607_v1, 0.0  ;;  %v7110_v53 = vunpack.c.l.bf16 %v7224_v8 }
 0x8b3   :  { %v6340_v54 = vpop.f32.mrf.mxu3 }
 0x8b4   :  { %v6638_v47 = vsel %vm22_vm0, %v6574_v0, 0.0  ;;  %v6341_v35 = vadd.f32 %v17552_v59, %v6340_v54  ;;  %v7174_v0 = vunpack.c.l.bf16 %v7240_v4 }
 0x8b5   :  { %v6257_v13 = vpop.f32.mrf.mxu1  ;;  %6718 = vxpose.xlu0.b32.cont [7/16] (narrow) %v6638_v47, 8  ;;  %6782 = vxpose.xlu2.b32.cont [7/16] (narrow) %v6670_v16, 8 }
 0x8b6   :  { %v6258_v55 = vadd.f32 %v17552_v59, %v6257_v13  ;;  %v6544_v21 = vadd.f32 %v7166_v62, %v6341_v35 }
 0x8b8   :  { %v6511_v10 = vadd.f32 %v7099_v46, %v6258_v55  ;;  %v6608_v58 = vmax.f32 %v6544_v21, 0.0 }
 0x8ba   :  { %v6575_v18 = vmax.f32 %v6511_v10, 0.0  ;;  %v6672_v56 = vsel %vm22_vm0, %v6608_v58, 0.0 }
 0x8bb   :  { %v6342_v24 = vpop.f32.mrf.mxu3 }
 0x8bc   :  { %v6639_v32 = vsel %vm22_vm0, %v6575_v18, 0.0  ;;  %v6343_v57 = vadd.f32 %v17552_v59, %v6342_v24 }
 0x8bd   :  { %v6260_v51 = vpop.f32.mrf.mxu1  ;;  %6719 = vxpose.xlu0.b32.cont [8/16] (narrow) %v6639_v32, 8  ;;  %6783 = vxpose.xlu2.b32.cont [8/16] (narrow) %v6671_v38, 8  ;;  %v7111_v32 = vunpack.c.h.bf16 %v7224_v8 }
 0x8be   :  { %v6261_v26 = vadd.f32 %v17552_v59, %v6260_v51  ;;  %v6545_v23 = vadd.f32 %v7167_v28, %v6343_v57 }
 0x8c0   :  { %v6512_v45 = vadd.f32 %v7102_v6, %v6261_v26  ;;  %v6609_v42 = vmax.f32 %v6545_v23, 0.0  ;;  %v7241_v26 = vld [vmem:[%s17839_s0 + $0xf8] sm:$0xff]  }
 0x8c1   :  { %v7225_v23 = vld [vmem:[%s17839_s0 + $0x78] sm:$0xff]   ;;  %v7179_v63 = vunpack.c.h.bf16 %v7241_v26 }
 0x8c2   :  { %v6576_v15 = vmax.f32 %v6512_v45, 0.0  ;;  %v6673_v7 = vsel %vm22_vm0, %v6609_v42, 0.0 }
 0x8c3   :  { %v6345_v5 = vpop.f32.mrf.mxu3 }
 0x8c4   :  { %v6640_v43 = vsel %vm22_vm0, %v6576_v15, 0.0  ;;  %v6346_v44 = vadd.f32 %v17552_v59, %v6345_v5  ;;  %v7178_v15 = vunpack.c.l.bf16 %v7241_v26 }
 0x8c5   :  { %v6262_v25 = vpop.f32.mrf.mxu1  ;;  %6720 = vxpose.xlu0.b32.cont [9/16] (narrow) %v6640_v43, 8  ;;  %6784 = vxpose.xlu2.b32.cont [9/16] (narrow) %v6672_v56, 8  ;;  %v7114_v56 = vunpack.c.l.bf16 %v7225_v23 }
 0x8c6   :  { %v6263_v17 = vadd.f32 %v17552_v59, %v6262_v25  ;;  %v6546_v33 = vadd.f32 %v7170_v39, %v6346_v44 }
 0x8c8   :  { %v6513_v49 = vadd.f32 %v7103_v22, %v6263_v17  ;;  %v6610_v50 = vmax.f32 %v6546_v33, 0.0 }
 0x8ca   :  { %v6577_v3 = vmax.f32 %v6513_v49, 0.0  ;;  %v6674_v2 = vsel %vm22_vm0, %v6610_v50, 0.0 }
 0x8cb   :  { %v6347_v37 = vpop.f32.mrf.mxu3 }
 0x8cc   :  { %v6641_v52 = vsel %vm22_vm0, %v6577_v3, 0.0  ;;  %v6348_v30 = vadd.f32 %v17552_v59, %v6347_v37 }
 0x8cd   :  { %v6265_v41 = vpop.f32.mrf.mxu1  ;;  %6721 = vxpose.xlu0.b32.cont [10/16] (narrow) %v6641_v52, 8  ;;  %6785 = vxpose.xlu2.b32.cont [10/16] (narrow) %v6673_v7, 8 }
 0x8ce   :  { %v6266_v34 = vadd.f32 %v17552_v59, %v6265_v41  ;;  %v6547_v61 = vadd.f32 %v7171_v60, %v6348_v30 }
 0x8d0   :  { %v6514_v9 = vadd.f32 %v7106_v31, %v6266_v34  ;;  %v6611_v11 = vmax.f32 %v6547_v61, 0.0  ;;  %v7115_v31 = vunpack.c.h.bf16 %v7225_v23 }
 0x8d2   :  { %v6578_v36 = vmax.f32 %v6514_v9, 0.0  ;;  %v6675_v55 = vsel %vm22_vm0, %v6611_v11, 0.0 }
 0x8d3   :  { %v6350_v29 = vpop.f32.mrf.mxu3 }
 0x8d4   :  { %v6642_v40 = vsel %vm22_vm0, %v6578_v36, 0.0  ;;  %v6351_v20 = vadd.f32 %v17552_v59, %v6350_v29  ;;  %v6696_v29 = vpop.trf.xlu2 }
 0x8d5   :  { %v6267_v27 = vpop.f32.mrf.mxu1  ;;  %6722 = vxpose.xlu0.b32.cont [11/16] (narrow) %v6642_v40, 8  ;;  %6786 = vxpose.xlu2.b32.cont [11/16] (narrow) %v6674_v2, 8 }
 0x8d6   :  { %v6268_v19 = vadd.f32 %v17552_v59, %v6267_v27  ;;  %v6548_v16 = vadd.f32 %v7174_v0, %v6351_v20 }
 0x8d8   :  { %v6515_v54 = vadd.f32 %v7107_v48, %v6268_v19  ;;  %v6612_v62 = vmax.f32 %v6548_v16, 0.0  ;;  %v6760_v48 = vpop.trf.xlu1 }
 0x8da   :  { %v6579_v46 = vmax.f32 %v6515_v54, 0.0  ;;  %v6676_v51 = vsel %vm22_vm0, %v6612_v62, 0.0 }
 0x8db   :  { %v6352_v47 = vpop.f32.mrf.mxu3 }
 0x8dc   :  { %v6643_v13 = vsel %vm22_vm0, %v6579_v46, 0.0  ;;  %v6353_v10 = vadd.f32 %v17552_v59, %v6352_v47 }
 0x8dd   :  { %v6270_v1 = vpop.f32.mrf.mxu1  ;;  %6723 = vxpose.xlu0.b32.cont [12/16] (narrow) %v6643_v13, 8  ;;  %6787 = vxpose.xlu2.b32.cont [12/16] (narrow) %v6675_v55, 8 }
 0x8de   :  { %v6271_v35 = vadd.f32 %v17552_v59, %v6270_v1  ;;  %v6549_v6 = vadd.f32 %v7175_v12, %v6353_v10 }
 0x8e0   :  { %v6516_v18 = vadd.f32 %v7110_v53, %v6271_v35  ;;  %v6613_v28 = vmax.f32 %v6549_v6, 0.0 }
 0x8e2   :  { %v6580_v24 = vmax.f32 %v6516_v18, 0.0  ;;  %v6677_v25 = vsel %vm22_vm0, %v6613_v28, 0.0 }
 0x8e3   :  { %v6355_v21 = vpop.f32.mrf.mxu3 }
 0x8e4   :  { %v6644_v38 = vsel %vm22_vm0, %v6580_v24, 0.0  ;;  %v6356_v45 = vadd.f32 %v17552_v59, %v6355_v21 }
 0x8e5   :  { %v6272_v58 = vpop.f32.mrf.mxu1  ;;  %6724 = vxpose.xlu0.b32.cont [13/16] (narrow) %v6644_v38, 8  ;;  %6788 = vxpose.xlu2.b32.cont [13/16] (narrow) %v6676_v51, 8 }
 0x8e6   :  { %v6273_v57 = vadd.f32 %v17552_v59, %v6272_v58  ;;  %v6550_v43 = vadd.f32 %v7178_v15, %v6356_v45 }
 0x8e8   :  { %v6517_v5 = vadd.f32 %v7111_v32, %v6273_v57  ;;  %v6614_v39 = vmax.f32 %v6550_v43, 0.0 }
 0x8ea   :  { %v6581_v22 = vmax.f32 %v6517_v5, 0.0  ;;  %v6678_v7 = vsel %vm22_vm0, %v6614_v39, 0.0 }
 0x8eb   :  { %v6357_v17 = vpop.f32.mrf.mxu3 }
 0x8ec   :  { %v6645_v14 = vsel %vm22_vm0, %v6581_v22, 0.0  ;;  %v6358_v49 = vadd.f32 %v17552_v59, %v6357_v17 }
 0x8ed   :  { %v6275_v42 = vpop.f32.mrf.mxu1  ;;  %6725 = vxpose.xlu0.b32.cont [14/16] (narrow) %v6645_v14, 8  ;;  %6789 = vxpose.xlu2.b32.cont [14/16] (narrow) %v6677_v25, 8 }
 0x8ee   :  { %v6276_v44 = vadd.f32 %v17552_v59, %v6275_v42  ;;  %v6551_v33 = vadd.f32 %v7179_v63, %v6358_v49 }
 0x8f0   :  { %v6518_v3 = vadd.f32 %v7114_v56, %v6276_v44  ;;  %v6615_v50 = vmax.f32 %v6551_v33, 0.0 }
 0x8f2   :  { %v6582_v37 = vmax.f32 %v6518_v3, 0.0  ;;  %v6679_v36 = vsel %vm22_vm0, %v6615_v50, 0.0 }
 0x8f4   :  { %v6646_v52 = vsel %vm22_vm0, %v6582_v37, 0.0 }
 0x8f5   :  { %v6277_v41 = vpop.f32.mrf.mxu1  ;;  %6726 = vxpose.xlu0.b32.cont [15/16] (narrow) %v6646_v52, 8  ;;  %6790 = vxpose.xlu2.b32.cont [15/16] (narrow) %v6678_v7, 8 }
 0x8f6   :  { %v6278_v34 = vadd.f32 %v17552_v59, %v6277_v41 }
 0x8f8   :  { %v6519_v30 = vadd.f32 %v7115_v31, %v6278_v34 }
 0x8fa   :  { %v6583_v60 = vmax.f32 %v6519_v30, 0.0 }
 0x8fc   :  { %v6647_v9 = vsel %vm22_vm0, %v6583_v60, 0.0 }
 0x8fd   :  { %6727 = vxpose.xlu0.b32.end [16/16] (narrow) %v6647_v9, 8  ;;  %6791 = vxpose.xlu2.b32.end [16/16] (narrow) %v6679_v36, 8 }
 0x91e   :  { %v6792_v61 = vpop.trf.xlu2 }
 0x91f   :  { %v6817_v40 = vrot.slane %v6792_v61, 4 }
 0x921   :  { %v6818_v2 = vsel %vm6811_vm13, %v6760_v48, %v6817_v40 }
 0x922   :  { %6821 = vst [vmem:[#allocation3 + $0x8] sm:$0xff] %v6818_v2 }
 0x929   :  { %v6728_v59 = vpop.trf.xlu0 }
 0x92a   :  { %v6810_v4 = vrot.slane %v6728_v59, 4 }
 0x92c   :  { %v6812_v27 = vsel %vm6811_vm13, %v6696_v29, %v6810_v4 }
 0x92d   :  { %6814 = vst [vmem:[#allocation3] sm:$0xff] %v6812_v27 }
 0x92e   :  { %6834 = dma.vmem_to_hbm [thread:$0]  %s6827_s21, 256, %s6829_s19, [#allocation4], %s10030_s22, %s10030_s22, %s10022_s6  }
 0x92f   :  { %10018 = dma.done.wait [#allocation4], 256  }
 0x930   :  { %10019 = vsyncadd [#allocation4], 4294967040 }
 0x931   :  { %6839 = vsyncpa [#allocation4], 1 }

</bundles_post_ra>
